<compile_context>
chip_gen: v5e
topology: v5e:2x2
jax: 0.10.0
libtpu: 0.0.40
codegen_flags: <defaults>
</compile_context>

<pallas_src>
import functools

import jax
import jax.numpy as jnp
from jax.experimental import pallas as pl
from jax.experimental.pallas import tpu as pltpu

BN_EPS = 1e-5
FEATURE_IDX = 7          # first VGG-19-BN block (conv,bn,relu,conv,bn,relu,maxpool)
LOSS_CRITERION = "l1"    # 'l1' (nn.L1Loss) or 'l2' (nn.MSELoss), mean-reduced
CIN_PAD = 8              # pad the 3 input channels to 8 (tile-friendly lanes)
VMEM_LIMIT = 48 * 1024 * 1024


def _pick_tile(total, candidates):
    for c in candidates:
        if c <= total and total % c == 0:
            return c
    return total


# ----------------------------------------------------------------------------
# Kernel 1: fused VGG block per image.
#   conv1(3x3) -> BN -> ReLU -> conv2(3x3) -> BN -> ReLU -> MaxPool(2,2)
# Convs are tap-accumulated matmuls; all intermediates live in VMEM scratch.
# ----------------------------------------------------------------------------
def _fused_vgg_block_kernel(x_ref, w1_ref, s1_ref, b1_ref,
                            w2_ref, s2_ref, b2_ref,
                            o_ref, pad1_ref, act_ref, y3_ref):
    # x_ref   : (H, W, Cin)        bf16 raw image (batch dim squeezed)
    # w1_ref  : (9, Cin, Cmid)     bf16 conv1 taps, t = ky*3 + kx
    # w2_ref  : (9, Cmid, Cmid)    bf16 conv2 taps
    # s*/b*   : (1, Cmid)          f32 folded BN affine (conv bias folded in)
    # o_ref   : (H//2, W//2, Cmid) bf16 pooled features
    # pad1_ref: (H+2, W+2, Cin)    bf16 scratch, zero-haloed input
    # act_ref : (H+2, W+2, Cmid)   bf16 scratch, zero-haloed conv1 activation
    # y3_ref  : (H, W, Cmid)       f32 scratch, conv2 pre-pool activation
    H, W, Cin = x_ref.shape
    Cmid = act_ref.shape[-1]
    Hh, Wh = H // 2, W // 2
    Hp, Wp = H + 2, W + 2

    # ---- zero the halos only (interiors are fully overwritten below) ----
    def _zero_halo(ref):
        C = ref.shape[-1]
        ref[0:1, :, :] = jnp.zeros((1, Wp, C), ref.dtype)
        ref[Hp - 1:Hp, :, :] = jnp.zeros((1, Wp, C), ref.dtype)
        ref[:, 0:1, :] = jnp.zeros((Hp, 1, C), ref.dtype)
        ref[:, Wp - 1:Wp, :] = jnp.zeros((Hp, 1, C), ref.dtype)

    _zero_halo(pad1_ref)
    _zero_halo(act_ref)

    # ---- conv1: 9 tap matmuls accumulated in f32, + BN affine + ReLU ----
    pad1_ref[1:H + 1, 1:W + 1, :] = x_ref[...]
    acc1 = jnp.zeros((H * W, Cmid), jnp.float32)
    for t in range(9):
        ky, kx = t // 3, t % 3
        tap = pad1_ref[ky:ky + H, kx:kx + W, :].reshape(H * W, Cin)
        acc1 = acc1 + jnp.dot(tap, w1_ref[t],
                              preferred_element_type=jnp.float32)
    a1 = jnp.maximum(acc1 * s1_ref[...] + b1_ref[...], 0.0)
    # Activation written ONCE straight into the padded scratch interior
    # (bf16; never leaves VMEM).
    act_ref[1:H + 1, 1:W + 1, :] = a1.reshape(H, W, Cmid).astype(act_ref.dtype)

    # ---- conv2: 9 tap matmuls accumulated in f32, + BN affine + ReLU ----
    # NOTE: kx-shifted tap slices are sublane-misaligned (relayout cost);
    #       acceptable at these sizes -- see review item re: pltpu.roll.
    acc2 = jnp.zeros((H * W, Cmid), jnp.float32)
    for t in range(9):
        ky, kx = t // 3, t % 3
        tap = act_ref[ky:ky + H, kx:kx + W, :].reshape(H * W, Cmid)
        acc2 = acc2 + jnp.dot(tap, w2_ref[t],
                              preferred_element_type=jnp.float32)
    y = jnp.maximum(acc2 * s2_ref[...] + b2_ref[...], 0.0)
    y3_ref[...] = y.reshape(H, W, Cmid)

    # ---- fused MaxPool2d(2,2): four strided window loads, elementwise max ----
    p00 = y3_ref[pl.ds(0, Hh, stride=2), pl.ds(0, Wh, stride=2), :]
    p01 = y3_ref[pl.ds(0, Hh, stride=2), pl.ds(1, Wh, stride=2), :]
    p10 = y3_ref[pl.ds(1, Hh, stride=2), pl.ds(0, Wh, stride=2), :]
    p11 = y3_ref[pl.ds(1, Hh, stride=2), pl.ds(1, Wh, stride=2), :]
    pooled = jnp.maximum(jnp.maximum(p00, p01), jnp.maximum(p10, p11))
    o_ref[...] = pooled.astype(o_ref.dtype)


def fused_vgg_block(x_nhwc, w1, s1, b1, w2, s2, b2):
    """x: (B,H,W,Cin) bf16 -> pooled features (B,H//2,W//2,Cmid) bf16."""
    B, H, W, Cin = x_nhwc.shape
    Cmid = w2.shape[-1]
    assert H % 2 == 0 and W % 16 == 0, "even H and tile-friendly W expected"
    Hh, Wh = H // 2, W // 2
    return pl.pallas_call(
        _fused_vgg_block_kernel,
        out_shape=jax.ShapeDtypeStruct((B, Hh, Wh, Cmid), jnp.bfloat16),
        grid_spec=pltpu.PrefetchScalarGridSpec(
            num_scalar_prefetch=0,
            grid=(B,),
            in_specs=[
                pl.BlockSpec((None, H, W, Cin), lambda n: (n, 0, 0, 0)),
                pl.BlockSpec((9, Cin, Cmid), lambda n: (0, 0, 0)),
                pl.BlockSpec((1, Cmid), lambda n: (0, 0)),
                pl.BlockSpec((1, Cmid), lambda n: (0, 0)),
                pl.BlockSpec((9, Cmid, Cmid), lambda n: (0, 0, 0)),
                pl.BlockSpec((1, Cmid), lambda n: (0, 0)),
                pl.BlockSpec((1, Cmid), lambda n: (0, 0)),
            ],
            out_specs=pl.BlockSpec((None, Hh, Wh, Cmid),
                                   lambda n: (n, 0, 0, 0)),
            scratch_shapes=[
                pltpu.VMEM((H + 2, W + 2, Cin), jnp.bfloat16),
                pltpu.VMEM((H + 2, W + 2, Cmid), jnp.bfloat16),
                pltpu.VMEM((H, W, Cmid), jnp.float32),
            ],
        ),
        compiler_params=pltpu.CompilerParams(
            dimension_semantics=("parallel",),
            vmem_limit_bytes=VMEM_LIMIT),
    )(x_nhwc, w1, s1, b1, w2, s2, b2)


# ----------------------------------------------------------------------------
# Kernel 2: tiled mean L1 / L2 between two lane-dense bf16 feature slabs.
# bf16 is upcast IN-KERNEL; partial sums accumulate in an (8, lanes) f32
# scratch (VPU-only adds per step); single cross-lane reduce at finalize.
# ----------------------------------------------------------------------------
def _loss_kernel(a_ref, b_ref, o_ref, acc_ref, *, criterion, inv_count, group):
    @pl.when(pl.program_id(0) == 0)
    def _():
        acc_ref[...] = jnp.zeros_like(acc_ref)

    d = a_ref[...].astype(jnp.float32) - b_ref[...].astype(jnp.float32)
    d = jnp.abs(d) if criterion == "l1" else d * d
    tm, lanes = d.shape
    if group > 1:
        part = d.reshape(tm // group, group, lanes).sum(axis=0)   # VPU adds only
    else:
        part = jnp.sum(d, axis=0, keepdims=True)
    acc_ref[...] = acc_ref[...] + part

    @pl.when(pl.program_id(0) == pl.num_programs(0) - 1)
    def _():
        o_ref[...] = jnp.sum(acc_ref[...], keepdims=True) * inv_count


def feature_loss(a, b, criterion="l1"):
    """Mean L1/L2 between identically shaped bf16 feature tensors -> f32 scalar."""
    assert a.shape == b.shape
    total = a.size
    lane_w = a.shape[-1]
    for lw in (512, 256, 128):                      # lane-dense reshape (free view)
        if total % lw == 0:
            lane_w = lw
            break
    a2 = a.reshape(-1, lane_w)                      # stays bf16 (cast in-kernel)
    b2 = b.reshape(-1, lane_w)
    M = a2.shape[0]
    tm = _pick_tile(M, (2048, 1024, 512, 256, 128, 64, 32, 16, 8))
    group = 8 if tm % 8 == 0 else 1
    out = pl.pallas_call(
        functools.partial(_loss_kernel, criterion=criterion,
                          inv_count=1.0 / float(total), group=group),
        out_shape=jax.ShapeDtypeStruct((1, 1), jnp.float32),
        grid_spec=pltpu.PrefetchScalarGridSpec(
            num_scalar_prefetch=0,
            grid=(M // tm,),
            in_specs=[pl.BlockSpec((tm, lane_w), lambda i: (i, 0)),
                      pl.BlockSpec((tm, lane_w), lambda i: (i, 0))],
            out_specs=pl.BlockSpec((1, 1), lambda i: (0, 0)),
            scratch_shapes=[pltpu.VMEM((group, lane_w), jnp.float32)],
        ),
        compiler_params=pltpu.CompilerParams(
            dimension_semantics=("arbitrary",),
            vmem_limit_bytes=VMEM_LIMIT),
    )(a2, b2)
    return out[0, 0]


# ----------------------------------------------------------------------------
# Parameter setup (deterministic synthetic VGG-19-BN block weights).
# ----------------------------------------------------------------------------
def _fold_bn(gamma, beta, run_mean, run_var, conv_bias):
    scale = gamma / jnp.sqrt(run_var + BN_EPS)
    bias = beta + scale * (conv_bias - run_mean)
    return scale.reshape(1, -1), bias.reshape(1, -1)


def init_params(key):
    ks = jax.random.split(key, 8)
    params = {}
    # conv1: 3 -> 64, conv2: 64 -> 64 (first two convs of vgg19_bn.features)
    for idx, (cin, cout, k0) in enumerate([(3, 64, 0), (64, 64, 4)], start=1):
        w = 0.1 * jax.random.normal(ks[k0], (3, 3, cin, cout), jnp.float32)
        cb = 0.01 * jax.random.normal(ks[k0 + 1], (cout,), jnp.float32)
        gamma = 1.0 + 0.05 * jax.random.normal(ks[k0 + 2], (cout,), jnp.float32)
        beta = 0.01 * jax.random.normal(ks[k0 + 3], (cout,), jnp.float32)
        run_mean = jnp.zeros((cout,), jnp.float32)
        run_var = jnp.ones((cout,), jnp.float32)
        scale, bias = _fold_bn(gamma, beta, run_mean, run_var, cb)
        wt = w.reshape(9, cin, cout)                # tap-major: t = ky*3 + kx
        if cin < CIN_PAD:
            wt = jnp.pad(wt, ((0, 0), (0, CIN_PAD - cin), (0, 0)))  # Cin 3 -> 8
        params[f"w{idx}"] = wt.astype(jnp.bfloat16)
        params[f"s{idx}"] = scale
        params[f"b{idx}"] = bias
    return params


# ----------------------------------------------------------------------------
# Forward pass: PerceptualLoss(fake, real)
# ----------------------------------------------------------------------------
def vgg_features(x_nchw, params):
    x = jnp.transpose(x_nchw, (0, 2, 3, 1))                        # NCHW -> NHWC
    B, H, W, C = x.shape
    x = jnp.pad(x, ((0, 0), (0, 0), (0, 0), (0, CIN_PAD - C)))     # Cin 3 -> 8
    x = x.astype(jnp.bfloat16)
    return fused_vgg_block(x, params["w1"], params["s1"], params["b1"],
                           params["w2"], params["s2"], params["b2"])


def perceptual_loss(fake_nchw, real_nchw, params):
    # torch.no_grad(): inference-only feature extraction, no grads taken here.
    n = fake_nchw.shape[0]
    both = jnp.concatenate([fake_nchw, real_nchw], axis=0)  # one pass over 2N imgs
    feats = vgg_features(both, params)                      # (2N, H/2, W/2, 64) bf16
    return feature_loss(feats[:n], feats[n:], criterion=LOSS_CRITERION)


if __name__ == "__main__":
    key = jax.random.PRNGKey(0)
    k_fake, k_real, k_param = jax.random.split(key, 3)

    # PyTorch-convention NCHW inputs (small shapes): batch=2, 3 channels, 16x16.
    fake = jax.random.normal(k_fake, (2, 3, 16, 16), jnp.float32)
    real = jax.random.normal(k_real, (2, 3, 16, 16), jnp.float32)
    params = init_params(k_param)

    loss = jax.jit(perceptual_loss)(fake, real, params)
    jax.block_until_ready(loss)
    assert loss.shape == () and bool(jnp.isfinite(loss))
    print("KERNEL_OK")
</pallas_src>

<mosaic_0001>
module attributes {stable_mosaic.version = 11 : i64} {
  func.func @_fused_vgg_block_kernel(%arg0: i32, %arg1: memref<1x16x16x8xbf16, #tpu.memory_space<vmem>>, %arg2: memref<9x8x64xbf16, #tpu.memory_space<vmem>>, %arg3: memref<1x64xf32, #tpu.memory_space<vmem>>, %arg4: memref<1x64xf32, #tpu.memory_space<vmem>>, %arg5: memref<9x64x64xbf16, #tpu.memory_space<vmem>>, %arg6: memref<1x64xf32, #tpu.memory_space<vmem>>, %arg7: memref<1x64xf32, #tpu.memory_space<vmem>>, %arg8: memref<1x8x8x64xbf16, #tpu.memory_space<vmem>>, %arg9: memref<18x18x8xbf16, #tpu.memory_space<vmem>>, %arg10: memref<18x18x64xbf16, #tpu.memory_space<vmem>>, %arg11: memref<16x16x64xf32, #tpu.memory_space<vmem>>) attributes {dimension_semantics = [#tpu.dimension_semantics<parallel>], iteration_bounds = array<i64: 4>, scalar_prefetch = 0 : i64, scratch_operands = 3 : i64, tpu.core_type = #tpu.core_type<tc>, window_params = [{transform_indices = @transform_0, window_bounds = array<i64: 1, 16, 16, 8>}, {pipeline_mode = #tpu.pipeline_mode<synchronous>, transform_indices = @transform_1, window_bounds = array<i64: 9, 8, 64>}, {pipeline_mode = #tpu.pipeline_mode<synchronous>, transform_indices = @transform_2, window_bounds = array<i64: 1, 64>}, {pipeline_mode = #tpu.pipeline_mode<synchronous>, transform_indices = @transform_3, window_bounds = array<i64: 1, 64>}, {pipeline_mode = #tpu.pipeline_mode<synchronous>, transform_indices = @transform_4, window_bounds = array<i64: 9, 64, 64>}, {pipeline_mode = #tpu.pipeline_mode<synchronous>, transform_indices = @transform_5, window_bounds = array<i64: 1, 64>}, {pipeline_mode = #tpu.pipeline_mode<synchronous>, transform_indices = @transform_6, window_bounds = array<i64: 1, 64>}, {transform_indices = @transform_7, window_bounds = array<i64: 1, 8, 8, 64>}]} {
    %cst = arith.constant 0.000000e+00 : bf16
    %0 = vector.broadcast %cst : bf16 to vector<1x18x8xbf16>
    %c0 = arith.constant 0 : index
    %c0_0 = arith.constant 0 : index
    %c0_1 = arith.constant 0 : index
    %1 = vector.load %arg9[%c0, %c0_0, %c0_1] : memref<18x18x8xbf16, #tpu.memory_space<vmem>>, vector<1x18x8xbf16>
    tpu.vector_store %arg9[%c0, %c0_0, %c0_1], %0 {strides = array<i32>} : memref<18x18x8xbf16, #tpu.memory_space<vmem>>, vector<1x18x8xbf16>,
    %cst_2 = arith.constant 0.000000e+00 : bf16
    %2 = vector.broadcast %cst_2 : bf16 to vector<1x18x8xbf16>
    %c17 = arith.constant 17 : index
    %c0_3 = arith.constant 0 : index
    %c0_4 = arith.constant 0 : index
    %3 = vector.load %arg9[%c17, %c0_3, %c0_4] : memref<18x18x8xbf16, #tpu.memory_space<vmem>>, vector<1x18x8xbf16>
    tpu.vector_store %arg9[%c17, %c0_3, %c0_4], %2 {strides = array<i32>} : memref<18x18x8xbf16, #tpu.memory_space<vmem>>, vector<1x18x8xbf16>,
    %cst_5 = arith.constant 0.000000e+00 : bf16
    %4 = vector.broadcast %cst_5 : bf16 to vector<18x1x8xbf16>
    %c0_6 = arith.constant 0 : index
    %c0_7 = arith.constant 0 : index
    %c0_8 = arith.constant 0 : index
    %5 = vector.load %arg9[%c0_6, %c0_7, %c0_8] : memref<18x18x8xbf16, #tpu.memory_space<vmem>>, vector<18x1x8xbf16>
    tpu.vector_store %arg9[%c0_6, %c0_7, %c0_8], %4 {strides = array<i32>} : memref<18x18x8xbf16, #tpu.memory_space<vmem>>, vector<18x1x8xbf16>,
    %cst_9 = arith.constant 0.000000e+00 : bf16
    %6 = vector.broadcast %cst_9 : bf16 to vector<18x1x8xbf16>
    %c0_10 = arith.constant 0 : index
    %c17_11 = arith.constant 17 : index
    %c0_12 = arith.constant 0 : index
    %7 = vector.load %arg9[%c0_10, %c17_11, %c0_12] : memref<18x18x8xbf16, #tpu.memory_space<vmem>>, vector<18x1x8xbf16>
    tpu.vector_store %arg9[%c0_10, %c17_11, %c0_12], %6 {strides = array<i32>} : memref<18x18x8xbf16, #tpu.memory_space<vmem>>, vector<18x1x8xbf16>,
    %cst_13 = arith.constant 0.000000e+00 : bf16
    %8 = vector.broadcast %cst_13 : bf16 to vector<1x18x64xbf16>
    %c0_14 = arith.constant 0 : index
    %c0_15 = arith.constant 0 : index
    %c0_16 = arith.constant 0 : index
    %9 = vector.load %arg10[%c0_14, %c0_15, %c0_16] : memref<18x18x64xbf16, #tpu.memory_space<vmem>>, vector<1x18x64xbf16>
    tpu.vector_store %arg10[%c0_14, %c0_15, %c0_16], %8 {strides = array<i32>} : memref<18x18x64xbf16, #tpu.memory_space<vmem>>, vector<1x18x64xbf16>,
    %cst_17 = arith.constant 0.000000e+00 : bf16
    %10 = vector.broadcast %cst_17 : bf16 to vector<1x18x64xbf16>
    %c17_18 = arith.constant 17 : index
    %c0_19 = arith.constant 0 : index
    %c0_20 = arith.constant 0 : index
    %11 = vector.load %arg10[%c17_18, %c0_19, %c0_20] : memref<18x18x64xbf16, #tpu.memory_space<vmem>>, vector<1x18x64xbf16>
    tpu.vector_store %arg10[%c17_18, %c0_19, %c0_20], %10 {strides = array<i32>} : memref<18x18x64xbf16, #tpu.memory_space<vmem>>, vector<1x18x64xbf16>,
    %cst_21 = arith.constant 0.000000e+00 : bf16
    %12 = vector.broadcast %cst_21 : bf16 to vector<18x1x64xbf16>
    %c0_22 = arith.constant 0 : index
    %c0_23 = arith.constant 0 : index
    %c0_24 = arith.constant 0 : index
    %13 = vector.load %arg10[%c0_22, %c0_23, %c0_24] : memref<18x18x64xbf16, #tpu.memory_space<vmem>>, vector<18x1x64xbf16>
    tpu.vector_store %arg10[%c0_22, %c0_23, %c0_24], %12 {strides = array<i32>} : memref<18x18x64xbf16, #tpu.memory_space<vmem>>, vector<18x1x64xbf16>,
    %cst_25 = arith.constant 0.000000e+00 : bf16
    %14 = vector.broadcast %cst_25 : bf16 to vector<18x1x64xbf16>
    %c0_26 = arith.constant 0 : index
    %c17_27 = arith.constant 17 : index
    %c0_28 = arith.constant 0 : index
    %15 = vector.load %arg10[%c0_26, %c17_27, %c0_28] : memref<18x18x64xbf16, #tpu.memory_space<vmem>>, vector<18x1x64xbf16>
    tpu.vector_store %arg10[%c0_26, %c17_27, %c0_28], %14 {strides = array<i32>} : memref<18x18x64xbf16, #tpu.memory_space<vmem>>, vector<18x1x64xbf16>,
    %c0_29 = arith.constant 0 : index
    %c0_30 = arith.constant 0 : index
    %c0_31 = arith.constant 0 : index
    %c0_32 = arith.constant 0 : index
    %16 = vector.load %arg1[%c0_29, %c0_30, %c0_31, %c0_32] : memref<1x16x16x8xbf16, #tpu.memory_space<vmem>>, vector<1x16x16x8xbf16>
    %17 = vector.shape_cast %16 : vector<1x16x16x8xbf16> to vector<16x16x8xbf16>
    %c1 = arith.constant 1 : index
    %c1_33 = arith.constant 1 : index
    %c0_34 = arith.constant 0 : index
    %18 = vector.load %arg9[%c1, %c1_33, %c0_34] : memref<18x18x8xbf16, #tpu.memory_space<vmem>>, vector<16x16x8xbf16>
    tpu.vector_store %arg9[%c1, %c1_33, %c0_34], %17 {strides = array<i32>} : memref<18x18x8xbf16, #tpu.memory_space<vmem>>, vector<16x16x8xbf16>,
    %cst_35 = arith.constant 0.000000e+00 : f32
    %19 = vector.broadcast %cst_35 : f32 to vector<256x64xf32>
    %c0_36 = arith.constant 0 : index
    %c0_37 = arith.constant 0 : index
    %c0_38 = arith.constant 0 : index
    %20 = vector.load %arg9[%c0_36, %c0_37, %c0_38] : memref<18x18x8xbf16, #tpu.memory_space<vmem>>, vector<16x16x8xbf16>
    %21 = vector.shape_cast %20 : vector<16x16x8xbf16> to vector<256x8xbf16>
    %c0_39 = arith.constant 0 : index
    %c0_40 = arith.constant 0 : index
    %c0_41 = arith.constant 0 : index
    %22 = vector.load %arg2[%c0_39, %c0_40, %c0_41] : memref<9x8x64xbf16, #tpu.memory_space<vmem>>, vector<1x8x64xbf16>
    %23 = vector.shape_cast %22 : vector<1x8x64xbf16> to vector<8x64xbf16>
    %cst_42 = arith.constant dense<0.000000e+00> : vector<256x64xf32>
    %24 = tpu.matmul %21, %23, %cst_42 {dimension_numbers = #tpu.dot_dimension_numbers<[1], [0], [0], [1], [0, 0, 1, 1], [], []>} : vector<256x8xbf16>, vector<8x64xbf16>, vector<256x64xf32> -> vector<256x64xf32>
    %25 = arith.addf %19, %24 : vector<256x64xf32>
    %c0_43 = arith.constant 0 : index
    %c1_44 = arith.constant 1 : index
    %c0_45 = arith.constant 0 : index
    %26 = vector.load %arg9[%c0_43, %c1_44, %c0_45] : memref<18x18x8xbf16, #tpu.memory_space<vmem>>, vector<16x16x8xbf16>
    %27 = vector.shape_cast %26 : vector<16x16x8xbf16> to vector<256x8xbf16>
    %c1_46 = arith.constant 1 : index
    %c0_47 = arith.constant 0 : index
    %c0_48 = arith.constant 0 : index
    %28 = vector.load %arg2[%c1_46, %c0_47, %c0_48] : memref<9x8x64xbf16, #tpu.memory_space<vmem>>, vector<1x8x64xbf16>
    %29 = vector.shape_cast %28 : vector<1x8x64xbf16> to vector<8x64xbf16>
    %cst_49 = arith.constant dense<0.000000e+00> : vector<256x64xf32>
    %30 = tpu.matmul %27, %29, %cst_49 {dimension_numbers = #tpu.dot_dimension_numbers<[1], [0], [0], [1], [0, 0, 1, 1], [], []>} : vector<256x8xbf16>, vector<8x64xbf16>, vector<256x64xf32> -> vector<256x64xf32>
    %31 = arith.addf %25, %30 : vector<256x64xf32>
    %c0_50 = arith.constant 0 : index
    %c2 = arith.constant 2 : index
    %c0_51 = arith.constant 0 : index
    %32 = vector.load %arg9[%c0_50, %c2, %c0_51] : memref<18x18x8xbf16, #tpu.memory_space<vmem>>, vector<16x16x8xbf16>
    %33 = vector.shape_cast %32 : vector<16x16x8xbf16> to vector<256x8xbf16>
    %c2_52 = arith.constant 2 : index
    %c0_53 = arith.constant 0 : index
    %c0_54 = arith.constant 0 : index
    %34 = vector.load %arg2[%c2_52, %c0_53, %c0_54] : memref<9x8x64xbf16, #tpu.memory_space<vmem>>, vector<1x8x64xbf16>
    %35 = vector.shape_cast %34 : vector<1x8x64xbf16> to vector<8x64xbf16>
    %cst_55 = arith.constant dense<0.000000e+00> : vector<256x64xf32>
    %36 = tpu.matmul %33, %35, %cst_55 {dimension_numbers = #tpu.dot_dimension_numbers<[1], [0], [0], [1], [0, 0, 1, 1], [], []>} : vector<256x8xbf16>, vector<8x64xbf16>, vector<256x64xf32> -> vector<256x64xf32>
    %37 = arith.addf %31, %36 : vector<256x64xf32>
    %c1_56 = arith.constant 1 : index
    %c0_57 = arith.constant 0 : index
    %c0_58 = arith.constant 0 : index
    %38 = vector.load %arg9[%c1_56, %c0_57, %c0_58] : memref<18x18x8xbf16, #tpu.memory_space<vmem>>, vector<16x16x8xbf16>
    %39 = vector.shape_cast %38 : vector<16x16x8xbf16> to vector<256x8xbf16>
    %c3 = arith.constant 3 : index
    %c0_59 = arith.constant 0 : index
    %c0_60 = arith.constant 0 : index
    %40 = vector.load %arg2[%c3, %c0_59, %c0_60] : memref<9x8x64xbf16, #tpu.memory_space<vmem>>, vector<1x8x64xbf16>
    %41 = vector.shape_cast %40 : vector<1x8x64xbf16> to vector<8x64xbf16>
    %cst_61 = arith.constant dense<0.000000e+00> : vector<256x64xf32>
    %42 = tpu.matmul %39, %41, %cst_61 {dimension_numbers = #tpu.dot_dimension_numbers<[1], [0], [0], [1], [0, 0, 1, 1], [], []>} : vector<256x8xbf16>, vector<8x64xbf16>, vector<256x64xf32> -> vector<256x64xf32>
    %43 = arith.addf %37, %42 : vector<256x64xf32>
    %c1_62 = arith.constant 1 : index
    %c1_63 = arith.constant 1 : index
    %c0_64 = arith.constant 0 : index
    %44 = vector.load %arg9[%c1_62, %c1_63, %c0_64] : memref<18x18x8xbf16, #tpu.memory_space<vmem>>, vector<16x16x8xbf16>
    %45 = vector.shape_cast %44 : vector<16x16x8xbf16> to vector<256x8xbf16>
    %c4 = arith.constant 4 : index
    %c0_65 = arith.constant 0 : index
    %c0_66 = arith.constant 0 : index
    %46 = vector.load %arg2[%c4, %c0_65, %c0_66] : memref<9x8x64xbf16, #tpu.memory_space<vmem>>, vector<1x8x64xbf16>
    %47 = vector.shape_cast %46 : vector<1x8x64xbf16> to vector<8x64xbf16>
    %cst_67 = arith.constant dense<0.000000e+00> : vector<256x64xf32>
    %48 = tpu.matmul %45, %47, %cst_67 {dimension_numbers = #tpu.dot_dimension_numbers<[1], [0], [0], [1], [0, 0, 1, 1], [], []>} : vector<256x8xbf16>, vector<8x64xbf16>, vector<256x64xf32> -> vector<256x64xf32>
    %49 = arith.addf %43, %48 : vector<256x64xf32>
    %c1_68 = arith.constant 1 : index
    %c2_69 = arith.constant 2 : index
    %c0_70 = arith.constant 0 : index
    %50 = vector.load %arg9[%c1_68, %c2_69, %c0_70] : memref<18x18x8xbf16, #tpu.memory_space<vmem>>, vector<16x16x8xbf16>
    %51 = vector.shape_cast %50 : vector<16x16x8xbf16> to vector<256x8xbf16>
    %c5 = arith.constant 5 : index
    %c0_71 = arith.constant 0 : index
    %c0_72 = arith.constant 0 : index
    %52 = vector.load %arg2[%c5, %c0_71, %c0_72] : memref<9x8x64xbf16, #tpu.memory_space<vmem>>, vector<1x8x64xbf16>
    %53 = vector.shape_cast %52 : vector<1x8x64xbf16> to vector<8x64xbf16>
    %cst_73 = arith.constant dense<0.000000e+00> : vector<256x64xf32>
    %54 = tpu.matmul %51, %53, %cst_73 {dimension_numbers = #tpu.dot_dimension_numbers<[1], [0], [0], [1], [0, 0, 1, 1], [], []>} : vector<256x8xbf16>, vector<8x64xbf16>, vector<256x64xf32> -> vector<256x64xf32>
    %55 = arith.addf %49, %54 : vector<256x64xf32>
    %c2_74 = arith.constant 2 : index
    %c0_75 = arith.constant 0 : index
    %c0_76 = arith.constant 0 : index
    %56 = vector.load %arg9[%c2_74, %c0_75, %c0_76] : memref<18x18x8xbf16, #tpu.memory_space<vmem>>, vector<16x16x8xbf16>
    %57 = vector.shape_cast %56 : vector<16x16x8xbf16> to vector<256x8xbf16>
    %c6 = arith.constant 6 : index
    %c0_77 = arith.constant 0 : index
    %c0_78 = arith.constant 0 : index
    %58 = vector.load %arg2[%c6, %c0_77, %c0_78] : memref<9x8x64xbf16, #tpu.memory_space<vmem>>, vector<1x8x64xbf16>
    %59 = vector.shape_cast %58 : vector<1x8x64xbf16> to vector<8x64xbf16>
    %cst_79 = arith.constant dense<0.000000e+00> : vector<256x64xf32>
    %60 = tpu.matmul %57, %59, %cst_79 {dimension_numbers = #tpu.dot_dimension_numbers<[1], [0], [0], [1], [0, 0, 1, 1], [], []>} : vector<256x8xbf16>, vector<8x64xbf16>, vector<256x64xf32> -> vector<256x64xf32>
    %61 = arith.addf %55, %60 : vector<256x64xf32>
    %c2_80 = arith.constant 2 : index
    %c1_81 = arith.constant 1 : index
    %c0_82 = arith.constant 0 : index
    %62 = vector.load %arg9[%c2_80, %c1_81, %c0_82] : memref<18x18x8xbf16, #tpu.memory_space<vmem>>, vector<16x16x8xbf16>
    %63 = vector.shape_cast %62 : vector<16x16x8xbf16> to vector<256x8xbf16>
    %c7 = arith.constant 7 : index
    %c0_83 = arith.constant 0 : index
    %c0_84 = arith.constant 0 : index
    %64 = vector.load %arg2[%c7, %c0_83, %c0_84] : memref<9x8x64xbf16, #tpu.memory_space<vmem>>, vector<1x8x64xbf16>
    %65 = vector.shape_cast %64 : vector<1x8x64xbf16> to vector<8x64xbf16>
    %cst_85 = arith.constant dense<0.000000e+00> : vector<256x64xf32>
    %66 = tpu.matmul %63, %65, %cst_85 {dimension_numbers = #tpu.dot_dimension_numbers<[1], [0], [0], [1], [0, 0, 1, 1], [], []>} : vector<256x8xbf16>, vector<8x64xbf16>, vector<256x64xf32> -> vector<256x64xf32>
    %67 = arith.addf %61, %66 : vector<256x64xf32>
    %c2_86 = arith.constant 2 : index
    %c2_87 = arith.constant 2 : index
    %c0_88 = arith.constant 0 : index
    %68 = vector.load %arg9[%c2_86, %c2_87, %c0_88] : memref<18x18x8xbf16, #tpu.memory_space<vmem>>, vector<16x16x8xbf16>
    %69 = vector.shape_cast %68 : vector<16x16x8xbf16> to vector<256x8xbf16>
    %c8 = arith.constant 8 : index
    %c0_89 = arith.constant 0 : index
    %c0_90 = arith.constant 0 : index
    %70 = vector.load %arg2[%c8, %c0_89, %c0_90] : memref<9x8x64xbf16, #tpu.memory_space<vmem>>, vector<1x8x64xbf16>
    %71 = vector.shape_cast %70 : vector<1x8x64xbf16> to vector<8x64xbf16>
    %cst_91 = arith.constant dense<0.000000e+00> : vector<256x64xf32>
    %72 = tpu.matmul %69, %71, %cst_91 {dimension_numbers = #tpu.dot_dimension_numbers<[1], [0], [0], [1], [0, 0, 1, 1], [], []>} : vector<256x8xbf16>, vector<8x64xbf16>, vector<256x64xf32> -> vector<256x64xf32>
    %73 = arith.addf %67, %72 : vector<256x64xf32>
    %c0_92 = arith.constant 0 : index
    %c0_93 = arith.constant 0 : index
    %74 = vector.load %arg3[%c0_92, %c0_93] : memref<1x64xf32, #tpu.memory_space<vmem>>, vector<1x64xf32>
    %75 = vector.broadcast %74 : vector<1x64xf32> to vector<256x64xf32>
    %76 = arith.mulf %73, %75 : vector<256x64xf32>
    %c0_94 = arith.constant 0 : index
    %c0_95 = arith.constant 0 : index
    %77 = vector.load %arg4[%c0_94, %c0_95] : memref<1x64xf32, #tpu.memory_space<vmem>>, vector<1x64xf32>
    %78 = vector.broadcast %77 : vector<1x64xf32> to vector<256x64xf32>
    %79 = arith.addf %76, %78 : vector<256x64xf32>
    %cst_96 = arith.constant 0.000000e+00 : f32
    %80 = vector.broadcast %cst_96 : f32 to vector<256x64xf32>
    %81 = arith.maximumf %79, %80 : vector<256x64xf32>
    %82 = vector.shape_cast %81 : vector<256x64xf32> to vector<16x16x64xf32>
    %83 = arith.truncf %82 : vector<16x16x64xf32> to vector<16x16x64xbf16>
    %c1_97 = arith.constant 1 : index
    %c1_98 = arith.constant 1 : index
    %c0_99 = arith.constant 0 : index
    %84 = vector.load %arg10[%c1_97, %c1_98, %c0_99] : memref<18x18x64xbf16, #tpu.memory_space<vmem>>, vector<16x16x64xbf16>
    tpu.vector_store %arg10[%c1_97, %c1_98, %c0_99], %83 {strides = array<i32>} : memref<18x18x64xbf16, #tpu.memory_space<vmem>>, vector<16x16x64xbf16>,
    %cst_100 = arith.constant 0.000000e+00 : f32
    %85 = vector.broadcast %cst_100 : f32 to vector<256x64xf32>
    %c0_101 = arith.constant 0 : index
    %c0_102 = arith.constant 0 : index
    %c0_103 = arith.constant 0 : index
    %86 = vector.load %arg10[%c0_101, %c0_102, %c0_103] : memref<18x18x64xbf16, #tpu.memory_space<vmem>>, vector<16x16x64xbf16>
    %87 = vector.shape_cast %86 : vector<16x16x64xbf16> to vector<256x64xbf16>
    %c0_104 = arith.constant 0 : index
    %c0_105 = arith.constant 0 : index
    %c0_106 = arith.constant 0 : index
    %88 = vector.load %arg5[%c0_104, %c0_105, %c0_106] : memref<9x64x64xbf16, #tpu.memory_space<vmem>>, vector<1x64x64xbf16>
    %89 = vector.shape_cast %88 : vector<1x64x64xbf16> to vector<64x64xbf16>
    %cst_107 = arith.constant dense<0.000000e+00> : vector<256x64xf32>
    %90 = tpu.matmul %87, %89, %cst_107 {dimension_numbers = #tpu.dot_dimension_numbers<[1], [0], [0], [1], [0, 0, 1, 1], [], []>} : vector<256x64xbf16>, vector<64x64xbf16>, vector<256x64xf32> -> vector<256x64xf32>
    %91 = arith.addf %85, %90 : vector<256x64xf32>
    %c0_108 = arith.constant 0 : index
    %c1_109 = arith.constant 1 : index
    %c0_110 = arith.constant 0 : index
    %92 = vector.load %arg10[%c0_108, %c1_109, %c0_110] : memref<18x18x64xbf16, #tpu.memory_space<vmem>>, vector<16x16x64xbf16>
    %93 = vector.shape_cast %92 : vector<16x16x64xbf16> to vector<256x64xbf16>
    %c1_111 = arith.constant 1 : index
    %c0_112 = arith.constant 0 : index
    %c0_113 = arith.constant 0 : index
    %94 = vector.load %arg5[%c1_111, %c0_112, %c0_113] : memref<9x64x64xbf16, #tpu.memory_space<vmem>>, vector<1x64x64xbf16>
    %95 = vector.shape_cast %94 : vector<1x64x64xbf16> to vector<64x64xbf16>
    %cst_114 = arith.constant dense<0.000000e+00> : vector<256x64xf32>
    %96 = tpu.matmul %93, %95, %cst_114 {dimension_numbers = #tpu.dot_dimension_numbers<[1], [0], [0], [1], [0, 0, 1, 1], [], []>} : vector<256x64xbf16>, vector<64x64xbf16>, vector<256x64xf32> -> vector<256x64xf32>
    %97 = arith.addf %91, %96 : vector<256x64xf32>
    %c0_115 = arith.constant 0 : index
    %c2_116 = arith.constant 2 : index
    %c0_117 = arith.constant 0 : index
    %98 = vector.load %arg10[%c0_115, %c2_116, %c0_117] : memref<18x18x64xbf16, #tpu.memory_space<vmem>>, vector<16x16x64xbf16>
    %99 = vector.shape_cast %98 : vector<16x16x64xbf16> to vector<256x64xbf16>
    %c2_118 = arith.constant 2 : index
    %c0_119 = arith.constant 0 : index
    %c0_120 = arith.constant 0 : index
    %100 = vector.load %arg5[%c2_118, %c0_119, %c0_120] : memref<9x64x64xbf16, #tpu.memory_space<vmem>>, vector<1x64x64xbf16>
    %101 = vector.shape_cast %100 : vector<1x64x64xbf16> to vector<64x64xbf16>
    %cst_121 = arith.constant dense<0.000000e+00> : vector<256x64xf32>
    %102 = tpu.matmul %99, %101, %cst_121 {dimension_numbers = #tpu.dot_dimension_numbers<[1], [0], [0], [1], [0, 0, 1, 1], [], []>} : vector<256x64xbf16>, vector<64x64xbf16>, vector<256x64xf32> -> vector<256x64xf32>
    %103 = arith.addf %97, %102 : vector<256x64xf32>
    %c1_122 = arith.constant 1 : index
    %c0_123 = arith.constant 0 : index
    %c0_124 = arith.constant 0 : index
    %104 = vector.load %arg10[%c1_122, %c0_123, %c0_124] : memref<18x18x64xbf16, #tpu.memory_space<vmem>>, vector<16x16x64xbf16>
    %105 = vector.shape_cast %104 : vector<16x16x64xbf16> to vector<256x64xbf16>
    %c3_125 = arith.constant 3 : index
    %c0_126 = arith.constant 0 : index
    %c0_127 = arith.constant 0 : index
    %106 = vector.load %arg5[%c3_125, %c0_126, %c0_127] : memref<9x64x64xbf16, #tpu.memory_space<vmem>>, vector<1x64x64xbf16>
    %107 = vector.shape_cast %106 : vector<1x64x64xbf16> to vector<64x64xbf16>
    %cst_128 = arith.constant dense<0.000000e+00> : vector<256x64xf32>
    %108 = tpu.matmul %105, %107, %cst_128 {dimension_numbers = #tpu.dot_dimension_numbers<[1], [0], [0], [1], [0, 0, 1, 1], [], []>} : vector<256x64xbf16>, vector<64x64xbf16>, vector<256x64xf32> -> vector<256x64xf32>
    %109 = arith.addf %103, %108 : vector<256x64xf32>
    %c1_129 = arith.constant 1 : index
    %c1_130 = arith.constant 1 : index
    %c0_131 = arith.constant 0 : index
    %110 = vector.load %arg10[%c1_129, %c1_130, %c0_131] : memref<18x18x64xbf16, #tpu.memory_space<vmem>>, vector<16x16x64xbf16>
    %111 = vector.shape_cast %110 : vector<16x16x64xbf16> to vector<256x64xbf16>
    %c4_132 = arith.constant 4 : index
    %c0_133 = arith.constant 0 : index
    %c0_134 = arith.constant 0 : index
    %112 = vector.load %arg5[%c4_132, %c0_133, %c0_134] : memref<9x64x64xbf16, #tpu.memory_space<vmem>>, vector<1x64x64xbf16>
    %113 = vector.shape_cast %112 : vector<1x64x64xbf16> to vector<64x64xbf16>
    %cst_135 = arith.constant dense<0.000000e+00> : vector<256x64xf32>
    %114 = tpu.matmul %111, %113, %cst_135 {dimension_numbers = #tpu.dot_dimension_numbers<[1], [0], [0], [1], [0, 0, 1, 1], [], []>} : vector<256x64xbf16>, vector<64x64xbf16>, vector<256x64xf32> -> vector<256x64xf32>
    %115 = arith.addf %109, %114 : vector<256x64xf32>
    %c1_136 = arith.constant 1 : index
    %c2_137 = arith.constant 2 : index
    %c0_138 = arith.constant 0 : index
    %116 = vector.load %arg10[%c1_136, %c2_137, %c0_138] : memref<18x18x64xbf16, #tpu.memory_space<vmem>>, vector<16x16x64xbf16>
    %117 = vector.shape_cast %116 : vector<16x16x64xbf16> to vector<256x64xbf16>
    %c5_139 = arith.constant 5 : index
    %c0_140 = arith.constant 0 : index
    %c0_141 = arith.constant 0 : index
    %118 = vector.load %arg5[%c5_139, %c0_140, %c0_141] : memref<9x64x64xbf16, #tpu.memory_space<vmem>>, vector<1x64x64xbf16>
    %119 = vector.shape_cast %118 : vector<1x64x64xbf16> to vector<64x64xbf16>
    %cst_142 = arith.constant dense<0.000000e+00> : vector<256x64xf32>
    %120 = tpu.matmul %117, %119, %cst_142 {dimension_numbers = #tpu.dot_dimension_numbers<[1], [0], [0], [1], [0, 0, 1, 1], [], []>} : vector<256x64xbf16>, vector<64x64xbf16>, vector<256x64xf32> -> vector<256x64xf32>
    %121 = arith.addf %115, %120 : vector<256x64xf32>
    %c2_143 = arith.constant 2 : index
    %c0_144 = arith.constant 0 : index
    %c0_145 = arith.constant 0 : index
    %122 = vector.load %arg10[%c2_143, %c0_144, %c0_145] : memref<18x18x64xbf16, #tpu.memory_space<vmem>>, vector<16x16x64xbf16>
    %123 = vector.shape_cast %122 : vector<16x16x64xbf16> to vector<256x64xbf16>
    %c6_146 = arith.constant 6 : index
    %c0_147 = arith.constant 0 : index
    %c0_148 = arith.constant 0 : index
    %124 = vector.load %arg5[%c6_146, %c0_147, %c0_148] : memref<9x64x64xbf16, #tpu.memory_space<vmem>>, vector<1x64x64xbf16>
    %125 = vector.shape_cast %124 : vector<1x64x64xbf16> to vector<64x64xbf16>
    %cst_149 = arith.constant dense<0.000000e+00> : vector<256x64xf32>
    %126 = tpu.matmul %123, %125, %cst_149 {dimension_numbers = #tpu.dot_dimension_numbers<[1], [0], [0], [1], [0, 0, 1, 1], [], []>} : vector<256x64xbf16>, vector<64x64xbf16>, vector<256x64xf32> -> vector<256x64xf32>
    %127 = arith.addf %121, %126 : vector<256x64xf32>
    %c2_150 = arith.constant 2 : index
    %c1_151 = arith.constant 1 : index
    %c0_152 = arith.constant 0 : index
    %128 = vector.load %arg10[%c2_150, %c1_151, %c0_152] : memref<18x18x64xbf16, #tpu.memory_space<vmem>>, vector<16x16x64xbf16>
    %129 = vector.shape_cast %128 : vector<16x16x64xbf16> to vector<256x64xbf16>
    %c7_153 = arith.constant 7 : index
    %c0_154 = arith.constant 0 : index
    %c0_155 = arith.constant 0 : index
    %130 = vector.load %arg5[%c7_153, %c0_154, %c0_155] : memref<9x64x64xbf16, #tpu.memory_space<vmem>>, vector<1x64x64xbf16>
    %131 = vector.shape_cast %130 : vector<1x64x64xbf16> to vector<64x64xbf16>
    %cst_156 = arith.constant dense<0.000000e+00> : vector<256x64xf32>
    %132 = tpu.matmul %129, %131, %cst_156 {dimension_numbers = #tpu.dot_dimension_numbers<[1], [0], [0], [1], [0, 0, 1, 1], [], []>} : vector<256x64xbf16>, vector<64x64xbf16>, vector<256x64xf32> -> vector<256x64xf32>
    %133 = arith.addf %127, %132 : vector<256x64xf32>
    %c2_157 = arith.constant 2 : index
    %c2_158 = arith.constant 2 : index
    %c0_159 = arith.constant 0 : index
    %134 = vector.load %arg10[%c2_157, %c2_158, %c0_159] : memref<18x18x64xbf16, #tpu.memory_space<vmem>>, vector<16x16x64xbf16>
    %135 = vector.shape_cast %134 : vector<16x16x64xbf16> to vector<256x64xbf16>
    %c8_160 = arith.constant 8 : index
    %c0_161 = arith.constant 0 : index
    %c0_162 = arith.constant 0 : index
    %136 = vector.load %arg5[%c8_160, %c0_161, %c0_162] : memref<9x64x64xbf16, #tpu.memory_space<vmem>>, vector<1x64x64xbf16>
    %137 = vector.shape_cast %136 : vector<1x64x64xbf16> to vector<64x64xbf16>
    %cst_163 = arith.constant dense<0.000000e+00> : vector<256x64xf32>
    %138 = tpu.matmul %135, %137, %cst_163 {dimension_numbers = #tpu.dot_dimension_numbers<[1], [0], [0], [1], [0, 0, 1, 1], [], []>} : vector<256x64xbf16>, vector<64x64xbf16>, vector<256x64xf32> -> vector<256x64xf32>
    %139 = arith.addf %133, %138 : vector<256x64xf32>
    %c0_164 = arith.constant 0 : index
    %c0_165 = arith.constant 0 : index
    %140 = vector.load %arg6[%c0_164, %c0_165] : memref<1x64xf32, #tpu.memory_space<vmem>>, vector<1x64xf32>
    %141 = vector.broadcast %140 : vector<1x64xf32> to vector<256x64xf32>
    %142 = arith.mulf %139, %141 : vector<256x64xf32>
    %c0_166 = arith.constant 0 : index
    %c0_167 = arith.constant 0 : index
    %143 = vector.load %arg7[%c0_166, %c0_167] : memref<1x64xf32, #tpu.memory_space<vmem>>, vector<1x64xf32>
    %144 = vector.broadcast %143 : vector<1x64xf32> to vector<256x64xf32>
    %145 = arith.addf %142, %144 : vector<256x64xf32>
    %cst_168 = arith.constant 0.000000e+00 : f32
    %146 = vector.broadcast %cst_168 : f32 to vector<256x64xf32>
    %147 = arith.maximumf %145, %146 : vector<256x64xf32>
    %148 = vector.shape_cast %147 : vector<256x64xf32> to vector<16x16x64xf32>
    %c0_169 = arith.constant 0 : index
    %c0_170 = arith.constant 0 : index
    %c0_171 = arith.constant 0 : index
    %149 = vector.load %arg11[%c0_169, %c0_170, %c0_171] : memref<16x16x64xf32, #tpu.memory_space<vmem>>, vector<16x16x64xf32>
    tpu.vector_store %arg11[%c0_169, %c0_170, %c0_171], %148 {strides = array<i32>} : memref<16x16x64xf32, #tpu.memory_space<vmem>>, vector<16x16x64xf32>,
    %c0_172 = arith.constant 0 : index
    %c0_173 = arith.constant 0 : index
    %c0_174 = arith.constant 0 : index
    %150 = tpu.strided_load %arg11[%c0_172, %c0_173, %c0_174] {strides = array<i32: 2, 2, 1>} : memref<16x16x64xf32, #tpu.memory_space<vmem>>, vector<8x8x64xf32>
    %c0_175 = arith.constant 0 : index
    %c1_176 = arith.constant 1 : index
    %c0_177 = arith.constant 0 : index
    %151 = tpu.strided_load %arg11[%c0_175, %c1_176, %c0_177] {strides = array<i32: 2, 2, 1>} : memref<16x16x64xf32, #tpu.memory_space<vmem>>, vector<8x8x64xf32>
    %c1_178 = arith.constant 1 : index
    %c0_179 = arith.constant 0 : index
    %c0_180 = arith.constant 0 : index
    %152 = tpu.strided_load %arg11[%c1_178, %c0_179, %c0_180] {strides = array<i32: 2, 2, 1>} : memref<16x16x64xf32, #tpu.memory_space<vmem>>, vector<8x8x64xf32>
    %c1_181 = arith.constant 1 : index
    %c1_182 = arith.constant 1 : index
    %c0_183 = arith.constant 0 : index
    %153 = tpu.strided_load %arg11[%c1_181, %c1_182, %c0_183] {strides = array<i32: 2, 2, 1>} : memref<16x16x64xf32, #tpu.memory_space<vmem>>, vector<8x8x64xf32>
    %154 = arith.maximumf %150, %151 : vector<8x8x64xf32>
    %155 = arith.maximumf %152, %153 : vector<8x8x64xf32>
    %156 = arith.maximumf %154, %155 : vector<8x8x64xf32>
    %157 = arith.truncf %156 : vector<8x8x64xf32> to vector<8x8x64xbf16>
    %c0_184 = arith.constant 0 : index
    %c0_185 = arith.constant 0 : index
    %c0_186 = arith.constant 0 : index
    %c0_187 = arith.constant 0 : index
    %158 = vector.load %arg8[%c0_184, %c0_185, %c0_186, %c0_187] : memref<1x8x8x64xbf16, #tpu.memory_space<vmem>>, vector<1x8x8x64xbf16>
    %159 = vector.shape_cast %158 : vector<1x8x8x64xbf16> to vector<8x8x64xbf16>
    %160 = vector.shape_cast %157 : vector<8x8x64xbf16> to vector<1x8x8x64xbf16>
    tpu.vector_store %arg8[%c0_184, %c0_185, %c0_186, %c0_187], %160 {strides = array<i32>} : memref<1x8x8x64xbf16, #tpu.memory_space<vmem>>, vector<1x8x8x64xbf16>,
    return
  }
  func.func @transform_0(%arg0: i32) -> (i32, i32, i32, i32) {
    %c0_i32 = arith.constant 0 : i32
    %c0_i32_0 = arith.constant 0 : i32
    %c0_i32_1 = arith.constant 0 : i32
    %c0_i32_2 = arith.constant 0 : i32
    return %arg0, %c0_i32, %c0_i32_0, %c0_i32_1 : i32, i32, i32, i32
  }
  func.func @transform_1(%arg0: i32) -> (i32, i32, i32) {
    %c0_i32 = arith.constant 0 : i32
    %c0_i32_0 = arith.constant 0 : i32
    %c0_i32_1 = arith.constant 0 : i32
    %c0_i32_2 = arith.constant 0 : i32
    return %c0_i32, %c0_i32_0, %c0_i32_1 : i32, i32, i32
  }
  func.func @transform_2(%arg0: i32) -> (i32, i32) {
    %c0_i32 = arith.constant 0 : i32
    %c0_i32_0 = arith.constant 0 : i32
    %c0_i32_1 = arith.constant 0 : i32
    return %c0_i32, %c0_i32_0 : i32, i32
  }
  func.func @transform_3(%arg0: i32) -> (i32, i32) {
    %c0_i32 = arith.constant 0 : i32
    %c0_i32_0 = arith.constant 0 : i32
    %c0_i32_1 = arith.constant 0 : i32
    return %c0_i32, %c0_i32_0 : i32, i32
  }
  func.func @transform_4(%arg0: i32) -> (i32, i32, i32) {
    %c0_i32 = arith.constant 0 : i32
    %c0_i32_0 = arith.constant 0 : i32
    %c0_i32_1 = arith.constant 0 : i32
    %c0_i32_2 = arith.constant 0 : i32
    return %c0_i32, %c0_i32_0, %c0_i32_1 : i32, i32, i32
  }
  func.func @transform_5(%arg0: i32) -> (i32, i32) {
    %c0_i32 = arith.constant 0 : i32
    %c0_i32_0 = arith.constant 0 : i32
    %c0_i32_1 = arith.constant 0 : i32
    return %c0_i32, %c0_i32_0 : i32, i32
  }
  func.func @transform_6(%arg0: i32) -> (i32, i32) {
    %c0_i32 = arith.constant 0 : i32
    %c0_i32_0 = arith.constant 0 : i32
    %c0_i32_1 = arith.constant 0 : i32
    return %c0_i32, %c0_i32_0 : i32, i32
  }
  func.func @transform_7(%arg0: i32) -> (i32, i32, i32, i32) {
    %c0_i32 = arith.constant 0 : i32
    %c0_i32_0 = arith.constant 0 : i32
    %c0_i32_1 = arith.constant 0 : i32
    %c0_i32_2 = arith.constant 0 : i32
    return %arg0, %c0_i32, %c0_i32_0, %c0_i32_1 : i32, i32, i32, i32
  }
}

module attributes {stable_mosaic.version = 11 : i64} {
  func.func @_loss_kernel(%arg0: i32, %arg1: memref<16x512xbf16, #tpu.memory_space<vmem>>, %arg2: memref<16x512xbf16, #tpu.memory_space<vmem>>, %arg3: memref<1x1xf32, #tpu.memory_space<vmem>>, %arg4: memref<8x512xf32, #tpu.memory_space<vmem>>) attributes {dimension_semantics = [#tpu.dimension_semantics<arbitrary>], iteration_bounds = array<i64: 1>, scalar_prefetch = 0 : i64, scratch_operands = 1 : i64, tpu.core_type = #tpu.core_type<tc>, window_params = [{transform_indices = @transform_0, window_bounds = array<i64: 16, 512>}, {transform_indices = @transform_1, window_bounds = array<i64: 16, 512>}, {pipeline_mode = #tpu.pipeline_mode<synchronous>, transform_indices = @transform_2, window_bounds = array<i64: 1, 1>}]} {
    %c0_i32 = arith.constant 0 : i32
    %0 = arith.cmpi eq, %arg0, %c0_i32 : i32
    %1 = arith.extui %0 : i1 to i32
    %c0_i32_0 = arith.constant 0 : i32
    %2 = arith.cmpi ne, %1, %c0_i32_0 : i32
    scf.if %2 {
      %cst_10 = arith.constant 0.000000e+00 : f32
      %17 = vector.broadcast %cst_10 : f32 to vector<8x512xf32>
      %c0_11 = arith.constant 0 : index
      %c0_12 = arith.constant 0 : index
      %18 = vector.load %arg4[%c0_11, %c0_12] : memref<8x512xf32, #tpu.memory_space<vmem>>, vector<8x512xf32>
      tpu.vector_store %arg4[%c0_11, %c0_12], %17 {strides = array<i32>} : memref<8x512xf32, #tpu.memory_space<vmem>>, vector<8x512xf32>,
    } else {
    }
    %c0 = arith.constant 0 : index
    %c0_1 = arith.constant 0 : index
    %3 = vector.load %arg1[%c0, %c0_1] : memref<16x512xbf16, #tpu.memory_space<vmem>>, vector<16x512xbf16>
    %4 = arith.extf %3 : vector<16x512xbf16> to vector<16x512xf32>
    %c0_2 = arith.constant 0 : index
    %c0_3 = arith.constant 0 : index
    %5 = vector.load %arg2[%c0_2, %c0_3] : memref<16x512xbf16, #tpu.memory_space<vmem>>, vector<16x512xbf16>
    %6 = arith.extf %5 : vector<16x512xbf16> to vector<16x512xf32>
    %7 = arith.subf %4, %6 : vector<16x512xf32>
    %8 = math.absf %7 : vector<16x512xf32>
    %9 = vector.shape_cast %8 : vector<16x512xf32> to vector<2x8x512xf32>
    %cst = arith.constant dense<0.000000e+00> : vector<8x512xf32>
    %10 = vector.multi_reduction <add>, %9, %cst [0] : vector<2x8x512xf32> to vector<8x512xf32>
    %c0_4 = arith.constant 0 : index
    %c0_5 = arith.constant 0 : index
    %11 = vector.load %arg4[%c0_4, %c0_5] : memref<8x512xf32, #tpu.memory_space<vmem>>, vector<8x512xf32>
    %12 = arith.addf %11, %10 : vector<8x512xf32>
    %c0_6 = arith.constant 0 : index
    %c0_7 = arith.constant 0 : index
    %13 = vector.load %arg4[%c0_6, %c0_7] : memref<8x512xf32, #tpu.memory_space<vmem>>, vector<8x512xf32>
    tpu.vector_store %arg4[%c0_6, %c0_7], %12 {strides = array<i32>} : memref<8x512xf32, #tpu.memory_space<vmem>>, vector<8x512xf32>,
    %c0_i32_8 = arith.constant 0 : i32
    %14 = arith.cmpi eq, %arg0, %c0_i32_8 : i32
    %15 = arith.extui %14 : i1 to i32
    %c0_i32_9 = arith.constant 0 : i32
    %16 = arith.cmpi ne, %15, %c0_i32_9 : i32
    scf.if %16 {
      %c0_10 = arith.constant 0 : index
      %c0_11 = arith.constant 0 : index
      %17 = vector.load %arg4[%c0_10, %c0_11] : memref<8x512xf32, #tpu.memory_space<vmem>>, vector<8x512xf32>
      %18 = vector.shape_cast %17 : vector<8x512xf32> to vector<1x8x512xf32>
      %cst_12 = arith.constant dense<0.000000e+00> : vector<1xf32>
      %19 = vector.multi_reduction <add>, %18, %cst_12 [1, 2] : vector<1x8x512xf32> to vector<1xf32>
      %20 = vector.shape_cast %19 : vector<1xf32> to vector<1x1x1xf32>
      %21 = vector.extract %20[0, 0, 0] : f32 from vector<1x1x1xf32>
      %22 = vector.broadcast %21 : f32 to vector<1x1xf32>
      %cst_13 = arith.constant 1.22070313E-4 : f32
      %23 = vector.broadcast %cst_13 : f32 to vector<1x1xf32>
      %24 = arith.mulf %22, %23 : vector<1x1xf32>
      %c0_14 = arith.constant 0 : index
      %c0_15 = arith.constant 0 : index
      %25 = vector.load %arg3[%c0_14, %c0_15] : memref<1x1xf32, #tpu.memory_space<vmem>>, vector<1x1xf32>
      tpu.vector_store %arg3[%c0_14, %c0_15], %24 {strides = array<i32>} : memref<1x1xf32, #tpu.memory_space<vmem>>, vector<1x1xf32>,
    } else {
    }
    return
  }
  func.func @transform_0(%arg0: i32) -> (i32, i32) {
    %c0_i32 = arith.constant 0 : i32
    %c0_i32_0 = arith.constant 0 : i32
    return %arg0, %c0_i32 : i32, i32
  }
  func.func @transform_1(%arg0: i32) -> (i32, i32) {
    %c0_i32 = arith.constant 0 : i32
    %c0_i32_0 = arith.constant 0 : i32
    return %arg0, %c0_i32 : i32, i32
  }
  func.func @transform_2(%arg0: i32) -> (i32, i32) {
    %c0_i32 = arith.constant 0 : i32
    %c0_i32_0 = arith.constant 0 : i32
    %c0_i32_1 = arith.constant 0 : i32
    return %c0_i32, %c0_i32_0 : i32, i32
  }
}

</mosaic_0001>

<bundles_post_ra>
// kernel: perceptual_loss.3
= control target key start
LH: loop header
LB: loop body
LE: loop exit
PB: predicated region body
PF: predicated region fallthrough
CT: control target
= control target key end

     0   :  { %s187_s0 = inlined_call_operand.vmem [shape: bf16[16,512], index: 0, kind: input, shape index: {}]   ;;  %s188_s1 = inlined_call_operand.vmem [shape: bf16[16,512], index: 1, kind: input, shape index: {}]   ;;  %s189_s2 = inlined_call_operand.hbm [shape: f32[1,1], index: 2, kind: output, shape index: {}]  }
   0x1   :  { %v20_v0 = vld [vmem:[%s187_s0] sm:$0xff]  ;;  %v21_v1 = vld [vmem:[%s187_s0 + $0x8] sm:$0xff]  ;;  %v22_v2 = vld [vmem:[%s187_s0 + $0x10] sm:$0xff] }
   0x2   :  { %v23_v3 = vld [vmem:[%s187_s0 + $0x18] sm:$0xff]  ;;  %v24_v4 = vunpack.c.l.bf16 %v20_v0  ;;  %v25_v5 = vunpack.c.h.bf16 %v20_v0  ;;  %v26_v6 = vunpack.c.l.bf16 %v21_v1  ;;  %v27_v7 = vunpack.c.h.bf16 %v21_v1  ;;  %v32_v8 = vld [vmem:[%s188_s1] sm:$0xff]  ;;  %v33_v9 = vld [vmem:[%s188_s1 + $0x8] sm:$0xff] }
   0x3   :  { %v28_v10 = vunpack.c.l.bf16 %v22_v2  ;;  %v29_v11 = vunpack.c.h.bf16 %v22_v2  ;;  %v30_v12 = vunpack.c.l.bf16 %v23_v3  ;;  %v31_v13 = vunpack.c.h.bf16 %v23_v3  ;;  %v34_v14 = vld [vmem:[%s188_s1 + $0x10] sm:$0xff]  ;;  %v35_v15 = vld [vmem:[%s188_s1 + $0x18] sm:$0xff] }
   0x4   :  { %7 = vsyncpa [#allocation4], 0  ;;  %v36_v16 = vunpack.c.l.bf16 %v32_v8  ;;  %v37_v17 = vunpack.c.h.bf16 %v32_v8  ;;  %v38_v18 = vunpack.c.l.bf16 %v33_v9  ;;  %v39_v19 = vunpack.c.h.bf16 %v33_v9  ;;  %s144_s1 = smov [#allocation3]   ;;  %s106_s27 = sshll.u32 %s189_s2, 4  ;;  %s107_s27 = int_to_ptr.hbm [resolvable:$true] %s106_s27 }
   0x5   :  { %v40_v20 = vunpack.c.l.bf16 %v34_v14  ;;  %v41_v21 = vunpack.c.h.bf16 %v34_v14  ;;  %v42_v22 = vunpack.c.l.bf16 %v35_v15  ;;  %v43_v23 = vunpack.c.h.bf16 %v35_v15  ;;  %s104_s24 = sshll.u32 %s144_s1, 4  ;;  %s105_s24 = int_to_ptr.vmem [resolvable:$true] %s104_s24 }
   0x6   :  { %v44_v24 = vsub.f32 %v24_v4, %v36_v16  ;;  %v45_v25 = vsub.f32 %v25_v5, %v37_v17  ;;  %v46_v26 = vsub.f32 %v26_v6, %v38_v18  ;;  %v47_v27 = vsub.f32 %v27_v7, %v39_v19 }
   0x7   :  { %v48_v28 = vsub.f32 %v28_v10, %v40_v20  ;;  %v49_v29 = vsub.f32 %v29_v11, %v41_v21  ;;  %v50_v30 = vsub.f32 %v30_v12, %v42_v22  ;;  %v51_v31 = vsub.f32 %v31_v13, %v43_v23 }
   0x8   :  { %v52_v32 = vand.u32 2147483647, %v44_v24  ;;  %v53_v33 = vand.u32 2147483647, %v45_v25  ;;  %v54_v34 = vand.u32 2147483647, %v46_v26 }
   0x9   :  { %v55_v35 = vand.u32 2147483647, %v47_v27  ;;  %v56_v36 = vand.u32 2147483647, %v48_v28  ;;  %v57_v37 = vand.u32 2147483647, %v49_v29 }
   0xa   :  { %v58_v38 = vand.u32 2147483647, %v50_v30  ;;  %v59_v39 = vand.u32 2147483647, %v51_v31  ;;  %vm97_vm0 = vcmask 0  }
   0xb   :  { %v60_v40 = vadd.f32 %v56_v36, %v52_v32  ;;  %v61_v41 = vadd.f32 %v57_v37, %v53_v33 }
   0xc   :  { %v62_v42 = vadd.f32 %v58_v38, %v54_v34  ;;  %v63_v43 = vadd.f32 %v59_v39, %v55_v35 }
   0xd   :  { %v83_v44 = vadd.f32 %v61_v41, %v60_v40 }
   0xf   :  { %v84_v45 = vadd.f32 %v83_v44, %v62_v42 }
  0x11   :  { %v85_v46 = vadd.f32 %v84_v45, %v63_v43 }
  0x13   :  { %86 = vadd.xlane.f32.xlu0 %v85_v46 }
  0x86   :  { %v87_v47 = vpop.xlane.xlu0 %86 }
  0x87   :  { %v88_v48 = vrot.slane %v87_v47, 4 }
  0x89   :  { %v89_v49 = vadd.f32 %v88_v48, %v87_v47 }
  0x8b   :  { %v90_v50 = vrot.slane %v89_v49, 2 }
  0x8d   :  { %v91_v51 = vadd.f32 %v90_v50, %v89_v49 }
  0x8f   :  { %v92_v52 = vrot.slane %v91_v51, 1 }
  0x91   :  { %v93_v53 = vadd.f32 %v92_v52, %v91_v51 }
  0x93   :  { %115 = vpush %v93_v53 }
  0xc4   :  { %s116_s28 = spop %115 }
  0xc5   :  { %v95_v54 = vstv %s116_s28 }
  0xc6   :  { %v96_v55 = vmul.f32 0.00012207031, %v95_v54 }
  0xc8   :  { %98 = vst.msk [vmem:[#allocation3] sm:$0x1] %vm97_vm0, %v96_v55 }
  0xc9   :  { %109 = dma.vmem_to_hbm [thread:$0]  %s105_s24, 16, %s107_s27, [#allocation4]  }
  0xca   :  { %142 = dma.done.wait [#allocation4], 16  }
  0xcb   :  { %143 = vsyncadd [#allocation4], 4294967280 }
  0xcc   :  { %114 = vsyncpa [#allocation4], 1 }

// kernel: perceptual_loss.2
= control target key start
LH: loop header
LB: loop body
LE: loop exit
PB: predicated region body
PF: predicated region fallthrough
CT: control target
= control target key end

     0   :  { %s11163_s24 = smov 0   ;;  %s15289_s0 = inlined_call_operand.vmem [shape: bf16[4,16,16,8], index: 0, kind: input, shape index: {}]   ;;  %s15290_s1 = inlined_call_operand.vmem [shape: bf16[9,8,64], index: 1, kind: input, shape index: {}]   ;;  %s15291_s2 = inlined_call_operand.vmem [shape: f32[1,64], index: 2, kind: input, shape index: {}]   ;;  %s15292_s3 = inlined_call_operand.vmem [shape: f32[1,64], index: 3, kind: input, shape index: {}]   ;;  %s15293_s4 = inlined_call_operand.vmem [shape: bf16[9,64,64], index: 4, kind: input, shape index: {}]   ;;  %s15294_s5 = inlined_call_operand.vmem [shape: f32[1,64], index: 5, kind: input, shape index: {}]   ;;  %s15295_s6 = inlined_call_operand.vmem [shape: f32[1,64], index: 6, kind: input, shape index: {}]   ;;  %s15296_s7 = inlined_call_operand.vmem [shape: bf16[4,8,8,64], index: 7, kind: output, shape index: {}]  }
   0x1 LB: > { %s9936_s25 = sadd.s32 4294967295, %s11120_s24   ;;  %p9940_p0 = scmp.ge.s32.totalorder %s11120_s24, 1  ;;  %s11120_s24 = sphi %s11163_s24, %s17_s24  }
   0x2   : > { %p237_p1 = scmp.lt.s32.totalorder %s11120_s24, 5 }
   0x4   : > { %p238_p2 = pnand %p9940_p0, %p237_p1 }
   0x6   : > { %241 = sbr.rel (%p238_p2) target bundleno = 1534 (0x5fe), region = 48 }
   0xb   : > { %v1023_v0 = vld [vmem:[%s15290_s1] sm:$0xf]  ;;  %vm1526_vm0 = vcmask 1043456   ;;  %p269_p3 = scmp.lt.s32.totalorder %s9936_s25, 3  ;;  %vm280_vm1 = vcmask 60416   ;;  %vm283_vm2 = vcmask 57344  }
   0xc   : > { %v1748_v1 = vsel %vm1526_vm0, %v1023_v0, 0  ;;  %vm290_vm3 = vsmask.f32 256  ;;  %v316_v2 = vld [vmem:[#allocation2 + $0x60] sm:$0x1]  ;;  %v15297_v6 = vmov 0  }
   0xd   : > { %11066 = vmatpush.bf16.msra.mxu3 %v1748_v1  ;;  %s15557_s25 = smov (!%p269_p3, %s9936_s25), 3  ;;  %vm11179_vm4 = vmand %vm283_vm2, %vm290_vm3  ;;  %vm346_vm5 = vsmask.f32 7938  ;;  %1757 = vmatpush.bf16.msra.mxu1 %v1748_v1  ;;  %v9945_v5 = vld [vmem:[%s15290_s1 + $0x4] sm:$0xf]  ;;  %v15305_v8 = vmov 0 }
   0xe   : > { %v317_v4 = vsel %vm11179_vm4, 0, %v316_v2  ;;  %281 = vst.msk [vmem:[#allocation2] sm:$0xf] %vm280_vm1, %v15297_v6  ;;  %s10931_s30 = sshll.u32 %s15557_s25, 7  ;;  %v1528_v7 = vsel %vm1526_vm0, %v9945_v5, 0  ;;  %vm11199_vm6 = vmand %vm283_vm2, %vm346_vm5  ;;  %vm1477_vm11 = vcmask 64512  }
   0xf   : > { %318 = vst [vmem:[#allocation2 + $0x60] sm:$0x1] %v317_v4  ;;  %s11195_s10 = scalar_lea.vmem %s15289_s0, %s10931_s30  ;;  %v15306_v8 = vsel %vm11199_vm6, 4294967295, %v15305_v8  ;;  %vm554_vm7 = vsmask.f32 4368  ;;  %1537 = vmatpush.bf16.msra.mxu0 %v1528_v7  ;;  %11065 = vmatpush.bf16.msra.mxu2 %v1528_v7  ;;  %vm11229_vm9 = vmand %vm280_vm1, %vm346_vm5  ;;  %vm1887_vm14 = vcmask 1042432  }
  0x10   : > { %15307 = vst [vmem:[#allocation5_spill] sm:$0xff] %v15306_v8  ;;  %v372_v9 = vld [vmem:[#allocation2 + $0x68] sm:$0x1]  ;;  %v536_v10 = vld [vmem:[%s11195_s10 + $0x38] sm:$0xf]  ;;  %vm11220_vm8 = vmor %vm290_vm3, %vm554_vm7  ;;  %vm1888_vm15 = vcmask 1046532  }
  0x11   : > { %282 = vst.msk [vmem:[#allocation2 + $0x4] sm:$0xf] %vm280_vm1, %v15297_v6  ;;  %v537_v11 = vld [vmem:[%s11195_s10 + $0x3c] sm:$0xf]  ;;  %v676_v12 = vshrl.u32 %v536_v10, 16  ;;  %v679_v13 = vshll.u32 %v536_v10, 16 }
  0x12   : > { %284 = vst.msk [vmem:[#allocation2 + $0x8] sm:$0x1] %vm283_vm2, %v15297_v6  ;;  %v684_v14 = vshrl.u32 %v537_v11, 16  ;;  %v687_v15 = vshll.u32 %v537_v11, 16  ;;  %v373_v16 = vsel %vm11199_vm6, 0, %v372_v9  ;;  %s10932_s8 = sshll.u32 %s15557_s25, 5 }
  0x13   : > { %286 = vst.msk [vmem:[#allocation2 + $0xcc] sm:$0xf] %vm280_vm1, %v15297_v6  ;;  %v10058_v17 = vld [vmem:[%s15290_s1 + $0x8] sm:$0xf]  ;;  %v678_v19 = vrot.slane %v676_v12, 7  ;;  %s15083_s11 = scalar_lea.vmem %s15296_s7, %s10932_s8 }
  0x14   : > { %287 = vst.msk [vmem:[#allocation2 + $0xd0] sm:$0xf] %vm280_vm1, %v15297_v6  ;;  %v686_v20 = vrot.slane %v684_v14, 7  ;;  %v2101_v21 = vsel %vm1526_vm0, %v10058_v17, 0  ;;  %v10075_v24 = vld [vmem:[%s15290_s1 + $0xc] sm:$0xf] }
  0x15   : > { %288 = vst.msk [vmem:[#allocation2 + $0xd4] sm:$0x1] %vm283_vm2, %v15297_v6  ;;  %v292_v23 = vld [vmem:[#allocation2] sm:$0x1]  ;;  %2110 = vmatpush.bf16.msrb.mxu2 %v2101_v21  ;;  %v681_v25 = vor.u32 %v679_v13, %v678_v19  ;;  %v682_v26 = vrot.slane %v678_v19, 4  ;;  %v2387_v33 = vsel %vm1526_vm0, %v10075_v24, 0 }
  0x16   : > { %374 = vst [vmem:[#allocation2 + $0x68] sm:$0x1] %v373_v16  ;;  %v689_v27 = vor.u32 %v687_v15, %v686_v20  ;;  %v928_v28 = vld [vmem:[#allocation2 + $0x60] sm:$0xf]  ;;  %v319_v29 = vld [vmem:[#allocation2 + $0x6c] sm:$0x1]  ;;  %2396 = vmatpush.bf16.msrb.mxu3 %v2387_v33 }
  0x17   : > { %v691_v30 = vrot.slane %v686_v20, 4  ;;  %v293_v31 = vsel %vm11179_vm4, 0, %v292_v23  ;;  %v929_v35 = vsel %vm11229_vm9, %v681_v25, %v928_v28  ;;  %vm1040_vm10 = vsmask.f32 3328  ;;  %v538_v41 = vld [vmem:[%s11195_s10 + $0x40] sm:$0xf] }
  0x18   : > { %v992_v32 = vld [vmem:[#allocation2 + $0x4] sm:$0xf]  ;;  %v690_v34 = vsel %vm11220_vm8, %v682_v26, %v689_v27  ;;  %294 = vst [vmem:[#allocation2] sm:$0x1] %v293_v31  ;;  %v320_v40 = vsel %vm11179_vm4, 0, %v319_v29  ;;  %v693_v45 = vshrl.u32 %v538_v41, 16 }
  0x19   : > { %v348_v36 = vld [vmem:[#allocation2 + $0x8] sm:$0x1]  ;;  %v1053_v37 = vshll.u32 %v992_v32, 16  ;;  %v1057_v38 = vshrl.u32 %v992_v32, 16  ;;  %930 = vst [vmem:[#allocation2 + $0x60] sm:$0xf] %v929_v35 }
  0x1a   : > { %v349_v39 = vsel %vm11199_vm6, 0, %v348_v36  ;;  %931 = vst.msk [vmem:[#allocation2 + $0x64] sm:$0xf] %vm280_vm1, %v690_v34  ;;  %v539_v44 = vld [vmem:[%s11195_s10 + $0x44] sm:$0xf]  ;;  %v696_v46 = vshll.u32 %v538_v41, 16 }
  0x1b   : > { %v11249_v42 = vrot.slane %v1053_v37, 5  ;;  %v1059_v43 = vrot.slane %v1057_v38, 4  ;;  %350 = vst [vmem:[#allocation2 + $0x8] sm:$0x1] %v349_v39  ;;  %v701_v47 = vshrl.u32 %v539_v44, 16  ;;  %v704_v48 = vshll.u32 %v539_v44, 16 }
  0x1c   : > { %321 = vst [vmem:[#allocation2 + $0x6c] sm:$0x1] %v320_v40  ;;  %v10156_v51 = vld [vmem:[%s15290_s1 + $0x10] sm:$0xf]  ;;  %v695_v53 = vrot.slane %v693_v45, 7  ;;  %vm405_vm2 = vcmask 516096  }
  0x1d   : > { %v1060_v49 = vor.u32 %v1059_v43, %v11249_v42  ;;  %v932_v50 = vld [vmem:[#allocation2 + $0x68] sm:$0x1]  ;;  %v11258_v54 = vrot.slane %v701_v47, 7  ;;  %v3041_v55 = vsel %vm1526_vm0, %v10156_v51, 0  ;;  %v295_v56 = vld [vmem:[#allocation2 + $0xc] sm:$0x1]  ;;  %vm12503_vm7 = vmand %vm405_vm2, %vm290_vm3 }
  0x1e   : > { %v933_v52 = vsel %vm11179_vm4, %v691_v30, %v932_v50  ;;  %vm1041_vm12 = vsmask.f32 7440  ;;  %3050 = vmatpush.bf16.msrb.mxu0 %v3041_v55  ;;  %v296_v57 = vsel %vm11179_vm4, 0, %v295_v56  ;;  %v699_v60 = vrot.slane %v695_v53, 4  ;;  %v351_v62 = vld [vmem:[#allocation2 + $0x14] sm:$0x1]  ;;  %vm12545_vm3 = vmand %vm405_vm2, %vm346_vm5 }
  0x1f   : > { %934 = vst [vmem:[#allocation2 + $0x68] sm:$0x1] %v933_v52  ;;  %v991_v58 = vld [vmem:[#allocation2] sm:$0xf]  ;;  %v706_v61 = vor.u32 %v704_v48, %v11258_v54  ;;  %v698_v2 = vor.u32 %v696_v46, %v695_v53  ;;  %v1061_v5 = vrot.slane %v1060_v49, 4  ;;  %v352_v23 = vsel %vm11199_vm6, 0, %v351_v62  ;;  %vm11272_vm13 = vmor %vm1040_vm10, %vm1041_vm12 }
  0x20   : > { %v10933_v59 = vld [vmem:[#allocation2] sm:$0xff]  ;;  %v1044_v63 = vshrl.u32 %v991_v58, 16  ;;  %v1047_v0 = vshll.u32 %v991_v58, 16  ;;  %297 = vst [vmem:[#allocation2 + $0xc] sm:$0x1] %v296_v57  ;;  %v708_v51 = vrot.slane %v11258_v54, 4 }
  0x21   : > { %v1007_v1 = vld [vmem:[#allocation2 + $0x60] sm:$0xf]  ;;  %v1008_v7 = vld [vmem:[#allocation2 + $0x64] sm:$0xf]  ;;  %10026 = vmatmul.msk.bf16.vlgmr.msra.gmra.mxu1 %vm1477_vm11, %v10933_v59  ;;  %v707_v11 = vsel %vm11220_vm8, %v699_v60, %v706_v61  ;;  %353 = vst [vmem:[#allocation2 + $0x14] sm:$0x1] %v352_v23 }
  0x22   : > { %v10941_v4 = vld [vmem:[#allocation2 + $0x60] sm:$0xff]  ;;  %v1236_v9 = vshrl.u32 %v1007_v1, 16  ;;  %v1239_v10 = vshll.u32 %v1007_v1, 16  ;;  %v1024_v12 = vld [vmem:[#allocation2 + $0x8] sm:$0x1]  ;;  %v1046_v13 = vrot.slane %v1044_v63, 4 }
  0x23   : > { %v1049_v14 = vrot.slane %v1047_v0, 5  ;;  %v1245_v15 = vshll.u32 %v1008_v7, 16  ;;  %v1249_v16 = vshrl.u32 %v1008_v7, 16  ;;  %10034 = vmatmul.msk.bf16.vlgmr.msra.gmra.mxu3 %vm1477_vm11, %v10941_v4  ;;  %v1063_v17 = vshll.u32 %v1024_v12, 16  ;;  %v935_v21 = vld [vmem:[#allocation2 + $0x6c] sm:$0xf] }
  0x24   : > { %v1238_v19 = vrot.slane %v1236_v9, 4  ;;  %v1241_v20 = vrot.slane %v1239_v10, 5  ;;  %v936_v28 = vsel %vm11229_vm9, %v698_v2, %v935_v21  ;;  %938 = vst.msk [vmem:[#allocation2 + $0x70] sm:$0xf] %vm280_vm1, %v707_v11  ;;  %v522_v29 = vld [vmem:[%s11195_s10] sm:$0xf] }
  0x25   : > { %v1050_v25 = vor.u32 %v1049_v14, %v1046_v13  ;;  %v1247_v26 = vrot.slane %v1245_v15, 5  ;;  %v1251_v27 = vrot.slane %v1249_v16, 4  ;;  %v1065_v30 = vrot.slane %v1063_v17, 5  ;;  %937 = vst [vmem:[#allocation2 + $0x6c] sm:$0xf] %v936_v28 }
  0x26   : > { %v1032_v31 = vld [vmem:[#allocation2 + $0x68] sm:$0x1]  ;;  %v1242_v32 = vor.u32 %v1241_v20, %v1238_v19  ;;  %v557_v33 = vshrl.u32 %v522_v29, 16  ;;  %v523_v39 = vld [vmem:[%s11195_s10 + $0x4] sm:$0xf]  ;;  %v560_v41 = vshll.u32 %v522_v29, 16 }
  0x27   : > { %v1051_v34 = vrot.slane %v1050_v25, 4  ;;  %v1252_v35 = vor.u32 %v1251_v27, %v1247_v26  ;;  %v1255_v36 = vshll.u32 %v1032_v31, 16  ;;  %v1066_v37 = vsel %vm11272_vm13, %v1061_v5, %v1065_v30  ;;  %v879_v47 = vld [vmem:[#allocation2 + $0xc] sm:$0xf]  ;;  %v375_v48 = vld [vmem:[#allocation2 + $0x74] sm:$0x1] }
  0x28   : > { %v1243_v38 = vrot.slane %v1242_v32, 4  ;;  %v559_v40 = vrot.slane %v557_v33, 7  ;;  %v1430_v44 = vunpack.c.l.b16 %v1066_v37  ;;  %v565_v56 = vshrl.u32 %v523_v39, 16  ;;  %v322_v57 = vld [vmem:[#allocation2 + $0x78] sm:$0x1] }
  0x29   : > { %v1056_v43 = vsel %vm11272_vm13, %v1051_v34, %v11249_v42  ;;  %v1253_v45 = vrot.slane %v1252_v35, 4  ;;  %v1257_v46 = vrot.slane %v1255_v36, 5  ;;  %v568_v42 = vshll.u32 %v523_v39, 16  ;;  %v540_v63 = vld [vmem:[%s11195_s10 + $0x48] sm:$0xf] }
  0x2a   : > { %v1429_v49 = vunpack.c.l.b16 %v1056_v43  ;;  %v1248_v50 = vsel %vm11272_vm13, %v1243_v38, %v1247_v26  ;;  %v562_v52 = vor.u32 %v560_v41, %v559_v40  ;;  %v376_v61 = vsel %vm11199_vm6, 0, %v375_v48  ;;  %v541_v4 = vld [vmem:[%s11195_s10 + $0x4c] sm:$0xf]  ;;  %v883_v7 = vld [vmem:[#allocation2 + $0x14] sm:$0x1] }
  0x2b   : > { %v1258_v53 = vsel %vm11272_vm13, %v1253_v45, %v1257_v46  ;;  %v1445_v55 = vunpack.c.l.b16 %v1248_v50  ;;  %v1010_v62 = vld [vmem:[#allocation2 + $0x70] sm:$0xf]  ;;  %v563_v0 = vrot.slane %v559_v40, 4  ;;  %v567_v1 = vrot.slane %v565_v56, 7  ;;  %377 = vst [vmem:[#allocation2 + $0x74] sm:$0x1] %v376_v61 }
  0x2c   : > { %v1461_v58 = vpack.c.b16 %v1430_v44, %v1429_v49  ;;  %v1446_v59 = vunpack.c.l.b16 %v1258_v53  ;;  %v880_v60 = vsel %vm11229_vm9, %v562_v52, %v879_v47  ;;  %v1009_v2 = vld [vmem:[#allocation2 + $0x6c] sm:$0xf]  ;;  %v298_v11 = vld [vmem:[#allocation2 + $0x18] sm:$0x1]  ;;  %v1269_v14 = vshll.u32 %v1010_v62, 16 }
  0x2d   : > { %881 = vst [vmem:[#allocation2 + $0xc] sm:$0xf] %v880_v60  ;;  %v1260_v9 = vshrl.u32 %v1009_v2, 16  ;;  %v1263_v10 = vshll.u32 %v1009_v2, 16  ;;  %v570_v12 = vor.u32 %v568_v42, %v567_v1  ;;  %v572_v13 = vrot.slane %v567_v1, 4  ;;  %v10942_v17 = vld [vmem:[#allocation2 + $0x6c] sm:$0xff] }
  0x2e   : > { %9946 = vmatmul.msk.bf16.vlgmr.msra.gmra.mxu0 %vm1477_vm11, %v1461_v58  ;;  %v1469_v5 = vpack.c.b16 %v1446_v59, %v1445_v55  ;;  %v1273_v15 = vshrl.u32 %v1010_v62, 16  ;;  %v354_v16 = vld [vmem:[#allocation2 + $0x20] sm:$0x1]  ;;  %v323_v21 = vsel %vm11179_vm4, 0, %v322_v57  ;;  %v710_v23 = vshrl.u32 %v540_v63, 16 }
  0x2f   : > { %v1262_v19 = vrot.slane %v1260_v9, 4  ;;  %v1265_v20 = vrot.slane %v1263_v10, 5  ;;  %v571_v25 = vsel %vm11220_vm8, %v563_v0, %v570_v12  ;;  %v884_v26 = vsel %vm11179_vm4, %v572_v13, %v883_v7  ;;  %324 = vst [vmem:[#allocation2 + $0x78] sm:$0x1] %v323_v21  ;;  %v524_v29 = vld [vmem:[%s11195_s10 + $0x8] sm:$0xf] }
  0x30   : > { %9954 = vmatmul.msk.bf16.vlgmr.msra.gmra.mxu2 %vm1477_vm11, %v1469_v5  ;;  %v11305_v27 = vrot.slane %v1269_v14, 5  ;;  %v1275_v28 = vrot.slane %v1273_v15, 4  ;;  %882 = vst.msk [vmem:[#allocation2 + $0x10] sm:$0xf] %vm280_vm1, %v571_v25  ;;  %v712_v31 = vrot.slane %v710_v23, 7  ;;  %v713_v32 = vshll.u32 %v540_v63, 16 }
  0x31   : > { %v1266_v30 = vor.u32 %v1265_v20, %v1262_v19  ;;  %v718_v33 = vshrl.u32 %v541_v4, 16  ;;  %885 = vst [vmem:[#allocation2 + $0x14] sm:$0x1] %v884_v26  ;;  %v721_v35 = vshll.u32 %v541_v4, 16  ;;  %v299_v36 = vsel %vm11179_vm4, 0, %v298_v11 }
  0x32   : > { %v1276_v34 = vor.u32 %v1275_v28, %v11305_v27  ;;  %v525_v37 = vld [vmem:[%s11195_s10 + $0xc] sm:$0xf]  ;;  %v716_v39 = vrot.slane %v712_v31, 4  ;;  %v355_v41 = vsel %vm11199_vm6, 0, %v354_v16  ;;  %v939_v45 = vld [vmem:[#allocation2 + $0x74] sm:$0x1]  ;;  %v715_v46 = vor.u32 %v713_v32, %v712_v31 }
  0x33   : > { %10035 = vmatmul.msk.bf16.gmra.mxu3 %vm1477_vm11, %v10942_v17  ;;  %v11314_v40 = vrot.slane %v718_v33, 7  ;;  %v574_v47 = vshrl.u32 %v524_v29, 16  ;;  %v940_v48 = vsel %vm11179_vm4, %v708_v51, %v939_v45  ;;  %v1267_v49 = vrot.slane %v1266_v30, 4  ;;  %300 = vst [vmem:[#allocation2 + $0x18] sm:$0x1] %v299_v36 }
  0x34   : > { %v993_v38 = vld [vmem:[#allocation2 + $0xc] sm:$0xf]  ;;  %941 = vst [vmem:[#allocation2 + $0x74] sm:$0x1] %v940_v48  ;;  %v11323_v55 = vrot.slane %v1276_v34, 4  ;;  %v577_v54 = vshll.u32 %v524_v29, 16 }
  0x35   : > { %v1068_v43 = vshrl.u32 %v993_v38, 16  ;;  %v1071_v44 = vshll.u32 %v993_v38, 16  ;;  %v723_v50 = vor.u32 %v721_v35, %v11314_v40  ;;  %v576_v56 = vrot.slane %v574_v47, 7  ;;  %v378_v42 = vld [vmem:[#allocation2 + $0x80] sm:$0x1] }
  0x36   : > { %v325_v57 = vld [vmem:[#allocation2 + $0x84] sm:$0x1]  ;;  %v942_v59 = vld [vmem:[#allocation2 + $0x78] sm:$0xf]  ;;  %356 = vst [vmem:[#allocation2 + $0x20] sm:$0x1] %v355_v41  ;;  %v1272_v19 = vsel %vm11272_vm13, %v1267_v49, %v11305_v27 }
  0x37   : > { %v1070_v52 = vrot.slane %v1068_v43, 4  ;;  %v1073_v53 = vrot.slane %v1071_v44, 5  ;;  %v724_v58 = vsel %vm11220_vm8, %v716_v39, %v723_v50  ;;  %v582_v60 = vshrl.u32 %v525_v37, 16  ;;  %v994_v51 = vld [vmem:[#allocation2 + $0x10] sm:$0xf] }
  0x38   : > { %v10934_v62 = vld [vmem:[#allocation2 + $0xc] sm:$0xff]  ;;  %v943_v63 = vsel %vm11229_vm9, %v715_v46, %v942_v59  ;;  %945 = vst.msk [vmem:[#allocation2 + $0x7c] sm:$0xf] %vm280_vm1, %v724_v58  ;;  %v580_v0 = vrot.slane %v576_v56, 4  ;;  %v1025_v1 = vld [vmem:[#allocation2 + $0x14] sm:$0x1]  ;;  %v579_v5 = vor.u32 %v577_v54, %v576_v56  ;;  %v1447_v41 = vunpack.c.l.b16 %v1272_v19 }
  0x39   : > { %v1074_v61 = vor.u32 %v1073_v53, %v1070_v52  ;;  %v1077_v2 = vshll.u32 %v994_v51, 16  ;;  %v1081_v4 = vshrl.u32 %v994_v51, 16  ;;  %944 = vst [vmem:[#allocation2 + $0x78] sm:$0xf] %v943_v63  ;;  %v1087_v9 = vshll.u32 %v1025_v1, 16  ;;  %10027 = vmatmul.msk.bf16.gmra.mxu1 %vm1477_vm11, %v10934_v62 }
  0x3a   : > { %v584_v10 = vrot.slane %v582_v60, 7  ;;  %v585_v11 = vshll.u32 %v525_v37, 16  ;;  %v542_v12 = vld [vmem:[%s11195_s10 + $0x50] sm:$0xf]  ;;  %v379_v15 = vsel %vm11199_vm6, 0, %v378_v42  ;;  %v326_v16 = vsel %vm11179_vm4, 0, %v325_v57 }
  0x3b   : > { %v1075_v7 = vrot.slane %v1074_v61, 4  ;;  %v1079_v13 = vrot.slane %v1077_v2, 5  ;;  %v1083_v14 = vrot.slane %v1081_v4, 4  ;;  %v1089_v17 = vrot.slane %v1087_v9, 5  ;;  %v886_v23 = vld [vmem:[#allocation2 + $0x18] sm:$0xf] }
  0x3c   : > { %v587_v20 = vor.u32 %v585_v11, %v584_v10  ;;  %v589_v21 = vrot.slane %v584_v10, 4  ;;  %380 = vst [vmem:[#allocation2 + $0x80] sm:$0x1] %v379_v15  ;;  %v1033_v28 = vld [vmem:[#allocation2 + $0x74] sm:$0x1]  ;;  %v887_v29 = vsel %vm11229_vm9, %v579_v5, %v886_v23  ;;  %v727_v30 = vshrl.u32 %v542_v12, 16 }
  0x3d   : > { %v1080_v25 = vsel %vm11272_vm13, %v1075_v7, %v1079_v13  ;;  %v1084_v26 = vor.u32 %v1083_v14, %v1079_v13  ;;  %327 = vst [vmem:[#allocation2 + $0x84] sm:$0x1] %v326_v16  ;;  %v1279_v31 = vshll.u32 %v1033_v28, 16  ;;  %v725_v32 = vrot.slane %v11314_v40, 4  ;;  %v890_v33 = vld [vmem:[#allocation2 + $0x20] sm:$0x1] }
  0x3e   : > { %v588_v27 = vsel %vm11220_vm8, %v580_v0, %v587_v20  ;;  %888 = vst [vmem:[#allocation2 + $0x18] sm:$0xf] %v887_v29  ;;  %v891_v35 = vsel %vm11179_vm4, %v589_v21, %v890_v33  ;;  %v11349_v37 = vrot.slane %v727_v30, 7  ;;  %v1431_v38 = vunpack.c.l.b16 %v1080_v25  ;;  %v543_v52 = vld [vmem:[%s11195_s10 + $0x54] sm:$0xf] }
  0x3f   : > { %v1085_v34 = vrot.slane %v1084_v26, 4  ;;  %889 = vst.msk [vmem:[#allocation2 + $0x1c] sm:$0xf] %vm280_vm1, %v588_v27  ;;  %v1012_v36 = vld [vmem:[#allocation2 + $0x7c] sm:$0xf]  ;;  %v1281_v39 = vrot.slane %v1279_v31, 5 }
  0x40   : > { %v10943_v43 = vld [vmem:[#allocation2 + $0x78] sm:$0xff]  ;;  %892 = vst [vmem:[#allocation2 + $0x20] sm:$0x1] %v891_v35  ;;  %v1293_v47 = vshll.u32 %v1012_v36, 16  ;;  %v1297_v50 = vshrl.u32 %v1012_v36, 16  ;;  %v730_v53 = vshll.u32 %v542_v12, 16 }
  0x41   : > { %v1011_v40 = vld [vmem:[#allocation2 + $0x78] sm:$0xf]  ;;  %v1090_v44 = vsel %vm11272_vm13, %v1085_v34, %v1089_v17  ;;  %v1282_v49 = vsel %vm11272_vm13, %v11323_v55, %v1281_v39  ;;  %v733_v0 = vrot.slane %v11349_v37, 4  ;;  %v735_v1 = vshrl.u32 %v543_v52, 16  ;;  %v301_v11 = vld [vmem:[#allocation2 + $0x24] sm:$0x1] }
  0x42   : > { %v1284_v45 = vshrl.u32 %v1011_v40, 16  ;;  %v1287_v46 = vshll.u32 %v1011_v40, 16  ;;  %v1432_v48 = vunpack.c.l.b16 %v1090_v44  ;;  %v1448_v56 = vunpack.c.l.b16 %v1282_v49  ;;  %v357_v29 = vld [vmem:[#allocation2 + $0x2c] sm:$0x1]  ;;  %v526_v27 = vld [vmem:[%s11195_s10 + $0x10] sm:$0xf] }
  0x43   : > { %10036 = vmatmul.msk.bf16.gmra.mxu3 %vm1477_vm11, %v10943_v43  ;;  %v946_v42 = vld [vmem:[#allocation2 + $0x80] sm:$0x1]  ;;  %v1295_v59 = vrot.slane %v1293_v47, 5  ;;  %v1299_v51 = vrot.slane %v1297_v50, 4  ;;  %v732_v61 = vor.u32 %v730_v53, %v11349_v37  ;;  %v738_v10 = vshll.u32 %v543_v52, 16 }
  0x44   : > { %v1286_v57 = vrot.slane %v1284_v45, 4  ;;  %v1289_v58 = vrot.slane %v1287_v46, 5  ;;  %v1462_v54 = vpack.c.b16 %v1432_v48, %v1431_v38  ;;  %v947_v60 = vsel %vm11179_vm4, %v725_v32, %v946_v42  ;;  %v949_v21 = vld [vmem:[#allocation2 + $0x84] sm:$0xf]  ;;  %v527_v33 = vld [vmem:[%s11195_s10 + $0x14] sm:$0xf] }
  0x45   : > { %v1470_v62 = vpack.c.b16 %v1448_v56, %v1447_v41  ;;  %v995_v63 = vld [vmem:[#allocation2 + $0x18] sm:$0xf]  ;;  %948 = vst [vmem:[#allocation2 + $0x80] sm:$0x1] %v947_v60  ;;  %v1300_v7 = vor.u32 %v1299_v51, %v1295_v59  ;;  %v11364_v16 = vrot.slane %v735_v1, 7  ;;  %v950_v36 = vsel %vm11229_vm9, %v732_v61, %v949_v21 }
  0x46   : > { %v1290_v55 = vor.u32 %v1289_v58, %v1286_v57  ;;  %9947 = vmatmul.msk.bf16.gmra.mxu0 %vm1477_vm11, %v1462_v54  ;;  %v996_v2 = vld [vmem:[#allocation2 + $0x1c] sm:$0xf]  ;;  %v1092_v4 = vshrl.u32 %v995_v63, 16  ;;  %v1095_v5 = vshll.u32 %v995_v63, 16  ;;  %v302_v37 = vsel %vm11179_vm4, 0, %v301_v11 }
  0x47   : > { %v10935_v9 = vld [vmem:[#allocation2 + $0x18] sm:$0xff]  ;;  %9955 = vmatmul.msk.bf16.gmra.mxu2 %vm1477_vm11, %v1470_v62  ;;  %v1026_v12 = vld [vmem:[#allocation2 + $0x20] sm:$0x1]  ;;  %v1101_v13 = vshll.u32 %v996_v2, 16  ;;  %v1105_v14 = vshrl.u32 %v996_v2, 16  ;;  %v740_v28 = vor.u32 %v738_v10, %v11364_v16  ;;  %v1301_v32 = vrot.slane %v1300_v7, 4 }
  0x48   : > { %v1291_v15 = vrot.slane %v1290_v55, 4  ;;  %v1094_v17 = vrot.slane %v1092_v4, 4  ;;  %v1097_v19 = vrot.slane %v1095_v5, 5  ;;  %v1111_v20 = vshll.u32 %v1026_v12, 16  ;;  %v381_v38 = vld [vmem:[#allocation2 + $0x8c] sm:$0x1] }
  0x49   : > { %v1103_v23 = vrot.slane %v1101_v13, 5  ;;  %v1107_v25 = vrot.slane %v1105_v14, 4  ;;  %10028 = vmatmul.msk.bf16.gmra.mxu1 %vm1477_vm11, %v10935_v9  ;;  %v741_v35 = vsel %vm11220_vm8, %v733_v0, %v740_v28  ;;  %v328_v39 = vld [vmem:[#allocation2 + $0x90] sm:$0x1]  ;;  %951 = vst [vmem:[#allocation2 + $0x84] sm:$0xf] %v950_v36 }
  0x4a   : > { %v1296_v26 = vsel %vm11272_vm13, %v1291_v15, %v1295_v59  ;;  %v1098_v30 = vor.u32 %v1097_v19, %v1094_v17  ;;  %v1113_v31 = vrot.slane %v1111_v20, 5  ;;  %v358_v44 = vsel %vm11199_vm6, 0, %v357_v29  ;;  %v544_v45 = vld [vmem:[%s11195_s10 + $0x58] sm:$0xf]  ;;  %952 = vst.msk [vmem:[#allocation2 + $0x88] sm:$0xf] %vm280_vm1, %v741_v35 }
  0x4b   : > { %v1108_v34 = vor.u32 %v1107_v25, %v1103_v23  ;;  %v1449_v40 = vunpack.c.l.b16 %v1296_v26  ;;  %v742_v48 = vrot.slane %v11364_v16, 4  ;;  %v591_v49 = vshrl.u32 %v526_v27, 16  ;;  %303 = vst [vmem:[#allocation2 + $0x24] sm:$0x1] %v302_v37  ;;  %v545_v62 = vld [vmem:[%s11195_s10 + $0x5c] sm:$0xf] }
  0x4c   : > { %v1099_v41 = vrot.slane %v1098_v30, 4  ;;  %v1034_v43 = vld [vmem:[#allocation2 + $0x80] sm:$0x1]  ;;  %v594_v52 = vshll.u32 %v526_v27, 16  ;;  %v599_v53 = vshrl.u32 %v527_v33, 16  ;;  %v602_v56 = vshll.u32 %v527_v33, 16 }
  0x4d   : > { %v1109_v46 = vrot.slane %v1108_v34, 4  ;;  %v1303_v47 = vshll.u32 %v1034_v43, 16  ;;  %359 = vst [vmem:[#allocation2 + $0x2c] sm:$0x1] %v358_v44  ;;  %v593_v59 = vrot.slane %v591_v49, 7  ;;  %v382_v51 = vsel %vm11199_vm6, 0, %v381_v38 }
  0x4e   : > { %v1104_v50 = vsel %vm11272_vm13, %v1099_v41, %v1103_v23  ;;  %v601_v60 = vrot.slane %v599_v53, 7  ;;  %v329_v61 = vsel %vm11179_vm4, 0, %v328_v39  ;;  %383 = vst [vmem:[#allocation2 + $0x8c] sm:$0x1] %v382_v51  ;;  %v744_v1 = vshrl.u32 %v544_v45, 16 }
  0x4f   : > { %v1114_v42 = vsel %vm11272_vm13, %v1109_v46, %v1113_v31  ;;  %v1433_v57 = vunpack.c.l.b16 %v1104_v50  ;;  %v1305_v58 = vrot.slane %v1303_v47, 5  ;;  %v596_v55 = vor.u32 %v594_v52, %v593_v59  ;;  %330 = vst [vmem:[#allocation2 + $0x90] sm:$0x1] %v329_v61  ;;  %v304_v14 = vld [vmem:[#allocation2 + $0x30] sm:$0x1] }
  0x50   : > { %v1434_v54 = vunpack.c.l.b16 %v1114_v42  ;;  %v597_v0 = vrot.slane %v593_v59, 4  ;;  %v604_v5 = vor.u32 %v602_v56, %v601_v60  ;;  %v606_v7 = vrot.slane %v601_v60, 4  ;;  %v1013_v9 = vld [vmem:[#allocation2 + $0x84] sm:$0xf]  ;;  %v360_v25 = vld [vmem:[#allocation2 + $0x38] sm:$0x1] }
  0x51   : > { %v1306_v63 = vsel %vm11272_vm13, %v1301_v32, %v1305_v58  ;;  %v746_v10 = vrot.slane %v744_v1, 7  ;;  %v747_v11 = vshll.u32 %v544_v45, 16  ;;  %v752_v12 = vshrl.u32 %v545_v62, 16  ;;  %v10944_v17 = vld [vmem:[#allocation2 + $0x84] sm:$0xff]  ;;  %v528_v30 = vld [vmem:[%s11195_s10 + $0x18] sm:$0xf] }
  0x52   : > { %v1463_v2 = vpack.c.b16 %v1434_v54, %v1433_v57  ;;  %v1450_v4 = vunpack.c.l.b16 %v1306_v63  ;;  %v755_v13 = vshll.u32 %v545_v62, 16  ;;  %v605_v19 = vsel %vm11220_vm8, %v597_v0, %v604_v5  ;;  %v1014_v20 = vld [vmem:[#allocation2 + $0x88] sm:$0xf]  ;;  %v893_v26 = vld [vmem:[#allocation2 + $0x24] sm:$0xf] }
  0x53   : > { %v1308_v21 = vshrl.u32 %v1013_v9, 16  ;;  %v1311_v23 = vshll.u32 %v1013_v9, 16  ;;  %896 = vst.msk [vmem:[#allocation2 + $0x28] sm:$0xf] %vm280_vm1, %v605_v19  ;;  %v1317_v28 = vshll.u32 %v1014_v20, 16  ;;  %v1321_v29 = vshrl.u32 %v1014_v20, 16  ;;  %10037 = vmatmul.msk.bf16.gmra.mxu3 %vm1477_vm11, %v10944_v17 }
  0x54   : > { %v1471_v15 = vpack.c.b16 %v1450_v4, %v1449_v40  ;;  %v894_v31 = vsel %vm11229_vm9, %v596_v55, %v893_v26  ;;  %v897_v32 = vld [vmem:[#allocation2 + $0x2c] sm:$0x1]  ;;  %v749_v34 = vor.u32 %v747_v11, %v746_v10  ;;  %v529_v35 = vld [vmem:[%s11195_s10 + $0x1c] sm:$0xf]  ;;  %v750_v37 = vrot.slane %v746_v10, 4 }
  0x55   : > { %v1310_v27 = vrot.slane %v1308_v21, 4  ;;  %v1313_v33 = vrot.slane %v1311_v23, 5  ;;  %895 = vst [vmem:[#allocation2 + $0x24] sm:$0xf] %v894_v31  ;;  %v898_v36 = vsel %vm11179_vm4, %v606_v7, %v897_v32  ;;  %v11406_v38 = vrot.slane %v752_v12, 7 }
  0x56   : > { %9948 = vmatmul.msk.bf16.gmra.mxu0 %vm1477_vm11, %v1463_v2  ;;  %v384_v39 = vld [vmem:[#allocation2 + $0x98] sm:$0x1]  ;;  %899 = vst [vmem:[#allocation2 + $0x2c] sm:$0x1] %v898_v36  ;;  %v953_v41 = vld [vmem:[#allocation2 + $0x8c] sm:$0x1] }
  0x57   : > { %9956 = vmatmul.msk.bf16.gmra.mxu2 %vm1477_vm11, %v1471_v15  ;;  %v1314_v43 = vor.u32 %v1313_v33, %v1310_v27  ;;  %v1319_v40 = vrot.slane %v1317_v28, 5  ;;  %v305_v44 = vsel %vm11179_vm4, 0, %v304_v14  ;;  %v954_v45 = vsel %vm11179_vm4, %v742_v48, %v953_v41  ;;  %v956_v49 = vld [vmem:[#allocation2 + $0x90] sm:$0xf]  ;;  %v331_v58 = vld [vmem:[#allocation2 + $0x9c] sm:$0x1] }
  0x58   : > { %v1323_v46 = vrot.slane %v1321_v29, 4  ;;  %v757_v47 = vor.u32 %v755_v13, %v11406_v38  ;;  %306 = vst [vmem:[#allocation2 + $0x30] sm:$0x1] %v305_v44  ;;  %v361_v50 = vsel %vm11199_vm6, 0, %v360_v25  ;;  %v957_v53 = vsel %vm11229_vm9, %v749_v34, %v956_v49 }
  0x59   : > { %955 = vst [vmem:[#allocation2 + $0x8c] sm:$0x1] %v954_v45  ;;  %v1315_v52 = vrot.slane %v1314_v43, 4  ;;  %v608_v56 = vshrl.u32 %v528_v30, 16  ;;  %v611_v42 = vshll.u32 %v528_v30, 16  ;;  %v616_v48 = vshrl.u32 %v529_v35, 16 }
  0x5a   : > { %v758_v16 = vsel %vm11220_vm8, %v750_v37, %v757_v47  ;;  %958 = vst [vmem:[#allocation2 + $0x90] sm:$0xf] %v957_v53  ;;  %v619_v57 = vshll.u32 %v529_v35, 16  ;;  %v998_v59 = vld [vmem:[#allocation2 + $0x28] sm:$0xf]  ;;  %v385_v60 = vsel %vm11199_vm6, 0, %v384_v39  ;;  %v1324_v1 = vor.u32 %v1323_v46, %v1319_v40 }
  0x5b   : > { %959 = vst.msk [vmem:[#allocation2 + $0x94] sm:$0xf] %vm280_vm1, %v758_v16  ;;  %v610_v54 = vrot.slane %v608_v56, 7  ;;  %v1125_v51 = vshll.u32 %v998_v59, 16  ;;  %v1129_v61 = vshrl.u32 %v998_v59, 16  ;;  %v759_v62 = vrot.slane %v11406_v38, 4 }
  0x5c   : > { %362 = vst [vmem:[#allocation2 + $0x38] sm:$0x1] %v361_v50  ;;  %v618_v63 = vrot.slane %v616_v48, 7  ;;  %v997_v55 = vld [vmem:[#allocation2 + $0x24] sm:$0xf]  ;;  %v1320_v0 = vsel %vm11272_vm13, %v1315_v52, %v1319_v40  ;;  %v332_v19 = vsel %vm11179_vm4, 0, %v331_v58 }
  0x5d   : > { %v10936_v2 = vld [vmem:[#allocation2 + $0x24] sm:$0xff]  ;;  %v613_v4 = vor.u32 %v611_v42, %v610_v54  ;;  %v614_v5 = vrot.slane %v610_v54, 4  ;;  %386 = vst [vmem:[#allocation2 + $0x98] sm:$0x1] %v385_v60  ;;  %v1027_v7 = vld [vmem:[#allocation2 + $0x2c] sm:$0x1]  ;;  %v1451_v36 = vunpack.c.l.b16 %v1320_v0 }
  0x5e   : > { %v1116_v9 = vshrl.u32 %v997_v55, 16  ;;  %v1119_v10 = vshll.u32 %v997_v55, 16  ;;  %v1127_v11 = vrot.slane %v1125_v51, 5  ;;  %v1131_v12 = vrot.slane %v1129_v61, 4  ;;  %10029 = vmatmul.msk.bf16.gmra.mxu1 %vm1477_vm11, %v10936_v2  ;;  %333 = vst [vmem:[#allocation2 + $0x9c] sm:$0x1] %v332_v19 }
  0x5f   : > { %v1135_v13 = vshll.u32 %v1027_v7, 16  ;;  %v621_v14 = vor.u32 %v619_v57, %v618_v63  ;;  %v623_v15 = vrot.slane %v618_v63, 4  ;;  %v900_v17 = vld [vmem:[#allocation2 + $0x30] sm:$0xf]  ;;  %v1325_v29 = vrot.slane %v1324_v1, 4 }
  0x60   : > { %v1118_v20 = vrot.slane %v1116_v9, 4  ;;  %v1121_v21 = vrot.slane %v1119_v10, 5  ;;  %v1132_v23 = vor.u32 %v1131_v12, %v1127_v11  ;;  %v1035_v25 = vld [vmem:[#allocation2 + $0x8c] sm:$0x1]  ;;  %v901_v26 = vsel %vm11229_vm9, %v613_v4, %v900_v17  ;;  %v546_v46 = vld [vmem:[%s11195_s10 + $0x60] sm:$0xf] }
  0x61   : > { %v1137_v28 = vrot.slane %v1135_v13, 5  ;;  %v1327_v30 = vshll.u32 %v1035_v25, 16  ;;  %v622_v31 = vsel %vm11220_vm8, %v614_v5, %v621_v14  ;;  %902 = vst [vmem:[#allocation2 + $0x30] sm:$0xf] %v901_v26  ;;  %v1015_v34 = vld [vmem:[#allocation2 + $0x90] sm:$0xf] }
  0x62   : > { %v1122_v32 = vor.u32 %v1121_v21, %v1118_v20  ;;  %v1133_v27 = vrot.slane %v1132_v23, 4  ;;  %v10945_v33 = vld [vmem:[#allocation2 + $0x90] sm:$0xff]  ;;  %903 = vst.msk [vmem:[#allocation2 + $0x34] sm:$0xf] %vm280_vm1, %v622_v31  ;;  %v1332_v39 = vshrl.u32 %v1015_v34, 16  ;;  %v1335_v45 = vshll.u32 %v1015_v34, 16 }
  0x63   : > { %v1329_v35 = vrot.slane %v1327_v30, 5  ;;  %v904_v37 = vld [vmem:[#allocation2 + $0x38] sm:$0x1]  ;;  %v1016_v38 = vld [vmem:[#allocation2 + $0x94] sm:$0xf]  ;;  %10038 = vmatmul.msk.bf16.gmra.mxu3 %vm1477_vm11, %v10945_v33  ;;  %v761_v59 = vshrl.u32 %v546_v46, 16 }
  0x64   : > { %v1123_v41 = vrot.slane %v1122_v32, 4  ;;  %v1138_v43 = vsel %vm11272_vm13, %v1133_v27, %v1137_v28  ;;  %v905_v40 = vsel %vm11179_vm4, %v623_v15, %v904_v37  ;;  %v960_v44 = vld [vmem:[#allocation2 + $0x98] sm:$0x1]  ;;  %v1334_v52 = vrot.slane %v1332_v39, 4  ;;  %v547_v53 = vld [vmem:[%s11195_s10 + $0x64] sm:$0xf] }
  0x65   : > { %v1436_v47 = vunpack.c.l.b16 %v1138_v43  ;;  %v1330_v49 = vsel %vm11272_vm13, %v1325_v29, %v1329_v35  ;;  %906 = vst [vmem:[#allocation2 + $0x38] sm:$0x1] %v905_v40  ;;  %v961_v50 = vsel %vm11179_vm4, %v759_v62, %v960_v44  ;;  %v1337_v16 = vrot.slane %v1335_v45, 5  ;;  %v307_v23 = vld [vmem:[#allocation2 + $0x3c] sm:$0x1] }
  0x66   : > { %v1128_v56 = vsel %vm11272_vm13, %v1123_v41, %v1127_v11  ;;  %v1452_v42 = vunpack.c.l.b16 %v1330_v49  ;;  %962 = vst [vmem:[#allocation2 + $0x98] sm:$0x1] %v961_v50  ;;  %v1341_v48 = vshll.u32 %v1016_v38, 16  ;;  %v1345_v58 = vshrl.u32 %v1016_v38, 16  ;;  %v963_v30 = vld [vmem:[#allocation2 + $0x9c] sm:$0xf] }
  0x67   : > { %v1435_v57 = vunpack.c.l.b16 %v1128_v56  ;;  %v764_v54 = vshll.u32 %v546_v46, 16  ;;  %v1338_v61 = vor.u32 %v1337_v16, %v1334_v52  ;;  %v769_v55 = vshrl.u32 %v547_v53, 16  ;;  %v363_v34 = vld [vmem:[#allocation2 + $0x44] sm:$0x1]  ;;  %v530_v35 = vld [vmem:[%s11195_s10 + $0x20] sm:$0xf] }
  0x68   : > { %v1472_v60 = vpack.c.b16 %v1452_v42, %v1451_v36  ;;  %v999_v51 = vld [vmem:[#allocation2 + $0x30] sm:$0xf]  ;;  %v1343_v63 = vrot.slane %v1341_v48, 5  ;;  %v1347_v4 = vrot.slane %v1345_v58, 4  ;;  %v763_v10 = vrot.slane %v761_v59, 7 }
  0x69   : > { %v1464_v0 = vpack.c.b16 %v1436_v47, %v1435_v57  ;;  %v1000_v62 = vld [vmem:[#allocation2 + $0x34] sm:$0xf]  ;;  %v1140_v1 = vshrl.u32 %v999_v51, 16  ;;  %v1143_v2 = vshll.u32 %v999_v51, 16  ;;  %v1339_v9 = vrot.slane %v1338_v61, 4 }
  0x6a   : > { %9957 = vmatmul.msk.bf16.gmra.mxu2 %vm1477_vm11, %v1472_v60  ;;  %v1149_v5 = vshll.u32 %v1000_v62, 16  ;;  %v1153_v7 = vshrl.u32 %v1000_v62, 16  ;;  %v1348_v13 = vor.u32 %v1347_v4, %v1343_v63  ;;  %v10937_v14 = vld [vmem:[#allocation2 + $0x30] sm:$0xff]  ;;  %v766_v21 = vor.u32 %v764_v54, %v763_v10  ;;  %v531_v41 = vld [vmem:[%s11195_s10 + $0x24] sm:$0xf] }
  0x6b   : > { %9949 = vmatmul.msk.bf16.gmra.mxu0 %vm1477_vm11, %v1464_v0  ;;  %v1142_v11 = vrot.slane %v1140_v1, 4  ;;  %v1145_v12 = vrot.slane %v1143_v2, 5  ;;  %v1344_v20 = vsel %vm11272_vm13, %v1339_v9, %v1343_v63  ;;  %v11452_v29 = vrot.slane %v769_v55, 7  ;;  %v387_v43 = vld [vmem:[#allocation2 + $0xa4] sm:$0x1] }
  0x6c   : > { %v1028_v15 = vld [vmem:[#allocation2 + $0x38] sm:$0x1]  ;;  %v1151_v17 = vrot.slane %v1149_v5, 5  ;;  %v1155_v19 = vrot.slane %v1153_v7, 4  ;;  %v1349_v32 = vrot.slane %v1348_v13, 4  ;;  %v11454_v33 = vunpack.c.l.b16 %v1344_v20 }
  0x6d   : > { %v1146_v25 = vor.u32 %v1145_v12, %v1142_v11  ;;  %v1159_v26 = vshll.u32 %v1028_v15, 16  ;;  %v1036_v28 = vld [vmem:[#allocation2 + $0x98] sm:$0x1]  ;;  %v767_v38 = vrot.slane %v763_v10, 4  ;;  %v772_v39 = vshll.u32 %v547_v53, 16 }
  0x6e   : > { %v1156_v31 = vor.u32 %v1155_v19, %v1151_v17  ;;  %v1351_v27 = vshll.u32 %v1036_v28, 16  ;;  %10030 = vmatmul.msk.bf16.gmra.mxu1 %vm1477_vm11, %v10937_v14  ;;  %v776_v45 = vrot.slane %v11452_v29, 4  ;;  %v964_v46 = vsel %vm11229_vm9, %v766_v21, %v963_v30  ;;  %v334_v47 = vld [vmem:[#allocation2 + $0xa8] sm:$0x1]  ;;  %v549_v58 = vld [vmem:[%s11195_s10 + $0x6c] sm:$0xf] }
  0x6f   : > { %v1147_v36 = vrot.slane %v1146_v25, 4  ;;  %v1161_v37 = vrot.slane %v1159_v26, 5  ;;  %v774_v50 = vor.u32 %v772_v39, %v11452_v29  ;;  %965 = vst [vmem:[#allocation2 + $0x9c] sm:$0xf] %v964_v46  ;;  %v308_v52 = vsel %vm11179_vm4, 0, %v307_v23 }
  0x70   : > { %v1157_v40 = vrot.slane %v1156_v31, 4  ;;  %v1353_v44 = vrot.slane %v1351_v27, 5  ;;  %v364_v53 = vsel %vm11199_vm6, 0, %v363_v34  ;;  %v548_v56 = vld [vmem:[%s11195_s10 + $0x68] sm:$0xf]  ;;  %v625_v57 = vshrl.u32 %v530_v35, 16 }
  0x71   : > { %v1152_v49 = vsel %vm11272_vm13, %v1147_v36, %v1151_v17  ;;  %309 = vst [vmem:[#allocation2 + $0x3c] sm:$0x1] %v308_v52  ;;  %v775_v60 = vsel %vm11220_vm8, %v767_v38, %v774_v50  ;;  %v628_v51 = vshll.u32 %v530_v35, 16  ;;  %v310_v61 = vld [vmem:[#allocation2 + $0x48] sm:$0x1]  ;;  %v633_v55 = vshrl.u32 %v531_v41, 16 }
  0x72   : > { %v1162_v42 = vsel %vm11272_vm13, %v1157_v40, %v1161_v37  ;;  %v1437_v16 = vunpack.c.l.b16 %v1152_v49  ;;  %v1354_v48 = vsel %vm11272_vm13, %v1349_v32, %v1353_v44  ;;  %365 = vst [vmem:[#allocation2 + $0x44] sm:$0x1] %v364_v53  ;;  %v627_v63 = vrot.slane %v625_v57, 7  ;;  %v366_v7 = vld [vmem:[#allocation2 + $0x50] sm:$0x1] }
  0x73   : > { %v1438_v59 = vunpack.c.l.b16 %v1162_v42  ;;  %v1454_v54 = vunpack.c.l.b16 %v1354_v48  ;;  %966 = vst.msk [vmem:[#allocation2 + $0xa0] sm:$0xf] %vm280_vm1, %v775_v60  ;;  %v636_v0 = vshll.u32 %v531_v41, 16  ;;  %v388_v62 = vsel %vm11199_vm6, 0, %v387_v43  ;;  %v532_v19 = vld [vmem:[%s11195_s10 + $0x28] sm:$0xf] }
  0x74   : > { %389 = vst [vmem:[#allocation2 + $0xa4] sm:$0x1] %v388_v62  ;;  %v335_v4 = vsel %vm11179_vm4, 0, %v334_v47  ;;  %v778_v5 = vshrl.u32 %v548_v56, 16  ;;  %v630_v9 = vor.u32 %v628_v51, %v627_v63  ;;  %v631_v10 = vrot.slane %v627_v63, 4 }
  0x75   : > { %v1465_v1 = vpack.c.b16 %v1438_v59, %v1437_v16  ;;  %v1473_v2 = vpack.c.b16 %v1454_v54, %v11454_v33  ;;  %v635_v11 = vrot.slane %v633_v55, 7  ;;  %336 = vst [vmem:[#allocation2 + $0xa8] sm:$0x1] %v335_v4  ;;  %v781_v12 = vshll.u32 %v548_v56, 16  ;;  %v533_v36 = vld [vmem:[%s11195_s10 + $0x2c] sm:$0xf] }
  0x76   : > { %v780_v13 = vrot.slane %v778_v5, 7  ;;  %v786_v14 = vshrl.u32 %v549_v58, 16  ;;  %v789_v15 = vshll.u32 %v549_v58, 16  ;;  %v311_v17 = vsel %vm11179_vm4, 0, %v310_v61  ;;  %v1017_v23 = vld [vmem:[#allocation2 + $0x9c] sm:$0xf] }
  0x77   : > { %v638_v20 = vor.u32 %v636_v0, %v635_v11  ;;  %v640_v21 = vrot.slane %v635_v11, 4  ;;  %312 = vst [vmem:[#allocation2 + $0x48] sm:$0x1] %v311_v17  ;;  %v367_v25 = vsel %vm11199_vm6, 0, %v366_v7  ;;  %v1356_v28 = vshrl.u32 %v1017_v23, 16 }
  0x78   : > { %v907_v26 = vld [vmem:[#allocation2 + $0x3c] sm:$0xf]  ;;  %v1359_v30 = vshll.u32 %v1017_v23, 16  ;;  %v783_v31 = vor.u32 %v781_v12, %v780_v13  ;;  %v784_v32 = vrot.slane %v780_v13, 4  ;;  %v11493_v35 = vrot.slane %v786_v14, 7 }
  0x79   : > { %v639_v27 = vsel %vm11220_vm8, %v631_v10, %v638_v20  ;;  %v908_v33 = vsel %vm11229_vm9, %v630_v9, %v907_v26  ;;  %v911_v34 = vld [vmem:[#allocation2 + $0x44] sm:$0x1]  ;;  %368 = vst [vmem:[#allocation2 + $0x50] sm:$0x1] %v367_v25  ;;  %v642_v37 = vshrl.u32 %v532_v19, 16  ;;  %v1358_v43 = vrot.slane %v1356_v28, 4 }
  0x7a   : > { %9958 = vmatmul.msk.bf16.gmra.mxu2 %vm1477_vm11, %v1473_v2  ;;  %v10946_v38 = vld [vmem:[#allocation2 + $0x9c] sm:$0xff]  ;;  %909 = vst [vmem:[#allocation2 + $0x3c] sm:$0xf] %v908_v33  ;;  %v912_v39 = vsel %vm11179_vm4, %v640_v21, %v911_v34  ;;  %v1361_v44 = vrot.slane %v1359_v30, 5  ;;  %v791_v47 = vor.u32 %v789_v15, %v11493_v35  ;;  %v390_v53 = vld [vmem:[#allocation2 + $0xb0] sm:$0x1] }
  0x7b   : > { %9950 = vmatmul.msk.bf16.gmra.mxu0 %vm1477_vm11, %v1465_v1  ;;  %v1018_v41 = vld [vmem:[#allocation2 + $0xa0] sm:$0xf]  ;;  %910 = vst.msk [vmem:[#allocation2 + $0x40] sm:$0xf] %vm280_vm1, %v639_v27  ;;  %v967_v40 = vld [vmem:[#allocation2 + $0xa4] sm:$0x1]  ;;  %10039 = vmatmul.msk.bf16.gmra.mxu3 %vm1477_vm11, %v10946_v38 }
  0x7c   : > { %v1365_v46 = vshll.u32 %v1018_v41, 16  ;;  %913 = vst [vmem:[#allocation2 + $0x44] sm:$0x1] %v912_v39  ;;  %v968_v49 = vsel %vm11179_vm4, %v776_v45, %v967_v40  ;;  %v1369_v50 = vshrl.u32 %v1018_v41, 16  ;;  %v970_v52 = vld [vmem:[#allocation2 + $0xa8] sm:$0xf]  ;;  %v1362_v56 = vor.u32 %v1361_v44, %v1358_v43 }
  0x7d   : > { %969 = vst [vmem:[#allocation2 + $0xa4] sm:$0x1] %v968_v49  ;;  %v792_v16 = vsel %vm11220_vm8, %v784_v32, %v791_v47  ;;  %v971_v48 = vsel %vm11229_vm9, %v783_v31, %v970_v52  ;;  %v11510_v57 = vld [vmem:[#allocation2 + $0xb4] sm:$0x1]  ;;  %v644_v29 = vrot.slane %v642_v37, 7  ;;  %v645_v59 = vshll.u32 %v532_v19, 16 }
  0x7e   : > { %v1367_v42 = vrot.slane %v1365_v46, 5  ;;  %v1371_v58 = vrot.slane %v1369_v50, 4  ;;  %972 = vst [vmem:[#allocation2 + $0xa8] sm:$0xf] %v971_v48  ;;  %v650_v45 = vshrl.u32 %v533_v36, 16  ;;  %v1363_v54 = vrot.slane %v1362_v56, 4 }
  0x7f   : > { %973 = vst.msk [vmem:[#allocation2 + $0xac] sm:$0xf] %vm280_vm1, %v792_v16  ;;  %v653_v60 = vshll.u32 %v533_v36, 16  ;;  %v11514_v51 = vld [vmem:[%s11195_s10 + $0x70] sm:$0xf]  ;;  %v793_v63 = vrot.slane %v11493_v35, 4  ;;  %v647_v62 = vor.u32 %v645_v59, %v644_v29 }
  0x80   : > { %v1372_v61 = vor.u32 %v1371_v58, %v1367_v42  ;;  %v652_v55 = vrot.slane %v650_v45, 7  ;;  %v648_v1 = vrot.slane %v644_v29, 4  ;;  %v914_v2 = vld [vmem:[#allocation2 + $0x48] sm:$0xf]  ;;  %v391_v4 = vsel %vm11199_vm6, 0, %v390_v53 }
  0x81   : > { %v1001_v0 = vld [vmem:[#allocation2 + $0x3c] sm:$0xf]  ;;  %v338_v5 = vsel %vm11179_vm4, 0, %v11510_v57  ;;  %v1368_v11 = vsel %vm11272_vm13, %v1363_v54, %v1367_v42  ;;  %v918_v13 = vld [vmem:[#allocation2 + $0x50] sm:$0x1]  ;;  %v795_v14 = vshrl.u32 %v11514_v51, 16  ;;  %v915_v38 = vsel %vm11229_vm9, %v647_v62, %v914_v2 }
  0x82   : > { %v1002_v7 = vld [vmem:[#allocation2 + $0x40] sm:$0xf]  ;;  %v1164_v9 = vshrl.u32 %v1001_v0, 16  ;;  %v1167_v10 = vshll.u32 %v1001_v0, 16  ;;  %v655_v20 = vor.u32 %v653_v60, %v652_v55  ;;  %v657_v21 = vrot.slane %v652_v55, 4 }
  0x83   : > { %v10938_v12 = vld [vmem:[#allocation2 + $0x3c] sm:$0xff]  ;;  %v1029_v15 = vld [vmem:[#allocation2 + $0x44] sm:$0x1]  ;;  %v1173_v17 = vshll.u32 %v1002_v7, 16  ;;  %v1177_v19 = vshrl.u32 %v1002_v7, 16  ;;  %v1373_v30 = vrot.slane %v1372_v61, 4  ;;  %v1455_v33 = vunpack.c.l.b16 %v1368_v11 }
  0x84   : > { %v1166_v23 = vrot.slane %v1164_v9, 4  ;;  %v1169_v25 = vrot.slane %v1167_v10, 5  ;;  %v1183_v26 = vshll.u32 %v1029_v15, 16  ;;  %v1037_v28 = vld [vmem:[#allocation2 + $0xa4] sm:$0x1]  ;;  %10031 = vmatmul.msk.bf16.gmra.mxu1 %vm1477_vm11, %v10938_v12  ;;  %v656_v37 = vsel %vm11220_vm8, %v648_v1, %v655_v20 }
  0x85   : > { %v1175_v31 = vrot.slane %v1173_v17, 5  ;;  %v1179_v32 = vrot.slane %v1177_v19, 4  ;;  %v1375_v27 = vshll.u32 %v1037_v28, 16  ;;  %392 = vst [vmem:[#allocation2 + $0xb0] sm:$0x1] %v391_v4  ;;  %v919_v46 = vsel %vm11179_vm4, %v657_v21, %v918_v13 }
  0x86   : > { %v1170_v34 = vor.u32 %v1169_v25, %v1166_v23  ;;  %v1185_v36 = vrot.slane %v1183_v26, 5  ;;  %v1019_v39 = vld [vmem:[#allocation2 + $0xa8] sm:$0xf]  ;;  %v1020_v41 = vld [vmem:[#allocation2 + $0xac] sm:$0xf]  ;;  %v797_v48 = vrot.slane %v795_v14, 7 }
  0x87   : > { %v1180_v43 = vor.u32 %v1179_v32, %v1175_v31  ;;  %v1377_v40 = vrot.slane %v1375_v27, 5  ;;  %v10947_v44 = vld [vmem:[#allocation2 + $0xa8] sm:$0xff]  ;;  %916 = vst [vmem:[#allocation2 + $0x48] sm:$0xf] %v915_v38  ;;  %v1380_v47 = vshrl.u32 %v1019_v39, 16  ;;  %v1383_v50 = vshll.u32 %v1019_v39, 16 }
  0x88   : > { %v1171_v49 = vrot.slane %v1170_v34, 4  ;;  %917 = vst.msk [vmem:[#allocation2 + $0x4c] sm:$0xf] %vm280_vm1, %v656_v37  ;;  %v1389_v52 = vshll.u32 %v1020_v41, 16  ;;  %v1393_v53 = vshrl.u32 %v1020_v41, 16  ;;  %v798_v55 = vshll.u32 %v11514_v51, 16 }
  0x89   : > { %v1181_v56 = vrot.slane %v1180_v43, 4  ;;  %v1378_v42 = vsel %vm11272_vm13, %v1373_v30, %v1377_v40  ;;  %920 = vst [vmem:[#allocation2 + $0x50] sm:$0x1] %v919_v46  ;;  %v1382_v16 = vrot.slane %v1380_v47, 4  ;;  %v1385_v29 = vrot.slane %v1383_v50, 5 }
  0x8a   : > { %v1176_v57 = vsel %vm11272_vm13, %v1171_v49, %v1175_v31  ;;  %v1456_v58 = vunpack.c.l.b16 %v1378_v42  ;;  %v11537_v59 = vrot.slane %v1389_v52, 5  ;;  %339 = vst [vmem:[#allocation2 + $0xb4] sm:$0x1] %v338_v5  ;;  %v551_v45 = vld [vmem:[%s11195_s10 + $0x74] sm:$0xf]  ;;  %v1395_v61 = vrot.slane %v1393_v53, 4 }
  0x8b   : > { %v1186_v54 = vsel %vm11272_vm13, %v1181_v56, %v1185_v36  ;;  %v1439_v60 = vunpack.c.l.b16 %v1176_v57  ;;  %10040 = vmatmul.msk.bf16.gmra.mxu3 %vm1477_vm11, %v10947_v44  ;;  %v803_v4 = vshrl.u32 %v551_v45, 16  ;;  %v1386_v9 = vor.u32 %v1385_v29, %v1382_v16  ;;  %v313_v15 = vld [vmem:[#allocation2 + $0x54] sm:$0x1]  ;;  %v369_v17 = vld [vmem:[#allocation2 + $0x5c] sm:$0x1] }
  0x8c   : > { %v1440_v0 = vunpack.c.l.b16 %v1186_v54  ;;  %v1474_v62 = vpack.c.b16 %v1456_v58, %v1455_v33  ;;  %v974_v1 = vld [vmem:[#allocation2 + $0xb0] sm:$0x1]  ;;  %v801_v10 = vrot.slane %v797_v48, 4  ;;  %v806_v51 = vshll.u32 %v551_v45, 16  ;;  %v535_v41 = vld [vmem:[%s11195_s10 + $0x34] sm:$0xf] }
  0x8d   : > { %v975_v2 = vsel %vm11179_vm4, %v793_v63, %v974_v1  ;;  %v1396_v14 = vor.u32 %v1395_v61, %v11537_v59  ;;  %v800_v35 = vor.u32 %v798_v55, %v797_v48  ;;  %v11557_v23 = vrot.slane %v803_v4, 7  ;;  %v534_v25 = vld [vmem:[%s11195_s10 + $0x30] sm:$0xf]  ;;  %v393_v47 = vld [vmem:[#allocation2 + $0xbc] sm:$0x1] }
  0x8e   : > { %v1466_v5 = vpack.c.b16 %v1440_v0, %v1439_v60  ;;  %9959 = vmatmul.msk.bf16.gmra.mxu2 %vm1477_vm11, %v1474_v62  ;;  %v1003_v7 = vld [vmem:[#allocation2 + $0x48] sm:$0xf]  ;;  %976 = vst [vmem:[#allocation2 + $0xb0] sm:$0x1] %v975_v2  ;;  %v1387_v33 = vrot.slane %v1386_v9, 4  ;;  %v314_v44 = vsel %vm11179_vm4, 0, %v313_v15 }
  0x8f   : > { %v11549_v11 = vld [vmem:[#allocation2 + $0x4c] sm:$0xf]  ;;  %v1188_v12 = vshrl.u32 %v1003_v7, 16  ;;  %v1191_v13 = vshll.u32 %v1003_v7, 16  ;;  %v808_v34 = vor.u32 %v806_v51, %v11557_v23  ;;  %v1397_v38 = vrot.slane %v1396_v14, 4 }
  0x90   : > { %9951 = vmatmul.msk.bf16.gmra.mxu0 %vm1477_vm11, %v1466_v5  ;;  %v11553_v63 = vld [vmem:[#allocation2 + $0x50] sm:$0x1]  ;;  %v1197_v19 = vshll.u32 %v11549_v11, 16  ;;  %v1201_v20 = vshrl.u32 %v11549_v11, 16  ;;  %v10939_v21 = vld [vmem:[#allocation2 + $0x48] sm:$0xff]  ;;  %v370_v46 = vsel %vm11199_vm6, 0, %v369_v17  ;;  %v1392_v56 = vsel %vm11272_vm13, %v1387_v33, %v11537_v59 }
  0x91   : > { %v1190_v26 = vrot.slane %v1188_v12, 4  ;;  %v1193_v28 = vrot.slane %v1191_v13, 5  ;;  %v1207_v30 = vshll.u32 %v11553_v63, 16  ;;  %v977_v31 = vld [vmem:[#allocation2 + $0xb4] sm:$0xf]  ;;  %v809_v40 = vsel %vm11220_vm8, %v801_v10, %v808_v34 }
  0x92   : > { %v1199_v32 = vrot.slane %v1197_v19, 5  ;;  %v1203_v27 = vrot.slane %v1201_v20, 4  ;;  %v978_v39 = vsel %vm11229_vm9, %v800_v35, %v977_v31  ;;  %980 = vst.msk [vmem:[#allocation2 + $0xb8] sm:$0xf] %vm280_vm1, %v809_v40  ;;  %v659_v52 = vshrl.u32 %v534_v25, 16 }
  0x93   : > { %v1194_v36 = vor.u32 %v1193_v28, %v1190_v26  ;;  %v1209_v37 = vrot.slane %v1207_v30, 5  ;;  %979 = vst [vmem:[#allocation2 + $0xb4] sm:$0xf] %v978_v39  ;;  %v662_v16 = vshll.u32 %v534_v25, 16  ;;  %v667_v58 = vshrl.u32 %v535_v41, 16 }
  0x94   : > { %v1204_v43 = vor.u32 %v1203_v27, %v1199_v32  ;;  %10032 = vmatmul.msk.bf16.gmra.mxu1 %vm1477_vm11, %v10939_v21  ;;  %315 = vst [vmem:[#allocation2 + $0x54] sm:$0x1] %v314_v44  ;;  %v661_v57 = vrot.slane %v659_v52, 7  ;;  %v670_v29 = vshll.u32 %v535_v41, 16  ;;  %v394_v61 = vsel %vm11199_vm6, 0, %v393_v47 }
  0x95   : > { %v1195_v49 = vrot.slane %v1194_v36, 4  ;;  %v1038_v50 = vld [vmem:[#allocation2 + $0xb0] sm:$0x1]  ;;  %371 = vst [vmem:[#allocation2 + $0x5c] sm:$0x1] %v370_v46  ;;  %v1457_v59 = vunpack.c.l.b16 %v1392_v56  ;;  %v669_v62 = vrot.slane %v667_v58, 7 }
  0x96   : > { %v1205_v53 = vrot.slane %v1204_v43, 4  ;;  %v1399_v42 = vshll.u32 %v1038_v50, 16  ;;  %v665_v0 = vrot.slane %v661_v57, 4  ;;  %395 = vst [vmem:[#allocation2 + $0xbc] sm:$0x1] %v394_v61  ;;  %v664_v2 = vor.u32 %v662_v16, %v661_v57 }
  0x97   : > { %v1200_v48 = vsel %vm11272_vm13, %v1195_v49, %v1199_v32  ;;  %v672_v5 = vor.u32 %v670_v29, %v669_v62  ;;  %v674_v7 = vrot.slane %v669_v62, 4  ;;  %v810_v51 = vrot.slane %v11557_v23, 4  ;;  %v2510_v36 = vld [vmem:[#allocation2 + $0xc] sm:$0xf]  ;;  %v11599_v39 = vld [vmem:[#allocation2 + $0x10] sm:$0xf] }
  0x98   : > { %v1210_v45 = vsel %vm11272_vm13, %v1205_v53, %v1209_v37  ;;  %v1441_v54 = vunpack.c.l.b16 %v1200_v48  ;;  %v1401_v60 = vrot.slane %v1399_v42, 5  ;;  %v10206_v43 = vld [vmem:[%s15290_s1 + $0x18] sm:$0xf]  ;;  %v10287_v40 = vld [vmem:[%s15290_s1 + $0x1c] sm:$0xf]  ;;  %v2559_v46 = vshrl.u32 %v2510_v36, 16 }
  0x99   : > { %v1442_v55 = vunpack.c.l.b16 %v1210_v45  ;;  %v1022_v13 = vld [vmem:[#allocation2 + $0xb8] sm:$0xf]  ;;  %v673_v17 = vsel %vm11220_vm8, %v665_v0, %v672_v5  ;;  %v2562_v47 = vshll.u32 %v2510_v36, 16  ;;  %v3726_v49 = vsel %vm1526_vm0, %v10206_v43, 0  ;;  %v11103_v8 = vld [vmem:[#allocation2 + $0xa4] sm:$0x1] }
  0x9a   : > { %v1402_v1 = vsel %vm11272_vm13, %v1397_v38, %v1401_v60  ;;  %v1021_v9 = vld [vmem:[#allocation2 + $0xb4] sm:$0xf]  ;;  %v1413_v20 = vshll.u32 %v1022_v13, 16  ;;  %v1417_v21 = vshrl.u32 %v1022_v13, 16  ;;  %924 = vst.msk [vmem:[#allocation2 + $0x58] sm:$0xf] %vm280_vm1, %v673_v17  ;;  %3735 = vmatpush.bf16.msra.mxu2 %v3726_v49 }
  0x9b   : > { %v1458_v4 = vunpack.c.l.b16 %v1402_v1  ;;  %v1467_v10 = vpack.c.b16 %v1442_v55, %v1441_v54  ;;  %v10948_v12 = vld [vmem:[#allocation2 + $0xb4] sm:$0xff]  ;;  %v1404_v14 = vshrl.u32 %v1021_v9, 16  ;;  %v1407_v35 = vshll.u32 %v1021_v9, 16  ;;  %v3164_v49 = vld [vmem:[#allocation2 + $0xc] sm:$0xe] }
  0x9c   : > { %v921_v19 = vld [vmem:[#allocation2 + $0x54] sm:$0xf]  ;;  %10041 = vmatmul.msk.bf16.gmra.mxu3 %vm1477_vm11, %v10948_v12  ;;  %v925_v26 = vld [vmem:[#allocation2 + $0x5c] sm:$0x1]  ;;  %v1415_v32 = vrot.slane %v1413_v20, 5  ;;  %v1419_v27 = vrot.slane %v1417_v21, 4 }
  0x9d   : > { %v1475_v15 = vpack.c.b16 %v1458_v4, %v1457_v59  ;;  %v922_v25 = vsel %vm11229_vm9, %v664_v2, %v921_v19  ;;  %v1406_v23 = vrot.slane %v1404_v14, 4  ;;  %v1409_v28 = vrot.slane %v1407_v35, 5  ;;  %v981_v31 = vld [vmem:[#allocation2 + $0xbc] sm:$0x1]  ;;  %v10189_v4 = vld [vmem:[%s15290_s1 + $0x14] sm:$0xf] }
  0x9e   : > { %923 = vst [vmem:[#allocation2 + $0x54] sm:$0xf] %v922_v25  ;;  %v926_v30 = vsel %vm11179_vm4, %v674_v7, %v925_v26  ;;  %v982_v33 = vsel %vm11179_vm4, %v810_v51, %v981_v31  ;;  %v1420_v37 = vor.u32 %v1419_v27, %v1415_v32  ;;  %v1759_v41 = vpop.f32.mrf.mxu1  ;;  %v4380_v50 = vsel %vm1526_vm0, %v10287_v40, 0  ;;  %v10949_v51 = vld [vmem:[#allocation2 + $0xc] sm:$0xff]  ;;  %v10320_v12 = vld [vmem:[%s15290_s1 + $0x20] sm:$0xf] }
  0x9f   : > { %9960 = vmatmul.msk.bf16.gmra.mxu2 %vm1477_vm11, %v1475_v15  ;;  %927 = vst [vmem:[#allocation2 + $0x5c] sm:$0x1] %v926_v30  ;;  %v1410_v34 = vor.u32 %v1409_v28, %v1406_v23  ;;  %4389 = vmatpush.bf16.msra.mxu3 %v4380_v50  ;;  %v2568_v29 = vshll.u32 %v11599_v39, 16  ;;  %v2572_v45 = vshrl.u32 %v11599_v39, 16  ;;  %v2561_v14 = vrot.slane %v2559_v46, 4 }
  0xa0   : > { %9952 = vmatmul.msk.bf16.gmra.mxu0 %vm1477_vm11, %v1467_v10  ;;  %983 = vst [vmem:[#allocation2 + $0xbc] sm:$0x1] %v982_v33  ;;  %v1421_v55 = vrot.slane %v1420_v37, 4  ;;  %v2564_v35 = vrot.slane %v2562_v47, 5  ;;  %v3439_v25 = vsel %vm1526_vm0, %v10189_v4, 0  ;;  %v4778_v31 = vsel %vm1526_vm0, %v10320_v12, 0  ;;  %vm11652_vm0 = vmor %vm1887_vm14, %vm1888_vm15 }
  0xa1   : > { %v11607_v44 = vld [vmem:[#allocation2 + $0x58] sm:$0xf]  ;;  %v1411_v42 = vrot.slane %v1410_v34, 4  ;;  %v11629_v19 = vrot.slane %v2568_v29, 5  ;;  %v2512_v28 = vld [vmem:[#allocation2 + $0x14] sm:$0x1]  ;;  %3448 = vmatpush.bf16.msrb.mxu1 %v3439_v25  ;;  %4787 = vmatpush.bf16.msra.mxu0 %v4778_v31 }
  0xa2   : > { %v1221_v53 = vshll.u32 %v11607_v44, 16  ;;  %v1225_v56 = vshrl.u32 %v11607_v44, 16  ;;  %v2574_v30 = vrot.slane %v2572_v45, 4  ;;  %v2565_v37 = vor.u32 %v2564_v35, %v2561_v14  ;;  %v11080_v40 = vld [vmem:[#allocation2 + $0x4] sm:$0xf] }
  0xa3   : > { %v1416_v9 = vsel %vm11272_vm13, %v1411_v42, %v1415_v32  ;;  %v2578_v43 = vshll.u32 %v2512_v28, 16  ;;  %v1892_v46 = vrot.slane %v11080_v40, 5  ;;  %v11081_v29 = vld [vmem:[#allocation2 + $0x8] sm:$0x1] }
  0xa4   : > { %v1223_v54 = vrot.slane %v1221_v53, 5  ;;  %v1227_v60 = vrot.slane %v1225_v56, 4  ;;  %v1459_v23 = vunpack.c.l.b16 %v1416_v9  ;;  %v1839_v53 = vld [vmem:[#allocation2] sm:$0xe]  ;;  %v1895_v45 = vrot.slane %v11081_v29, 5 }
  0xa5   : > { %v1005_v52 = vld [vmem:[#allocation2 + $0x54] sm:$0xf] }
  0xa6   : > { %v11597_v38 = vpop.f32.mrf.mxu3  ;;  %v10940_v16 = vld [vmem:[#allocation2 + $0x54] sm:$0xff]  ;;  %v11613_v48 = vld [vmem:[#allocation2 + $0x5c] sm:$0x1]  ;;  %v1212_v57 = vshrl.u32 %v1005_v52, 16  ;;  %v1215_v58 = vshll.u32 %v1005_v52, 16  ;;  %v1228_v5 = vor.u32 %v1227_v60, %v1223_v54  ;;  %v11633_v21 = vpop.f32.mrf.mxu1  ;;  %v2575_v52 = vor.u32 %v2574_v30, %v11629_v19 }
  0xa7   : > { %v1231_v61 = vshll.u32 %v11613_v48, 16  ;;  %10033 = vmatmul.msk.bf16.gmra.mxu1 %vm1477_vm11, %v10940_v16  ;;  %v1039_v1 = vld [vmem:[#allocation2 + $0xbc] sm:$0x1]  ;;  %v10173_v16 = vrot.slane %v3164_v49, 9 }
  0xa8   : > { %v1214_v0 = vrot.slane %v1212_v57, 4  ;;  %v1217_v62 = vrot.slane %v1215_v58, 5  ;;  %v1423_v10 = vshll.u32 %v1039_v1, 16  ;;  %v1229_v15 = vrot.slane %v1228_v5, 4  ;;  %v2514_v5 = vld [vmem:[#allocation2 + $0x1c] sm:$0xf] }
  0xa9   : > { %v1233_v7 = vrot.slane %v1231_v61, 5  ;;  %v3230_v57 = vrot.slane %v11599_v39, 5  ;;  %v3233_v58 = vrot.slane %v2512_v28, 5  ;;  %v10042_v61 = vrot.slane %v1839_v53, 9 }
  0xaa   : > { %v1218_v13 = vor.u32 %v1217_v62, %v1214_v0  ;;  %v1425_v17 = vrot.slane %v1423_v10, 5  ;;  %v2576_v0 = vrot.slane %v2575_v52, 4  ;;  %v2580_v62 = vrot.slane %v2578_v43, 5 }
  0xab   : > { %v1539_v59 = vpop.f32.mrf.mxu0  ;;  %v1234_v32 = vsel %vm11272_vm13, %v1229_v15, %v1233_v7  ;;  %v3231_v39 = vsel %vm11652_vm0, %v10173_v16, %v3230_v57  ;;  %v3232_v1 = vrot.slane %v3230_v57, 4  ;;  %v2592_v25 = vshll.u32 %v2514_v5, 16  ;;  %v1840_v57 = vld [vmem:[#allocation2 + $0xc] sm:$0xe] }
  0xac   : > { %v11619_v2 = vadd.f32 %v1759_v41, %v1539_v59  ;;  %v1219_v26 = vrot.slane %v1218_v13, 4  ;;  %v1426_v27 = vsel %vm11272_vm13, %v1421_v55, %v1425_v17  ;;  %10140 = vmatmul.msk.bf16.vlgmr.msrb.gmra.mxu3 %vm1477_vm11, %v10949_v51  ;;  %v1444_v34 = vunpack.c.l.b16 %v1234_v32  ;;  %v2513_v59 = vld [vmem:[#allocation2 + $0x18] sm:$0xf] }
  0xad   : > { %v1460_v36 = vunpack.c.l.b16 %v1426_v27  ;;  %v3342_v7 = vunpack.c.l.b16 %v3231_v39  ;;  %v2583_v10 = vshrl.u32 %v2513_v59, 16  ;;  %v2586_v51 = vshll.u32 %v2513_v59, 16 }
  0xae   : > { %v11631_v20 = vpop.f32.mrf.mxu3  ;;  %v1224_v33 = vsel %vm11272_vm13, %v1219_v26, %v1223_v54  ;;  %v2566_v54 = vrot.slane %v2565_v37, 4  ;;  %v3234_v12 = vsel %vm11652_vm0, %v3232_v1, %v3233_v58  ;;  %v1893_v13 = vsel %vm11652_vm0, %v10042_v61, %v1892_v46  ;;  %v11082_v58 = vld [vmem:[#allocation2 + $0x10] sm:$0xf] }
  0xaf   : > { %v1443_v41 = vunpack.c.l.b16 %v1224_v33  ;;  %v1476_v50 = vpack.c.b16 %v1460_v36, %v1459_v23  ;;  %v3343_v35 = vunpack.c.l.b16 %v3234_v12  ;;  %v2581_v17 = vsel %vm11272_vm13, %v2576_v0, %v2580_v62  ;;  %v10950_v23 = vld [vmem:[#allocation2 + $0x18] sm:$0xff]  ;;  %v2515_v36 = vld [vmem:[#allocation2 + $0x20] sm:$0x1] }
  0xb0   : > { %v2571_v15 = vsel %vm11272_vm13, %v2566_v54, %v11629_v19  ;;  %v2596_v26 = vshrl.u32 %v2514_v5, 16  ;;  %v2004_v30 = vunpack.c.l.b16 %v1893_v13  ;;  %v2585_v32 = vrot.slane %v2583_v10, 4 }
  0xb1   : > { %v1468_v42 = vpack.c.b16 %v1444_v34, %v1443_v41  ;;  %9961 = vmatmul.msk.bf16.gmra.mxu2 %vm1477_vm11, %v1476_v50  ;;  %v3374_v28 = vpack.c.b16 %v3343_v35, %v3342_v7  ;;  %v2588_v27 = vrot.slane %v2586_v51, 5  ;;  %v2944_v33 = vunpack.c.l.b16 %v2571_v15  ;;  %v3165_v41 = vld [vmem:[#allocation2 + $0x18] sm:$0xe]  ;;  %v2516_v51 = vld [vmem:[#allocation2 + $0x24] sm:$0xf] }
  0xb2   : > { %v2945_v34 = vunpack.c.l.b16 %v2581_v17  ;;  %v3237_v19 = vrot.slane %v2514_v5, 5  ;;  %v2594_v43 = vrot.slane %v2592_v25, 5  ;;  %v2598_v40 = vrot.slane %v2596_v26, 4  ;;  %v11083_v5 = vld [vmem:[#allocation2 + $0x14] sm:$0x1] }
  0xb3   : > { %v1579_v47 = vpop.f32.mrf.mxu2  ;;  %9953 = vmatmul.msk.bf16.gmra.mxu0 %vm1477_vm11, %v1468_v42  ;;  %v11660_v9 = vpop.f32.mrf.mxu0  ;;  %v3240_v49 = vrot.slane %v2515_v36, 5  ;;  %v2589_v42 = vor.u32 %v2588_v27, %v2585_v32  ;;  %v1899_v29 = vrot.slane %v11082_v58, 5  ;;  %v2602_v61 = vshll.u32 %v2515_v36, 16  ;;  %v2517_v15 = vld [vmem:[#allocation2 + $0x28] sm:$0xf] }
  0xb4   : > { %v11646_v56 = vadd.f32 %v11597_v38, %v1579_v47  ;;  %v1894_v38 = vrot.slane %v1892_v46, 4  ;;  %v10174_v47 = vrot.slane %v3165_v41, 9  ;;  %v3239_v52 = vrot.slane %v3237_v19, 4  ;;  %v10951_v41 = vld [vmem:[#allocation2 + $0x24] sm:$0xff] }
  0xb5   : > { %v2976_v16 = vpack.c.b16 %v2945_v34, %v2944_v33  ;;  %v2599_v54 = vor.u32 %v2598_v40, %v2594_v43  ;;  %v2590_v62 = vrot.slane %v2589_v42, 4  ;;  %v10043_v39 = vrot.slane %v1840_v57, 9  ;;  %v3166_v57 = vld [vmem:[#allocation2 + $0x24] sm:$0xe] }
  0xb6   : > { %v11656_v55 = vpop.f32.mrf.mxu3  ;;  %v1764_v4 = vpop.f32.mrf.mxu1  ;;  %v1896_v14 = vsel %vm11652_vm0, %v1894_v38, %v1895_v45  ;;  %v3238_v38 = vsel %vm11652_vm0, %v10174_v47, %v3237_v19  ;;  %v3241_v59 = vsel %vm11652_vm0, %v3239_v52, %v3240_v49  ;;  %v1901_v1 = vrot.slane %v1899_v29, 4  ;;  %v2518_v47 = vld [vmem:[#allocation2 + $0x2c] sm:$0x1] }
  0xb7   : > { %v2005_v31 = vunpack.c.l.b16 %v1896_v14  ;;  %10190 = vmatmul.msk.bf16.vlgmr.msrb.gmra.mxu1 %vm1477_vm11, %v3374_v28  ;;  %v1902_v7 = vrot.slane %v11083_v5, 5  ;;  %v3344_v12 = vunpack.c.l.b16 %v3238_v38  ;;  %v3345_v13 = vunpack.c.l.b16 %v3241_v59 }
  0xb8   : > { %v2600_v14 = vrot.slane %v2599_v54, 4  ;;  %v2604_v35 = vrot.slane %v2602_v61, 5  ;;  %v1900_v17 = vsel %vm11652_vm0, %v10043_v39, %v1899_v29  ;;  %v2607_v25 = vshrl.u32 %v2516_v51, 16  ;;  %v1841_v39 = vld [vmem:[#allocation2 + $0x18] sm:$0xe] }
  0xb9   : > { %v2036_v53 = vpack.c.b16 %v2005_v31, %v2004_v30  ;;  %v2610_v30 = vshll.u32 %v2516_v51, 16  ;;  %v2616_v31 = vshll.u32 %v2517_v15, 16  ;;  %v3375_v32 = vpack.c.b16 %v3345_v13, %v3344_v12 }
  0xba   : > { %v2605_v27 = vsel %vm11272_vm13, %v2600_v14, %v2604_v35  ;;  %v2620_v36 = vshrl.u32 %v2517_v15, 16  ;;  %v3244_v49 = vrot.slane %v2517_v15, 5  ;;  %v3247_v54 = vrot.slane %v2518_v47, 5 }
  0xbb   : > { %v11679_v50 = vpop.f32.mrf.mxu2  ;;  %v2947_v52 = vunpack.c.l.b16 %v2605_v27  ;;  %v2612_v42 = vrot.slane %v2610_v30, 5 }
  0xbc   : > { %10141 = vmatmul.msk.bf16.gmra.mxu3 %vm1477_vm11, %v10950_v23  ;;  %v1903_v23 = vsel %vm11652_vm0, %v1901_v1, %v1902_v7  ;;  %v2622_v58 = vrot.slane %v2620_v36, 4  ;;  %v11084_v1 = vld [vmem:[#allocation2 + $0x1c] sm:$0xf] }
  0xbd   : > { %v2007_v40 = vunpack.c.l.b16 %v1903_v23  ;;  %v1906_v5 = vrot.slane %v11084_v1, 5 }
  0xbe   : > { %v11674_v37 = vpop.f32.mrf.mxu3  ;;  %v11676_v46 = vpop.f32.mrf.mxu1 }
  0xbf   : > { %15316 = vst [vmem:[#allocation6_spill] sm:$0xff] %v11674_v37 }
  0xc1   : > { %10059 = vmatmul.msk.bf16.vlgmr.msrb.gmra.mxu2 %vm1477_vm11, %v2036_v53  ;;  %v2609_v53 = vrot.slane %v2607_v25, 4  ;;  %v11085_v25 = vld [vmem:[#allocation2 + $0x20] sm:$0x1] }
  0xc2   : > { %v1909_v23 = vrot.slane %v11085_v25, 5 }
  0xc3   : > { %v1544_v45 = vpop.f32.mrf.mxu0  ;;  %10157 = vmatmul.msk.bf16.vlgmr.msrb.gmra.mxu0 %vm1477_vm11, %v2976_v16  ;;  %v2618_v16 = vrot.slane %v2616_v31, 5  ;;  %v2613_v51 = vor.u32 %v2612_v42, %v2609_v53 }
  0xc4   : > { %v11685_v0 = vadd.f32 %v1764_v4, %v1544_v45  ;;  %v2595_v4 = vsel %vm11272_vm13, %v2590_v62, %v2594_v43  ;;  %v2006_v43 = vunpack.c.l.b16 %v1900_v17  ;;  %v10175_v45 = vrot.slane %v3166_v57, 9 }
  0xc5   : > { %v2946_v19 = vunpack.c.l.b16 %v2595_v4  ;;  %v2626_v62 = vshll.u32 %v2518_v47, 16  ;;  %v2623_v12 = vor.u32 %v2622_v58, %v2618_v16  ;;  %v10044_v4 = vrot.slane %v1841_v39, 9 }
  0xc6   : > { %v11689_v10 = vpop.f32.mrf.mxu3  ;;  %v1769_v26 = vpop.f32.mrf.mxu1  ;;  %v2037_v61 = vpack.c.b16 %v2007_v40, %v2006_v43  ;;  %v3245_v14 = vsel %vm11652_vm0, %v10175_v45, %v3244_v49  ;;  %v1908_v17 = vrot.slane %v1906_v5, 4 }
  0xc7   : > { %10191 = vmatmul.msk.bf16.gmra.mxu1 %vm1477_vm11, %v3375_v32  ;;  %v2977_v38 = vpack.c.b16 %v2947_v52, %v2946_v19  ;;  %v3346_v30 = vunpack.c.l.b16 %v3245_v14  ;;  %v2614_v32 = vrot.slane %v2613_v51, 4  ;;  %v2624_v27 = vrot.slane %v2623_v12, 4  ;;  %v2521_v51 = vld [vmem:[#allocation2 + $0x38] sm:$0x1] }
  0xc8   : > { %v2628_v36 = vrot.slane %v2626_v62, 5  ;;  %v1907_v19 = vsel %vm11652_vm0, %v10044_v4, %v1906_v5  ;;  %v1910_v47 = vsel %vm11652_vm0, %v1908_v17, %v1909_v23  ;;  %v3254_v17 = vrot.slane %v2521_v51, 5 }
  0xc9   : > { %v2619_v42 = vsel %vm11272_vm13, %v2614_v32, %v2618_v16  ;;  %v3167_v16 = vld [vmem:[#allocation2 + $0x30] sm:$0xe] }
  0xca   : > { %v1584_v28 = vpop.f32.mrf.mxu2  ;;  %v2629_v57 = vsel %vm11272_vm13, %v2624_v27, %v2628_v36  ;;  %v2948_v5 = vunpack.c.l.b16 %v2619_v42  ;;  %v2650_v36 = vshll.u32 %v2521_v51, 16  ;;  %v11087_v42 = vld [vmem:[#allocation2 + $0x2c] sm:$0x1] }
  0xcb   : > { %v11699_v33 = vpop.f32.mrf.mxu0  ;;  %v11702_v34 = vadd.f32 %v11656_v55, %v1584_v28  ;;  %v3246_v55 = vrot.slane %v3244_v49, 4  ;;  %v2519_v28 = vld [vmem:[#allocation2 + $0x30] sm:$0xf] }
  0xcc   : > { %10142 = vmatmul.msk.bf16.gmra.mxu3 %vm1477_vm11, %v10951_v41  ;;  %v2520_v41 = vld [vmem:[#allocation2 + $0x34] sm:$0xf]  ;;  %v2631_v43 = vshrl.u32 %v2519_v28, 16  ;;  %v2634_v40 = vshll.u32 %v2519_v28, 16 }
  0xcd   : > { %15317 = vst [vmem:[#allocation7_spill] sm:$0xff] %v11702_v34  ;;  %v3248_v35 = vsel %vm11652_vm0, %v3246_v55, %v3247_v54  ;;  %v2640_v52 = vshll.u32 %v2520_v41, 16  ;;  %v2644_v45 = vshrl.u32 %v2520_v41, 16  ;;  %v2008_v55 = vunpack.c.l.b16 %v1907_v19  ;;  %v10952_v54 = vld [vmem:[#allocation2 + $0x30] sm:$0xff] }
  0xce   : > { %v11705_v29 = vpop.f32.mrf.mxu3  ;;  %v11710_v13 = vpop.f32.mrf.mxu1  ;;  %v3347_v31 = vunpack.c.l.b16 %v3248_v35  ;;  %v2636_v62 = vrot.slane %v2634_v40, 5  ;;  %v3251_v1 = vrot.slane %v2520_v41, 5 }
  0xcf   : > { %15318 = vst [vmem:[#allocation8_spill] sm:$0xff] %v11705_v29  ;;  %v2642_v12 = vrot.slane %v2640_v52, 5  ;;  %v2646_v35 = vrot.slane %v2644_v45, 4 }
  0xd0   : > { %v3376_v53 = vpack.c.b16 %v3347_v31, %v3346_v30  ;;  %v3253_v4 = vrot.slane %v3251_v1, 4  ;;  %v1842_v30 = vld [vmem:[#allocation2 + $0x24] sm:$0xe]  ;;  %v11086_v31 = vld [vmem:[#allocation2 + $0x28] sm:$0xf] }
  0xd1   : > { %10060 = vmatmul.msk.bf16.gmra.mxu2 %vm1477_vm11, %v2037_v61  ;;  %v2009_v61 = vunpack.c.l.b16 %v1910_v47  ;;  %v1913_v32 = vrot.slane %v11086_v31, 5  ;;  %v2647_v27 = vor.u32 %v2646_v35, %v2642_v12 }
  0xd2   : > { %v11708_v59 = vpop.f32.mrf.mxu2 }
  0xd3   : > { %15319 = vst [vmem:[#allocation9_spill] sm:$0xff] %v11708_v59  ;;  %v1549_v7 = vpop.f32.mrf.mxu0  ;;  %10158 = vmatmul.msk.bf16.gmra.mxu0 %vm1477_vm11, %v2977_v38  ;;  %v2633_v38 = vrot.slane %v2631_v43, 4  ;;  %v2038_v25 = vpack.c.b16 %v2009_v61, %v2008_v55  ;;  %v3255_v43 = vsel %vm11652_vm0, %v3253_v4, %v3254_v17  ;;  %v2652_v61 = vrot.slane %v2650_v36, 5 }
  0xd4   : > { %v11716_v15 = vadd.f32 %v1769_v26, %v1549_v7  ;;  %v2949_v7 = vunpack.c.l.b16 %v2629_v57  ;;  %v1916_v57 = vrot.slane %v11087_v42, 5  ;;  %v3349_v55 = vunpack.c.l.b16 %v3255_v43  ;;  %v3168_v43 = vld [vmem:[#allocation2 + $0x3c] sm:$0xe] }
  0xd5   : > { %v2637_v23 = vor.u32 %v2636_v62, %v2633_v38  ;;  %v2522_v38 = vld [vmem:[#allocation2 + $0x3c] sm:$0xf]  ;;  %v2523_v62 = vld [vmem:[#allocation2 + $0x40] sm:$0xf] }
  0xd6   : > { %v11722_v26 = vpop.f32.mrf.mxu3  ;;  %v2978_v28 = vpack.c.b16 %v2949_v7, %v2948_v5  ;;  %v2655_v35 = vshrl.u32 %v2522_v38, 16  ;;  %v2658_v17 = vshll.u32 %v2522_v38, 16 }
  0xd7   : > { %10192 = vmatmul.msk.bf16.gmra.mxu1 %vm1477_vm11, %v3376_v53  ;;  %v2638_v47 = vrot.slane %v2637_v23, 4  ;;  %v1915_v53 = vrot.slane %v1913_v32, 4  ;;  %v2668_v23 = vshrl.u32 %v2523_v62, 16 }
  0xd9   : > { %v2643_v5 = vsel %vm11272_vm13, %v2638_v47, %v2642_v12 }
  0xda   : > { %v1589_v49 = vpop.f32.mrf.mxu2 }
  0xdb   : > { %v11731_v58 = vadd.f32 %v11689_v10, %v1589_v49  ;;  %v1774_v39 = vpop.f32.mrf.mxu1  ;;  %v11734_v14 = vpop.f32.mrf.mxu0  ;;  %v10176_v10 = vrot.slane %v3167_v16, 9  ;;  %v10045_v49 = vrot.slane %v1842_v30, 9  ;;  %v1917_v16 = vsel %vm11652_vm0, %v1915_v53, %v1916_v57 }
  0xdc   : > { %10143 = vmatmul.msk.bf16.gmra.mxu3 %vm1477_vm11, %v10952_v54  ;;  %v2648_v54 = vrot.slane %v2647_v27, 4  ;;  %v2011_v31 = vunpack.c.l.b16 %v1917_v16  ;;  %v3258_v27 = vrot.slane %v2523_v62, 5  ;;  %v2660_v53 = vrot.slane %v2658_v17, 5 }
  0xdd   : > { %15320 = vst [vmem:[#allocation10_spill] sm:$0xff] %v11731_v58  ;;  %v3252_v19 = vsel %vm11652_vm0, %v10176_v10, %v3251_v1  ;;  %v1914_v7 = vsel %vm11652_vm0, %v10045_v49, %v1913_v32  ;;  %v2950_v32 = vunpack.c.l.b16 %v2643_v5  ;;  %v2524_v49 = vld [vmem:[#allocation2 + $0x44] sm:$0x1]  ;;  %v2670_v57 = vrot.slane %v2668_v23, 4 }
  0xde   : > { %v11737_v41 = vpop.f32.mrf.mxu3  ;;  %v3348_v45 = vunpack.c.l.b16 %v3252_v19  ;;  %v2653_v4 = vsel %vm11272_vm13, %v2648_v54, %v2652_v61  ;;  %v2010_v30 = vunpack.c.l.b16 %v1914_v7  ;;  %v2657_v19 = vrot.slane %v2655_v35, 4  ;;  %v1843_v35 = vld [vmem:[#allocation2 + $0x30] sm:$0xe] }
  0xdf   : > { %v3260_v54 = vrot.slane %v3258_v27, 4  ;;  %v3261_v61 = vrot.slane %v2524_v49, 5  ;;  %v2674_v16 = vshll.u32 %v2524_v49, 16 }
  0xe0   : > { %v3377_v10 = vpack.c.b16 %v3349_v55, %v3348_v45  ;;  %v10177_v55 = vrot.slane %v3168_v43, 9  ;;  %v2039_v38 = vpack.c.b16 %v2011_v31, %v2010_v30 }
  0xe1   : > { %10061 = vmatmul.msk.bf16.gmra.mxu2 %vm1477_vm11, %v2038_v25  ;;  %v2664_v25 = vshll.u32 %v2523_v62, 16  ;;  %v3262_v17 = vsel %vm11652_vm0, %v3260_v54, %v3261_v61 }
  0xe2   : > { %v11743_v40 = vpop.f32.mrf.mxu2 }
  0xe3   : > { %15321 = vst [vmem:[#allocation11_spill] sm:$0xff] %v11743_v40  ;;  %v11746_v52 = vpop.f32.mrf.mxu1  ;;  %10159 = vmatmul.msk.bf16.gmra.mxu0 %vm1477_vm11, %v2978_v28  ;;  %v10953_v28 = vld [vmem:[#allocation2 + $0x3c] sm:$0xff]  ;;  %v2666_v42 = vrot.slane %v2664_v25, 5  ;;  %v11089_v25 = vld [vmem:[#allocation2 + $0x38] sm:$0x1] }
  0xe4   : > { %v1923_v23 = vrot.slane %v11089_v25, 5 }
  0xe6   : > { %v11759_v12 = vpop.f32.mrf.mxu3 }
  0xe7   : > { %10193 = vmatmul.msk.bf16.gmra.mxu1 %vm1477_vm11, %v3377_v10  ;;  %v2671_v10 = vor.u32 %v2670_v57, %v2666_v42  ;;  %v2526_v57 = vld [vmem:[#allocation2 + $0x4c] sm:$0xf] }
  0xe8   : > { %v1554_v1 = vpop.f32.mrf.mxu0 }
  0xe9   : > { %v11753_v51 = vadd.f32 %v1774_v39, %v1554_v1  ;;  %v2951_v39 = vunpack.c.l.b16 %v2653_v4  ;;  %v11088_v1 = vld [vmem:[#allocation2 + $0x34] sm:$0xf]  ;;  %v3259_v4 = vsel %vm11652_vm0, %v10177_v55, %v3258_v27  ;;  %v2672_v43 = vrot.slane %v2671_v10, 4 }
  0xea   : > { %v1920_v5 = vrot.slane %v11088_v1, 5  ;;  %v2676_v27 = vrot.slane %v2674_v16, 5  ;;  %v2688_v10 = vshll.u32 %v2526_v57, 16 }
  0xeb   : > { %v1779_v45 = vpop.f32.mrf.mxu1  ;;  %v2979_v7 = vpack.c.b16 %v2951_v39, %v2950_v32  ;;  %v3350_v32 = vunpack.c.l.b16 %v3259_v4  ;;  %v3351_v39 = vunpack.c.l.b16 %v3262_v17  ;;  %v2692_v4 = vshrl.u32 %v2526_v57, 16  ;;  %v10954_v17 = vld [vmem:[#allocation2 + $0x48] sm:$0xff] }
  0xec   : > { %10144 = vmatmul.msk.bf16.gmra.mxu3 %vm1477_vm11, %v10953_v28  ;;  %v10046_v28 = vrot.slane %v1843_v35, 9  ;;  %v1922_v30 = vrot.slane %v1920_v5, 4 }
  0xed   : > { %v1594_v36 = vpop.f32.mrf.mxu2  ;;  %v3378_v35 = vpack.c.b16 %v3351_v39, %v3350_v32  ;;  %v3169_v32 = vld [vmem:[#allocation2 + $0x48] sm:$0xe] }
  0xee   : > { %v11763_v47 = vadd.f32 %v11722_v26, %v1594_v36  ;;  %v2661_v26 = vor.u32 %v2660_v53, %v2657_v19  ;;  %v1821_v49 = vpop.f32.mrf.mxu3  ;;  %v2525_v53 = vld [vmem:[#allocation2 + $0x48] sm:$0xf]  ;;  %v1921_v54 = vsel %vm11652_vm0, %v10046_v28, %v1920_v5  ;;  %v1924_v61 = vsel %vm11652_vm0, %v1922_v30, %v1923_v23 }
  0xef   : > { %v2012_v5 = vunpack.c.l.b16 %v1921_v54  ;;  %v2013_v25 = vunpack.c.l.b16 %v1924_v61  ;;  %v3265_v28 = vrot.slane %v2526_v57, 5 }
  0xf0   : > { %15322 = vst [vmem:[#allocation12_spill] sm:$0xff] %v11763_v47  ;;  %v11766_v62 = vpop.f32.mrf.mxu0  ;;  %v2662_v19 = vrot.slane %v2661_v26, 4  ;;  %v2677_v26 = vsel %vm11272_vm13, %v2672_v43, %v2676_v27  ;;  %v2694_v43 = vrot.slane %v2692_v4, 4  ;;  %v10178_v27 = vrot.slane %v3169_v32, 9 }
  0xf1   : > { %10062 = vmatmul.msk.bf16.gmra.mxu2 %vm1477_vm11, %v2039_v38  ;;  %v2953_v30 = vunpack.c.l.b16 %v2677_v26  ;;  %v2040_v57 = vpack.c.b16 %v2013_v25, %v2012_v5  ;;  %v11090_v26 = vld [vmem:[#allocation2 + $0x40] sm:$0xf]  ;;  %v11091_v25 = vld [vmem:[#allocation2 + $0x44] sm:$0x1] }
  0xf2   : > { %v2667_v16 = vsel %vm11272_vm13, %v2662_v19, %v2666_v42  ;;  %v2527_v42 = vld [vmem:[#allocation2 + $0x50] sm:$0x1]  ;;  %v2690_v19 = vrot.slane %v2688_v10, 5  ;;  %v3266_v10 = vsel %vm11652_vm0, %v10178_v27, %v3265_v28  ;;  %v2528_v27 = vld [vmem:[#allocation2 + $0x54] sm:$0xf] }
  0xf3   : > { %10160 = vmatmul.msk.bf16.gmra.mxu0 %vm1477_vm11, %v2979_v7  ;;  %v11781_v38 = vpop.f32.mrf.mxu1  ;;  %v2679_v7 = vshrl.u32 %v2525_v53, 16  ;;  %v2952_v23 = vunpack.c.l.b16 %v2667_v16  ;;  %v3268_v54 = vrot.slane %v2527_v42, 5 }
  0xf4   : > { %v2695_v6 = vor.u32 %v2694_v43, %v2690_v19 }
  0xf5   : > { %v1596_v31 = vpop.f32.mrf.mxu2  ;;  %v2980_v16 = vpack.c.b16 %v2953_v30, %v2952_v23  ;;  %v1930_v23 = vrot.slane %v11091_v25, 5 }
  0xf6   : > { %v11775_v36 = vadd.f32 %v11737_v41, %v1596_v31  ;;  %v2682_v41 = vshll.u32 %v2525_v53, 16  ;;  %v3267_v53 = vrot.slane %v3265_v28, 4  ;;  %v2696_v28 = vrot.slane %v2695_v6, 4 }
  0xf7   : > { %10194 = vmatmul.msk.bf16.gmra.mxu1 %vm1477_vm11, %v3378_v35  ;;  %v1927_v35 = vrot.slane %v11090_v26, 5  ;;  %v2706_v26 = vshll.u32 %v2528_v27, 16 }
  0xf8   : > { %15323 = vst [vmem:[#allocation13_spill] sm:$0xff] %v11775_v36  ;;  %v1559_v55 = vpop.f32.mrf.mxu0  ;;  %v2698_v36 = vshll.u32 %v2527_v42, 16  ;;  %v3269_v4 = vsel %vm11652_vm0, %v3267_v53, %v3268_v54  ;;  %v2529_v53 = vld [vmem:[#allocation2 + $0x58] sm:$0xf] }
  0xf9   : > { %v11783_v1 = vadd.f32 %v1779_v45, %v1559_v55  ;;  %v2681_v45 = vrot.slane %v2679_v7, 4  ;;  %v2684_v55 = vrot.slane %v2682_v41, 5  ;;  %v1844_v41 = vld [vmem:[#allocation2 + $0x3c] sm:$0xe] }
  0xfa   : > { %v10047_v5 = vrot.slane %v1844_v41, 9  ;;  %v2700_v43 = vrot.slane %v2698_v36, 5  ;;  %v2712_v36 = vshll.u32 %v2529_v53, 16 }
  0xfb   : > { %v2685_v7 = vor.u32 %v2684_v55, %v2681_v45  ;;  %v3352_v45 = vunpack.c.l.b16 %v3266_v10  ;;  %v3353_v55 = vunpack.c.l.b16 %v3269_v4  ;;  %v10955_v10 = vld [vmem:[#allocation2 + $0x54] sm:$0xff] }
  0xfc   : > { %10145 = vmatmul.msk.bf16.gmra.mxu3 %vm1477_vm11, %v10954_v17  ;;  %v2701_v6 = vsel %vm11272_vm13, %v2696_v28, %v2700_v43 }
  0xfd   : > { %v1599_v31 = vpop.f32.mrf.mxu2  ;;  %v2686_v42 = vrot.slane %v2685_v7, 4  ;;  %v3379_v25 = vpack.c.b16 %v3353_v55, %v3352_v45  ;;  %v2716_v7 = vshrl.u32 %v2529_v53, 16  ;;  %v2530_v55 = vld [vmem:[#allocation2 + $0x5c] sm:$0x1] }
  0xfe   : > { %v11791_v39 = vadd.f32 %v11759_v12, %v1599_v31  ;;  %v11794_v61 = vpop.f32.mrf.mxu3  ;;  %v1929_v31 = vrot.slane %v1927_v35, 4  ;;  %v2722_v40 = vshll.u32 %v2530_v55, 16 }
 0x100   : > { %15324 = vst [vmem:[#allocation14_spill] sm:$0xff] %v11791_v39  ;;  %v11801_v17 = vpop.f32.mrf.mxu0  ;;  %v1931_v41 = vsel %vm11652_vm0, %v1929_v31, %v1930_v23  ;;  %v3272_v39 = vrot.slane %v2529_v53, 5  ;;  %v2708_v23 = vrot.slane %v2706_v26, 5  ;;  %v3170_v31 = vld [vmem:[#allocation2 + $0x54] sm:$0xe] }
 0x101   : > { %v1784_v12 = vpop.f32.mrf.mxu1  ;;  %10063 = vmatmul.msk.bf16.gmra.mxu2 %vm1477_vm11, %v2040_v57  ;;  %v1928_v57 = vsel %vm11652_vm0, %v10047_v5, %v1927_v35  ;;  %v2955_v5 = vunpack.c.l.b16 %v2701_v6  ;;  %v1845_v26 = vld [vmem:[#allocation2 + $0x48] sm:$0xe] }
 0x102   : > { %v3274_v43 = vrot.slane %v3272_v39, 4 }
 0x103   : > { %10161 = vmatmul.msk.bf16.gmra.mxu0 %vm1477_vm11, %v2980_v16  ;;  %v2703_v16 = vshrl.u32 %v2528_v27, 16  ;;  %v10179_v27 = vrot.slane %v3170_v31, 9 }
 0x105   : > { %v1601_v30 = vpop.f32.mrf.mxu2  ;;  %v2705_v47 = vrot.slane %v2703_v16, 4 }
 0x106   : > { %v11804_v32 = vadd.f32 %v1821_v49, %v1601_v30  ;;  %v11806_v54 = vpop.f32.mrf.mxu3  ;;  %v2691_v49 = vsel %vm11272_vm13, %v2686_v42, %v2690_v19  ;;  %v2014_v30 = vunpack.c.l.b16 %v1928_v57  ;;  %v2714_v19 = vrot.slane %v2712_v36, 5 }
 0x107   : > { %v2954_v35 = vunpack.c.l.b16 %v2691_v49  ;;  %10195 = vmatmul.msk.bf16.gmra.mxu1 %vm1477_vm11, %v3379_v25  ;;  %v2718_v42 = vrot.slane %v2716_v7, 4  ;;  %v3275_v57 = vrot.slane %v2530_v55, 5  ;;  %v2709_v16 = vor.u32 %v2708_v23, %v2705_v47 }
 0x108   : > { %15325 = vst [vmem:[#allocation15_spill] sm:$0xff] %v11804_v32  ;;  %v2015_v32 = vunpack.c.l.b16 %v1931_v41  ;;  %v1934_v25 = vrot.slane %v11549_v11, 5  ;;  %v3273_v36 = vsel %vm11652_vm0, %v10179_v27, %v3272_v39  ;;  %v1937_v47 = vrot.slane %v11553_v63, 5 }
 0x109   : > { %v1786_v4 = vpop.f32.mrf.mxu1  ;;  %v2981_v49 = vpack.c.b16 %v2955_v5, %v2954_v35  ;;  %v2719_v29 = vor.u32 %v2718_v42, %v2714_v19  ;;  %v3354_v35 = vunpack.c.l.b16 %v3273_v36  ;;  %v2710_v39 = vrot.slane %v2709_v16, 4 }
 0x10a   : > { %v2041_v41 = vpack.c.b16 %v2015_v32, %v2014_v30  ;;  %v10048_v32 = vrot.slane %v1845_v26, 9  ;;  %v2531_v30 = vld [vmem:[#allocation2 + $0x60] sm:$0xf] }
 0x10b   : > { %v2720_v31 = vrot.slane %v2719_v29, 4  ;;  %v2727_v63 = vshrl.u32 %v2531_v30, 16  ;;  %v2715_v16 = vsel %vm11272_vm13, %v2710_v39, %v2714_v19 }
 0x10c   : > { %10146 = vmatmul.msk.bf16.gmra.mxu3 %vm1477_vm11, %v10955_v10  ;;  %v1936_v10 = vrot.slane %v1934_v25, 4  ;;  %v1935_v27 = vsel %vm11652_vm0, %v10048_v32, %v1934_v25  ;;  %v10956_v25 = vld [vmem:[#allocation2 + $0x60] sm:$0xff] }
 0x10d   : > { %v1564_v45 = vpop.f32.mrf.mxu0 }
 0x10e   : > { %v11817_v28 = vadd.f32 %v1784_v12, %v1564_v45  ;;  %v11820_v53 = vpop.f32.mrf.mxu3  ;;  %v3276_v12 = vsel %vm11652_vm0, %v3274_v43, %v3275_v57  ;;  %v2724_v45 = vrot.slane %v2722_v40, 5  ;;  %v2730_v43 = vshll.u32 %v2531_v30, 16 }
 0x10f   : > { %v3355_v5 = vunpack.c.l.b16 %v3276_v12  ;;  %v1938_v57 = vsel %vm11652_vm0, %v1936_v10, %v1937_v47  ;;  %v2729_v12 = vrot.slane %v2727_v63, 4  ;;  %v2956_v47 = vunpack.c.l.b16 %v2715_v16 }
 0x110   : > { %v2725_v29 = vsel %vm11272_vm13, %v2720_v31, %v2724_v45  ;;  %v2017_v36 = vunpack.c.l.b16 %v1938_v57  ;;  %v2732_v32 = vrot.slane %v2730_v43, 5  ;;  %v1941_v16 = vrot.slane %v11607_v44, 5 }
 0x111   : > { %v1604_v6 = vpop.f32.mrf.mxu2  ;;  %10064 = vmatmul.msk.bf16.gmra.mxu2 %vm1477_vm11, %v2041_v41  ;;  %v1789_v11 = vpop.f32.mrf.mxu1  ;;  %v3380_v41 = vpack.c.b16 %v3355_v5, %v3354_v35  ;;  %v2957_v10 = vunpack.c.l.b16 %v2725_v29  ;;  %v3171_v35 = vld [vmem:[#allocation2 + $0x60] sm:$0xe]  ;;  %v2533_v5 = vld [vmem:[#allocation2 + $0x68] sm:$0x1]  ;;  %v1944_v44 = vrot.slane %v11613_v48, 5 }
 0x112   : > { %v11828_v7 = vadd.f32 %v11794_v61, %v1604_v6  ;;  %v2532_v61 = vld [vmem:[#allocation2 + $0x64] sm:$0xf]  ;;  %v2016_v6 = vunpack.c.l.b16 %v1935_v27  ;;  %v10180_v31 = vrot.slane %v3171_v35, 9  ;;  %v3282_v57 = vrot.slane %v2533_v5, 5 }
 0x113   : > { %10162 = vmatmul.msk.bf16.gmra.mxu0 %vm1477_vm11, %v2981_v49  ;;  %v2736_v40 = vshll.u32 %v2532_v61, 16  ;;  %v3279_v30 = vrot.slane %v2532_v61, 5  ;;  %v2733_v43 = vor.u32 %v2732_v32, %v2729_v12  ;;  %v1943_v12 = vrot.slane %v1941_v16, 4 }
 0x114   : > { %15326 = vst [vmem:[#allocation16_spill] sm:$0xff] %v11828_v7  ;;  %v2042_v63 = vpack.c.b16 %v2017_v36, %v2016_v6 }
 0x115   : > { %v1566_v23 = vpop.f32.mrf.mxu0  ;;  %v3281_v27 = vrot.slane %v3279_v30, 4  ;;  %v1945_v48 = vsel %vm11652_vm0, %v1943_v12, %v1944_v44  ;;  %v3172_v12 = vld [vmem:[#allocation2 + $0x6c] sm:$0xe] }
 0x116   : > { %v11833_v55 = vadd.f32 %v1786_v4, %v1566_v23  ;;  %v11835_v42 = vpop.f32.mrf.mxu3  ;;  %v2740_v4 = vshrl.u32 %v2532_v61, 16  ;;  %v2738_v23 = vrot.slane %v2736_v40, 5  ;;  %v2982_v61 = vpack.c.b16 %v2957_v10, %v2956_v47 }
 0x117   : > { %10196 = vmatmul.msk.bf16.gmra.mxu1 %vm1477_vm11, %v3380_v41  ;;  %v3280_v40 = vsel %vm11652_vm0, %v10180_v31, %v3279_v30 }
 0x118   : > { %v2742_v39 = vrot.slane %v2740_v4, 4  ;;  %v3356_v32 = vunpack.c.l.b16 %v3280_v40  ;;  %v10957_v40 = vld [vmem:[#allocation2 + $0x6c] sm:$0xff] }
 0x119   : > { %v1606_v49 = vpop.f32.mrf.mxu2 }
 0x11a   : > { %v11846_v26 = vadd.f32 %v11806_v54, %v1606_v49  ;;  %v1791_v54 = vpop.f32.mrf.mxu1  ;;  %v1846_v49 = vld [vmem:[#allocation2 + $0x54] sm:$0xe]  ;;  %v2743_v29 = vor.u32 %v2742_v39, %v2738_v23  ;;  %v2535_v39 = vld [vmem:[#allocation2 + $0x70] sm:$0xf] }
 0x11b   : > { %v10049_v36 = vrot.slane %v1846_v49, 9  ;;  %v2764_v49 = vshrl.u32 %v2535_v39, 16 }
 0x11c   : > { %15327 = vst [vmem:[#allocation17_spill] sm:$0xff] %v11846_v26  ;;  %10147 = vmatmul.msk.bf16.gmra.mxu3 %vm1477_vm11, %v10956_v25  ;;  %v2746_v26 = vshll.u32 %v2533_v5, 16  ;;  %v2734_v25 = vrot.slane %v2733_v43, 4  ;;  %v2744_v30 = vrot.slane %v2743_v29, 4 }
 0x11d   : > { %v1569_v19 = vpop.f32.mrf.mxu0  ;;  %v1942_v31 = vsel %vm11652_vm0, %v10049_v36, %v1941_v16 }
 0x11e   : > { %v11849_v45 = vadd.f32 %v1789_v11, %v1569_v19  ;;  %v3283_v11 = vsel %vm11652_vm0, %v3281_v27, %v3282_v57  ;;  %v2748_v35 = vrot.slane %v2746_v26, 5  ;;  %v2534_v19 = vld [vmem:[#allocation2 + $0x6c] sm:$0xf] }
 0x11f   : > { %v11853_v41 = vpop.f32.mrf.mxu3  ;;  %v3357_v47 = vunpack.c.l.b16 %v3283_v11  ;;  %v2751_v57 = vshrl.u32 %v2534_v19, 16  ;;  %v2018_v11 = vunpack.c.l.b16 %v1942_v31  ;;  %v1847_v31 = vld [vmem:[#allocation2 + $0x60] sm:$0xe] }
 0x120   : > { %v2749_v26 = vsel %vm11272_vm13, %v2744_v30, %v2748_v35  ;;  %v2766_v30 = vrot.slane %v2764_v49, 4  ;;  %v10181_v35 = vrot.slane %v3172_v12, 9 }
 0x121   : > { %10065 = vmatmul.msk.bf16.gmra.mxu2 %vm1477_vm11, %v2042_v63  ;;  %v2754_v63 = vshll.u32 %v2534_v19, 16  ;;  %v3381_v43 = vpack.c.b16 %v3357_v47, %v3356_v32  ;;  %v2753_v36 = vrot.slane %v2751_v57, 4  ;;  %v3286_v32 = vrot.slane %v2535_v39, 5  ;;  %v2536_v47 = vld [vmem:[#allocation2 + $0x74] sm:$0x1] }
 0x122   : > { %v1609_v4 = vpop.f32.mrf.mxu2 }
 0x123   : > { %v11861_v6 = vadd.f32 %v11820_v53, %v1609_v4  ;;  %10163 = vmatmul.msk.bf16.gmra.mxu0 %vm1477_vm11, %v2982_v61  ;;  %v2739_v53 = vsel %vm11272_vm13, %v2734_v25, %v2738_v23  ;;  %v2019_v4 = vunpack.c.l.b16 %v1945_v48  ;;  %v2959_v25 = vunpack.c.l.b16 %v2749_v26  ;;  %v11092_v48 = vld [vmem:[#allocation2 + $0x64] sm:$0xf] }
 0x124   : > { %v1794_v27 = vpop.f32.mrf.mxu1  ;;  %v2958_v16 = vunpack.c.l.b16 %v2739_v53  ;;  %v2756_v44 = vrot.slane %v2754_v63, 5  ;;  %v3288_v19 = vrot.slane %v3286_v32, 4  ;;  %v1948_v26 = vrot.slane %v11092_v48, 5  ;;  %v2538_v48 = vld [vmem:[#allocation2 + $0x7c] sm:$0xf] }
 0x125   : > { %15328 = vst [vmem:[#allocation18_spill] sm:$0xff] %v11861_v6  ;;  %v1571_v10 = vpop.f32.mrf.mxu0  ;;  %v3289_v6 = vrot.slane %v2536_v47, 5 }
 0x126   : > { %v11865_v5 = vadd.f32 %v1791_v54, %v1571_v10  ;;  %v2760_v54 = vshll.u32 %v2535_v39, 16  ;;  %v2757_v53 = vor.u32 %v2756_v44, %v2753_v36  ;;  %v3287_v39 = vsel %vm11652_vm0, %v10181_v35, %v3286_v32  ;;  %v2537_v32 = vld [vmem:[#allocation2 + $0x78] sm:$0xf] }
 0x127   : > { %v11875_v61 = vpop.f32.mrf.mxu3  ;;  %10197 = vmatmul.msk.bf16.gmra.mxu1 %vm1477_vm11, %v3381_v43  ;;  %v3358_v36 = vunpack.c.l.b16 %v3287_v39  ;;  %v2788_v39 = vshrl.u32 %v2538_v48, 16 }
 0x128   : > { %v2762_v10 = vrot.slane %v2760_v54, 5  ;;  %v3290_v54 = vsel %vm11652_vm0, %v3288_v19, %v3289_v6  ;;  %v2758_v12 = vrot.slane %v2757_v53, 4 }
 0x129   : > { %v3359_v44 = vunpack.c.l.b16 %v3290_v54 }
 0x12a   : > { %v1611_v29 = vpop.f32.mrf.mxu2  ;;  %v2767_v43 = vor.u32 %v2766_v30, %v2762_v10  ;;  %v2763_v53 = vsel %vm11272_vm13, %v2758_v12, %v2762_v10  ;;  %v3173_v10 = vld [vmem:[#allocation2 + $0x78] sm:$0xe]  ;;  %v2539_v12 = vld [vmem:[#allocation2 + $0x80] sm:$0x1] }
 0x12b   : > { %v11878_v23 = vadd.f32 %v11835_v42, %v1611_v29  ;;  %v2043_v42 = vpack.c.b16 %v2019_v4, %v2018_v11  ;;  %v2983_v29 = vpack.c.b16 %v2959_v25, %v2958_v16  ;;  %v10050_v16 = vrot.slane %v1847_v31, 9  ;;  %v11093_v11 = vld [vmem:[#allocation2 + $0x68] sm:$0x1] }
 0x12c   : > { %10148 = vmatmul.msk.bf16.gmra.mxu3 %vm1477_vm11, %v10957_v40  ;;  %v1796_v40 = vpop.f32.mrf.mxu1  ;;  %v1951_v4 = vrot.slane %v11093_v11, 5  ;;  %v1950_v25 = vrot.slane %v1948_v26, 4  ;;  %v3382_v31 = vpack.c.b16 %v3359_v44, %v3358_v36  ;;  %v2960_v36 = vunpack.c.l.b16 %v2763_v53  ;;  %v11094_v53 = vld [vmem:[#allocation2 + $0x70] sm:$0xf] }
 0x12d   : > { %15329 = vst [vmem:[#allocation19_spill] sm:$0xff] %v11878_v23  ;;  %v2770_v23 = vshll.u32 %v2536_v47, 16  ;;  %v2768_v47 = vrot.slane %v2767_v43, 4 }
 0x12e   : > { %v1952_v19 = vsel %vm11652_vm0, %v1950_v25, %v1951_v4  ;;  %v3293_v25 = vrot.slane %v2538_v48, 5 }
 0x12f   : > { %v11882_v63 = vpop.f32.mrf.mxu3  ;;  %v2772_v30 = vrot.slane %v2770_v23, 5  ;;  %v2021_v4 = vunpack.c.l.b16 %v1952_v19  ;;  %v1848_v19 = vld [vmem:[#allocation2 + $0x6c] sm:$0xe] }
 0x130   : > { %v1574_v57 = vpop.f32.mrf.mxu0  ;;  %v3295_v7 = vrot.slane %v3293_v25, 4  ;;  %v10051_v37 = vrot.slane %v1848_v19, 9 }
 0x131   : > { %v11888_v49 = vadd.f32 %v1794_v27, %v1574_v57  ;;  %10066 = vmatmul.msk.bf16.gmra.mxu2 %vm1477_vm11, %v2043_v42  ;;  %v1949_v27 = vsel %vm11652_vm0, %v10050_v16, %v1948_v26  ;;  %v2775_v42 = vshrl.u32 %v2537_v32, 16  ;;  %v2773_v23 = vsel %vm11272_vm13, %v2768_v47, %v2772_v30  ;;  %v10958_v26 = vld [vmem:[#allocation2 + $0x78] sm:$0xff] }
 0x132   : > { %v2020_v11 = vunpack.c.l.b16 %v1949_v27  ;;  %v2961_v44 = vunpack.c.l.b16 %v2773_v23  ;;  %v2790_v30 = vrot.slane %v2788_v39, 4  ;;  %v2794_v39 = vshll.u32 %v2539_v12, 16 }
 0x133   : > { %10164 = vmatmul.msk.bf16.gmra.mxu0 %vm1477_vm11, %v2983_v29  ;;  %v2778_v29 = vshll.u32 %v2537_v32, 16  ;;  %v2777_v32 = vrot.slane %v2775_v42, 4  ;;  %v1955_v42 = vrot.slane %v11094_v53, 5 }
 0x134   : > { %v1614_v35 = vpop.f32.mrf.mxu2  ;;  %v11907_v16 = vpop.f32.mrf.mxu1 }
 0x135   : > { %v11893_v6 = vadd.f32 %v11853_v41, %v1614_v35  ;;  %v2784_v41 = vshll.u32 %v2538_v48, 16  ;;  %v2780_v35 = vrot.slane %v2778_v29, 5  ;;  %v2044_v48 = vpack.c.b16 %v2021_v4, %v2020_v11  ;;  %v11095_v11 = vld [vmem:[#allocation2 + $0x74] sm:$0x1] }
 0x136   : > { %v2984_v29 = vpack.c.b16 %v2961_v44, %v2960_v36  ;;  %v1958_v4 = vrot.slane %v11095_v11, 5  ;;  %v1957_v36 = vrot.slane %v1955_v42, 4 }
 0x137   : > { %15330 = vst [vmem:[#allocation20_spill] sm:$0xff] %v11893_v6  ;;  %v11903_v43 = vpop.f32.mrf.mxu3  ;;  %10198 = vmatmul.msk.bf16.gmra.mxu1 %vm1477_vm11, %v3382_v31  ;;  %v2786_v47 = vrot.slane %v2784_v41, 5  ;;  %v10182_v6 = vrot.slane %v3173_v10, 9  ;;  %v2781_v23 = vor.u32 %v2780_v35, %v2777_v32  ;;  %v2540_v32 = vld [vmem:[#allocation2 + $0x84] sm:$0xf] }
 0x138   : > { %v1576_v57 = vpop.f32.mrf.mxu0  ;;  %v1959_v19 = vsel %vm11652_vm0, %v1957_v36, %v1958_v4  ;;  %v2802_v53 = vshll.u32 %v2540_v32, 16  ;;  %v10959_v36 = vld [vmem:[#allocation2 + $0x84] sm:$0xff] }
 0x139   : > { %v11905_v54 = vadd.f32 %v1796_v40, %v1576_v57  ;;  %v3296_v57 = vrot.slane %v2539_v12, 5  ;;  %v2791_v41 = vor.u32 %v2790_v30, %v2786_v47  ;;  %v3294_v10 = vsel %vm11652_vm0, %v10182_v6, %v3293_v25  ;;  %v2541_v25 = vld [vmem:[#allocation2 + $0x88] sm:$0xf] }
 0x13a   : > { %v2782_v44 = vrot.slane %v2781_v23, 4  ;;  %v3360_v35 = vunpack.c.l.b16 %v3294_v10  ;;  %v2023_v4 = vunpack.c.l.b16 %v1959_v19 }
 0x13b   : > { %v2792_v30 = vrot.slane %v2791_v41, 4 }
 0x13c   : > { %v1616_v40 = vpop.f32.mrf.mxu2  ;;  %10149 = vmatmul.msk.bf16.gmra.mxu3 %vm1477_vm11, %v10958_v26  ;;  %v3297_v26 = vsel %vm11652_vm0, %v3295_v7, %v3296_v57  ;;  %v1956_v7 = vsel %vm11652_vm0, %v10051_v37, %v1955_v42  ;;  %v2808_v37 = vshll.u32 %v2541_v25, 16  ;;  %v2812_v42 = vshrl.u32 %v2541_v25, 16 }
 0x13d   : > { %v11912_v27 = vadd.f32 %v11875_v61, %v1616_v40  ;;  %v11920_v61 = vpop.f32.mrf.mxu1  ;;  %v3361_v12 = vunpack.c.l.b16 %v3297_v26  ;;  %v2796_v40 = vrot.slane %v2794_v39, 5  ;;  %v2022_v11 = vunpack.c.l.b16 %v1956_v7  ;;  %v2542_v7 = vld [vmem:[#allocation2 + $0x8c] sm:$0x1] }
 0x13e   : > { %v2810_v19 = vrot.slane %v2808_v37, 5 }
 0x13f   : > { %15331 = vst [vmem:[#allocation21_spill] sm:$0xff] %v11912_v27  ;;  %v11914_v58 = vpop.f32.mrf.mxu3  ;;  %v3383_v23 = vpack.c.b16 %v3361_v12, %v3360_v35  ;;  %v2797_v39 = vsel %vm11272_vm13, %v2792_v30, %v2796_v40  ;;  %v2804_v35 = vrot.slane %v2802_v53, 5  ;;  %v1762_v12 = vadd.f32 %v11633_v21, %v11660_v9 }
 0x140   : > { %v3052_v31 = vpop.f32.mrf.mxu0  ;;  %v2963_v40 = vunpack.c.l.b16 %v2797_v39  ;;  %v2814_v27 = vrot.slane %v2812_v42, 4  ;;  %v1849_v39 = vld [vmem:[#allocation2 + $0x78] sm:$0xe] }
 0x141   : > { %10067 = vmatmul.msk.bf16.gmra.mxu2 %vm1477_vm11, %v2044_v48  ;;  %v2799_v48 = vshrl.u32 %v2540_v32, 16 }
 0x142   : > { %v2815_v37 = vor.u32 %v2814_v27, %v2810_v19 }
 0x143   : > { %10165 = vmatmul.msk.bf16.gmra.mxu0 %vm1477_vm11, %v2984_v29  ;;  %v2787_v29 = vsel %vm11272_vm13, %v2782_v44, %v2786_v47  ;;  %v2801_v44 = vrot.slane %v2799_v48, 4 }
 0x144   : > { %v2112_v6 = vpop.f32.mrf.mxu2  ;;  %v2962_v30 = vunpack.c.l.b16 %v2787_v29  ;;  %v2818_v29 = vshll.u32 %v2542_v7, 16 }
 0x145   : > { %v2192_v57 = vadd.f32 %v2112_v6, %v11619_v2  ;;  %v11004_v2 = vld [vmem:[%s15293_s4 + $0x38] sm:$0xff]  ;;  %v11939_v32 = vpop.f32.mrf.mxu1  ;;  %v3174_v6 = vld [vmem:[#allocation2 + $0x84] sm:$0xe]  ;;  %v2805_v21 = vor.u32 %v2804_v35, %v2801_v44  ;;  %v10052_v44 = vrot.slane %v1849_v39, 9  ;;  %v11097_v35 = vld [vmem:[#allocation2 + $0x80] sm:$0x1] }
 0x146   : > { %6046 = vmatpush.bf16.msra.mxu1 %v11004_v2  ;;  %v10183_v59 = vrot.slane %v3174_v6, 9  ;;  %v2985_v9 = vpack.c.b16 %v2963_v40, %v2962_v30  ;;  %v1965_v30 = vrot.slane %v11097_v35, 5 }
 0x147   : > { %v2478_v41 = vadd.f32 %v11882_v63, %v2192_v57  ;;  %v11934_v26 = vpop.f32.mrf.mxu3  ;;  %v3300_v63 = vrot.slane %v2541_v25, 5  ;;  %10199 = vmatmul.msk.bf16.gmra.mxu1 %vm1477_vm11, %v3383_v23  ;;  %v3303_v25 = vrot.slane %v2542_v7, 5  ;;  %v11096_v23 = vld [vmem:[#allocation2 + $0x7c] sm:$0xf]  ;;  %v2543_v7 = vld [vmem:[#allocation2 + $0x90] sm:$0xf] }
 0x148   : > { %v3054_v10 = vpop.f32.mrf.mxu0  ;;  %v1962_v2 = vrot.slane %v11096_v23, 5 }
 0x149   : > { %v3132_v47 = vadd.f32 %v3052_v31, %v2478_v41  ;;  %v3302_v48 = vrot.slane %v3300_v63, 4  ;;  %v2045_v41 = vpack.c.b16 %v2023_v4, %v2022_v11  ;;  %v3301_v42 = vsel %vm11652_vm0, %v10183_v59, %v3300_v63 }
 0x14a   : > { %v2806_v4 = vrot.slane %v2805_v21, 4  ;;  %v3362_v40 = vunpack.c.l.b16 %v3301_v42  ;;  %v2816_v59 = vrot.slane %v2815_v37, 4  ;;  %v2820_v63 = vrot.slane %v2818_v29, 5 }
 0x14b   : > { %v11945_v57 = vadd.f32 %v11907_v16, %v3132_v47  ;;  %v2823_v21 = vshrl.u32 %v2543_v7, 16 }
 0x14c   : > { %v2114_v31 = vpop.f32.mrf.mxu2  ;;  %10150 = vmatmul.msk.bf16.gmra.mxu3 %vm1477_vm11, %v10959_v36  ;;  %v3304_v36 = vsel %vm11652_vm0, %v3302_v48, %v3303_v25  ;;  %v2544_v48 = vld [vmem:[#allocation2 + $0x94] sm:$0xf]  ;;  %v2821_v23 = vsel %vm11272_vm13, %v2816_v59, %v2820_v63  ;;  %v2545_v59 = vld [vmem:[#allocation2 + $0x98] sm:$0x1] }
 0x14d   : > { %v2193_v53 = vadd.f32 %v2114_v31, %v1762_v12  ;;  %v11955_v12 = vpop.f32.mrf.mxu1  ;;  %v3363_v27 = vunpack.c.l.b16 %v3304_v36  ;;  %v2836_v37 = vshrl.u32 %v2544_v48, 16 }
 0x14f   : > { %v2479_v16 = vadd.f32 %v11903_v43, %v2193_v53  ;;  %v11949_v47 = vpop.f32.mrf.mxu3  ;;  %v1964_v43 = vrot.slane %v1962_v2, 4  ;;  %v1963_v53 = vsel %vm11652_vm0, %v10052_v44, %v1962_v2  ;;  %v10960_v2 = vld [vmem:[#allocation2 + $0x90] sm:$0xff]  ;;  %v3307_v44 = vrot.slane %v2544_v48, 5 }
 0x150   : > { %v3057_v34 = vpop.f32.mrf.mxu0 }
 0x151   : > { %10068 = vmatmul.msk.bf16.gmra.mxu2 %vm1477_vm11, %v2045_v41  ;;  %v3133_v11 = vadd.f32 %v3054_v10, %v2479_v16  ;;  %v2811_v10 = vsel %vm11272_vm13, %v2806_v4, %v2810_v19  ;;  %v1966_v41 = vsel %vm11652_vm0, %v1964_v43, %v1965_v30  ;;  %v1767_v19 = vadd.f32 %v11676_v46, %v11699_v33 }
 0x152   : > { %v2025_v4 = vunpack.c.l.b16 %v1966_v41  ;;  %v2964_v35 = vunpack.c.l.b16 %v2811_v10  ;;  %v2965_v30 = vunpack.c.l.b16 %v2821_v23  ;;  %v2838_v46 = vrot.slane %v2836_v37, 4  ;;  %v1850_v10 = vld [vmem:[#allocation2 + $0x84] sm:$0xe] }
 0x153   : > { %10166 = vmatmul.msk.bf16.gmra.mxu0 %vm1477_vm11, %v2985_v9  ;;  %v11960_v6 = vadd.f32 %v11920_v61, %v3133_v11  ;;  %v2826_v9 = vshll.u32 %v2543_v7, 16  ;;  %v3384_v61 = vpack.c.b16 %v3363_v27, %v3362_v40  ;;  %v2024_v11 = vunpack.c.l.b16 %v1963_v53  ;;  %v3175_v40 = vld [vmem:[#allocation2 + $0x90] sm:$0xe]  ;;  %v11098_v53 = vld [vmem:[#allocation2 + $0x88] sm:$0xf] }
 0x154   : > { %v2117_v31 = vpop.f32.mrf.mxu2  ;;  %v10184_v33 = vrot.slane %v3175_v40, 9  ;;  %v1969_v41 = vrot.slane %v11098_v53, 5 }
 0x155   : > { %v2194_v25 = vadd.f32 %v2117_v31, %v11685_v0  ;;  %v2832_v0 = vshll.u32 %v2544_v48, 16  ;;  %v11976_v42 = vpop.f32.mrf.mxu1  ;;  %v2828_v43 = vrot.slane %v2826_v9, 5  ;;  %v3310_v31 = vrot.slane %v2545_v59, 5 }
 0x156   : > { %v3308_v37 = vsel %vm11652_vm0, %v10184_v33, %v3307_v44 }
 0x157   : > { %v2480_v29 = vadd.f32 %v11914_v58, %v2194_v25  ;;  %v11972_v16 = vpop.f32.mrf.mxu3  ;;  %v2825_v58 = vrot.slane %v2823_v21, 4  ;;  %10200 = vmatmul.msk.bf16.gmra.mxu1 %vm1477_vm11, %v3384_v61  ;;  %v2834_v63 = vrot.slane %v2832_v0, 5  ;;  %v2046_v25 = vpack.c.b16 %v2025_v4, %v2024_v11  ;;  %v11099_v11 = vld [vmem:[#allocation2 + $0x8c] sm:$0x1] }
 0x158   : > { %v3059_v39 = vpop.f32.mrf.mxu0  ;;  %v2986_v21 = vpack.c.b16 %v2965_v30, %v2964_v35  ;;  %v2842_v61 = vshll.u32 %v2545_v59, 16  ;;  %v1972_v4 = vrot.slane %v11099_v11, 5  ;;  %v1971_v30 = vrot.slane %v1969_v41, 4 }
 0x159   : > { %v3134_v36 = vadd.f32 %v3057_v34, %v2480_v29  ;;  %v3309_v34 = vrot.slane %v3307_v44, 4  ;;  %v2829_v9 = vor.u32 %v2828_v43, %v2825_v58  ;;  %v2839_v0 = vor.u32 %v2838_v46, %v2834_v63  ;;  %v2546_v58 = vld [vmem:[#allocation2 + $0x9c] sm:$0xf] }
 0x15a   : > { %v3364_v43 = vunpack.c.l.b16 %v3308_v37  ;;  %v2844_v33 = vrot.slane %v2842_v61, 5 }
 0x15b   : > { %v11980_v27 = vadd.f32 %v11939_v32, %v3134_v36  ;;  %v2830_v59 = vrot.slane %v2829_v9, 4  ;;  %v2840_v46 = vrot.slane %v2839_v0, 4 }
 0x15c   : > { %v2119_v7 = vpop.f32.mrf.mxu2  ;;  %10151 = vmatmul.msk.bf16.gmra.mxu3 %vm1477_vm11, %v10960_v2  ;;  %v3311_v2 = vsel %vm11652_vm0, %v3309_v34, %v3310_v31  ;;  %v2847_v31 = vshrl.u32 %v2546_v58, 16 }
 0x15d   : > { %v2195_v48 = vadd.f32 %v2119_v7, %v1767_v19  ;;  %v10053_v19 = vrot.slane %v1850_v10, 9  ;;  %v11990_v36 = vpop.f32.mrf.mxu1  ;;  %v3365_v40 = vunpack.c.l.b16 %v3311_v2  ;;  %v2835_v9 = vsel %vm11272_vm13, %v2830_v59, %v2834_v63 }
 0x15e   : > { %v2845_v61 = vsel %vm11272_vm13, %v2840_v46, %v2844_v33  ;;  %v1772_v59 = vadd.f32 %v11710_v13, %v11734_v14 }
 0x15f   : > { %v2481_v32 = vadd.f32 %v11934_v26, %v2195_v48  ;;  %v11984_v23 = vpop.f32.mrf.mxu3  ;;  %v2547_v26 = vld [vmem:[#allocation2 + $0xa0] sm:$0xf]  ;;  %v1970_v34 = vsel %vm11652_vm0, %v10053_v19, %v1969_v41  ;;  %v2850_v48 = vshll.u32 %v2546_v58, 16  ;;  %v2849_v19 = vrot.slane %v2847_v31, 4 }
 0x160   : > { %v3062_v29 = vpop.f32.mrf.mxu0  ;;  %v2856_v10 = vshll.u32 %v2547_v26, 16  ;;  %v2860_v53 = vshrl.u32 %v2547_v26, 16  ;;  %v2026_v0 = vunpack.c.l.b16 %v1970_v34  ;;  %v3314_v58 = vrot.slane %v2547_v26, 5 }
 0x161   : > { %10069 = vmatmul.msk.bf16.gmra.mxu2 %vm1477_vm11, %v2046_v25  ;;  %v3135_v35 = vadd.f32 %v3059_v39, %v2481_v32  ;;  %v1973_v25 = vsel %vm11652_vm0, %v1971_v30, %v1972_v4  ;;  %v2852_v11 = vrot.slane %v2850_v48, 5  ;;  %v2967_v63 = vunpack.c.l.b16 %v2845_v61 }
 0x162   : > { %v2027_v37 = vunpack.c.l.b16 %v1973_v25  ;;  %v12011_v30 = vrot.slane %v2856_v10, 5  ;;  %v3316_v31 = vrot.slane %v3314_v58, 4  ;;  %v11100_v10 = vld [vmem:[#allocation2 + $0x94] sm:$0xf] }
 0x163   : > { %10167 = vmatmul.msk.bf16.gmra.mxu0 %vm1477_vm11, %v2986_v21  ;;  %v11995_v44 = vadd.f32 %v11955_v12, %v3135_v35  ;;  %v3385_v21 = vpack.c.b16 %v3365_v40, %v3364_v43  ;;  %v2548_v35 = vld [vmem:[#allocation2 + $0xa4] sm:$0x1]  ;;  %v2966_v43 = vunpack.c.l.b16 %v2835_v9  ;;  %v3176_v40 = vld [vmem:[#allocation2 + $0x9c] sm:$0xe] }
 0x164   : > { %v2122_v7 = vpop.f32.mrf.mxu2  ;;  %v10185_v33 = vrot.slane %v3176_v40, 9  ;;  %v2866_v34 = vshll.u32 %v2548_v35, 16  ;;  %v3317_v48 = vrot.slane %v2548_v35, 5  ;;  %v340_v40 = vld [vmem:[#allocation2 + $0xc0] sm:$0x1] }
 0x165   : > { %v2196_v39 = vadd.f32 %v2122_v7, %v11716_v15  ;;  %v10961_v15 = vld [vmem:[#allocation2 + $0x9c] sm:$0xff]  ;;  %v12009_v2 = vpop.f32.mrf.mxu1 }
 0x166   : > { %v3315_v9 = vsel %vm11652_vm0, %v10185_v33, %v3314_v58  ;;  %v3318_v61 = vsel %vm11652_vm0, %v3316_v31, %v3317_v48  ;;  %v12035_v33 = vld [vmem:[#allocation2 + $0xac] sm:$0xf] }
 0x167   : > { %v2482_v12 = vadd.f32 %v11949_v47, %v2196_v39  ;;  %v12007_v41 = vpop.f32.mrf.mxu3  ;;  %v2862_v47 = vrot.slane %v2860_v53, 4  ;;  %10201 = vmatmul.msk.bf16.gmra.mxu1 %vm1477_vm11, %v3385_v21  ;;  %v2047_v39 = vpack.c.b16 %v2027_v37, %v2026_v0  ;;  %v1976_v53 = vrot.slane %v11100_v10, 5  ;;  %v553_v10 = vld [vmem:[%s11195_s10 + $0x7c] sm:$0xf] }
 0x168   : > { %v3064_v32 = vpop.f32.mrf.mxu0  ;;  %v2987_v21 = vpack.c.b16 %v2967_v63, %v2966_v43  ;;  %v2868_v37 = vrot.slane %v2866_v34, 5  ;;  %v3366_v58 = vunpack.c.l.b16 %v3315_v9  ;;  %v3367_v63 = vunpack.c.l.b16 %v3318_v61  ;;  %v396_v9 = vld [vmem:[#allocation2 + $0xc8] sm:$0x1] }
 0x169   : > { %v3136_v4 = vadd.f32 %v3062_v29, %v2482_v12  ;;  %v2853_v29 = vor.u32 %v2852_v11, %v2849_v19  ;;  %v2863_v25 = vor.u32 %v2862_v47, %v12011_v30  ;;  %v1851_v12 = vld [vmem:[#allocation2 + $0x90] sm:$0xe]  ;;  %v1978_v43 = vrot.slane %v1976_v53, 4 }
 0x16b   : > { %v12017_v46 = vadd.f32 %v11976_v42, %v3136_v4  ;;  %v2854_v0 = vrot.slane %v2853_v29, 4  ;;  %v2549_v4 = vld [vmem:[#allocation2 + $0xa8] sm:$0xf]  ;;  %v2864_v47 = vrot.slane %v2863_v25, 4  ;;  %v552_v25 = vld [vmem:[%s11195_s10 + $0x78] sm:$0xf] }
 0x16c   : > { %v2124_v7 = vpop.f32.mrf.mxu2  ;;  %10152 = vmatmul.msk.bf16.gmra.mxu3 %vm1477_vm11, %v10961_v15  ;;  %v11101_v15 = vld [vmem:[#allocation2 + $0x98] sm:$0x1]  ;;  %v2874_v29 = vshll.u32 %v2549_v4, 16 }
 0x16d   : > { %v2197_v26 = vadd.f32 %v2124_v7, %v1772_v59  ;;  %v1979_v19 = vrot.slane %v11101_v15, 5  ;;  %v12028_v11 = vpop.f32.mrf.mxu1  ;;  %v2871_v7 = vshrl.u32 %v2549_v4, 16  ;;  %v2859_v31 = vsel %vm11272_vm13, %v2854_v0, %v12011_v30  ;;  %v10962_v4 = vld [vmem:[#allocation2 + $0xa8] sm:$0xff] }
 0x16e   : > { %v812_v30 = vshrl.u32 %v552_v25, 16 }
 0x16f   : > { %v2483_v14 = vadd.f32 %v11972_v16, %v2197_v26  ;;  %v12022_v42 = vpop.f32.mrf.mxu3  ;;  %v10054_v16 = vrot.slane %v1851_v12, 9  ;;  %v2869_v26 = vsel %vm11272_vm13, %v2864_v47, %v2868_v37  ;;  %v2884_v12 = vshrl.u32 %v12035_v33, 16 }
 0x170   : > { %v3067_v13 = vpop.f32.mrf.mxu0  ;;  %v2873_v0 = vrot.slane %v2871_v7, 4  ;;  %v2876_v37 = vrot.slane %v2874_v29, 5  ;;  %v814_v47 = vrot.slane %v812_v30, 7  ;;  %v2968_v7 = vunpack.c.l.b16 %v2859_v31 }
 0x171   : > { %10070 = vmatmul.msk.bf16.gmra.mxu2 %vm1477_vm11, %v2047_v39  ;;  %v3137_v35 = vadd.f32 %v3064_v32, %v2483_v14  ;;  %v341_v32 = vsel %vm11179_vm4, 0, %v340_v40  ;;  %v1980_v39 = vsel %vm11652_vm0, %v1978_v43, %v1979_v19  ;;  %v3386_v14 = vpack.c.b16 %v3367_v63, %v3366_v58 }
 0x172   : > { %342 = vst [vmem:[#allocation2 + $0xc0] sm:$0x1] %v341_v32  ;;  %v1777_v19 = vadd.f32 %v11746_v52, %v11766_v62  ;;  %v820_v43 = vshrl.u32 %v553_v10, 16  ;;  %v2029_v40 = vunpack.c.l.b16 %v1980_v39  ;;  %v2969_v29 = vunpack.c.l.b16 %v2869_v26  ;;  %v2551_v32 = vld [vmem:[#allocation2 + $0xb0] sm:$0x1] }
 0x173   : > { %10168 = vmatmul.msk.bf16.gmra.mxu0 %vm1477_vm11, %v2987_v21  ;;  %v12033_v59 = vadd.f32 %v11990_v36, %v3137_v35  ;;  %v1977_v36 = vsel %vm11652_vm0, %v10054_v16, %v1976_v53  ;;  %v2880_v21 = vshll.u32 %v12035_v33, 16  ;;  %v397_v53 = vsel %vm11199_vm6, 0, %v396_v9  ;;  %v3177_v52 = vld [vmem:[#allocation2 + $0xa8] sm:$0xe] }
 0x174   : > { %v2127_v34 = vpop.f32.mrf.mxu2  ;;  %v815_v16 = vshll.u32 %v552_v25, 16  ;;  %v2028_v63 = vunpack.c.l.b16 %v1977_v36  ;;  %398 = vst [vmem:[#allocation2 + $0xc8] sm:$0x1] %v397_v53  ;;  %v2877_v25 = vor.u32 %v2876_v37, %v2873_v0  ;;  %v10186_v30 = vrot.slane %v3177_v52, 9 }
 0x175   : > { %15332 = vst [vmem:[#allocation22_spill] sm:$0xff] %v12033_v59  ;;  %v2198_v48 = vadd.f32 %v2127_v34, %v11753_v51  ;;  %v12060_v35 = vpop.f32.mrf.mxu1  ;;  %v12063_v34 = vrot.slane %v2880_v21, 5  ;;  %v3324_v39 = vrot.slane %v2551_v32, 5  ;;  %v822_v31 = vrot.slane %v820_v43, 7 }
 0x176   : > { %v823_v26 = vshll.u32 %v553_v10, 16  ;;  %v2048_v21 = vpack.c.b16 %v2029_v40, %v2028_v63  ;;  %v1986_v59 = vrot.slane %v11103_v8, 5  ;;  %v818_v0 = vrot.slane %v814_v47, 4  ;;  %v2552_v8 = vld [vmem:[#allocation2 + $0xb4] sm:$0xf] }
 0x177   : > { %v2484_v51 = vadd.f32 %v11984_v23, %v2198_v48  ;;  %v12054_v15 = vpop.f32.mrf.mxu3  ;;  %v3321_v23 = vrot.slane %v12035_v33, 5  ;;  %v2886_v48 = vrot.slane %v2884_v12, 4  ;;  %10202 = vmatmul.msk.bf16.gmra.mxu1 %vm1477_vm11, %v3386_v14  ;;  %v11102_v12 = vld [vmem:[#allocation2 + $0xa0] sm:$0xf]  ;;  %v2878_v43 = vrot.slane %v2877_v25, 4 }
 0x178   : > { %v3069_v61 = vpop.f32.mrf.mxu0  ;;  %v1983_v53 = vrot.slane %v11102_v12, 5  ;;  %v825_v40 = vor.u32 %v823_v26, %v822_v31 }
 0x179   : > { %v3138_v58 = vadd.f32 %v3067_v13, %v2484_v51  ;;  %v817_v13 = vor.u32 %v815_v16, %v814_v47  ;;  %v3323_v33 = vrot.slane %v3321_v23, 4  ;;  %v2890_v51 = vshll.u32 %v2551_v32, 16  ;;  %v984_v14 = vld [vmem:[#allocation2 + $0xc0] sm:$0xf] }
 0x17a   : > { %v3322_v10 = vsel %vm11652_vm0, %v10186_v30, %v3321_v23  ;;  %v12083_v23 = vld [vmem:[#allocation2 + $0xb8] sm:$0xf]  ;;  %v2883_v12 = vsel %vm11272_vm13, %v2878_v43, %v12063_v34  ;;  %v2554_v43 = vld [vmem:[#allocation2 + $0xbc] sm:$0x1] }
 0x17b   : > { %v12067_v62 = vadd.f32 %v12009_v2, %v3138_v58  ;;  %v2988_v2 = vpack.c.b16 %v2969_v29, %v2968_v7  ;;  %v1852_v58 = vld [vmem:[#allocation2 + $0x9c] sm:$0xe]  ;;  %v827_v7 = vrot.slane %v822_v31, 4  ;;  %v985_v47 = vsel %vm11229_vm9, %v817_v13, %v984_v14 }
 0x17c   : > { %v2129_v36 = vpop.f32.mrf.mxu2  ;;  %10153 = vmatmul.msk.bf16.gmra.mxu3 %vm1477_vm11, %v10962_v4  ;;  %v2887_v4 = vor.u32 %v2886_v48, %v12063_v34  ;;  %v2892_v32 = vrot.slane %v2890_v51, 5  ;;  %v10055_v48 = vrot.slane %v1852_v58, 9  ;;  %v3368_v25 = vunpack.c.l.b16 %v3322_v10  ;;  %986 = vst [vmem:[#allocation2 + $0xc0] sm:$0xf] %v985_v47  ;;  %v11003_v34 = vld [vmem:[%s15293_s4 + $0x30] sm:$0xff] }
 0x17d   : > { %v2199_v9 = vadd.f32 %v2129_v36, %v1777_v19  ;;  %v3325_v19 = vsel %vm11652_vm0, %v3323_v33, %v3324_v39  ;;  %v12078_v63 = vpop.f32.mrf.mxu1  ;;  %v1985_v36 = vrot.slane %v1983_v53, 4  ;;  %v826_v33 = vsel %vm11220_vm8, %v818_v0, %v825_v40  ;;  %6047 = vmatpush.bf16.msra.mxu1 %v11003_v34 }
 0x17e   : > { %v3369_v30 = vunpack.c.l.b16 %v3325_v19  ;;  %v2895_v39 = vshrl.u32 %v2552_v8, 16  ;;  %v2898_v31 = vshll.u32 %v2552_v8, 16  ;;  %987 = vst.msk [vmem:[#allocation2 + $0xc4] sm:$0xf] %vm280_vm1, %v826_v33  ;;  %v10963_v19 = vld [vmem:[#allocation2 + $0xb4] sm:$0xff]  ;;  %v3328_v47 = vrot.slane %v12083_v23, 5 }
 0x17f   : > { %v2485_v16 = vadd.f32 %v12007_v41, %v2199_v9  ;;  %v12071_v52 = vpop.f32.mrf.mxu3  ;;  %v988_v41 = vld [vmem:[#allocation2 + $0xc8] sm:$0x1]  ;;  %v2904_v9 = vshll.u32 %v12083_v23, 16  ;;  %v1987_v14 = vsel %vm11652_vm0, %v1985_v36, %v1986_v59  ;;  %vm402_vm1 = vcmask 519168  }
 0x180   : > { %v3072_v37 = vpop.f32.mrf.mxu0  ;;  %v989_v22 = vsel %vm11179_vm4, %v827_v7, %v988_v41  ;;  %v2900_v10 = vrot.slane %v2898_v31, 5  ;;  %v2031_v7 = vunpack.c.l.b16 %v1987_v14  ;;  %v2970_v41 = vunpack.c.l.b16 %v2883_v12  ;;  %v11104_v31 = vld [vmem:[#allocation2 + $0xac] sm:$0xf]  ;;  %vm12670_vm10 = vmand %vm402_vm1, %vm346_vm5 }
 0x181   : > { %10071 = vmatmul.msk.bf16.gmra.mxu2 %vm1477_vm11, %v2048_v21  ;;  %v3139_v29 = vadd.f32 %v3069_v61, %v2485_v16  ;;  %v2888_v61 = vrot.slane %v2887_v4, 4  ;;  %v2908_v21 = vshrl.u32 %v12083_v23, 16  ;;  %990 = vst [vmem:[#allocation2 + $0xc8] sm:$0x1] %v989_v22  ;;  %v12114_v59 = vrot.slane %v2904_v9, 5 }
 0x182   : > { %v3330_v9 = vrot.slane %v3328_v47, 4  ;;  %vm5993_vm9 = vcmask 523264  }
 0x183   : > { %10169 = vmatmul.msk.bf16.gmra.mxu0 %vm1477_vm11, %v2988_v2  ;;  %v12091_v13 = vadd.f32 %v12028_v11, %v3139_v29  ;;  %v1984_v11 = vsel %vm11652_vm0, %v10055_v48, %v1983_v53  ;;  %v3387_v2 = vpack.c.b16 %v3369_v30, %v3368_v25  ;;  %v2893_v16 = vsel %vm11272_vm13, %v2888_v61, %v2892_v32  ;;  %v3178_v30 = vld [vmem:[#allocation2 + $0xb4] sm:$0xe] }
 0x184   : > { %v2132_v26 = vpop.f32.mrf.mxu2  ;;  %v2910_v8 = vrot.slane %v2908_v21, 4  ;;  %v2971_v29 = vunpack.c.l.b16 %v2893_v16  ;;  %v1782_v32 = vadd.f32 %v11781_v38, %v11801_v17  ;;  %v2914_v25 = vshll.u32 %v2554_v43, 16  ;;  %v3849_v21 = vld [vmem:[#allocation2 + $0x18] sm:$0xf] }
 0x185   : > { %v2200_v51 = vadd.f32 %v2132_v26, %v11783_v1  ;;  %v2897_v1 = vrot.slane %v2895_v39, 4  ;;  %v12112_v53 = vpop.f32.mrf.mxu1  ;;  %v10187_v22 = vrot.slane %v3178_v30, 9  ;;  %v1853_v39 = vld [vmem:[#allocation2 + $0xa8] sm:$0xe]  ;;  %v1990_v26 = vrot.slane %v11104_v31, 5 }
 0x186   : > { %v2989_v38 = vpack.c.b16 %v2971_v29, %v2970_v41  ;;  %v3331_v17 = vrot.slane %v2554_v43, 5  ;;  %v2916_v14 = vrot.slane %v2914_v25, 5  ;;  %v10056_v16 = vrot.slane %v1853_v39, 9  ;;  %v2555_v29 = vld [vmem:[#allocation2 + $0xc0] sm:$0xf] }
 0x187   : > { %v2486_v0 = vadd.f32 %v12022_v42, %v2200_v51  ;;  %v12107_v4 = vpop.f32.mrf.mxu3  ;;  %v2030_v42 = vunpack.c.l.b16 %v1984_v11  ;;  %10203 = vmatmul.msk.bf16.gmra.mxu1 %vm1477_vm11, %v3387_v2  ;;  %v2901_v36 = vor.u32 %v2900_v10, %v2897_v1  ;;  %v3329_v2 = vsel %vm11652_vm0, %v10187_v22, %v3328_v47  ;;  %v12138_v47 = vld [vmem:[#allocation2 + $0x1c] sm:$0xf] }
 0x188   : > { %v3074_v58 = vpop.f32.mrf.mxu0  ;;  %v3332_v10 = vsel %vm11652_vm0, %v3330_v9, %v3331_v17  ;;  %v3898_v34 = vshrl.u32 %v3849_v21, 16  ;;  %v1991_v25 = vsel %vm11652_vm0, %v10056_v16, %v1990_v26  ;;  %v2922_v39 = vshll.u32 %v2555_v29, 16 }
 0x189   : > { %v3140_v40 = vadd.f32 %v3072_v37, %v2486_v0  ;;  %v2911_v37 = vor.u32 %v2910_v8, %v12114_v59  ;;  %v2049_v61 = vpack.c.b16 %v2031_v7, %v2030_v42  ;;  %v2902_v11 = vrot.slane %v2901_v36, 4 }
 0x18a   : > { %v1992_v8 = vrot.slane %v1990_v26, 4  ;;  %v3370_v42 = vunpack.c.l.b16 %v3329_v2  ;;  %v3371_v7 = vunpack.c.l.b16 %v3332_v10  ;;  %v3900_v30 = vrot.slane %v3898_v34, 4 }
 0x18b   : > { %v12121_v48 = vadd.f32 %v12060_v35, %v3140_v40  ;;  %v2912_v0 = vrot.slane %v2911_v37, 4  ;;  %v3901_v40 = vshll.u32 %v3849_v21, 16  ;;  %v2907_v41 = vsel %vm11272_vm13, %v2902_v11, %v12114_v59  ;;  %v12155_v21 = vld [vmem:[#allocation2 + $0x20] sm:$0x1] }
 0x18c   : > { %v2134_v33 = vpop.f32.mrf.mxu2  ;;  %10154 = vmatmul.msk.bf16.gmra.mxu3 %vm1477_vm11, %v10963_v19  ;;  %v11105_v19 = vld [vmem:[#allocation2 + $0xb0] sm:$0x1]  ;;  %v3911_v59 = vshrl.u32 %v12138_v47, 16  ;;  %v3388_v9 = vpack.c.b16 %v3371_v7, %v3370_v42  ;;  %v2924_v7 = vrot.slane %v2922_v39, 5 }
 0x18d   : > { %v2201_v23 = vadd.f32 %v2134_v33, %v1782_v32  ;;  %v12130_v1 = vpop.f32.mrf.mxu1  ;;  %v1993_v43 = vrot.slane %v11105_v19, 5  ;;  %v12143_v32 = vld [vmem:[#allocation2 + $0xc4] sm:$0xf]  ;;  %v3903_v33 = vrot.slane %v3901_v40, 5 }
 0x18e   : > { %15333 = vst [vmem:[#allocation23_spill] sm:$0xff] %v12130_v1  ;;  %v2928_v31 = vshll.u32 %v12143_v32, 16  ;;  %v3913_v11 = vrot.slane %v3911_v59, 4  ;;  %v1854_v59 = vld [vmem:[#allocation2 + $0xb4] sm:$0xe] }
 0x18f   : > { %v2487_v51 = vadd.f32 %v12054_v15, %v2201_v23  ;;  %v12126_v12 = vpop.f32.mrf.mxu3  ;;  %v1994_v22 = vsel %vm11652_vm0, %v1992_v8, %v1993_v43  ;;  %v3907_v23 = vshll.u32 %v12138_v47, 16  ;;  %v3904_v10 = vor.u32 %v3903_v33, %v3900_v30 }
 0x190   : > { %v3077_v35 = vpop.f32.mrf.mxu0  ;;  %v2033_v2 = vunpack.c.l.b16 %v1994_v22  ;;  %v3917_v43 = vshll.u32 %v12155_v21, 16  ;;  %v2972_v8 = vunpack.c.l.b16 %v2907_v41 }
 0x191   : > { %10072 = vmatmul.msk.bf16.gmra.mxu2 %vm1477_vm11, %v2049_v61  ;;  %v12135_v15 = vadd.f32 %v3074_v58, %v2487_v51  ;;  %v2917_v58 = vsel %vm11272_vm13, %v2912_v0, %v2916_v14  ;;  %v2919_v61 = vshrl.u32 %v2555_v29, 16  ;;  %v12161_v51 = vrot.slane %v3907_v23, 5  ;;  %v10964_v0 = vld [vmem:[#allocation2 + $0xc0] sm:$0xff] }
 0x192   : > { %v2032_v14 = vunpack.c.l.b16 %v1991_v25  ;;  %v2973_v40 = vunpack.c.l.b16 %v2917_v58  ;;  %v3179_v29 = vld [vmem:[#allocation2 + $0xc0] sm:$0xe]  ;;  %v2557_v25 = vld [vmem:[#allocation2 + $0xc8] sm:$0x1]  ;;  %v3905_v22 = vrot.slane %v3904_v10, 4  ;;  %v3919_v39 = vrot.slane %v3917_v43, 5 }
 0x193   : > { %10170 = vmatmul.msk.bf16.gmra.mxu0 %vm1477_vm11, %v2989_v38  ;;  %v3914_v19 = vor.u32 %v3913_v11, %v12161_v51  ;;  %v2921_v42 = vrot.slane %v2919_v61, 4  ;;  %v10188_v30 = vrot.slane %v3179_v29, 9  ;;  %v3338_v41 = vrot.slane %v2557_v25, 5 }
 0x194   : > { %v2137_v36 = vpop.f32.mrf.mxu2  ;;  %v2050_v23 = vpack.c.b16 %v2033_v2, %v2032_v14  ;;  %v2938_v11 = vshll.u32 %v2557_v25, 16  ;;  %v10057_v2 = vrot.slane %v1854_v59, 9  ;;  %v3910_v43 = vsel %vm11272_vm13, %v3905_v22, %v12161_v51  ;;  %v11107_v25 = vld [vmem:[#allocation2 + $0xbc] sm:$0x1] }
 0x195   : > { %v2202_v37 = vadd.f32 %v2137_v36, %v11817_v28  ;;  %v2932_v28 = vshrl.u32 %v12143_v32, 16  ;;  %v12163_v16 = vpop.f32.mrf.mxu1  ;;  %v3915_v61 = vrot.slane %v3914_v19, 4 }
 0x197   : > { %v2488_v26 = vadd.f32 %v12071_v52, %v2202_v37  ;;  %v12158_v17 = vpop.f32.mrf.mxu3  ;;  %v3335_v52 = vrot.slane %v12143_v32, 5  ;;  %10204 = vmatmul.msk.bf16.gmra.mxu1 %vm1477_vm11, %v3388_v9  ;;  %v12172_v37 = vrot.slane %v2928_v31, 5  ;;  %v3852_v9 = vld [vmem:[#allocation2 + $0x24] sm:$0xf]  ;;  %v11106_v31 = vld [vmem:[#allocation2 + $0xb8] sm:$0xf] }
 0x198   : > { %v3079_v38 = vpop.f32.mrf.mxu0 }
 0x199   : > { %v3142_v34 = vadd.f32 %v3077_v35, %v2488_v26  ;;  %v2934_v35 = vrot.slane %v2932_v28, 4  ;;  %v3337_v32 = vrot.slane %v3335_v52, 4  ;;  %v2925_v26 = vor.u32 %v2924_v7, %v2921_v42  ;;  %v12176_v28 = vld [vmem:[#allocation2 + $0x28] sm:$0xf] }
 0x19a   : > { %v3920_v42 = vsel %vm11272_vm13, %v3915_v61, %v3919_v39  ;;  %v3935_v7 = vshrl.u32 %v12176_v28, 16 }
 0x19b   : > { %v12170_v36 = vadd.f32 %v12112_v53, %v3142_v34  ;;  %v2990_v53 = vpack.c.b16 %v2973_v40, %v2972_v8  ;;  %v1997_v34 = vrot.slane %v11106_v31, 5  ;;  %v2935_v1 = vor.u32 %v2934_v35, %v12172_v37 }
 0x19c   : > { %v2139_v33 = vpop.f32.mrf.mxu2  ;;  %10155 = vmatmul.msk.bf16.gmra.mxu3 %vm1477_vm11, %v10964_v0  ;;  %v3339_v14 = vsel %vm11652_vm0, %v3337_v32, %v3338_v41  ;;  %v3922_v8 = vshrl.u32 %v3852_v9, 16  ;;  %v3925_v40 = vshll.u32 %v3852_v9, 16  ;;  %v2000_v35 = vrot.slane %v11107_v25, 5 }
 0x19d   : > { %v2203_v58 = vadd.f32 %v2139_v33, %v11833_v55  ;;  %v3336_v55 = vsel %vm11652_vm0, %v10188_v30, %v3335_v52  ;;  %v12186_v19 = vpop.f32.mrf.mxu1  ;;  %v3931_v52 = vshll.u32 %v12176_v28, 16  ;;  %v1999_v30 = vrot.slane %v1997_v34, 4 }
 0x19e   : > { %v3372_v33 = vunpack.c.l.b16 %v3336_v55  ;;  %v3373_v51 = vunpack.c.l.b16 %v3339_v14  ;;  %v2926_v22 = vrot.slane %v2925_v26, 4  ;;  %v2936_v32 = vrot.slane %v2935_v1, 4  ;;  %v12204_v14 = vld [vmem:[#allocation2 + $0x2c] sm:$0x1] }
 0x19f   : > { %v2489_v0 = vadd.f32 %v12107_v4, %v2203_v58  ;;  %v12179_v10 = vpop.f32.mrf.mxu3  ;;  %v2940_v41 = vrot.slane %v2938_v11, 5  ;;  %v3924_v59 = vrot.slane %v3922_v8, 4  ;;  %v3927_v9 = vrot.slane %v3925_v40, 5 }
 0x1a0   : > { %v3082_v29 = vpop.f32.mrf.mxu0  ;;  %v1998_v39 = vsel %vm11652_vm0, %v10057_v2, %v1997_v34  ;;  %v3933_v31 = vrot.slane %v3931_v52, 5  ;;  %v3389_v55 = vpack.c.b16 %v3373_v51, %v3372_v33  ;;  %v2931_v11 = vsel %vm11272_vm13, %v2926_v22, %v12172_v37 }
 0x1a1   : > { %10073 = vmatmul.msk.bf16.gmra.mxu2 %vm1477_vm11, %v2050_v23  ;;  %v12192_v4 = vadd.f32 %v3079_v38, %v2489_v0  ;;  %v4283_v38 = vunpack.c.l.b16 %v3910_v43  ;;  %v4284_v23 = vunpack.c.l.b16 %v3920_v42  ;;  %v3937_v0 = vrot.slane %v3935_v7, 4 }
 0x1a2   : > { %v2034_v34 = vunpack.c.l.b16 %v1998_v39  ;;  %v3928_v40 = vor.u32 %v3927_v9, %v3924_v59  ;;  %v3941_v25 = vshll.u32 %v12204_v14, 16 }
 0x1a3   : > { %10171 = vmatmul.msk.bf16.gmra.mxu0 %vm1477_vm11, %v2990_v53  ;;  %v2001_v53 = vsel %vm11652_vm0, %v1999_v30, %v2000_v35  ;;  %v4315_v2 = vpack.c.b16 %v4284_v23, %v4283_v38  ;;  %v3938_v7 = vor.u32 %v3937_v0, %v3933_v31  ;;  %v2974_v35 = vunpack.c.l.b16 %v2931_v11  ;;  %v12221_v38 = vld [vmem:[#allocation2 + $0x34] sm:$0xf] }
 0x1a4   : > { %v2142_v58 = vpop.f32.mrf.mxu2  ;;  %v2035_v52 = vunpack.c.l.b16 %v2001_v53  ;;  %v3929_v33 = vrot.slane %v3928_v40, 4  ;;  %v3959_v11 = vshrl.u32 %v12221_v38, 16 }
 0x1a5   : > { %v2204_v61 = vadd.f32 %v2142_v58, %v11849_v45  ;;  %v2941_v45 = vsel %vm11272_vm13, %v2936_v32, %v2940_v41  ;;  %v3485_v8 = vpop.f32.mrf.mxu1  ;;  %v3939_v32 = vrot.slane %v3938_v7, 4  ;;  %v3855_v41 = vld [vmem:[#allocation2 + $0x30] sm:$0xf] }
 0x1a6   : > { %v2051_v22 = vpack.c.b16 %v2035_v52, %v2034_v34  ;;  %v3946_v0 = vshrl.u32 %v3855_v41, 16  ;;  %v3949_v53 = vshll.u32 %v3855_v41, 16  ;;  %v4572_v34 = vrot.slane %v12155_v21, 5 }
 0x1a7   : > { %v2490_v26 = vadd.f32 %v12126_v12, %v2204_v61  ;;  %v12212_v43 = vpop.f32.mrf.mxu3  ;;  %v2975_v12 = vunpack.c.l.b16 %v2941_v45  ;;  %10205 = vmatmul.msk.bf16.gmra.mxu1 %vm1477_vm11, %v3389_v55  ;;  %v4503_v61 = vld [vmem:[#allocation2 + $0x18] sm:$0xe] }
 0x1a8   : > { %v3084_v1 = vpop.f32.mrf.mxu0  ;;  %v3951_v52 = vrot.slane %v3949_v53, 5  ;;  %v10965_v53 = vld [vmem:[#allocation2 + $0x18] sm:$0xff] }
 0x1a9   : > { %v3144_v42 = vadd.f32 %v3082_v29, %v2490_v26  ;;  %v3943_v29 = vrot.slane %v3941_v25, 5  ;;  %v2991_v58 = vpack.c.b16 %v2975_v12, %v2974_v35  ;;  %v3961_v25 = vrot.slane %v3959_v11, 4  ;;  %v12241_v35 = vld [vmem:[#allocation2 + $0x38] sm:$0x1]  ;;  %v3858_v11 = vld [vmem:[#allocation2 + $0x3c] sm:$0xf] }
 0x1ab   : > { %v12217_v37 = vadd.f32 %v12163_v16, %v3144_v42  ;;  %v4569_v16 = vrot.slane %v12138_v47, 5  ;;  %v3944_v26 = vsel %vm11272_vm13, %v3939_v32, %v3943_v29  ;;  %v10304_v47 = vrot.slane %v4503_v61, 9 }
 0x1ac   : > { %v2144_v30 = vpop.f32.mrf.mxu2  ;;  %10288 = vmatmul.msk.bf16.vlgmr.msra.gmra.mxu3 %vm1477_vm11, %v4315_v2  ;;  %v4286_v40 = vunpack.c.l.b16 %v3944_v26  ;;  %v3948_v42 = vrot.slane %v3946_v0, 4 }
 0x1ad   : > { %v2205_v51 = vadd.f32 %v2144_v30, %v11865_v5  ;;  %v12227_v39 = vpop.f32.mrf.mxu1  ;;  %v3934_v5 = vsel %vm11272_vm13, %v3929_v33, %v3933_v31  ;;  %v4571_v45 = vrot.slane %v4569_v16, 4  ;;  %v4570_v33 = vsel %vm11652_vm0, %v10304_v47, %v4569_v16 }
 0x1ae   : > { %v4285_v2 = vunpack.c.l.b16 %v3934_v5  ;;  %v3952_v29 = vor.u32 %v3951_v52, %v3948_v42  ;;  %v3970_v42 = vshrl.u32 %v3858_v11, 16  ;;  %v3973_v52 = vshll.u32 %v3858_v11, 16 }
 0x1af   : > { %v2491_v59 = vadd.f32 %v12158_v17, %v2205_v51  ;;  %v12224_v9 = vpop.f32.mrf.mxu3  ;;  %v3955_v17 = vshll.u32 %v12221_v38, 16  ;;  %v4573_v21 = vsel %vm11652_vm0, %v4571_v45, %v4572_v34  ;;  %v12255_v45 = vld [vmem:[#allocation2 + $0x40] sm:$0xf] }
 0x1b0   : > { %v3087_v23 = vpop.f32.mrf.mxu0  ;;  %v4682_v61 = vunpack.c.l.b16 %v4573_v21  ;;  %v3953_v16 = vrot.slane %v3952_v29, 4  ;;  %v4579_v21 = vrot.slane %v12204_v14, 5 }
 0x1b1   : > { %10074 = vmatmul.msk.bf16.gmra.mxu2 %vm1477_vm11, %v2051_v22  ;;  %v12232_v55 = vadd.f32 %v3084_v1, %v2491_v59  ;;  %v3957_v7 = vrot.slane %v3955_v17, 5  ;;  %v4316_v22 = vpack.c.b16 %v4286_v40, %v4285_v2  ;;  %v4681_v59 = vunpack.c.l.b16 %v4570_v33  ;;  %v4504_v2 = vld [vmem:[#allocation2 + $0x24] sm:$0xe] }
 0x1b3   : > { %10172 = vmatmul.msk.bf16.gmra.mxu0 %vm1477_vm11, %v2991_v58  ;;  %v3965_v58 = vshll.u32 %v12241_v35, 16  ;;  %v4713_v47 = vpack.c.b16 %v4682_v61, %v4681_v59  ;;  %v12275_v61 = vld [vmem:[#allocation2 + $0x44] sm:$0x1] }
 0x1b4   : > { %v2147_v31 = vpop.f32.mrf.mxu2 }
 0x1b5   : > { %v2206_v1 = vadd.f32 %v2147_v31, %v11888_v49  ;;  %v3490_v32 = vpop.f32.mrf.mxu1  ;;  %v3962_v49 = vor.u32 %v3961_v25, %v3957_v7  ;;  %v3967_v17 = vrot.slane %v3965_v58, 5 }
 0x1b7   : > { %v2492_v30 = vadd.f32 %v12179_v10, %v2206_v1  ;;  %v12248_v51 = vpop.f32.mrf.mxu3  ;;  %v3963_v26 = vrot.slane %v3962_v49, 4  ;;  %v3975_v49 = vrot.slane %v3973_v52, 5 }
 0x1b8   : > { %v3089_v12 = vpop.f32.mrf.mxu0 }
 0x1b9   : > { %v3146_v41 = vadd.f32 %v3087_v23, %v2492_v30  ;;  %v3968_v25 = vsel %vm11272_vm13, %v3963_v26, %v3967_v17  ;;  %v3983_v30 = vshrl.u32 %v12255_v45, 16  ;;  %v11002_v26 = vld [vmem:[%s15293_s4 + $0x28] sm:$0xff] }
 0x1ba   : > { %v4288_v29 = vunpack.c.l.b16 %v3968_v25  ;;  %6048 = vmatpush.bf16.msra.mxu1 %v11002_v26 }
 0x1bb   : > { %v12251_v5 = vadd.f32 %v3485_v8, %v3146_v41  ;;  %v4576_v8 = vrot.slane %v12176_v28, 5  ;;  %v10305_v28 = vrot.slane %v4504_v2, 9  ;;  %v3972_v41 = vrot.slane %v3970_v42, 4 }
 0x1bc   : > { %v2149_v10 = vpop.f32.mrf.mxu2  ;;  %10289 = vmatmul.msk.bf16.gmra.mxu3 %vm1477_vm11, %v4316_v22  ;;  %v3985_v59 = vrot.slane %v3983_v30, 4  ;;  %v3989_v2 = vshll.u32 %v12275_v61, 16  ;;  %v10966_v30 = vld [vmem:[#allocation2 + $0x24] sm:$0xff] }
 0x1bd   : > { %v2207_v0 = vadd.f32 %v2149_v10, %v11905_v54  ;;  %v12261_v40 = vpop.f32.mrf.mxu1  ;;  %v3958_v54 = vsel %vm11272_vm13, %v3953_v16, %v3957_v7  ;;  %v4578_v33 = vrot.slane %v4576_v8, 4  ;;  %v3976_v11 = vor.u32 %v3975_v49, %v3972_v41 }
 0x1be   : > { %15334 = vst [vmem:[#allocation24_spill] sm:$0xff] %v12261_v40  ;;  %v4287_v22 = vunpack.c.l.b16 %v3958_v54  ;;  %v12574_v40 = vld [vmem:[#allocation2 + $0xa0] sm:$0xf] }
 0x1bf   : > { %v2493_v34 = vadd.f32 %v12212_v43, %v2207_v0  ;;  %v12258_v31 = vpop.f32.mrf.mxu3  ;;  %v3979_v43 = vshll.u32 %v12255_v45, 16  ;;  %v4577_v0 = vsel %vm11652_vm0, %v10305_v28, %v4576_v8  ;;  %v4580_v14 = vsel %vm11652_vm0, %v4578_v33, %v4579_v21 }
 0x1c0   : > { %v3092_v23 = vpop.f32.mrf.mxu0  ;;  %v4684_v54 = vunpack.c.l.b16 %v4580_v14  ;;  %v1802_v8 = vadd.f32 %v11631_v20, %v11679_v50  ;;  %v3977_v25 = vrot.slane %v3976_v11, 4  ;;  %v3991_v33 = vrot.slane %v3989_v2, 5  ;;  %v4505_v50 = vld [vmem:[#allocation2 + $0x30] sm:$0xe] }
 0x1c1   : > { %10271 = vmatmul.msk.bf16.vlgmr.msra.gmra.mxu2 %vm1477_vm11, %v10965_v53  ;;  %v12266_v1 = vadd.f32 %v3089_v12, %v2493_v34  ;;  %v3981_v58 = vrot.slane %v3979_v43, 5  ;;  %v4583_v20 = vrot.slane %v12221_v38, 5  ;;  %v10306_v38 = vrot.slane %v4505_v50, 9 }
 0x1c3   : > { %10321 = vmatmul.msk.bf16.vlgmr.msra.gmra.mxu0 %vm1477_vm11, %v4713_v47  ;;  %v3986_v34 = vor.u32 %v3985_v59, %v3981_v58  ;;  %v3982_v49 = vsel %vm11272_vm13, %v3977_v25, %v3981_v58  ;;  %v4585_v26 = vrot.slane %v4583_v20, 4 }
 0x1c4   : > { %v2152_v7 = vpop.f32.mrf.mxu2  ;;  %v4289_v11 = vunpack.c.l.b16 %v3982_v49 }
 0x1c5   : > { %v2208_v12 = vadd.f32 %v2152_v7, %v11646_v56  ;;  %v4317_v56 = vpack.c.b16 %v4288_v29, %v4287_v22  ;;  %v3495_v17 = vpop.f32.mrf.mxu1  ;;  %v3987_v28 = vrot.slane %v3986_v34, 4  ;;  %v12293_v7 = vld [vmem:[#allocation2 + $0x4c] sm:$0xf] }
 0x1c6   : > { %v4007_v14 = vshrl.u32 %v12293_v7, 16 }
 0x1c7   : > { %v2494_v16 = vadd.f32 %v12224_v9, %v2208_v12  ;;  %v12282_v53 = vpop.f32.mrf.mxu3  ;;  %v4683_v9 = vunpack.c.l.b16 %v4577_v0  ;;  %v3992_v0 = vsel %vm11272_vm13, %v3987_v28, %v3991_v33 }
 0x1c8   : > { %v3094_v10 = vpop.f32.mrf.mxu0 }
 0x1c9   : > { %v3148_v47 = vadd.f32 %v3092_v23, %v2494_v16  ;;  %v3861_v23 = vld [vmem:[#allocation2 + $0x48] sm:$0xf]  ;;  %v4714_v21 = vpack.c.b16 %v4684_v54, %v4683_v9 }
 0x1ca   : > { %v3994_v12 = vshrl.u32 %v3861_v23, 16  ;;  %v3997_v59 = vshll.u32 %v3861_v23, 16 }
 0x1cb   : > { %v12290_v42 = vadd.f32 %v3490_v32, %v3148_v47  ;;  %v4290_v47 = vunpack.c.l.b16 %v3992_v0  ;;  %v15339_v0 = vld [vmem:[#allocation9_spill] sm:$0xff] }
 0x1cc   : > { %v2154_v52 = vpop.f32.mrf.mxu2  ;;  %10290 = vmatmul.msk.bf16.gmra.mxu3 %vm1477_vm11, %v4317_v56  ;;  %v4586_v56 = vrot.slane %v12241_v35, 5  ;;  %v3996_v34 = vrot.slane %v3994_v12, 4  ;;  %v3999_v2 = vrot.slane %v3997_v59, 5 }
 0x1cd   : > { %15335 = vst [vmem:[#allocation25_spill] sm:$0xff] %v12290_v42  ;;  %v2209_v43 = vadd.f32 %v2154_v52, %v1802_v8  ;;  %v12299_v32 = vpop.f32.mrf.mxu1  ;;  %v4009_v8 = vrot.slane %v4007_v14, 4  ;;  %v12313_v52 = vld [vmem:[#allocation2 + $0x50] sm:$0x1]  ;;  %v4318_v33 = vpack.c.b16 %v4290_v47, %v4289_v11  ;;  %v3864_v47 = vld [vmem:[#allocation2 + $0x54] sm:$0xf] }
 0x1ce   : > { %15336 = vst [vmem:[#allocation26_spill] sm:$0xff] %v12299_v32  ;;  %v4587_v35 = vsel %vm11652_vm0, %v4585_v26, %v4586_v56  ;;  %v4013_v49 = vshll.u32 %v12313_v52, 16  ;;  %v10967_v56 = vld [vmem:[#allocation2 + $0x30] sm:$0xff] }
 0x1cf   : > { %v2495_v29 = vadd.f32 %v12248_v51, %v2209_v43  ;;  %v12296_v41 = vpop.f32.mrf.mxu3  ;;  %v4003_v51 = vshll.u32 %v12293_v7, 16  ;;  %v4686_v59 = vunpack.c.l.b16 %v4587_v35  ;;  %v4018_v35 = vshrl.u32 %v3864_v47, 16 }
 0x1d0   : > { %v3097_v22 = vpop.f32.mrf.mxu0  ;;  %v4015_v11 = vrot.slane %v4013_v49, 5 }
 0x1d1   : > { %10272 = vmatmul.msk.bf16.gmra.mxu2 %vm1477_vm11, %v10966_v30  ;;  %v12304_v16 = vadd.f32 %v3094_v10, %v2495_v29  ;;  %v15338_v10 = vld [vmem:[#allocation7_spill] sm:$0xff]  ;;  %v4005_v54 = vrot.slane %v4003_v51, 5  ;;  %v4584_v30 = vsel %vm11652_vm0, %v10306_v38, %v4583_v20  ;;  %v15340_v51 = vld [vmem:[#allocation6_spill] sm:$0xff] }
 0x1d2   : > { %v4685_v12 = vunpack.c.l.b16 %v4584_v30 }
 0x1d3   : > { %15337 = vst [vmem:[#allocation27_spill] sm:$0xff] %v12304_v16  ;;  %10322 = vmatmul.msk.bf16.gmra.mxu0 %vm1477_vm11, %v4714_v21  ;;  %v4000_v21 = vor.u32 %v3999_v2, %v3996_v34  ;;  %v4010_v50 = vor.u32 %v4009_v8, %v4005_v54  ;;  %v12328_v34 = vld [vmem:[#allocation2 + $0x58] sm:$0xf]  ;;  %v4506_v8 = vld [vmem:[#allocation2 + $0x3c] sm:$0xe] }
 0x1d4   : > { %v2157_v58 = vpop.f32.mrf.mxu2 }
 0x1d5   : > { %v2210_v9 = vadd.f32 %v2157_v58, %v15338_v10  ;;  %v3500_v23 = vpop.f32.mrf.mxu1  ;;  %v4001_v38 = vrot.slane %v4000_v21, 4  ;;  %v4011_v58 = vrot.slane %v4010_v50, 4  ;;  %v4031_v50 = vshrl.u32 %v12328_v34, 16 }
 0x1d7   : > { %v2496_v43 = vadd.f32 %v12258_v31, %v2210_v9  ;;  %v12320_v28 = vpop.f32.mrf.mxu3  ;;  %v1807_v31 = vadd.f32 %v15340_v51, %v15339_v0  ;;  %v4006_v30 = vsel %vm11272_vm13, %v4001_v38, %v4005_v54  ;;  %v4020_v51 = vrot.slane %v4018_v35, 4 }
 0x1d8   : > { %v3099_v25 = vpop.f32.mrf.mxu0 }
 0x1d9   : > { %v3150_v29 = vadd.f32 %v3097_v22, %v2496_v43  ;;  %v4715_v22 = vpack.c.b16 %v4686_v59, %v4685_v12  ;;  %v4593_v12 = vrot.slane %v12275_v61, 5  ;;  %v4291_v59 = vunpack.c.l.b16 %v4006_v30 }
 0x1db   : > { %v12325_v14 = vadd.f32 %v3495_v17, %v3150_v29  ;;  %v4590_v17 = vrot.slane %v12255_v45, 5  ;;  %v4016_v29 = vsel %vm11272_vm13, %v4011_v58, %v4015_v11  ;;  %v10307_v45 = vrot.slane %v4506_v8, 9 }
 0x1dc   : > { %v2159_v20 = vpop.f32.mrf.mxu2  ;;  %10291 = vmatmul.msk.bf16.gmra.mxu3 %vm1477_vm11, %v4318_v33  ;;  %v4021_v33 = vshll.u32 %v3864_v47, 16  ;;  %v4292_v0 = vunpack.c.l.b16 %v4016_v29 }
 0x1dd   : > { %15341 = vst [vmem:[#allocation7_spill] sm:$0xff] %v12325_v14  ;;  %v2211_v26 = vadd.f32 %v2159_v20, %v1807_v31  ;;  %v12334_v43 = vpop.f32.mrf.mxu1  ;;  %v4592_v49 = vrot.slane %v4590_v17, 4  ;;  %v4591_v47 = vsel %vm11652_vm0, %v10307_v45, %v4590_v17 }
 0x1de   : > { %15342 = vst [vmem:[#allocation9_spill] sm:$0xff] %v12334_v43  ;;  %v4023_v31 = vrot.slane %v4021_v33, 5 }
 0x1df   : > { %v2497_v10 = vadd.f32 %v12282_v53, %v2211_v26  ;;  %v12331_v9 = vpop.f32.mrf.mxu3  ;;  %v4027_v53 = vshll.u32 %v12328_v34, 16  ;;  %v4033_v26 = vrot.slane %v4031_v50, 4  ;;  %v4594_v61 = vsel %vm11652_vm0, %v4592_v49, %v4593_v12  ;;  %v10968_v12 = vld [vmem:[#allocation2 + $0x3c] sm:$0xff] }
 0x1e0   : > { %v3102_v2 = vpop.f32.mrf.mxu0  ;;  %v4024_v30 = vor.u32 %v4023_v31, %v4020_v51  ;;  %v4688_v50 = vunpack.c.l.b16 %v4594_v61  ;;  %v3867_v51 = vld [vmem:[#allocation2 + $0x60] sm:$0xf]  ;;  %v12363_v31 = vld [vmem:[#allocation2 + $0x64] sm:$0xf]  ;;  %v4507_v61 = vld [vmem:[#allocation2 + $0x48] sm:$0xe] }
 0x1e1   : > { %10273 = vmatmul.msk.bf16.gmra.mxu2 %vm1477_vm11, %v10967_v56  ;;  %v12339_v21 = vadd.f32 %v3099_v25, %v2497_v10  ;;  %v15344_v25 = vld [vmem:[#allocation10_spill] sm:$0xff]  ;;  %v4029_v38 = vrot.slane %v4027_v53, 5  ;;  %v4319_v10 = vpack.c.b16 %v4292_v0, %v4291_v59  ;;  %v4687_v53 = vunpack.c.l.b16 %v4591_v47 }
 0x1e2   : > { %v12348_v56 = vld [vmem:[#allocation2 + $0x5c] sm:$0x1]  ;;  %v4025_v45 = vrot.slane %v4024_v30, 4  ;;  %v4042_v30 = vshrl.u32 %v3867_v51, 16 }
 0x1e3   : > { %15343 = vst [vmem:[#allocation6_spill] sm:$0xff] %v12339_v21  ;;  %10323 = vmatmul.msk.bf16.gmra.mxu0 %vm1477_vm11, %v4715_v22  ;;  %v4034_v33 = vor.u32 %v4033_v26, %v4029_v38  ;;  %v4037_v29 = vshll.u32 %v12348_v56, 16  ;;  %v15378_v21 = vld [vmem:[#allocation21_spill] sm:$0xff] }
 0x1e4   : > { %v2162_v54 = vpop.f32.mrf.mxu2 }
 0x1e5   : > { %v2212_v20 = vadd.f32 %v2162_v54, %v15344_v25  ;;  %v3505_v8 = vpop.f32.mrf.mxu1  ;;  %v15345_v54 = vld [vmem:[#allocation11_spill] sm:$0xff]  ;;  %v15346_v25 = vld [vmem:[#allocation8_spill] sm:$0xff]  ;;  %v4035_v59 = vrot.slane %v4034_v33, 4  ;;  %v4039_v0 = vrot.slane %v4037_v29, 5 }
 0x1e7   : > { %v2498_v11 = vadd.f32 %v12296_v41, %v2212_v20  ;;  %v12355_v22 = vpop.f32.mrf.mxu3  ;;  %v1812_v41 = vadd.f32 %v15346_v25, %v15345_v54  ;;  %v4040_v29 = vsel %vm11272_vm13, %v4035_v59, %v4039_v0 }
 0x1e8   : > { %v3104_v58 = vpop.f32.mrf.mxu0 }
 0x1e9   : > { %v3152_v35 = vadd.f32 %v3102_v2, %v2498_v11  ;;  %v4716_v2 = vpack.c.b16 %v4688_v50, %v4687_v53  ;;  %v4051_v53 = vshll.u32 %v12363_v31, 16  ;;  %v10308_v50 = vrot.slane %v4507_v61, 9 }
 0x1eb   : > { %v12360_v20 = vadd.f32 %v3500_v23, %v3152_v35  ;;  %v4597_v23 = vrot.slane %v12293_v7, 5  ;;  %v4045_v35 = vshll.u32 %v3867_v51, 16  ;;  %v4053_v59 = vrot.slane %v4051_v53, 5  ;;  %v12383_v51 = vld [vmem:[#allocation2 + $0x68] sm:$0x1] }
 0x1ec   : > { %v2164_v17 = vpop.f32.mrf.mxu2  ;;  %10292 = vmatmul.msk.bf16.gmra.mxu3 %vm1477_vm11, %v4319_v10  ;;  %v4030_v10 = vsel %vm11272_vm13, %v4025_v45, %v4029_v38  ;;  %v4600_v38 = vrot.slane %v12313_v52, 5  ;;  %v4061_v53 = vshll.u32 %v12383_v51, 16 }
 0x1ed   : > { %15347 = vst [vmem:[#allocation10_spill] sm:$0xff] %v12360_v20  ;;  %v2213_v49 = vadd.f32 %v2164_v17, %v1812_v41  ;;  %v12379_v7 = vpop.f32.mrf.mxu1  ;;  %v4599_v54 = vrot.slane %v4597_v23, 4  ;;  %v4293_v41 = vunpack.c.l.b16 %v4030_v10  ;;  %v4294_v17 = vunpack.c.l.b16 %v4040_v29 }
 0x1ee   : > { %15349 = vst [vmem:[#allocation8_spill] sm:$0xff] %v12379_v7  ;;  %v4047_v45 = vrot.slane %v4045_v35, 5  ;;  %v4598_v61 = vsel %vm11652_vm0, %v10308_v50, %v4597_v23  ;;  %v15352_v50 = vld [vmem:[#allocation13_spill] sm:$0xff]  ;;  %v4063_v43 = vrot.slane %v4061_v53, 5  ;;  %v4607_v53 = vrot.slane %v12348_v56, 5 }
 0x1ef   : > { %v2499_v11 = vadd.f32 %v12320_v28, %v2213_v49  ;;  %v12366_v47 = vpop.f32.mrf.mxu3  ;;  %v4055_v28 = vshrl.u32 %v12363_v31, 16  ;;  %v15350_v49 = vld [vmem:[#allocation12_spill] sm:$0xff]  ;;  %v4601_v52 = vsel %vm11652_vm0, %v4599_v54, %v4600_v38  ;;  %v4320_v10 = vpack.c.b16 %v4294_v17, %v4293_v41 }
 0x1f0   : > { %v3107_v26 = vpop.f32.mrf.mxu0  ;;  %v10969_v54 = vld [vmem:[#allocation2 + $0x48] sm:$0xff] }
 0x1f1   : > { %10274 = vmatmul.msk.bf16.gmra.mxu2 %vm1477_vm11, %v10968_v12  ;;  %v12372_v33 = vadd.f32 %v3104_v58, %v2499_v11  ;;  %v4044_v58 = vrot.slane %v4042_v30, 4  ;;  %v4057_v0 = vrot.slane %v4055_v28, 4  ;;  %v4689_v28 = vunpack.c.l.b16 %v4598_v61  ;;  %v3870_v41 = vld [vmem:[#allocation2 + $0x6c] sm:$0xf] }
 0x1f3   : > { %15348 = vst [vmem:[#allocation11_spill] sm:$0xff] %v12372_v33  ;;  %10324 = vmatmul.msk.bf16.gmra.mxu0 %vm1477_vm11, %v4716_v2  ;;  %v4048_v30 = vor.u32 %v4047_v45, %v4044_v58  ;;  %v4058_v29 = vor.u32 %v4057_v0, %v4053_v59 }
 0x1f4   : > { %v2167_v25 = vpop.f32.mrf.mxu2 }
 0x1f5   : > { %v2214_v12 = vadd.f32 %v2167_v25, %v15350_v49  ;;  %v4690_v25 = vunpack.c.l.b16 %v4601_v52  ;;  %v4049_v23 = vrot.slane %v4048_v30, 4  ;;  %v4059_v38 = vrot.slane %v4058_v29, 4 }
 0x1f6   : > { %v4066_v52 = vshrl.u32 %v3870_v41, 16 }
 0x1f7   : > { %v2500_v2 = vadd.f32 %v12331_v9, %v2214_v12  ;;  %v12390_v20 = vpop.f32.mrf.mxu3  ;;  %v3510_v9 = vpop.f32.mrf.mxu1  ;;  %v4717_v17 = vpack.c.b16 %v4690_v25, %v4689_v28  ;;  %v4054_v61 = vsel %vm11272_vm13, %v4049_v23, %v4053_v59  ;;  %v4064_v30 = vsel %vm11272_vm13, %v4059_v38, %v4063_v43  ;;  %v12417_v38 = vld [vmem:[#allocation2 + $0x74] sm:$0x1] }
 0x1f8   : > { %v3109_v11 = vpop.f32.mrf.mxu0  ;;  %v4295_v28 = vunpack.c.l.b16 %v4054_v61  ;;  %v4296_v25 = vunpack.c.l.b16 %v4064_v30  ;;  %v4068_v23 = vrot.slane %v4066_v52, 4  ;;  %v11001_v52 = vld [vmem:[%s15293_s4 + $0x20] sm:$0xff] }
 0x1f9   : > { %v3154_v35 = vadd.f32 %v3107_v26, %v2500_v2  ;;  %v12397_v26 = vld [vmem:[#allocation2 + $0x70] sm:$0xf]  ;;  %v4508_v2 = vld [vmem:[#allocation2 + $0x54] sm:$0xe]  ;;  %6049 = vmatpush.bf16.msra.mxu1 %v11001_v52 }
 0x1fb   : > { %v12393_v49 = vadd.f32 %v3505_v8, %v3154_v35  ;;  %v4604_v8 = vrot.slane %v12328_v34, 5  ;;  %v4075_v35 = vshll.u32 %v12397_v26, 16  ;;  %v10309_v34 = vrot.slane %v4508_v2, 9 }
 0x1fc   : > { %v2169_v7 = vpop.f32.mrf.mxu2  ;;  %10293 = vmatmul.msk.bf16.gmra.mxu3 %vm1477_vm11, %v4320_v10 }
 0x1fd   : > { %15351 = vst [vmem:[#allocation12_spill] sm:$0xff] %v12393_v49  ;;  %v2215_v12 = vadd.f32 %v2169_v7, %v15352_v50  ;;  %v4069_v7 = vshll.u32 %v3870_v41, 16  ;;  %v4606_v29 = vrot.slane %v4604_v8, 4  ;;  %v4605_v2 = vsel %vm11652_vm0, %v10309_v34, %v4604_v8 }
 0x1ff   : > { %v2501_v45 = vadd.f32 %v12355_v22, %v2215_v12  ;;  %v12400_v0 = vpop.f32.mrf.mxu3  ;;  %v4079_v22 = vshrl.u32 %v12397_v26, 16  ;;  %v4071_v50 = vrot.slane %v4069_v7, 5  ;;  %v12415_v43 = vpop.f32.mrf.mxu1  ;;  %v4608_v56 = vsel %vm11652_vm0, %v4606_v29, %v4607_v53  ;;  %v15357_v29 = vld [vmem:[#allocation15_spill] sm:$0xff] }
 0x200   : > { %v3112_v58 = vpop.f32.mrf.mxu0  ;;  %v4321_v7 = vpack.c.b16 %v4296_v25, %v4295_v28  ;;  %v3873_v28 = vld [vmem:[#allocation2 + $0x78] sm:$0xf] }
 0x201   : > { %10275 = vmatmul.msk.bf16.gmra.mxu2 %vm1477_vm11, %v10969_v54  ;;  %v12406_v10 = vadd.f32 %v3109_v11, %v2501_v45  ;;  %v15354_v11 = vld [vmem:[#allocation14_spill] sm:$0xff]  ;;  %v4077_v54 = vrot.slane %v4075_v35, 5  ;;  %v4081_v41 = vrot.slane %v4079_v22, 4  ;;  %v4072_v30 = vor.u32 %v4071_v50, %v4068_v23 }
 0x202   : > { %15355 = vst [vmem:[#allocation14_spill] sm:$0xff] %v12415_v43  ;;  %v10970_v43 = vld [vmem:[#allocation2 + $0x54] sm:$0xff]  ;;  %v4090_v52 = vshrl.u32 %v3873_v28, 16 }
 0x203   : > { %15353 = vst [vmem:[#allocation13_spill] sm:$0xff] %v12406_v10  ;;  %10325 = vmatmul.msk.bf16.gmra.mxu0 %vm1477_vm11, %v4717_v17  ;;  %v4082_v22 = vor.u32 %v4081_v41, %v4077_v54  ;;  %v4073_v34 = vrot.slane %v4072_v30, 4 }
 0x204   : > { %v2172_v59 = vpop.f32.mrf.mxu2 }
 0x205   : > { %v2216_v12 = vadd.f32 %v2172_v59, %v15354_v11  ;;  %v4085_v59 = vshll.u32 %v12417_v38, 16  ;;  %v4692_v11 = vunpack.c.l.b16 %v4608_v56  ;;  %v4083_v49 = vrot.slane %v4082_v22, 4 }
 0x206   : > { %v4078_v56 = vsel %vm11272_vm13, %v4073_v34, %v4077_v54  ;;  %v4092_v34 = vrot.slane %v4090_v52, 4 }
 0x207   : > { %v2502_v17 = vadd.f32 %v12366_v47, %v2216_v12  ;;  %v12424_v61 = vpop.f32.mrf.mxu3  ;;  %v4691_v47 = vunpack.c.l.b16 %v4605_v2  ;;  %v4087_v10 = vrot.slane %v4085_v59, 5  ;;  %v4509_v2 = vld [vmem:[#allocation2 + $0x60] sm:$0xe] }
 0x208   : > { %v3114_v45 = vpop.f32.mrf.mxu0 }
 0x209   : > { %v3156_v35 = vadd.f32 %v3112_v58, %v2502_v17  ;;  %v4718_v25 = vpack.c.b16 %v4692_v11, %v4691_v47  ;;  %v12434_v58 = vld [vmem:[#allocation2 + $0x7c] sm:$0xf]  ;;  %v3515_v17 = vpop.f32.mrf.mxu1  ;;  %v4614_v47 = vrot.slane %v12383_v51, 5  ;;  %v4297_v11 = vunpack.c.l.b16 %v4078_v56 }
 0x20a   : > { %v4103_v22 = vshrl.u32 %v12434_v58, 16 }
 0x20b   : > { %v12430_v12 = vadd.f32 %v3510_v9, %v3156_v35  ;;  %v4611_v9 = vrot.slane %v12363_v31, 5  ;;  %v4088_v35 = vsel %vm11272_vm13, %v4083_v49, %v4087_v10  ;;  %v10310_v31 = vrot.slane %v4509_v2, 9  ;;  %v12452_v49 = vld [vmem:[#allocation2 + $0x80] sm:$0x1] }
 0x20c   : > { %v2174_v8 = vpop.f32.mrf.mxu2  ;;  %10294 = vmatmul.msk.bf16.gmra.mxu3 %vm1477_vm11, %v4321_v7  ;;  %v4093_v7 = vshll.u32 %v3873_v28, 16  ;;  %v4105_v28 = vrot.slane %v4103_v22, 4 }
 0x20d   : > { %15356 = vst [vmem:[#allocation28_spill] sm:$0xff] %v12430_v12  ;;  %v2217_v53 = vadd.f32 %v2174_v8, %v15357_v29  ;;  %v4613_v59 = vrot.slane %v4611_v9, 4  ;;  %v4298_v8 = vunpack.c.l.b16 %v4088_v35 }
 0x20f   : > { %v2503_v50 = vadd.f32 %v12390_v20, %v2217_v53  ;;  %v12437_v41 = vpop.f32.mrf.mxu3  ;;  %v4099_v20 = vshll.u32 %v12434_v58, 16  ;;  %v4615_v51 = vsel %vm11652_vm0, %v4613_v59, %v4614_v47  ;;  %v4322_v56 = vpack.c.b16 %v4298_v8, %v4297_v11  ;;  %v10971_v47 = vld [vmem:[#allocation2 + $0x60] sm:$0xff] }
 0x210   : > { %v3117_v23 = vpop.f32.mrf.mxu0  ;;  %v3876_v8 = vld [vmem:[#allocation2 + $0x84] sm:$0xf] }
 0x211   : > { %10276 = vmatmul.msk.bf16.gmra.mxu2 %vm1477_vm11, %v10970_v43  ;;  %v12443_v30 = vadd.f32 %v3114_v45, %v2503_v50  ;;  %v4095_v43 = vrot.slane %v4093_v7, 5  ;;  %v15359_v45 = vld [vmem:[#allocation16_spill] sm:$0xff]  ;;  %v4101_v53 = vrot.slane %v4099_v20, 5  ;;  %v4109_v20 = vshll.u32 %v12452_v49, 16 }
 0x213   : > { %15358 = vst [vmem:[#allocation15_spill] sm:$0xff] %v12443_v30  ;;  %10326 = vmatmul.msk.bf16.gmra.mxu0 %vm1477_vm11, %v4718_v25  ;;  %v4612_v25 = vsel %vm11652_vm0, %v10310_v31, %v4611_v9  ;;  %v4096_v52 = vor.u32 %v4095_v43, %v4092_v34  ;;  %v4106_v35 = vor.u32 %v4105_v28, %v4101_v53  ;;  %v15362_v31 = vld [vmem:[#allocation17_spill] sm:$0xff]  ;;  %v4111_v11 = vrot.slane %v4109_v20, 5  ;;  %v12468_v34 = vld [vmem:[#allocation2 + $0x88] sm:$0xf] }
 0x214   : > { %v2177_v54 = vpop.f32.mrf.mxu2  ;;  %v4693_v22 = vunpack.c.l.b16 %v4612_v25  ;;  %v4510_v25 = vld [vmem:[#allocation2 + $0x6c] sm:$0xe]  ;;  %v4123_v20 = vshll.u32 %v12468_v34, 16  ;;  %v4632_v32 = vrot.slane %v12468_v34, 5 }
 0x215   : > { %v2218_v29 = vadd.f32 %v2177_v54, %v15359_v45  ;;  %v4694_v54 = vunpack.c.l.b16 %v4615_v51  ;;  %v12462_v45 = vpop.f32.mrf.mxu1  ;;  %v4097_v9 = vrot.slane %v4096_v52, 4  ;;  %v4117_v52 = vshll.u32 %v3876_v8, 16 }
 0x216   : > { %15360 = vst [vmem:[#allocation16_spill] sm:$0xff] %v12462_v45  ;;  %v15365_v45 = vmov 0   ;;  %v4634_v16 = vrot.slane %v4632_v32, 4 }
 0x217   : > { %v2504_v50 = vadd.f32 %v12400_v0, %v2218_v29  ;;  %v12459_v2 = vpop.f32.mrf.mxu3  ;;  %v4107_v29 = vrot.slane %v4106_v35, 4  ;;  %v4102_v51 = vsel %vm11272_vm13, %v4097_v9, %v4101_v53  ;;  %403 = vst.msk [vmem:[#allocation3] sm:$0xf] %vm402_vm1, %v15365_v45 }
 0x218   : > { %v3119_v10 = vpop.f32.mrf.mxu0  ;;  %v4299_v9 = vunpack.c.l.b16 %v4102_v51  ;;  %404 = vst.msk [vmem:[#allocation3 + $0x4] sm:$0xf] %vm402_vm1, %v15365_v45 }
 0x219   : > { %v3158_v7 = vadd.f32 %v3117_v23, %v2504_v50  ;;  %v4719_v23 = vpack.c.b16 %v4694_v54, %v4693_v22  ;;  %v4112_v35 = vsel %vm11272_vm13, %v4107_v29, %v4111_v11  ;;  %v4621_v54 = vrot.slane %v12417_v38, 5  ;;  %v12486_v29 = vld [vmem:[#allocation2 + $0x8c] sm:$0x1]  ;;  %406 = vst.msk [vmem:[#allocation3 + $0x8] sm:$0x1] %vm405_vm2, %v15365_v45 }
 0x21a   : > { %v12488_v11 = vrot.slane %v4123_v20, 5  ;;  %v15366_v20 = vmov 0  ;;  %408 = vst.msk [vmem:[#allocation3 + $0xcc] sm:$0xf] %vm402_vm1, %v15365_v45 }
 0x21b   : > { %v12464_v30 = vadd.f32 %v3515_v17, %v3158_v7  ;;  %v4618_v17 = vrot.slane %v12397_v26, 5  ;;  %v10311_v26 = vrot.slane %v4510_v25, 9  ;;  %v15367_v20 = vsel %vm12503_vm7, 4294967295, %v15366_v20  ;;  %409 = vst.msk [vmem:[#allocation3 + $0xd0] sm:$0xf] %vm402_vm1, %v15365_v45 }
 0x21c   : > { %v2179_v0 = vpop.f32.mrf.mxu2  ;;  %10295 = vmatmul.msk.bf16.gmra.mxu3 %vm1477_vm11, %v4322_v56  ;;  %v4114_v56 = vshrl.u32 %v3876_v8, 16  ;;  %410 = vst.msk [vmem:[#allocation3 + $0xd4] sm:$0x1] %vm405_vm2, %v15365_v45 }
 0x21d   : > { %15361 = vst [vmem:[#allocation29_spill] sm:$0xff] %v12464_v30  ;;  %v2219_v59 = vadd.f32 %v2179_v0, %v15362_v31  ;;  %v4620_v22 = vrot.slane %v4618_v17, 4  ;;  %v3520_v0 = vpop.f32.mrf.mxu1  ;;  %v4300_v31 = vunpack.c.l.b16 %v4112_v35  ;;  %v4619_v25 = vsel %vm11652_vm0, %v10311_v26, %v4618_v17 }
 0x21f   : > { %v2505_v28 = vadd.f32 %v12424_v61, %v2219_v59  ;;  %v12471_v50 = vpop.f32.mrf.mxu3  ;;  %v4127_v61 = vshrl.u32 %v12468_v34, 16  ;;  %v4116_v59 = vrot.slane %v4114_v56, 4  ;;  %v4622_v51 = vsel %vm11652_vm0, %v4620_v22, %v4621_v54 }
 0x220   : > { %v3122_v43 = vpop.f32.mrf.mxu0  ;;  %v4323_v35 = vpack.c.b16 %v4300_v31, %v4299_v9  ;;  %v4695_v54 = vunpack.c.l.b16 %v4619_v25  ;;  %v12523_v25 = vld [vmem:[#allocation2 + $0x94] sm:$0xf] }
 0x221   : > { %10277 = vmatmul.msk.bf16.gmra.mxu2 %vm1477_vm11, %v10971_v47  ;;  %v12477_v7 = vadd.f32 %v3119_v10, %v2505_v28  ;;  %v4119_v10 = vrot.slane %v4117_v52, 5  ;;  %v15364_v47 = vld [vmem:[#allocation18_spill] sm:$0xff]  ;;  %v4129_v28 = vrot.slane %v4127_v61, 4  ;;  %v416_v52 = vld [vmem:[#allocation3 + $0xc] sm:$0x1] }
 0x222   : > { %15368 = vst [vmem:[#allocation18_spill] sm:$0xff] %v15367_v20  ;;  %v417_v61 = vsel %vm12503_vm7, 0, %v416_v52 }
 0x223   : > { %15363 = vst [vmem:[#allocation17_spill] sm:$0xff] %v12477_v7  ;;  %10327 = vmatmul.msk.bf16.gmra.mxu0 %vm1477_vm11, %v4719_v23  ;;  %v4120_v26 = vor.u32 %v4119_v10, %v4116_v59  ;;  %v4130_v22 = vor.u32 %v4129_v28, %v12488_v11  ;;  %v15370_v59 = vld [vmem:[#allocation19_spill] sm:$0xff] }
 0x224   : > { %v2182_v53 = vpop.f32.mrf.mxu2  ;;  %418 = vst [vmem:[#allocation3 + $0xc] sm:$0x1] %v417_v61  ;;  %v4625_v61 = vrot.slane %v12434_v58, 5 }
 0x225   : > { %v2220_v8 = vadd.f32 %v2182_v53, %v15364_v47  ;;  %v4696_v53 = vunpack.c.l.b16 %v4622_v51  ;;  %v10972_v47 = vld [vmem:[#allocation2 + $0x6c] sm:$0xff]  ;;  %v4121_v28 = vrot.slane %v4120_v26, 4  ;;  %v12525_v52 = vpop.f32.mrf.mxu1  ;;  %v4151_v26 = vshrl.u32 %v12523_v25, 16 }
 0x226   : > { %15371 = vst [vmem:[#allocation19_spill] sm:$0xff] %v12525_v52  ;;  %v15376_v52 = vld [vmem:[#allocation20_spill] sm:$0xff] }
 0x227   : > { %v2506_v38 = vadd.f32 %v12437_v41, %v2220_v8  ;;  %v12497_v56 = vpop.f32.mrf.mxu3  ;;  %v4133_v41 = vshll.u32 %v12486_v29, 16  ;;  %v3879_v8 = vld [vmem:[#allocation2 + $0x90] sm:$0xf]  ;;  %v4720_v51 = vpack.c.b16 %v4696_v53, %v4695_v54  ;;  %v4126_v58 = vsel %vm11272_vm13, %v4121_v28, %v12488_v11 }
 0x228   : > { %v3124_v23 = vpop.f32.mrf.mxu0  ;;  %v4138_v45 = vshrl.u32 %v3879_v8, 16 }
 0x229   : > { %v3160_v17 = vadd.f32 %v3122_v43, %v2506_v38  ;;  %v4135_v43 = vrot.slane %v4133_v41, 5  ;;  %v4131_v38 = vrot.slane %v4130_v22, 4  ;;  %v4141_v41 = vshll.u32 %v3879_v8, 16 }
 0x22a   : > { %v15373_v8 = vmov 0  ;;  %v4140_v11 = vrot.slane %v4138_v45, 4 }
 0x22b   : > { %v12515_v9 = vadd.f32 %v3520_v0, %v3160_v17  ;;  %v413_v0 = vld [vmem:[#allocation3] sm:$0x1]  ;;  %v4511_v17 = vld [vmem:[#allocation2 + $0x78] sm:$0xe]  ;;  %v15374_v8 = vsel %vm12545_vm3, 4294967295, %v15373_v8  ;;  %v4143_v28 = vrot.slane %v4141_v41, 5 }
 0x22c   : > { %v2184_v31 = vpop.f32.mrf.mxu2  ;;  %10296 = vmatmul.msk.bf16.gmra.mxu3 %vm1477_vm11, %v4323_v35  ;;  %v414_v22 = vsel %vm12503_vm7, 0, %v413_v0  ;;  %v10312_v53 = vrot.slane %v4511_v17, 9  ;;  %15375 = vst [vmem:[#allocation32_spill] sm:$0xff] %v15374_v8  ;;  %v12553_v17 = vld [vmem:[#allocation2 + $0x98] sm:$0x1] }
 0x22d   : > { %15369 = vst [vmem:[#allocation30_spill] sm:$0xff] %v12515_v9  ;;  %v2221_v10 = vadd.f32 %v2184_v31, %v15370_v59  ;;  %v4147_v31 = vshll.u32 %v12523_v25, 16  ;;  %v468_v59 = vld [vmem:[#allocation3 + $0x8] sm:$0x1] }
 0x22e   : > { %415 = vst [vmem:[#allocation3] sm:$0x1] %v414_v22  ;;  %v4153_v22 = vrot.slane %v4151_v26, 4 }
 0x22f   : > { %v2507_v35 = vadd.f32 %v12459_v2, %v2221_v10  ;;  %v12529_v7 = vpop.f32.mrf.mxu3  ;;  %v4136_v2 = vsel %vm11272_vm13, %v4131_v38, %v4135_v43  ;;  %v469_v10 = vsel %vm12545_vm3, 0, %v468_v59  ;;  %v4301_v38 = vunpack.c.l.b16 %v4126_v58  ;;  %v5473_v59 = vld [vmem:[#allocation3 + $0x4] sm:$0xf] }
 0x230   : > { %v3127_v9 = vpop.f32.mrf.mxu0  ;;  %470 = vst [vmem:[#allocation3 + $0x8] sm:$0x1] %v469_v10  ;;  %v4302_v0 = vunpack.c.l.b16 %v4136_v2  ;;  %v4144_v58 = vor.u32 %v4143_v28, %v4140_v11  ;;  %v4157_v2 = vshll.u32 %v12553_v17, 16  ;;  %v5538_v12 = vshll.u32 %v5473_v59, 16  ;;  %v10973_v11 = vld [vmem:[#allocation2 + $0x78] sm:$0xff] }
 0x231   : > { %10278 = vmatmul.msk.bf16.gmra.mxu2 %vm1477_vm11, %v10972_v47  ;;  %v12536_v54 = vadd.f32 %v3124_v23, %v2507_v35  ;;  %v4627_v23 = vrot.slane %v4625_v61, 4  ;;  %v4628_v47 = vrot.slane %v12452_v49, 5  ;;  %v12555_v35 = vrot.slane %v4147_v31, 5  ;;  %v3525_v31 = vpop.f32.mrf.mxu1 }
 0x232   : > { %v4324_v26 = vpack.c.b16 %v4302_v0, %v4301_v38  ;;  %v4145_v38 = vrot.slane %v4144_v58, 4  ;;  %v4159_v0 = vrot.slane %v4157_v2, 5 }
 0x233   : > { %15372 = vst [vmem:[#allocation31_spill] sm:$0xff] %v12536_v54  ;;  %10328 = vmatmul.msk.bf16.gmra.mxu0 %vm1477_vm11, %v4720_v51  ;;  %v4626_v51 = vsel %vm11652_vm0, %v10312_v53, %v4625_v61  ;;  %v4629_v49 = vsel %vm11652_vm0, %v4627_v23, %v4628_v47  ;;  %v5542_v23 = vshrl.u32 %v5473_v59, 16  ;;  %v471_v47 = vld [vmem:[#allocation3 + $0x14] sm:$0x1] }
 0x234   : > { %v2187_v43 = vpop.f32.mrf.mxu2  ;;  %v4697_v30 = vunpack.c.l.b16 %v4626_v51  ;;  %v4698_v53 = vunpack.c.l.b16 %v4629_v49  ;;  %v472_v28 = vsel %vm12545_vm3, 0, %v471_v47  ;;  %v4512_v51 = vld [vmem:[#allocation2 + $0x84] sm:$0xe] }
 0x235   : > { %v2222_v54 = vadd.f32 %v2187_v43, %v15376_v52  ;;  %v4154_v52 = vor.u32 %v4153_v22, %v12555_v35  ;;  %v5472_v43 = vld [vmem:[#allocation3] sm:$0xf]  ;;  %473 = vst [vmem:[#allocation3 + $0x14] sm:$0x1] %v472_v28  ;;  %v10313_v47 = vrot.slane %v4512_v51, 9 }
 0x236   : > { %v5529_v33 = vshrl.u32 %v5472_v43, 16  ;;  %v5532_v59 = vshll.u32 %v5472_v43, 16  ;;  %v4721_v14 = vpack.c.b16 %v4698_v53, %v4697_v30  ;;  %v4171_v53 = vshll.u32 %v12574_v40, 16 }
 0x237   : > { %v2508_v41 = vadd.f32 %v12471_v50, %v2222_v54  ;;  %v12563_v10 = vpop.f32.mrf.mxu3  ;;  %v5512_v50 = vld [vmem:[#allocation3 + $0x8] sm:$0x1] }
 0x238   : > { %v3129_v45 = vpop.f32.mrf.mxu0  ;;  %v5531_v49 = vrot.slane %v5529_v33, 4  ;;  %v5534_v58 = vrot.slane %v5532_v59, 5  ;;  %v4635_v33 = vrot.slane %v12486_v29, 5  ;;  %v4175_v29 = vshrl.u32 %v12574_v40, 16 }
 0x239   : > { %v3162_v61 = vadd.f32 %v3127_v9, %v2508_v41  ;;  %v4155_v9 = vrot.slane %v4154_v52, 4  ;;  %v5540_v41 = vrot.slane %v5538_v12, 5 }
 0x23a   : > { %v5535_v30 = vor.u32 %v5534_v58, %v5531_v49  ;;  %v4177_v49 = vrot.slane %v4175_v29, 4  ;;  %v4633_v58 = vsel %vm11652_vm0, %v10313_v47, %v4632_v32 }
 0x23b   : > { %v12568_v54 = vadd.f32 %v3525_v31, %v3162_v61  ;;  %v5544_v31 = vrot.slane %v5542_v23, 4  ;;  %v5548_v61 = vshll.u32 %v5512_v50, 16 }
 0x23c   : > { %v2189_v22 = vpop.f32.mrf.mxu2  ;;  %10297 = vmatmul.msk.bf16.gmra.mxu3 %vm1477_vm11, %v4324_v26  ;;  %v5536_v51 = vrot.slane %v5535_v30, 4 }
 0x23d   : > { %15377 = vst [vmem:[#allocation20_spill] sm:$0xff] %v12568_v54  ;;  %v2223_v34 = vadd.f32 %v2189_v22, %v15378_v21  ;;  %v3882_v54 = vld [vmem:[#allocation2 + $0x9c] sm:$0xf]  ;;  %v5545_v12 = vor.u32 %v5544_v31, %v5540_v41  ;;  %v5550_v52 = vrot.slane %v5548_v61, 5  ;;  %v4150_v21 = vsel %vm11272_vm13, %v4145_v38, %v12555_v35 }
 0x23e   : > { %v4162_v2 = vshrl.u32 %v3882_v54, 16  ;;  %v4165_v43 = vshll.u32 %v3882_v54, 16  ;;  %v12591_v35 = vrot.slane %v4171_v53, 5  ;;  %v419_v54 = vld [vmem:[#allocation3 + $0x18] sm:$0x1]  ;;  %v4303_v38 = vunpack.c.l.b16 %v4150_v21 }
 0x23f   : > { %v2509_v26 = vadd.f32 %v12497_v56, %v2223_v34  ;;  %v12577_v28 = vpop.f32.mrf.mxu3  ;;  %v4160_v56 = vsel %vm11272_vm13, %v4155_v9, %v4159_v0  ;;  %v5546_v50 = vrot.slane %v5545_v12, 4  ;;  %v420_v0 = vsel %vm12503_vm7, 0, %v419_v54  ;;  %v4513_v12 = vld [vmem:[#allocation2 + $0x90] sm:$0xe] }
 0x240   : > { %v4789_v42 = vpop.f32.mrf.mxu0  ;;  %v4164_v22 = vrot.slane %v4162_v2, 4  ;;  %v4167_v59 = vrot.slane %v4165_v43, 5  ;;  %v4304_v9 = vunpack.c.l.b16 %v4160_v56  ;;  %v4636_v2 = vsel %vm11652_vm0, %v4634_v16, %v4635_v33  ;;  %421 = vst [vmem:[#allocation3 + $0x18] sm:$0x1] %v420_v0  ;;  %v12620_v56 = vld [vmem:[%s15292_s3] ss:$0 sm:$0xff] }
 0x241   : > { %10279 = vmatmul.msk.bf16.gmra.mxu2 %vm1477_vm11, %v10973_v11  ;;  %v12585_v23 = vadd.f32 %v3129_v45, %v2509_v26  ;;  %v5551_v11 = vsel %vm11272_vm13, %v5546_v50, %v5550_v52  ;;  %v12595_v45 = vld [vmem:[#allocation2 + $0xa4] sm:$0x1]  ;;  %v4178_v21 = vor.u32 %v4177_v49, %v12591_v35  ;;  %v4639_v33 = vrot.slane %v12523_v25, 5 }
 0x242   : > { %v5922_v31 = vunpack.c.l.b16 %v5551_v11  ;;  %v4168_v52 = vor.u32 %v4167_v59, %v4164_v22  ;;  %v4181_v30 = vshll.u32 %v12595_v45, 16  ;;  %v4325_v47 = vpack.c.b16 %v4304_v9, %v4303_v38  ;;  %v474_v22 = vld [vmem:[#allocation3 + $0x20] sm:$0x1] }
 0x243   : > { %10329 = vmatmul.msk.bf16.gmra.mxu0 %vm1477_vm11, %v4721_v14  ;;  %v5541_v14 = vsel %vm11272_vm13, %v5536_v51, %v5540_v41  ;;  %v4699_v50 = vunpack.c.l.b16 %v4633_v58  ;;  %v4700_v29 = vunpack.c.l.b16 %v4636_v2  ;;  %v11000_v51 = vld [vmem:[%s15293_s4 + $0x18] sm:$0xff]  ;;  %v4179_v54 = vrot.slane %v4178_v21, 4  ;;  %v3885_v58 = vld [vmem:[#allocation2 + $0xa8] sm:$0xf]  ;;  %v12637_v2 = vld [vmem:[#allocation2 + $0xac] sm:$0xf] }
 0x244   : > { %v3737_v34 = vpop.f32.mrf.mxu2  ;;  %v5921_v26 = vunpack.c.l.b16 %v5541_v14  ;;  %v4169_v59 = vrot.slane %v4168_v52, 4  ;;  %v4183_v38 = vrot.slane %v4181_v30, 5  ;;  %v475_v25 = vsel %vm12545_vm3, 0, %v474_v22  ;;  %6287 = vmatpush.bf16.msrb.mxu2 %v11000_v51 }
 0x245   : > { %v3817_v61 = vadd.f32 %v3737_v34, %v11945_v57  ;;  %v12612_v57 = vld [vmem:[%s15291_s2] ss:$0 sm:$0xff]  ;;  %476 = vst [vmem:[#allocation3 + $0x20] sm:$0x1] %v475_v25  ;;  %v4641_v49 = vrot.slane %v4639_v33, 4  ;;  %v4642_v34 = vrot.slane %v12553_v17, 5  ;;  %v4722_v14 = vpack.c.b16 %v4700_v29, %v4699_v50 }
 0x246   : > { %v5953_v16 = vpack.c.b16 %v5922_v31, %v5921_v26  ;;  %v10974_v31 = vld [vmem:[#allocation2 + $0x84] sm:$0xff]  ;;  %v4174_v26 = vsel %vm11272_vm13, %v4169_v59, %v12591_v35  ;;  %v4184_v17 = vsel %vm11272_vm13, %v4179_v54, %v4183_v38  ;;  %v4189_v52 = vshll.u32 %v3885_v58, 16  ;;  %v12651_v35 = vld [vmem:[#allocation2 + $0xb0] sm:$0x1] }
 0x247   : > { %v4471_v41 = vadd.f32 %v12529_v7, %v3817_v61  ;;  %v12614_v32 = vpop.f32.mrf.mxu3  ;;  %v10314_v7 = vrot.slane %v4513_v12, 9  ;;  %v4186_v12 = vshrl.u32 %v3885_v58, 16  ;;  %v4649_v58 = vrot.slane %v12595_v45, 5 }
 0x248   : > { %v4791_v43 = vpop.f32.mrf.mxu0  ;;  %10361 = vmatmul.msk.bf16.vlgmr.msra.gmra.mxu1 %vm5993_vm9, %v5953_v16  ;;  %v4514_v16 = vld [vmem:[#allocation2 + $0x9c] sm:$0xe]  ;;  %v4191_v29 = vrot.slane %v4189_v52, 5 }
 0x249   : > { %v4869_v53 = vadd.f32 %v4789_v42, %v4471_v41  ;;  %v12635_v61 = vsel %vm11652_vm0, %v10314_v7, %v4639_v33  ;;  %v4195_v33 = vshll.u32 %v12637_v2, 16  ;;  %v4188_v50 = vrot.slane %v4186_v12, 4 }
 0x24a   : > { %v4199_v7 = vshrl.u32 %v12637_v2, 16  ;;  %v4701_v45 = vunpack.c.l.b16 %v12635_v61 }
 0x24b   : > { %v4905_v42 = vmul.f32 %v12612_v57, %v4869_v53  ;;  %v4643_v53 = vsel %vm11652_vm0, %v4641_v49, %v4642_v34  ;;  %v4197_v59 = vrot.slane %v4195_v33, 5  ;;  %v4192_v54 = vor.u32 %v4191_v29, %v4188_v50  ;;  %v11008_v49 = vld [vmem:[%s15293_s4 + $0x58] sm:$0xff] }
 0x24c   : > { %v3739_v11 = vpop.f32.mrf.mxu2  ;;  %10298 = vmatmul.msk.bf16.gmra.mxu3 %vm1477_vm11, %v4325_v47  ;;  %v4646_v47 = vrot.slane %v12574_v40, 5  ;;  %v4306_v40 = vunpack.c.l.b16 %v4184_v17  ;;  %v4201_v38 = vrot.slane %v4199_v7, 4  ;;  %v10315_v34 = vrot.slane %v4514_v16, 9  ;;  %v5360_v16 = vld [vmem:[#allocation3 + $0xc] sm:$0xf] }
 0x24d   : > { %v4941_v0 = vadd.f32 %v12620_v56, %v4905_v42  ;;  %v3818_v9 = vadd.f32 %v3739_v11, %v11960_v6  ;;  %v4205_v42 = vshll.u32 %v12651_v35, 16  ;;  %6665 = vmatpush.bf16.msrb.mxu3 %v11008_v49  ;;  %v4702_v33 = vunpack.c.l.b16 %v4643_v53 }
 0x24f   : > { %v4973_v21 = vmax.f32 %v4941_v0, 0.0  ;;  %v4472_v30 = vadd.f32 %v12563_v10, %v3818_v9  ;;  %v12645_v41 = vpop.f32.mrf.mxu3  ;;  %v4305_v10 = vunpack.c.l.b16 %v4174_v26  ;;  %v4202_v26 = vor.u32 %v4201_v38, %v4197_v59 }
 0x250   : > { %v4794_v6 = vpop.f32.mrf.mxu0  ;;  %v4207_v50 = vrot.slane %v4205_v42, 5 }
 0x251   : > { %v5005_v51 = vpack.c.bf16 %v4973_v21, %v4973_v21  ;;  %v4870_v22 = vadd.f32 %v4791_v43, %v4472_v30  ;;  %10280 = vmatmul.msk.bf16.gmra.mxu2 %vm1477_vm11, %v10974_v31  ;;  %v4648_v43 = vrot.slane %v4646_v47, 4  ;;  %v422_v31 = vld [vmem:[#allocation3 + $0x24] sm:$0x1]  ;;  %v4326_v38 = vpack.c.b16 %v4306_v40, %v4305_v10 }
 0x252   : > { %v423_v21 = vsel %vm12503_vm7, 0, %v422_v31  ;;  %v4723_v10 = vpack.c.b16 %v4702_v33, %v4701_v45  ;;  %v11032_v40 = vld [vmem:[%s15293_s4 + $0x98] sm:$0xff]  ;;  %v3888_v45 = vld [vmem:[#allocation2 + $0xb4] sm:$0xf]  ;;  %v5364_v33 = vld [vmem:[#allocation3 + $0x14] sm:$0x1] }
 0x253   : > { %10330 = vmatmul.msk.bf16.gmra.mxu0 %vm1477_vm11, %v4722_v14  ;;  %v5038_v25 = vshrl.u32 %v5005_v51, 16  ;;  %v4906_v11 = vmul.f32 %v12612_v57, %v4870_v22  ;;  %v5041_v0 = vshll.u32 %v5005_v51, 16  ;;  %v4193_v14 = vrot.slane %v4192_v54, 4  ;;  %424 = vst [vmem:[#allocation3 + $0x24] sm:$0x1] %v423_v21  ;;  %7661 = vmatpush.bf16.msrb.mxu1 %v11032_v40 }
 0x254   : > { %v3742_v9 = vpop.f32.mrf.mxu2  ;;  %v4203_v54 = vrot.slane %v4202_v26, 4 }
 0x255   : > { %v12662_v17 = vrot.slane %v5038_v25, 7  ;;  %v4942_v12 = vadd.f32 %v12620_v56, %v4906_v11  ;;  %v3819_v52 = vadd.f32 %v3742_v9, %v11980_v27  ;;  %v4647_v25 = vsel %vm11652_vm0, %v10315_v34, %v4646_v47  ;;  %v11028_v47 = vld [vmem:[%s15293_s4 + $0x78] sm:$0xff]  ;;  %v477_v34 = vld [vmem:[#allocation3 + $0x2c] sm:$0x1] }
 0x256   : > { %v4650_v11 = vsel %vm11652_vm0, %v4648_v43, %v4649_v58  ;;  %v4198_v49 = vsel %vm11272_vm13, %v4193_v14, %v4197_v59  ;;  %v478_v59 = vsel %vm12545_vm3, 0, %v477_v34  ;;  %6979 = vmatpush.bf16.msrb.mxu0 %v11028_v47  ;;  %v4703_v31 = vunpack.c.l.b16 %v4647_v25 }
 0x257   : > { %v5043_v29 = vor.u32 %v5041_v0, %v12662_v17  ;;  %v4974_v7 = vmax.f32 %v4942_v12, 0.0  ;;  %v4473_v51 = vadd.f32 %v12577_v28, %v3819_v52  ;;  %v12677_v22 = vpop.f32.mrf.mxu3  ;;  %v12689_v28 = vadd.f32 %v12078_v63, %v12135_v15  ;;  %v4515_v15 = vld [vmem:[#allocation2 + $0xa8] sm:$0xe]  ;;  %479 = vst [vmem:[#allocation3 + $0x2c] sm:$0x1] %v478_v59 }
 0x258   : > { %v4796_v27 = vpop.f32.mrf.mxu0  ;;  %v4208_v63 = vsel %vm11272_vm13, %v4203_v54, %v4207_v50  ;;  %v5044_v0 = vrot.slane %v12662_v17, 4  ;;  %v4704_v58 = vunpack.c.l.b16 %v4650_v11  ;;  %v12704_v14 = vunpack.c.l.b16 %v4198_v49 }
 0x259   : > { %v5361_v61 = vsel %vm12670_vm10, %v5043_v29, %v5360_v16  ;;  %v5006_v53 = vpack.c.bf16 %v4974_v7, %v4974_v7  ;;  %v4871_v42 = vadd.f32 %v4794_v6, %v4473_v51  ;;  %v10975_v16 = vld [vmem:[#allocation2 + $0x90] sm:$0xff]  ;;  %v12708_v17 = vunpack.c.l.b16 %v4208_v63  ;;  %v12726_v63 = vld [vmem:[#allocation2 + $0xb8] sm:$0xf] }
 0x25a   : > { %5362 = vst [vmem:[#allocation3 + $0xc] sm:$0xf] %v5361_v61  ;;  %v10316_v50 = vrot.slane %v4515_v15, 9  ;;  %v4210_v29 = vshrl.u32 %v3888_v45, 16  ;;  %v4213_v7 = vshll.u32 %v3888_v45, 16 }
 0x25b   : > { %v5046_v43 = vshrl.u32 %v5006_v53, 16  ;;  %v4907_v6 = vmul.f32 %v12612_v57, %v4871_v42  ;;  %v5049_v12 = vshll.u32 %v5006_v53, 16  ;;  %v4653_v53 = vrot.slane %v12637_v2, 5 }
 0x25c   : > { %v3744_v9 = vpop.f32.mrf.mxu2  ;;  %10299 = vmatmul.msk.bf16.gmra.mxu3 %vm1477_vm11, %v4326_v38  ;;  %v4212_v42 = vrot.slane %v4210_v29, 4  ;;  %v4215_v49 = vrot.slane %v4213_v7, 5  ;;  %v4327_v2 = vpack.c.b16 %v12708_v17, %v12704_v14  ;;  %v4219_v29 = vshll.u32 %v12726_v63, 16 }
 0x25d   : > { %v5048_v26 = vrot.slane %v5046_v43, 7  ;;  %v4943_v52 = vadd.f32 %v12620_v56, %v4907_v6  ;;  %v3820_v21 = vadd.f32 %v3744_v9, %v11995_v44  ;;  %v4656_v44 = vrot.slane %v12651_v35, 5  ;;  %v12733_v9 = vld [vmem:[#allocation2 + $0xbc] sm:$0x1] }
 0x25e   : > { %v4223_v7 = vshrl.u32 %v12726_v63, 16 }
 0x25f   : > { %v5051_v51 = vor.u32 %v5049_v12, %v5048_v26  ;;  %v5053_v54 = vrot.slane %v5048_v26, 4  ;;  %v4975_v38 = vmax.f32 %v4943_v52, 0.0  ;;  %v4474_v11 = vadd.f32 %v12614_v32, %v3820_v21  ;;  %v12711_v61 = vpop.f32.mrf.mxu3  ;;  %v425_v26 = vld [vmem:[#allocation3 + $0x30] sm:$0x1] }
 0x260   : > { %v4799_v25 = vpop.f32.mrf.mxu0  ;;  %v12722_v32 = vpack.c.b16 %v4704_v58, %v4703_v31  ;;  %v4655_v52 = vrot.slane %v4653_v53, 4  ;;  %v426_v17 = vsel %vm12503_vm7, 0, %v425_v26 }
 0x261   : > { %v5052_v47 = vsel %vm11220_vm8, %v5044_v0, %v5051_v51  ;;  %v5365_v40 = vsel %vm12503_vm7, %v5053_v54, %v5364_v33  ;;  %v5007_v34 = vpack.c.bf16 %v4975_v38, %v4975_v38  ;;  %v4872_v43 = vadd.f32 %v4796_v27, %v4474_v11  ;;  %10281 = vmatmul.msk.bf16.gmra.mxu2 %vm1477_vm11, %v10975_v16  ;;  %v5474_v6 = vld [vmem:[#allocation3 + $0xc] sm:$0xf]  ;;  %v5367_v16 = vld [vmem:[#allocation3 + $0x18] sm:$0xf] }
 0x262   : > { %5363 = vst.msk [vmem:[#allocation3 + $0x10] sm:$0xf] %vm402_vm1, %v5052_v47  ;;  %v5553_v35 = vshrl.u32 %v5474_v6, 16  ;;  %v5556_v59 = vshll.u32 %v5474_v6, 16  ;;  %v12731_v0 = vsel %vm11652_vm0, %v10316_v50, %v4653_v53  ;;  %v4229_v51 = vshll.u32 %v12733_v9, 16 }
 0x263   : > { %10331 = vmatmul.msk.bf16.gmra.mxu0 %vm1477_vm11, %v4723_v10  ;;  %5366 = vst [vmem:[#allocation3 + $0x14] sm:$0x1] %v5365_v40  ;;  %v5055_v15 = vshrl.u32 %v5007_v34, 16  ;;  %v4908_v27 = vmul.f32 %v12612_v57, %v4872_v43  ;;  %v4216_v10 = vor.u32 %v4215_v49, %v4212_v42  ;;  %v5058_v31 = vshll.u32 %v5007_v34, 16 }
 0x264   : > { %v3747_v58 = vpop.f32.mrf.mxu2  ;;  %v5555_v12 = vrot.slane %v5553_v35, 4  ;;  %v5558_v14 = vrot.slane %v5556_v59, 5  ;;  %427 = vst [vmem:[#allocation3 + $0x30] sm:$0x1] %v426_v17  ;;  %v12750_v47 = vsel %vm11652_vm0, %v4655_v52, %v4656_v44  ;;  %v4221_v40 = vrot.slane %v4219_v29, 5 }
 0x265   : > { %v12735_v21 = vrot.slane %v5055_v15, 7  ;;  %v4944_v45 = vadd.f32 %v12620_v56, %v4908_v27  ;;  %v3821_v33 = vadd.f32 %v3747_v58, %v12017_v46  ;;  %v4217_v46 = vrot.slane %v4216_v10, 4 }
 0x266   : > { %v5559_v50 = vor.u32 %v5558_v14, %v5555_v12  ;;  %v4225_v34 = vrot.slane %v4223_v7, 4  ;;  %v4231_v15 = vrot.slane %v4229_v51, 5  ;;  %v4705_v44 = vunpack.c.l.b16 %v12731_v0  ;;  %v480_v14 = vld [vmem:[#allocation3 + $0x38] sm:$0x1]  ;;  %v15381_v51 = vld [vmem:[#allocation22_spill] sm:$0xff] }
 0x267   : > { %v5060_v54 = vor.u32 %v5058_v31, %v12735_v21  ;;  %v4976_v38 = vmax.f32 %v4944_v45, 0.0  ;;  %v4475_v53 = vadd.f32 %v12645_v41, %v3821_v33  ;;  %v12746_v42 = vpop.f32.mrf.mxu3  ;;  %v481_v33 = vsel %vm12545_vm3, 0, %v480_v14 }
 0x268   : > { %v4801_v11 = vpop.f32.mrf.mxu0  ;;  %v5560_v49 = vrot.slane %v5559_v50, 4  ;;  %v4226_v31 = vor.u32 %v4225_v34, %v4221_v40  ;;  %482 = vst [vmem:[#allocation3 + $0x38] sm:$0x1] %v481_v33  ;;  %v4660_v34 = vrot.slane %v12726_v63, 5 }
 0x269   : > { %v5368_v43 = vsel %vm12670_vm10, %v5060_v54, %v5367_v16  ;;  %v5008_v6 = vpack.c.bf16 %v4976_v38, %v4976_v38  ;;  %v4873_v35 = vadd.f32 %v4799_v25, %v4475_v53  ;;  %v12754_v59 = vld [vmem:[#allocation3 + $0x10] sm:$0xf]  ;;  %v4222_v25 = vsel %vm11272_vm13, %v4217_v46, %v4221_v40  ;;  %v10976_v38 = vld [vmem:[#allocation2 + $0x9c] sm:$0xff]  ;;  %v5371_v46 = vld [vmem:[#allocation3 + $0x20] sm:$0x1] }
 0x26a   : > { %5369 = vst [vmem:[#allocation3 + $0x18] sm:$0xf] %v5368_v43  ;;  %v12756_v41 = vld [vmem:[#allocation3 + $0x14] sm:$0x1]  ;;  %v5562_v27 = vshll.u32 %v12754_v59, 16  ;;  %v5566_v10 = vshrl.u32 %v12754_v59, 16  ;;  %v12779_v14 = vunpack.c.l.b16 %v4222_v25 }
 0x26b   : > { %v5063_v58 = vshrl.u32 %v5008_v6, 16  ;;  %v4909_v26 = vmul.f32 %v12612_v57, %v4873_v35  ;;  %v5572_v12 = vshll.u32 %v12756_v41, 16  ;;  %v4227_v17 = vrot.slane %v4226_v31, 4 }
 0x26c   : > { %v3749_v52 = vpop.f32.mrf.mxu2  ;;  %10300 = vmatmul.msk.bf16.gmra.mxu3 %vm1477_vm11, %v4327_v2  ;;  %v5564_v16 = vrot.slane %v5562_v27, 5  ;;  %v5568_v45 = vrot.slane %v5566_v10, 4  ;;  %v5066_v29 = vshll.u32 %v5008_v6, 16  ;;  %v5061_v53 = vrot.slane %v12735_v21, 4 }
 0x26d   : > { %v5065_v50 = vrot.slane %v5063_v58, 7  ;;  %v4945_v7 = vadd.f32 %v12620_v56, %v4909_v26  ;;  %v3822_v54 = vadd.f32 %v3749_v52, %v15381_v51  ;;  %v5574_v26 = vrot.slane %v5572_v12, 5 }
 0x26e   : > { %v5565_v2 = vsel %vm11272_vm13, %v5560_v49, %v5564_v16  ;;  %v5569_v40 = vor.u32 %v5568_v45, %v5564_v16  ;;  %v4232_v21 = vsel %vm11272_vm13, %v4227_v17, %v4231_v15  ;;  %v4516_v17 = vld [vmem:[#allocation2 + $0xb4] sm:$0xe] }
 0x26f   : > { %v5068_v43 = vor.u32 %v5066_v29, %v5065_v50  ;;  %v5070_v35 = vrot.slane %v5065_v50, 4  ;;  %v4977_v27 = vmax.f32 %v4945_v7, 0.0  ;;  %v4476_v6 = vadd.f32 %v12677_v22, %v3822_v54  ;;  %v12775_v31 = vpop.f32.mrf.mxu3  ;;  %v428_v7 = vld [vmem:[#allocation3 + $0x3c] sm:$0x1] }
 0x270   : > { %v4804_v10 = vpop.f32.mrf.mxu0  ;;  %v5570_v58 = vrot.slane %v5569_v40, 4  ;;  %v5923_v12 = vunpack.c.l.b16 %v5565_v2  ;;  %v4310_v51 = vunpack.c.l.b16 %v4232_v21  ;;  %v10317_v21 = vrot.slane %v4516_v17, 9 }
 0x271   : > { %v5069_v49 = vsel %vm11220_vm8, %v5061_v53, %v5068_v43  ;;  %v5372_v52 = vsel %vm12503_vm7, %v5070_v35, %v5371_v46  ;;  %v5009_v16 = vpack.c.bf16 %v4977_v27, %v4977_v27  ;;  %v4874_v45 = vadd.f32 %v4801_v11, %v4476_v6  ;;  %10282 = vmatmul.msk.bf16.gmra.mxu2 %vm1477_vm11, %v10976_v38  ;;  %v5476_v22 = vld [vmem:[#allocation3 + $0x18] sm:$0xf]  ;;  %v3891_v27 = vld [vmem:[#allocation2 + $0xc0] sm:$0xf]  ;;  %v5374_v6 = vld [vmem:[#allocation3 + $0x24] sm:$0xf] }
 0x272   : > { %5370 = vst.msk [vmem:[#allocation3 + $0x1c] sm:$0xf] %vm402_vm1, %v5069_v49  ;;  %v5575_v15 = vsel %vm11272_vm13, %v5570_v58, %v5574_v26  ;;  %v5577_v25 = vshrl.u32 %v5476_v22, 16  ;;  %v5580_v33 = vshll.u32 %v5476_v22, 16  ;;  %v429_v53 = vsel %vm12503_vm7, 0, %v428_v7 }
 0x273   : > { %10332 = vmatmul.msk.bf16.gmra.mxu0 %vm1477_vm11, %v12722_v32  ;;  %5373 = vst [vmem:[#allocation3 + $0x20] sm:$0x1] %v5372_v52  ;;  %v5072_v50 = vshrl.u32 %v5009_v16, 16  ;;  %v4910_v29 = vmul.f32 %v12612_v57, %v4874_v45  ;;  %v5924_v11 = vunpack.c.l.b16 %v5575_v15  ;;  %v5075_v54 = vshll.u32 %v5009_v16, 16 }
 0x274   : > { %v3752_v38 = vpop.f32.mrf.mxu2  ;;  %v5579_v32 = vrot.slane %v5577_v25, 4  ;;  %v5582_v46 = vrot.slane %v5580_v33, 5  ;;  %430 = vst [vmem:[#allocation3 + $0x3c] sm:$0x1] %v429_v53  ;;  %v4706_v58 = vunpack.c.l.b16 %v12750_v47  ;;  %v4662_v49 = vrot.slane %v4660_v34, 4 }
 0x275   : > { %v12794_v40 = vrot.slane %v5072_v50, 7  ;;  %v4946_v2 = vadd.f32 %v12620_v56, %v4910_v29  ;;  %v3823_v43 = vadd.f32 %v3752_v38, %v12067_v62  ;;  %v5954_v35 = vpack.c.b16 %v5924_v11, %v5923_v12 }
 0x276   : > { %v5583_v26 = vor.u32 %v5582_v46, %v5579_v32  ;;  %v4663_v15 = vrot.slane %v12733_v9, 5  ;;  %v4328_v47 = vpack.c.b16 %v4310_v51, %v12779_v14  ;;  %v4234_v33 = vshrl.u32 %v3891_v27, 16  ;;  %v483_v32 = vld [vmem:[#allocation3 + $0x44] sm:$0x1] }
 0x277   : > { %v5077_v52 = vor.u32 %v5075_v54, %v12794_v40  ;;  %v4978_v16 = vmax.f32 %v4946_v2, 0.0  ;;  %v4477_v22 = vadd.f32 %v12711_v61, %v3823_v43  ;;  %10362 = vmatmul.msk.bf16.gmra.mxu1 %vm5993_vm9, %v5954_v35  ;;  %v12804_v62 = vpop.f32.mrf.mxu3  ;;  %v5078_v12 = vrot.slane %v12794_v40, 4  ;;  %v10977_v40 = vld [vmem:[#allocation2 + $0xa8] sm:$0xff] }
 0x278   : > { %v4806_v45 = vpop.f32.mrf.mxu0  ;;  %v5584_v25 = vrot.slane %v5583_v26, 4  ;;  %v4237_v61 = vshll.u32 %v3891_v27, 16  ;;  %v4725_v7 = vpack.c.b16 %v4706_v58, %v4705_v44  ;;  %v12823_v51 = vsel %vm11652_vm0, %v10317_v21, %v4660_v34  ;;  %v12836_v58 = vld [vmem:[#allocation2 + $0xc4] sm:$0xf] }
 0x279   : > { %v5375_v17 = vsel %vm12670_vm10, %v5077_v52, %v5374_v6  ;;  %v5010_v50 = vpack.c.bf16 %v4978_v16, %v4978_v16  ;;  %v4875_v29 = vadd.f32 %v4804_v10, %v4477_v22  ;;  %v12811_v11 = vld [vmem:[#allocation3 + $0x1c] sm:$0xf]  ;;  %v12829_v0 = vsel %vm11652_vm0, %v4662_v49, %v4663_v15  ;;  %v5378_v26 = vld [vmem:[#allocation3 + $0x2c] sm:$0x1] }
 0x27a   : > { %5376 = vst [vmem:[#allocation3 + $0x24] sm:$0xf] %v5375_v17  ;;  %v12815_v54 = vld [vmem:[#allocation3 + $0x20] sm:$0x1]  ;;  %v5586_v9 = vshll.u32 %v12811_v11, 16  ;;  %v5590_v14 = vshrl.u32 %v12811_v11, 16 }
 0x27b   : > { %v5080_v10 = vshrl.u32 %v5010_v50, 16  ;;  %v4911_v38 = vmul.f32 %v12612_v57, %v4875_v29  ;;  %v5596_v53 = vshll.u32 %v12815_v54, 16  ;;  %v5083_v44 = vshll.u32 %v5010_v50, 16 }
 0x27c   : > { %v3754_v46 = vpop.f32.mrf.mxu2  ;;  %10301 = vmatmul.msk.bf16.gmra.mxu3 %vm1477_vm11, %v4328_v47  ;;  %v5588_v63 = vrot.slane %v5586_v9, 5  ;;  %v5592_v2 = vrot.slane %v5590_v14, 4  ;;  %v484_v34 = vsel %vm12545_vm3, 0, %v483_v32  ;;  %v4236_v52 = vrot.slane %v4234_v33, 4 }
 0x27d   : > { %v5082_v43 = vrot.slane %v5080_v10, 7  ;;  %v4947_v35 = vadd.f32 %v12620_v56, %v4911_v38  ;;  %v3824_v27 = vadd.f32 %v3754_v46, %v12091_v13  ;;  %v5598_v6 = vrot.slane %v5596_v53, 5  ;;  %485 = vst [vmem:[#allocation3 + $0x44] sm:$0x1] %v484_v34  ;;  %v12849_v53 = vld [vmem:[#allocation2 + $0xc8] sm:$0x1] }
 0x27e   : > { %v5589_v21 = vsel %vm11272_vm13, %v5584_v25, %v5588_v63  ;;  %v5593_v49 = vor.u32 %v5592_v2, %v5588_v63  ;;  %v4239_v16 = vrot.slane %v4237_v61, 5  ;;  %v4243_v10 = vshll.u32 %v12836_v58, 16  ;;  %v431_v34 = vld [vmem:[#allocation3 + $0x48] sm:$0x1] }
 0x27f   : > { %v5085_v22 = vor.u32 %v5083_v44, %v5082_v43  ;;  %v5087_v15 = vrot.slane %v5082_v43, 4  ;;  %v4979_v47 = vmax.f32 %v4947_v35, 0.0  ;;  %v4478_v50 = vadd.f32 %v12746_v42, %v3824_v27  ;;  %v12841_v29 = vpop.f32.mrf.mxu3 }
 0x280   : > { %v4809_v17 = vpop.f32.mrf.mxu0  ;;  %v5594_v13 = vrot.slane %v5593_v49, 4  ;;  %v5925_v9 = vunpack.c.l.b16 %v5589_v21  ;;  %v4240_v14 = vor.u32 %v4239_v16, %v4236_v52  ;;  %v4245_v46 = vrot.slane %v4243_v10, 5  ;;  %v5381_v16 = vld [vmem:[#allocation3 + $0x30] sm:$0xf] }
 0x281   : > { %v5086_v38 = vsel %vm11220_vm8, %v5078_v12, %v5085_v22  ;;  %v5379_v25 = vsel %vm12503_vm7, %v5087_v15, %v5378_v26  ;;  %v5011_v33 = vpack.c.bf16 %v4979_v47, %v4979_v47  ;;  %v4876_v61 = vadd.f32 %v4806_v45, %v4478_v50  ;;  %10283 = vmatmul.msk.bf16.gmra.mxu2 %vm1477_vm11, %v10977_v40  ;;  %v5478_v42 = vld [vmem:[#allocation3 + $0x24] sm:$0xf] }
 0x282   : > { %5377 = vst.msk [vmem:[#allocation3 + $0x28] sm:$0xf] %vm402_vm1, %v5086_v38  ;;  %v5599_v32 = vsel %vm11272_vm13, %v5594_v13, %v5598_v6  ;;  %v4241_v44 = vrot.slane %v4240_v14, 4  ;;  %v4247_v12 = vshrl.u32 %v12836_v58, 16  ;;  %v432_v35 = vsel %vm12503_vm7, 0, %v431_v34 }
 0x283   : > { %10333 = vmatmul.msk.bf16.gmra.mxu0 %vm1477_vm11, %v4725_v7  ;;  %5380 = vst [vmem:[#allocation3 + $0x2c] sm:$0x1] %v5379_v25  ;;  %v5089_v63 = vshrl.u32 %v5011_v33, 16  ;;  %v5092_v2 = vshll.u32 %v5011_v33, 16  ;;  %v4912_v45 = vmul.f32 %v12612_v57, %v4876_v61  ;;  %v5926_v40 = vunpack.c.l.b16 %v5599_v32 }
 0x284   : > { %v3757_v43 = vpop.f32.mrf.mxu2  ;;  %v4246_v7 = vsel %vm11272_vm13, %v4241_v44, %v4245_v46  ;;  %v4249_v27 = vrot.slane %v4247_v12, 4  ;;  %v4253_v6 = vshll.u32 %v12849_v53, 16  ;;  %433 = vst [vmem:[#allocation3 + $0x48] sm:$0x1] %v432_v35  ;;  %v4707_v22 = vunpack.c.l.b16 %v12823_v51 }
 0x285   : > { %v12862_v26 = vrot.slane %v5089_v63, 7  ;;  %v4948_v21 = vadd.f32 %v12620_v56, %v4912_v45  ;;  %v3825_v49 = vadd.f32 %v3757_v43, %v12121_v48  ;;  %v5955_v52 = vpack.c.b16 %v5926_v40, %v5925_v9 }
 0x286   : > { %v4250_v15 = vor.u32 %v4249_v27, %v4245_v46  ;;  %v4255_v47 = vrot.slane %v4253_v6, 5  ;;  %v5601_v50 = vshrl.u32 %v5478_v42, 16  ;;  %v4708_v25 = vunpack.c.l.b16 %v12829_v0  ;;  %v486_v27 = vld [vmem:[#allocation3 + $0x50] sm:$0x1] }
 0x287   : > { %v5094_v13 = vor.u32 %v5092_v2, %v12862_v26  ;;  %v4980_v14 = vmax.f32 %v4948_v21, 0.0  ;;  %v4479_v38 = vadd.f32 %v12775_v31, %v3825_v49  ;;  %10363 = vmatmul.msk.bf16.gmra.mxu1 %vm5993_vm9, %v5955_v52  ;;  %v12871_v33 = vpop.f32.mrf.mxu3  ;;  %v4311_v9 = vunpack.c.l.b16 %v4246_v7  ;;  %v4517_v31 = vld [vmem:[#allocation2 + $0xc0] sm:$0xe] }
 0x288   : > { %v4811_v10 = vpop.f32.mrf.mxu0  ;;  %v4251_v48 = vrot.slane %v4250_v15, 4  ;;  %v5603_v61 = vrot.slane %v5601_v50, 4  ;;  %v5604_v32 = vshll.u32 %v5478_v42, 16  ;;  %v5095_v51 = vrot.slane %v12862_v26, 4 }
 0x289   : > { %v5382_v44 = vsel %vm12670_vm10, %v5094_v13, %v5381_v16  ;;  %v5012_v46 = vpack.c.bf16 %v4980_v14, %v4980_v14  ;;  %v4877_v12 = vadd.f32 %v4809_v17, %v4479_v38  ;;  %v12876_v63 = vld [vmem:[#allocation3 + $0x28] sm:$0xf]  ;;  %v4667_v40 = vrot.slane %v12836_v58, 5  ;;  %v10999_v17 = vld [vmem:[%s15293_s4 + $0x10] sm:$0xff] }
 0x28a   : > { %5383 = vst [vmem:[#allocation3 + $0x30] sm:$0xf] %v5382_v44  ;;  %v4256_v0 = vsel %vm11272_vm13, %v4251_v48, %v4255_v47  ;;  %v5606_v2 = vrot.slane %v5604_v32, 5  ;;  %v5610_v45 = vshll.u32 %v12876_v63, 16  ;;  %v4726_v43 = vpack.c.b16 %v4708_v25, %v4707_v22  ;;  %v12883_v7 = vld [vmem:[#allocation3 + $0x2c] sm:$0x1]  ;;  %6288 = vmatpush.bf16.msrb.mxu2 %v10999_v17 }
 0x28b   : > { %v5097_v42 = vshrl.u32 %v5012_v46, 16  ;;  %v4913_v34 = vmul.f32 %v12612_v57, %v4877_v12  ;;  %v4312_v35 = vunpack.c.l.b16 %v4256_v0  ;;  %v5100_v6 = vshll.u32 %v5012_v46, 16  ;;  %v5385_v58 = vld [vmem:[#allocation3 + $0x38] sm:$0x1]  ;;  %v10978_v47 = vld [vmem:[#allocation2 + $0xb4] sm:$0xff] }
 0x28c   : > { %v3759_v26 = vpop.f32.mrf.mxu2  ;;  %v5607_v21 = vor.u32 %v5606_v2, %v5603_v61  ;;  %v5612_v49 = vrot.slane %v5610_v45, 5  ;;  %v5614_v52 = vshrl.u32 %v12876_v63, 16  ;;  %v5620_v14 = vshll.u32 %v12883_v7, 16  ;;  %v11007_v48 = vld [vmem:[%s15293_s4 + $0x50] sm:$0xff] }
 0x28d   : > { %v5099_v16 = vrot.slane %v5097_v42, 7  ;;  %v4949_v15 = vadd.f32 %v12620_v56, %v4913_v34  ;;  %v3826_v22 = vadd.f32 %v3759_v26, %v12689_v28  ;;  %v4329_v50 = vpack.c.b16 %v4312_v35, %v4311_v9  ;;  %6666 = vmatpush.bf16.msrb.mxu3 %v11007_v48  ;;  %v399_v35 = vld [vmem:[#allocation2 + $0xd4] sm:$0x1] }
 0x28e   : > { %v5616_v13 = vrot.slane %v5614_v52, 4  ;;  %v487_v38 = vsel %vm12545_vm3, 0, %v486_v27  ;;  %v10318_v25 = vrot.slane %v4517_v31, 9  ;;  %v5608_v12 = vrot.slane %v5607_v21, 4 }
 0x28f   : > { %v5102_v61 = vor.u32 %v5100_v6, %v5099_v16  ;;  %v5104_v32 = vrot.slane %v5099_v16, 4  ;;  %v4981_v44 = vmax.f32 %v4949_v15, 0.0  ;;  %v4480_v28 = vadd.f32 %v12804_v62, %v3826_v22  ;;  %10302 = vmatmul.msk.bf16.gmra.mxu3 %vm1477_vm11, %v4329_v50  ;;  %v12899_v9 = vpop.f32.mrf.mxu3  ;;  %488 = vst [vmem:[#allocation3 + $0x50] sm:$0x1] %v487_v38  ;;  %v343_v62 = vld [vmem:[#allocation2 + $0xcc] sm:$0x1] }
 0x290   : > { %v4814_v46 = vpop.f32.mrf.mxu0  ;;  %v5617_v0 = vor.u32 %v5616_v13, %v5612_v49  ;;  %v4669_v2 = vrot.slane %v4667_v40, 4  ;;  %v5613_v17 = vsel %vm11272_vm13, %v5608_v12, %v5612_v49  ;;  %v5622_v6 = vrot.slane %v5620_v14, 5  ;;  %v434_v16 = vld [vmem:[#allocation3 + $0x54] sm:$0x1]  ;;  %v12926_v14 = vld [vmem:[#allocation2 + $0xd0] sm:$0xf] }
 0x291   : > { %v5103_v31 = vsel %vm11220_vm8, %v5095_v51, %v5102_v61  ;;  %v5386_v45 = vsel %vm12503_vm7, %v5104_v32, %v5385_v58  ;;  %v5013_v42 = vpack.c.bf16 %v4981_v44, %v4981_v44  ;;  %v4878_v34 = vadd.f32 %v4811_v10, %v4480_v28  ;;  %10284 = vmatmul.msk.bf16.gmra.mxu2 %vm1477_vm11, %v10978_v47  ;;  %v5388_v58 = vld [vmem:[#allocation3 + $0x3c] sm:$0xf]  ;;  %v5480_v44 = vld [vmem:[#allocation3 + $0x30] sm:$0xf]  ;;  %v15383_v28 = vld [vmem:[#allocation23_spill] sm:$0xff] }
 0x292   : > { %5384 = vst.msk [vmem:[#allocation3 + $0x34] sm:$0xf] %vm402_vm1, %v5103_v31  ;;  %v5618_v27 = vrot.slane %v5617_v0, 4  ;;  %v4670_v51 = vrot.slane %v12849_v53, 5  ;;  %v4668_v52 = vsel %vm11652_vm0, %v10318_v25, %v4667_v40  ;;  %v435_v53 = vsel %vm12503_vm7, 0, %v434_v16  ;;  %v11027_v61 = vld [vmem:[%s15293_s4 + $0x70] sm:$0xff] }
 0x293   : > { %10334 = vmatmul.msk.bf16.gmra.mxu0 %vm1477_vm11, %v4726_v43  ;;  %5387 = vst [vmem:[#allocation3 + $0x38] sm:$0x1] %v5386_v45  ;;  %v5106_v26 = vshrl.u32 %v5013_v42, 16  ;;  %v5109_v21 = vshll.u32 %v5013_v42, 16  ;;  %v4914_v10 = vmul.f32 %v12612_v57, %v4878_v34  ;;  %v344_v22 = vsel %vm11179_vm4, 0, %v343_v62  ;;  %v11006_v42 = vld [vmem:[%s15293_s4 + $0x48] sm:$0xff] }
 0x294   : > { %v3762_v15 = vpop.f32.mrf.mxu2  ;;  %v5623_v43 = vsel %vm11272_vm13, %v5618_v27, %v5622_v6  ;;  %v4671_v49 = vsel %vm11652_vm0, %v4669_v2, %v4670_v51  ;;  %436 = vst [vmem:[#allocation3 + $0x54] sm:$0x1] %v435_v53  ;;  %v5927_v38 = vunpack.c.l.b16 %v5613_v17  ;;  %v4709_v25 = vunpack.c.l.b16 %v4668_v52  ;;  %6980 = vmatpush.bf16.msrb.mxu0 %v11027_v61  ;;  %6667 = vmatpush.bf16.msrb.mxu3 %v11006_v42 }
 0x295   : > { %v12922_v47 = vrot.slane %v5106_v26, 7  ;;  %v4950_v50 = vadd.f32 %v12620_v56, %v4914_v10  ;;  %v3827_v40 = vadd.f32 %v3762_v15, %v12170_v36  ;;  %v5928_v13 = vunpack.c.l.b16 %v5623_v43  ;;  %345 = vst [vmem:[#allocation2 + $0xcc] sm:$0x1] %v344_v22 }
 0x296   : > { %v4710_v48 = vunpack.c.l.b16 %v4671_v49  ;;  %v400_v32 = vsel %vm11199_vm6, 0, %v399_v35  ;;  %v3541_v12 = vadd.f32 %v15383_v28, %v12192_v4  ;;  %v4267_v35 = vshll.u32 %v12926_v14, 16  ;;  %v11031_v49 = vld [vmem:[%s15293_s4 + $0x90] sm:$0xff] }
 0x297   : > { %v5111_v36 = vor.u32 %v5109_v21, %v12922_v47  ;;  %v4982_v0 = vmax.f32 %v4950_v50, 0.0  ;;  %v4481_v31 = vadd.f32 %v12841_v29, %v3827_v40  ;;  %v12937_v45 = vpop.f32.mrf.mxu3  ;;  %401 = vst [vmem:[#allocation2 + $0xd4] sm:$0x1] %v400_v32  ;;  %v5112_v34 = vrot.slane %v12922_v47, 4  ;;  %v11005_v40 = vld [vmem:[%s15293_s4 + $0x40] sm:$0xff]  ;;  %7662 = vmatpush.bf16.msrb.mxu1 %v11031_v49 }
 0x298   : > { %v4816_v2 = vpop.f32.mrf.mxu0  ;;  %v5956_v62 = vpack.c.b16 %v5928_v13, %v5927_v38  ;;  %v4271_v4 = vshrl.u32 %v12926_v14, 16  ;;  %v5625_v51 = vshrl.u32 %v5480_v44, 16  ;;  %v12951_v26 = vadd.f32 %v12186_v19, %v12232_v55  ;;  %v5392_v19 = vld [vmem:[#allocation3 + $0x44] sm:$0x1]  ;;  %6668 = vmatpush.bf16.msrb.mxu3 %v11005_v40 }
 0x299   : > { %v5389_v17 = vsel %vm12670_vm10, %v5111_v36, %v5388_v58  ;;  %v5014_v27 = vpack.c.bf16 %v4982_v0, %v4982_v0  ;;  %v4879_v29 = vadd.f32 %v4814_v46, %v4481_v31  ;;  %v12947_v6 = vld [vmem:[#allocation3 + $0x34] sm:$0xf]  ;;  %v4727_v21 = vpack.c.b16 %v4710_v48, %v4709_v25  ;;  %v10979_v25 = vld [vmem:[#allocation2 + $0xc0] sm:$0xff] }
 0x29a   : > { %5390 = vst [vmem:[#allocation3 + $0x3c] sm:$0xf] %v5389_v17  ;;  %10364 = vmatmul.msk.bf16.gmra.mxu1 %vm5993_vm9, %v5956_v62  ;;  %v12954_v10 = vrot.slane %v4267_v35, 5  ;;  %v4273_v52 = vrot.slane %v4271_v4, 4  ;;  %v12956_v16 = vld [vmem:[#allocation3 + $0x38] sm:$0x1] }
 0x29b   : > { %v5114_v58 = vshrl.u32 %v5014_v27, 16  ;;  %v5117_v15 = vshll.u32 %v5014_v27, 16  ;;  %v4915_v46 = vmul.f32 %v12612_v57, %v4879_v29  ;;  %v5627_v43 = vrot.slane %v5625_v51, 4 }
 0x29c   : > { %v3764_v55 = vpop.f32.mrf.mxu2  ;;  %v4274_v53 = vor.u32 %v4273_v52, %v12954_v10  ;;  %v5628_v22 = vshll.u32 %v5480_v44, 16  ;;  %v5634_v47 = vshll.u32 %v12947_v6, 16  ;;  %v5638_v50 = vshrl.u32 %v12947_v6, 16  ;;  %v3894_v48 = vld [vmem:[#allocation2 + $0xcc] sm:$0xf] }
 0x29d   : > { %v5116_v13 = vrot.slane %v5114_v58, 7  ;;  %v4951_v57 = vadd.f32 %v12620_v56, %v4915_v46  ;;  %v3828_v38 = vadd.f32 %v3764_v55, %v3541_v12  ;;  %v5644_v61 = vshll.u32 %v12956_v16, 16  ;;  %v11026_v12 = vld [vmem:[%s15293_s4 + $0x68] sm:$0xff] }
 0x29e   : > { %v12970_v3 = vld [vmem:[#allocation2 + $0xd4] sm:$0x1]  ;;  %v4258_v32 = vshrl.u32 %v3894_v48, 16  ;;  %v4261_v44 = vshll.u32 %v3894_v48, 16  ;;  %v4275_v28 = vrot.slane %v4274_v53, 4  ;;  %v5630_v36 = vrot.slane %v5628_v22, 5  ;;  %6981 = vmatpush.bf16.msrb.mxu0 %v11026_v12 }
 0x29f   : > { %v5119_v0 = vor.u32 %v5117_v15, %v5116_v13  ;;  %v5121_v31 = vrot.slane %v5116_v13, 4  ;;  %v4983_v42 = vmax.f32 %v4951_v57, 0.0  ;;  %v4482_v35 = vadd.f32 %v12871_v33, %v3828_v38  ;;  %v12973_v56 = vpop.f32.mrf.mxu3  ;;  %v489_v33 = vld [vmem:[#allocation3 + $0x5c] sm:$0x1] }
 0x2a0   : > { %v4819_v62 = vpop.f32.mrf.mxu0  ;;  %v4260_v4 = vrot.slane %v4258_v32, 4  ;;  %v4263_v17 = vrot.slane %v4261_v44, 5  ;;  %v4277_v27 = vshll.u32 %v12970_v3, 16  ;;  %v5631_v29 = vor.u32 %v5630_v36, %v5627_v43  ;;  %v4518_v44 = vld [vmem:[#allocation2 + $0xcc] sm:$0xe] }
 0x2a1   : > { %v5120_v51 = vsel %vm11220_vm8, %v5112_v34, %v5119_v0  ;;  %v5393_v52 = vsel %vm12503_vm7, %v5121_v31, %v5392_v19  ;;  %v5015_v58 = vpack.c.bf16 %v4983_v42, %v4983_v42  ;;  %v4880_v15 = vadd.f32 %v4816_v2, %v4482_v35  ;;  %10285 = vmatmul.msk.bf16.gmra.mxu2 %vm1477_vm11, %v10979_v25  ;;  %v12989_v34 = vld [vmem:[%s15291_s2] ss:$0 sm:$0xff] }
 0x2a2   : > { %5391 = vst.msk [vmem:[#allocation3 + $0x40] sm:$0xf] %vm402_vm1, %v5120_v51  ;;  %v4264_v46 = vor.u32 %v4263_v17, %v4260_v4  ;;  %v4279_v49 = vrot.slane %v4277_v27, 5  ;;  %v5632_v55 = vrot.slane %v5631_v29, 4  ;;  %v5636_v53 = vrot.slane %v5634_v47, 5 }
 0x2a3   : > { %10335 = vmatmul.msk.bf16.gmra.mxu0 %vm1477_vm11, %v4727_v21  ;;  %5394 = vst [vmem:[#allocation3 + $0x44] sm:$0x1] %v5393_v52  ;;  %v5123_v43 = vshrl.u32 %v5015_v58, 16  ;;  %v5126_v22 = vshll.u32 %v5015_v58, 16  ;;  %v4916_v2 = vmul.f32 %v12989_v34, %v4880_v15  ;;  %v5640_v19 = vrot.slane %v5638_v50, 4  ;;  %v10998_v52 = vld [vmem:[%s15293_s4 + $0x8] sm:$0xff] }
 0x2a4   : > { %v3767_v40 = vpop.f32.mrf.mxu2  ;;  %v4265_v13 = vrot.slane %v4264_v46, 4  ;;  %v4280_v21 = vsel %vm11272_vm13, %v4275_v28, %v4279_v49  ;;  %v5637_v47 = vsel %vm11272_vm13, %v5632_v55, %v5636_v53  ;;  %v5646_v57 = vrot.slane %v5644_v61, 5  ;;  %v13001_v25 = vld [vmem:[%s15292_s3] ss:$0 sm:$0xff]  ;;  %v437_v49 = vld [vmem:[#allocation3 + $0x60] sm:$0x1]  ;;  %6289 = vmatpush.bf16.msrb.mxu2 %v10998_v52 }
 0x2a5   : > { %v12996_v38 = vrot.slane %v5123_v43, 7  ;;  %v4952_v48 = vadd.f32 %v13001_v25, %v4916_v2  ;;  %v3829_v50 = vadd.f32 %v3767_v40, %v12217_v37  ;;  %v4314_v32 = vunpack.c.l.b16 %v4280_v21  ;;  %v5395_v36 = vld [vmem:[#allocation3 + $0x48] sm:$0xf]  ;;  %v6372_v55 = vld [vmem:[#allocation3] sm:$0xe] }
 0x2a6   : > { %v4270_v28 = vsel %vm11272_vm13, %v4265_v13, %v12954_v10  ;;  %v5641_v0 = vor.u32 %v5640_v19, %v5636_v53  ;;  %v5929_v61 = vunpack.c.l.b16 %v5637_v47  ;;  %v490_v31 = vsel %vm12545_vm3, 0, %v489_v33  ;;  %v11025_v58 = vld [vmem:[%s15293_s4 + $0x60] sm:$0xff] }
 0x2a7   : > { %v5128_v42 = vor.u32 %v5126_v22, %v12996_v38  ;;  %v5129_v35 = vrot.slane %v12996_v38, 4  ;;  %v4984_v12 = vmax.f32 %v4952_v48, 0.0  ;;  %v4483_v37 = vadd.f32 %v12899_v9, %v3829_v50  ;;  %491 = vst [vmem:[#allocation3 + $0x5c] sm:$0x1] %v490_v31  ;;  %v13015_v17 = vpop.f32.mrf.mxu3  ;;  %6982 = vmatpush.bf16.msrb.mxu0 %v11025_v58  ;;  %v10997_v50 = vld [vmem:[%s15293_s4] sm:$0xff] }
 0x2a8   : > { %v13012_v4 = vpop.f32.mrf.mxu0  ;;  %v4313_v27 = vunpack.c.l.b16 %v4270_v28  ;;  %v5642_v29 = vrot.slane %v5641_v0, 4  ;;  %v10319_v10 = vrot.slane %v4518_v44, 9  ;;  %v4674_v51 = vrot.slane %v12926_v14, 5  ;;  %v10980_v0 = vld [vmem:[#allocation2 + $0xcc] sm:$0xff]  ;;  %v5399_v31 = vld [vmem:[#allocation3 + $0x50] sm:$0x1]  ;;  %6290 = vmatpush.bf16.msrb.mxu2 %v10997_v50 }
 0x2a9   : > { %v5396_v15 = vsel %vm12670_vm10, %v5128_v42, %v5395_v36  ;;  %v5016_v9 = vpack.c.bf16 %v4984_v12, %v4984_v12  ;;  %v4881_v33 = vadd.f32 %v4819_v62, %v4483_v37  ;;  %v4677_v46 = vrot.slane %v12970_v3, 5  ;;  %v5482_v62 = vld [vmem:[#allocation3 + $0x3c] sm:$0xf]  ;;  %v11110_v12 = vld [vmem:[#allocation3 + $0x4] sm:$0xf] }
 0x2aa   : > { %5397 = vst [vmem:[#allocation3 + $0x48] sm:$0xf] %v5396_v15  ;;  %v4330_v53 = vpack.c.b16 %v4314_v32, %v4313_v27  ;;  %v5647_v14 = vsel %vm11272_vm13, %v5642_v29, %v5646_v57  ;;  %v4675_v43 = vsel %vm11652_vm0, %v10319_v10, %v4674_v51  ;;  %v4676_v22 = vrot.slane %v4674_v51, 4  ;;  %v11111_v27 = vld [vmem:[#allocation3 + $0x8] sm:$0x1] }
 0x2ab   : > { %v5131_v2 = vshrl.u32 %v5016_v9, 16  ;;  %v5134_v19 = vshll.u32 %v5016_v9, 16  ;;  %v4917_v40 = vmul.f32 %v12989_v34, %v4881_v33  ;;  %v5930_v13 = vunpack.c.l.b16 %v5647_v14  ;;  %v13044_v9 = vld [vmem:[#allocation3 + $0x40] sm:$0xf] }
 0x2ac   : > { %10303 = vmatmul.msk.bf16.gmra.mxu3 %vm1477_vm11, %v4330_v53  ;;  %v3769_v3 = vpop.f32.mrf.mxu2  ;;  %v4678_v21 = vsel %vm11652_vm0, %v4676_v22, %v4677_v46  ;;  %v4711_v47 = vunpack.c.l.b16 %v4675_v43  ;;  %v438_v57 = vsel %vm12503_vm7, 0, %v437_v49  ;;  %v10473_v48 = vrot.slane %v6372_v55, 9  ;;  %v13058_v43 = vld [vmem:[#allocation3 + $0x44] sm:$0x1] }
 0x2ad   : > { %v5133_v32 = vrot.slane %v5131_v2, 7  ;;  %v4953_v44 = vadd.f32 %v13001_v25, %v4917_v40  ;;  %v5957_v36 = vpack.c.b16 %v5930_v13, %v5929_v61  ;;  %v3830_v28 = vadd.f32 %v3769_v3, %v12951_v26  ;;  %439 = vst [vmem:[#allocation3 + $0x60] sm:$0x1] %v438_v57  ;;  %v492_v3 = vld [vmem:[#allocation3 + $0x68] sm:$0x1] }
 0x2ae   : > { %v4712_v42 = vunpack.c.l.b16 %v4678_v21  ;;  %v6422_v37 = vrot.slane %v11110_v12, 5  ;;  %v6425_v29 = vrot.slane %v11111_v27, 5  ;;  %v5649_v10 = vshrl.u32 %v5482_v62, 16 }
 0x2af   : > { %v5136_v51 = vor.u32 %v5134_v19, %v5133_v32  ;;  %v5138_v52 = vrot.slane %v5133_v32, 4  ;;  %v4985_v58 = vmax.f32 %v4953_v44, 0.0  ;;  %10365 = vmatmul.msk.bf16.gmra.mxu1 %vm5993_vm9, %v5957_v36  ;;  %v4484_v61 = vadd.f32 %v12937_v45, %v3830_v28  ;;  %v13046_v26 = vpop.f32.mrf.mxu3  ;;  %v440_v28 = vld [vmem:[#allocation3 + $0x6c] sm:$0x1] }
 0x2b0   : > { %v4824_v15 = vpop.f32.mrf.mxu0  ;;  %v4728_v33 = vpack.c.b16 %v4712_v42, %v4711_v47  ;;  %v6423_v46 = vsel %vm11652_vm0, %v10473_v48, %v6422_v37  ;;  %v6424_v49 = vrot.slane %v6422_v37, 4  ;;  %v5651_v22 = vrot.slane %v5649_v10, 4 }
 0x2b1   : > { %v5137_v55 = vsel %vm11220_vm8, %v5129_v35, %v5136_v51  ;;  %v5400_v53 = vsel %vm12503_vm7, %v5138_v52, %v5399_v31  ;;  %v5017_v14 = vpack.c.bf16 %v4985_v58, %v4985_v58  ;;  %v4882_v45 = vadd.f32 %v13012_v4, %v4484_v61  ;;  %10286 = vmatmul.msk.bf16.gmra.mxu2 %vm1477_vm11, %v10980_v0  ;;  %v5402_v0 = vld [vmem:[#allocation3 + $0x54] sm:$0xf] }
 0x2b2   : > { %5398 = vst.msk [vmem:[#allocation3 + $0x4c] sm:$0xf] %vm402_vm1, %v5137_v55  ;;  %v6426_v38 = vsel %vm11652_vm0, %v6424_v49, %v6425_v29  ;;  %v5652_v2 = vshll.u32 %v5482_v62, 16  ;;  %v5658_v35 = vshll.u32 %v13044_v9, 16  ;;  %v6541_v13 = vunpack.c.l.b16 %v6423_v46 }
 0x2b3   : > { %10336 = vmatmul.msk.bf16.gmra.mxu0 %vm1477_vm11, %v4728_v33  ;;  %5401 = vst [vmem:[#allocation3 + $0x50] sm:$0x1] %v5400_v53  ;;  %v5140_v19 = vshrl.u32 %v5017_v14, 16  ;;  %v5143_v40 = vshll.u32 %v5017_v14, 16  ;;  %v4918_v4 = vmul.f32 %v12989_v34, %v4882_v45  ;;  %v6542_v47 = vunpack.c.l.b16 %v6426_v38  ;;  %v5484_v45 = vld [vmem:[#allocation3 + $0x48] sm:$0xf] }
 0x2b4   : > { %v3772_v21 = vpop.f32.mrf.mxu2  ;;  %v5654_v57 = vrot.slane %v5652_v2, 5  ;;  %v5660_v48 = vrot.slane %v5658_v35, 5  ;;  %v5662_v50 = vshrl.u32 %v13044_v9, 16  ;;  %v5668_v36 = vshll.u32 %v13058_v43, 16 }
 0x2b5   : > { %v13067_v32 = vrot.slane %v5140_v19, 7  ;;  %v4954_v44 = vadd.f32 %v13001_v25, %v4918_v4  ;;  %v3831_v62 = vadd.f32 %v3772_v21, %v12251_v5  ;;  %v493_v12 = vsel %vm12545_vm3, 0, %v492_v3 }
 0x2b6   : > { %v5655_v31 = vor.u32 %v5654_v57, %v5651_v22  ;;  %v5664_v42 = vrot.slane %v5662_v50, 4  ;;  %494 = vst [vmem:[#allocation3 + $0x68] sm:$0x1] %v493_v12  ;;  %v6573_v52 = vpack.c.b16 %v6542_v47, %v6541_v13  ;;  %v441_v61 = vsel %vm12503_vm7, 0, %v440_v28  ;;  %v10981_v47 = vld [vmem:[#allocation3] sm:$0xff] }
 0x2b7   : > { %v5145_v37 = vor.u32 %v5143_v40, %v13067_v32  ;;  %v4986_v27 = vmax.f32 %v4954_v44, 0.0  ;;  %v4485_v10 = vadd.f32 %v12973_v56, %v3831_v62  ;;  %v13076_v51 = vpop.f32.mrf.mxu3  ;;  %v5670_v55 = vrot.slane %v5668_v36, 5  ;;  %442 = vst [vmem:[#allocation3 + $0x6c] sm:$0x1] %v441_v61 }
 0x2b8   : > { %v4826_v29 = vpop.f32.mrf.mxu0  ;;  %v5656_v5 = vrot.slane %v5655_v31, 4  ;;  %v5665_v58 = vor.u32 %v5664_v42, %v5660_v48  ;;  %v6429_v14 = vrot.slane %v12754_v59, 5  ;;  %v3545_v38 = vadd.f32 %v12227_v39, %v12266_v1  ;;  %v5406_v1 = vld [vmem:[#allocation3 + $0x5c] sm:$0x1]  ;;  %v6373_v42 = vld [vmem:[#allocation3 + $0xc] sm:$0xe] }
 0x2b9   : > { %v5403_v33 = vsel %vm12670_vm10, %v5145_v37, %v5402_v0  ;;  %v5018_v46 = vpack.c.bf16 %v4986_v27, %v4986_v27  ;;  %v4883_v49 = vadd.f32 %v4824_v15, %v4485_v10  ;;  %v5673_v4 = vshrl.u32 %v5484_v45, 16  ;;  %v13092_v57 = vld [vmem:[#allocation3 + $0x4c] sm:$0xf] }
 0x2ba   : > { %5404 = vst [vmem:[#allocation3 + $0x54] sm:$0xf] %v5403_v33  ;;  %v5661_v56 = vsel %vm11272_vm13, %v5656_v5, %v5660_v48  ;;  %v5666_v53 = vrot.slane %v5665_v58, 4  ;;  %v5146_v39 = vrot.slane %v13067_v32, 4  ;;  %v6431_v48 = vrot.slane %v6429_v14, 4  ;;  %v11009_v27 = vld [vmem:[#allocation3 + $0xc] sm:$0xff] }
 0x2bb   : > { %v5148_v22 = vshrl.u32 %v5018_v46, 16  ;;  %v4919_v2 = vmul.f32 %v12989_v34, %v4883_v49  ;;  %v5151_v35 = vshll.u32 %v5018_v46, 16  ;;  %v5931_v19 = vunpack.c.l.b16 %v5661_v56  ;;  %v495_v46 = vld [vmem:[#allocation3 + $0x74] sm:$0x1] }
 0x2bc   : > { %10513 = vmatmul.msk.bf16.vlgmr.msrb.gmra.mxu3 %vm5993_vm9, %v6573_v52  ;;  %v5671_v15 = vsel %vm11272_vm13, %v5666_v53, %v5670_v55  ;;  %v3774_v40 = vpop.f32.mrf.mxu2  ;;  %v5675_v50 = vrot.slane %v5673_v4, 4  ;;  %v5676_v44 = vshll.u32 %v5484_v45, 16  ;;  %v6432_v10 = vrot.slane %v12756_v41, 5  ;;  %v13099_v52 = vld [vmem:[#allocation3 + $0x50] sm:$0x1] }
 0x2bd   : > { %v5150_v13 = vrot.slane %v5148_v22, 7  ;;  %v4955_v3 = vadd.f32 %v13001_v25, %v4919_v2  ;;  %v5932_v59 = vunpack.c.l.b16 %v5671_v15  ;;  %v3832_v21 = vadd.f32 %v3774_v40, %v3545_v38  ;;  %v443_v40 = vld [vmem:[#allocation3 + $0x78] sm:$0x1] }
 0x2be   : > { %v5678_v32 = vrot.slane %v5676_v44, 5  ;;  %v5682_v5 = vshll.u32 %v13092_v57, 16  ;;  %v10474_v49 = vrot.slane %v6373_v42, 9  ;;  %v6433_v45 = vsel %vm11652_vm0, %v6431_v48, %v6432_v10 }
 0x2bf   : > { %v5153_v62 = vor.u32 %v5151_v35, %v5150_v13  ;;  %v5155_v36 = vrot.slane %v5150_v13, 4  ;;  %v4987_v28 = vmax.f32 %v4955_v3, 0.0  ;;  %v5958_v0 = vpack.c.b16 %v5932_v59, %v5931_v19  ;;  %v13095_v12 = vpop.f32.mrf.mxu3  ;;  %v15384_v13 = vld [vmem:[#allocation25_spill] sm:$0xff] }
 0x2c0   : > { %v4829_v31 = vpop.f32.mrf.mxu0  ;;  %v4486_v37 = vadd.f32 %v13015_v17, %v3832_v21  ;;  %v5686_v17 = vshrl.u32 %v13092_v57, 16  ;;  %v5679_v55 = vor.u32 %v5678_v32, %v5675_v50  ;;  %v5684_v56 = vrot.slane %v5682_v5, 5  ;;  %v15385_v32 = vld [vmem:[#allocation27_spill] sm:$0xff]  ;;  %v15386_v5 = vld [vmem:[#allocation24_spill] sm:$0xff] }
 0x2c1   : > { %v5154_v58 = vsel %vm11220_vm8, %v5146_v39, %v5153_v62  ;;  %v5407_v61 = vsel %vm12503_vm7, %v5155_v36, %v5406_v1  ;;  %v5019_v33 = vpack.c.bf16 %v4987_v28, %v4987_v28  ;;  %10366 = vmatmul.msk.bf16.gmra.mxu1 %vm5993_vm9, %v5958_v0  ;;  %10457 = vmatmul.msk.bf16.vlgmr.msrb.gmra.mxu2 %vm5993_vm9, %v10981_v47  ;;  %v5692_v22 = vshll.u32 %v13099_v52, 16  ;;  %v5409_v47 = vld [vmem:[#allocation3 + $0x60] sm:$0xf] }
 0x2c2   : > { %5405 = vst.msk [vmem:[#allocation3 + $0x58] sm:$0xf] %vm402_vm1, %v5154_v58  ;;  %v4884_v41 = vadd.f32 %v4826_v29, %v4486_v37  ;;  %v5688_v38 = vrot.slane %v5686_v17, 4  ;;  %v6430_v29 = vsel %vm11652_vm0, %v10474_v49, %v6429_v14  ;;  %v496_v19 = vsel %vm12545_vm3, 0, %v495_v46 }
 0x2c3   : > { %10617 = vmatmul.msk.bf16.vlgmr.msrb.gmra.mxu0 %vm5993_vm9, %v11009_v27  ;;  %5408 = vst [vmem:[#allocation3 + $0x5c] sm:$0x1] %v5407_v61  ;;  %v5157_v53 = vshrl.u32 %v5019_v33, 16  ;;  %v5160_v2 = vshll.u32 %v5019_v33, 16  ;;  %v5680_v59 = vrot.slane %v5679_v55, 4  ;;  %v6544_v1 = vunpack.c.l.b16 %v6433_v45 }
 0x2c4   : > { %v4920_v35 = vmul.f32 %v12989_v34, %v4884_v41  ;;  %v3777_v15 = vpop.f32.mrf.mxu2  ;;  %v5689_v21 = vor.u32 %v5688_v38, %v5684_v56  ;;  %497 = vst [vmem:[#allocation3 + $0x74] sm:$0x1] %v496_v19  ;;  %v5694_v48 = vrot.slane %v5692_v22, 5  ;;  %v444_v50 = vsel %vm12503_vm7, 0, %v443_v40  ;;  %v6374_v27 = vld [vmem:[#allocation3 + $0x18] sm:$0xe] }
 0x2c5   : > { %v13119_v4 = vrot.slane %v5157_v53, 7  ;;  %v3833_v3 = vadd.f32 %v3777_v15, %v15384_v13  ;;  %v5685_v36 = vsel %vm11272_vm13, %v5680_v59, %v5684_v56  ;;  %445 = vst [vmem:[#allocation3 + $0x78] sm:$0x1] %v444_v50  ;;  %v6543_v37 = vunpack.c.l.b16 %v6430_v29  ;;  %v5486_v55 = vld [vmem:[#allocation3 + $0x54] sm:$0xf] }
 0x2c6   : > { %v4956_v39 = vadd.f32 %v13001_v25, %v4920_v35  ;;  %v5690_v28 = vrot.slane %v5689_v21, 4  ;;  %v6436_v10 = vrot.slane %v12811_v11, 5  ;;  %v3547_v58 = vadd.f32 %v15386_v5, %v15385_v32  ;;  %v11010_v32 = vld [vmem:[#allocation3 + $0x18] sm:$0xff] }
 0x2c7   : > { %v5162_v14 = vor.u32 %v5160_v2, %v13119_v4  ;;  %v4487_v62 = vadd.f32 %v13046_v26, %v3833_v3  ;;  %v13129_v0 = vpop.f32.mrf.mxu3  ;;  %v6574_v46 = vpack.c.b16 %v6544_v1, %v6543_v37  ;;  %v5933_v41 = vunpack.c.l.b16 %v5685_v36  ;;  %v5413_v1 = vld [vmem:[#allocation3 + $0x68] sm:$0x1] }
 0x2c8   : > { %v4831_v44 = vpop.f32.mrf.mxu0  ;;  %v4988_v42 = vmax.f32 %v4956_v39, 0.0  ;;  %v5695_v26 = vsel %vm11272_vm13, %v5690_v28, %v5694_v48  ;;  %v10475_v53 = vrot.slane %v6374_v27, 9  ;;  %v5697_v45 = vshrl.u32 %v5486_v55, 16 }
 0x2c9   : > { %v5410_v61 = vsel %vm12670_vm10, %v5162_v14, %v5409_v47  ;;  %v4885_v33 = vadd.f32 %v4829_v31, %v4487_v62  ;;  %v5934_v49 = vunpack.c.l.b16 %v5695_v26  ;;  %v13139_v11 = vld [vmem:[#allocation3 + $0x58] sm:$0xf]  ;;  %v5700_v38 = vshll.u32 %v5486_v55, 16  ;;  %v10982_v47 = vld [vmem:[#allocation3 + $0xc] sm:$0xff] }
 0x2ca   : > { %5411 = vst [vmem:[#allocation3 + $0x60] sm:$0xf] %v5410_v61  ;;  %v5020_v17 = vpack.c.bf16 %v4988_v42, %v4988_v42  ;;  %v5163_v22 = vrot.slane %v13119_v4, 4  ;;  %v6438_v15 = vrot.slane %v6436_v10, 4  ;;  %v13143_v29 = vld [vmem:[#allocation3 + $0x5c] sm:$0x1] }
 0x2cb   : > { %v4921_v56 = vmul.f32 %v12989_v34, %v4885_v33  ;;  %v5959_v31 = vpack.c.b16 %v5934_v49, %v5933_v41  ;;  %v5699_v13 = vrot.slane %v5697_v45, 4  ;;  %v5702_v3 = vrot.slane %v5700_v38, 5  ;;  %v498_v42 = vld [vmem:[#allocation3 + $0x80] sm:$0x1] }
 0x2cc   : > { %v5165_v2 = vshrl.u32 %v5020_v17, 16  ;;  %10514 = vmatmul.msk.bf16.gmra.mxu3 %vm5993_vm9, %v6574_v46  ;;  %v3779_v35 = vpop.f32.mrf.mxu2  ;;  %v5168_v21 = vshll.u32 %v5020_v17, 16  ;;  %v5706_v39 = vshll.u32 %v13139_v11, 16  ;;  %v5710_v4 = vshrl.u32 %v13139_v11, 16 }
 0x2cd   : > { %v4957_v19 = vadd.f32 %v13001_v25, %v4921_v56  ;;  %v3834_v40 = vadd.f32 %v3779_v35, %v3547_v58  ;;  %v5703_v62 = vor.u32 %v5702_v3, %v5699_v13  ;;  %v5716_v36 = vshll.u32 %v13143_v29, 16  ;;  %v446_v56 = vld [vmem:[#allocation3 + $0x84] sm:$0x1]  ;;  %v5416_v3 = vld [vmem:[#allocation3 + $0x6c] sm:$0xf] }
 0x2ce   : > { %v5167_v59 = vrot.slane %v5165_v2, 7  ;;  %v5708_v5 = vrot.slane %v5706_v39, 5  ;;  %v5712_v58 = vrot.slane %v5710_v4, 4  ;;  %v6439_v26 = vrot.slane %v12815_v54, 5 }
 0x2cf   : > { %v4989_v48 = vmax.f32 %v4957_v19, 0.0  ;;  %v4488_v14 = vadd.f32 %v13076_v51, %v3834_v40  ;;  %v13150_v28 = vpop.f32.mrf.mxu3  ;;  %v6437_v51 = vsel %vm11652_vm0, %v10475_v53, %v6436_v10  ;;  %v499_v49 = vsel %vm12545_vm3, 0, %v498_v42  ;;  %v15387_v19 = vld [vmem:[#allocation7_spill] sm:$0xff] }
 0x2d0   : > { %v4834_v50 = vpop.f32.mrf.mxu0  ;;  %v5170_v37 = vor.u32 %v5168_v21, %v5167_v59  ;;  %v5172_v27 = vrot.slane %v5167_v59, 4  ;;  %v5713_v41 = vor.u32 %v5712_v58, %v5708_v5  ;;  %v6440_v54 = vsel %vm11652_vm0, %v6438_v15, %v6439_v26  ;;  %500 = vst [vmem:[#allocation3 + $0x80] sm:$0x1] %v499_v49  ;;  %v13176_v15 = vld [vmem:[#allocation3 + $0x24] sm:$0xe]  ;;  %v15390_v26 = vld [vmem:[#allocation11_spill] sm:$0xff] }
 0x2d1   : > { %v5021_v61 = vpack.c.bf16 %v4989_v48, %v4989_v48  ;;  %10367 = vmatmul.msk.bf16.gmra.mxu1 %vm5993_vm9, %v5959_v31  ;;  %v4886_v33 = vadd.f32 %v4831_v44, %v4488_v14  ;;  %10458 = vmatmul.msk.bf16.gmra.mxu2 %vm5993_vm9, %v10982_v47  ;;  %v5704_v10 = vrot.slane %v5703_v62, 4  ;;  %v447_v2 = vsel %vm12503_vm7, 0, %v446_v56  ;;  %v15393_v49 = vld [vmem:[#allocation8_spill] sm:$0xff] }
 0x2d2   : > { %v5171_v17 = vsel %vm11220_vm8, %v5163_v22, %v5170_v37  ;;  %v5414_v46 = vsel %vm12503_vm7, %v5172_v27, %v5413_v1  ;;  %v5714_v38 = vrot.slane %v5713_v41, 4  ;;  %v5718_v22 = vrot.slane %v5716_v36, 5  ;;  %448 = vst [vmem:[#allocation3 + $0x84] sm:$0x1] %v447_v2  ;;  %v15392_v41 = vld [vmem:[#allocation13_spill] sm:$0xff] }
 0x2d3   : > { %10618 = vmatmul.msk.bf16.gmra.mxu0 %vm5993_vm9, %v11010_v32  ;;  %5412 = vst.msk [vmem:[#allocation3 + $0x64] sm:$0xf] %vm402_vm1, %v5171_v17  ;;  %v5174_v44 = vshrl.u32 %v5021_v61, 16  ;;  %v4922_v55 = vmul.f32 %v12989_v34, %v4886_v33  ;;  %v5177_v53 = vshll.u32 %v5021_v61, 16  ;;  %v5709_v13 = vsel %vm11272_vm13, %v5704_v10, %v5708_v5  ;;  %v15388_v33 = vld [vmem:[#allocation6_spill] sm:$0xff]  ;;  %v15391_v17 = vld [vmem:[#allocation9_spill] sm:$0xff] }
 0x2d4   : > { %5415 = vst [vmem:[#allocation3 + $0x68] sm:$0x1] %v5414_v46  ;;  %v3782_v45 = vpop.f32.mrf.mxu2  ;;  %v6545_v59 = vunpack.c.l.b16 %v6437_v51  ;;  %v6546_v21 = vunpack.c.l.b16 %v6440_v54  ;;  %v5719_v47 = vsel %vm11272_vm13, %v5714_v38, %v5718_v22  ;;  %v6443_v62 = vrot.slane %v12876_v63, 5  ;;  %v15389_v51 = vld [vmem:[#allocation26_spill] sm:$0xff]  ;;  %v11030_v22 = vld [vmem:[%s15293_s4 + $0x88] sm:$0xff] }
 0x2d5   : > { %v13170_v31 = vrot.slane %v5174_v44, 7  ;;  %v4958_v35 = vadd.f32 %v13001_v25, %v4922_v55  ;;  %v3835_v40 = vadd.f32 %v3782_v45, %v15387_v19  ;;  %v5935_v36 = vunpack.c.l.b16 %v5709_v13  ;;  %v13200_v55 = vpop.f32.mrf.mxu1  ;;  %v5488_v10 = vld [vmem:[#allocation3 + $0x60] sm:$0xf]  ;;  %7663 = vmatpush.bf16.msrb.mxu1 %v11030_v22 }
 0x2d6   : > { %v5936_v42 = vunpack.c.l.b16 %v5719_v47  ;;  %v10476_v37 = vrot.slane %v13176_v15, 9  ;;  %v6446_v27 = vrot.slane %v12883_v7, 5  ;;  %v13194_v46 = vadd.f32 %v15391_v17, %v15390_v26  ;;  %v501_v47 = vld [vmem:[#allocation3 + $0x8c] sm:$0x1]  ;;  %v15394_v7 = vld [vmem:[#allocation10_spill] sm:$0xff] }
 0x2d7   : > { %v5179_v39 = vor.u32 %v5177_v53, %v13170_v31  ;;  %v4990_v4 = vmax.f32 %v4958_v35, 0.0  ;;  %v4489_v48 = vadd.f32 %v13095_v12, %v3835_v40  ;;  %v13182_v14 = vpop.f32.mrf.mxu3  ;;  %v5180_v32 = vrot.slane %v13170_v31, 4 }
 0x2d8   : > { %v4836_v1 = vpop.f32.mrf.mxu0  ;;  %v3549_v12 = vadd.f32 %v15389_v51, %v15388_v33  ;;  %v13198_v44 = vadd.f32 %v15393_v49, %v15392_v41  ;;  %v6575_v54 = vpack.c.b16 %v6546_v21, %v6545_v59  ;;  %v5960_v45 = vpack.c.b16 %v5936_v42, %v5935_v36  ;;  %v10983_v41 = vld [vmem:[#allocation3 + $0x18] sm:$0xff] }
 0x2d9   : > { %v5417_v5 = vsel %vm12670_vm10, %v5179_v39, %v5416_v3  ;;  %v5022_v58 = vpack.c.bf16 %v4990_v4, %v4990_v4  ;;  %v4887_v61 = vadd.f32 %v4834_v50, %v4489_v48  ;;  %v6445_v38 = vrot.slane %v6443_v62, 4  ;;  %v5420_v39 = vld [vmem:[#allocation3 + $0x74] sm:$0x1] }
 0x2da   : > { %5418 = vst [vmem:[#allocation3 + $0x6c] sm:$0xf] %v5417_v5  ;;  %v13202_v56 = vld [vmem:[#allocation3 + $0x64] sm:$0xf]  ;;  %v5721_v31 = vshrl.u32 %v5488_v10, 16  ;;  %v5724_v35 = vshll.u32 %v5488_v10, 16 }
 0x2db   : > { %v5182_v53 = vshrl.u32 %v5022_v58, 16  ;;  %v4923_v50 = vmul.f32 %v12989_v34, %v4887_v61  ;;  %v5730_v19 = vshll.u32 %v13202_v56, 16  ;;  %v5734_v40 = vshrl.u32 %v13202_v56, 16  ;;  %v13214_v21 = vld [vmem:[#allocation3 + $0x68] sm:$0x1] }
 0x2dc   : > { %10515 = vmatmul.msk.bf16.gmra.mxu3 %vm5993_vm9, %v6575_v54  ;;  %v3784_v2 = vpop.f32.mrf.mxu2  ;;  %v5185_v15 = vshll.u32 %v5022_v58, 16  ;;  %v5723_v4 = vrot.slane %v5721_v31, 4  ;;  %v5726_v48 = vrot.slane %v5724_v35, 5  ;;  %v11011_v58 = vld [vmem:[#allocation3 + $0x24] sm:$0xff]  ;;  %v5740_v54 = vshll.u32 %v13214_v21, 16 }
 0x2dd   : > { %v5184_v13 = vrot.slane %v5182_v53, 7  ;;  %v4959_v3 = vadd.f32 %v13001_v25, %v4923_v50  ;;  %v3836_v59 = vadd.f32 %v3784_v2, %v3549_v12  ;;  %v5732_v36 = vrot.slane %v5730_v19, 5  ;;  %v6376_v2 = vld [vmem:[#allocation3 + $0x30] sm:$0xe]  ;;  %v13228_v31 = vpop.f32.mrf.mxu1 }
 0x2de   : > { %v5736_v42 = vrot.slane %v5734_v40, 4  ;;  %v5727_v12 = vor.u32 %v5726_v48, %v5723_v4  ;;  %v502_v10 = vsel %vm12545_vm3, 0, %v501_v47  ;;  %v5742_v19 = vrot.slane %v5740_v54, 5  ;;  %v5423_v48 = vld [vmem:[#allocation3 + $0x78] sm:$0xf] }
 0x2df   : > { %v5187_v5 = vor.u32 %v5185_v15, %v5184_v13  ;;  %v5189_v61 = vrot.slane %v5184_v13, 4  ;;  %v4991_v33 = vmax.f32 %v4959_v3, 0.0  ;;  %v4490_v26 = vadd.f32 %v13129_v0, %v3836_v59  ;;  %v13217_v17 = vpop.f32.mrf.mxu3  ;;  %v449_v3 = vld [vmem:[#allocation3 + $0x90] sm:$0x1]  ;;  %503 = vst [vmem:[#allocation3 + $0x8c] sm:$0x1] %v502_v10 }
 0x2e0   : > { %v4839_v51 = vpop.f32.mrf.mxu0  ;;  %v5737_v49 = vor.u32 %v5736_v42, %v5732_v36  ;;  %v6450_v40 = vrot.slane %v12947_v6, 5  ;;  %v6447_v13 = vsel %vm11652_vm0, %v6445_v38, %v6446_v27  ;;  %v5728_v15 = vrot.slane %v5727_v12, 4  ;;  %v6377_v38 = vld [vmem:[#allocation3 + $0x3c] sm:$0xe] }
 0x2e1   : > { %v5188_v53 = vsel %vm11220_vm8, %v5180_v32, %v5187_v5  ;;  %v5421_v50 = vsel %vm12503_vm7, %v5189_v61, %v5420_v39  ;;  %v5023_v22 = vpack.c.bf16 %v4991_v33, %v4991_v33  ;;  %10368 = vmatmul.msk.bf16.gmra.mxu1 %vm5993_vm9, %v5960_v45  ;;  %v4888_v0 = vadd.f32 %v4836_v1, %v4490_v26 }
 0x2e2   : > { %5419 = vst.msk [vmem:[#allocation3 + $0x70] sm:$0xf] %vm402_vm1, %v5188_v53  ;;  %10459 = vmatmul.msk.bf16.gmra.mxu2 %vm5993_vm9, %v10983_v41  ;;  %v6444_v32 = vsel %vm11652_vm0, %v10476_v37, %v6443_v62  ;;  %v5738_v35 = vrot.slane %v5737_v49, 4  ;;  %v450_v6 = vsel %vm12503_vm7, 0, %v449_v3  ;;  %v10477_v37 = vrot.slane %v6376_v2, 9 }
 0x2e3   : > { %10619 = vmatmul.msk.bf16.gmra.mxu0 %vm5993_vm9, %v11011_v58  ;;  %5422 = vst [vmem:[#allocation3 + $0x74] sm:$0x1] %v5421_v50  ;;  %v5191_v1 = vshrl.u32 %v5023_v22, 16  ;;  %v4924_v45 = vmul.f32 %v12989_v34, %v4888_v0  ;;  %v5194_v59 = vshll.u32 %v5023_v22, 16  ;;  %v5733_v27 = vsel %vm11272_vm13, %v5728_v15, %v5732_v36 }
 0x2e4   : > { %v3787_v63 = vpop.f32.mrf.mxu2  ;;  %v5743_v62 = vsel %vm11272_vm13, %v5738_v35, %v5742_v19  ;;  %451 = vst [vmem:[#allocation3 + $0x90] sm:$0x1] %v450_v6  ;;  %v6547_v42 = vunpack.c.l.b16 %v6444_v32  ;;  %v6548_v5 = vunpack.c.l.b16 %v6447_v13  ;;  %v6457_v33 = vrot.slane %v13044_v9, 5  ;;  %v5490_v19 = vld [vmem:[#allocation3 + $0x6c] sm:$0xf] }
 0x2e5   : > { %v13246_v47 = vrot.slane %v5191_v1, 7  ;;  %v4960_v39 = vadd.f32 %v13001_v25, %v4924_v45  ;;  %v3837_v4 = vadd.f32 %v3787_v63, %v15394_v7  ;;  %v5938_v61 = vunpack.c.l.b16 %v5743_v62 }
 0x2e6   : > { %v13255_v49 = vrot.slane %v6450_v40, 4  ;;  %v5937_v10 = vunpack.c.l.b16 %v5733_v27  ;;  %v10478_v36 = vrot.slane %v6377_v38, 9  ;;  %v6459_v53 = vrot.slane %v6457_v33, 4  ;;  %v504_v27 = vld [vmem:[#allocation3 + $0x98] sm:$0x1] }
 0x2e7   : > { %v5196_v26 = vor.u32 %v5194_v59, %v13246_v47  ;;  %v4992_v58 = vmax.f32 %v4960_v39, 0.0  ;;  %v4491_v12 = vadd.f32 %v13150_v28, %v3837_v4  ;;  %v5197_v54 = vrot.slane %v13246_v47, 4  ;;  %v13260_v2 = vpop.f32.mrf.mxu3  ;;  %v13276_v59 = vpop.f32.mrf.mxu1  ;;  %v5427_v38 = vld [vmem:[#allocation3 + $0x80] sm:$0x1] }
 0x2e8   : > { %v4841_v41 = vpop.f32.mrf.mxu0  ;;  %v6460_v9 = vrot.slane %v13058_v43, 5  ;;  %v6576_v32 = vpack.c.b16 %v6548_v5, %v6547_v42  ;;  %v5961_v35 = vpack.c.b16 %v5938_v61, %v5937_v10  ;;  %v13265_v28 = vsel %vm11652_vm0, %v10477_v37, %v6450_v40 }
 0x2e9   : > { %v5424_v50 = vsel %vm12670_vm10, %v5196_v26, %v5423_v48  ;;  %v5024_v22 = vpack.c.bf16 %v4992_v58, %v4992_v58  ;;  %v4889_v0 = vadd.f32 %v4839_v51, %v4491_v12  ;;  %v13267_v1 = vld [vmem:[#allocation3 + $0x70] sm:$0xf]  ;;  %v6458_v45 = vsel %vm11652_vm0, %v10478_v36, %v6457_v33 }
 0x2ea   : > { %5425 = vst [vmem:[#allocation3 + $0x78] sm:$0xf] %v5424_v50  ;;  %v13272_v3 = vld [vmem:[#allocation3 + $0x74] sm:$0x1]  ;;  %v6461_v43 = vsel %vm11652_vm0, %v6459_v53, %v6460_v9  ;;  %v5745_v63 = vshrl.u32 %v5490_v19, 16  ;;  %v5748_v62 = vshll.u32 %v5490_v19, 16 }
 0x2eb   : > { %v5199_v13 = vshrl.u32 %v5024_v22, 16  ;;  %v5202_v15 = vshll.u32 %v5024_v22, 16  ;;  %v4925_v51 = vmul.f32 %v12989_v34, %v4889_v0  ;;  %v5754_v6 = vshll.u32 %v13267_v1, 16  ;;  %v11012_v36 = vld [vmem:[#allocation3 + $0x30] sm:$0xff]  ;;  %v10984_v53 = vld [vmem:[#allocation3 + $0x24] sm:$0xff] }
 0x2ec   : > { %10516 = vmatmul.msk.bf16.gmra.mxu3 %vm5993_vm9, %v6576_v32  ;;  %v3789_v40 = vpop.f32.mrf.mxu2  ;;  %v5758_v37 = vshrl.u32 %v13267_v1, 16  ;;  %v5764_v4 = vshll.u32 %v13272_v3, 16  ;;  %v5747_v48 = vrot.slane %v5745_v63, 4  ;;  %v5750_v42 = vrot.slane %v5748_v62, 5 }
 0x2ed   : > { %v5201_v47 = vrot.slane %v5199_v13, 7  ;;  %v4961_v39 = vadd.f32 %v13001_v25, %v4925_v51  ;;  %v3838_v7 = vadd.f32 %v3789_v40, %v13194_v46  ;;  %v5756_v5 = vrot.slane %v5754_v6, 5  ;;  %v6378_v40 = vld [vmem:[#allocation3 + $0x48] sm:$0xe]  ;;  %v452_v6 = vld [vmem:[#allocation3 + $0x9c] sm:$0x1] }
 0x2ee   : > { %v5760_v61 = vrot.slane %v5758_v37, 4  ;;  %v6453_v50 = vrot.slane %v12956_v16, 5  ;;  %v5751_v22 = vor.u32 %v5750_v42, %v5747_v48  ;;  %v505_v0 = vsel %vm12545_vm3, 0, %v504_v27  ;;  %v15395_v27 = vld [vmem:[#allocation12_spill] sm:$0xff]  ;;  %v5430_v42 = vld [vmem:[#allocation3 + $0x84] sm:$0xf] }
 0x2ef   : > { %v5204_v33 = vor.u32 %v5202_v15, %v5201_v47  ;;  %v5206_v26 = vrot.slane %v5201_v47, 4  ;;  %v4993_v58 = vmax.f32 %v4961_v39, 0.0  ;;  %v4492_v10 = vadd.f32 %v13182_v14, %v3838_v7  ;;  %v13300_v62 = vpop.f32.mrf.mxu3  ;;  %506 = vst [vmem:[#allocation3 + $0x98] sm:$0x1] %v505_v0 }
 0x2f0   : > { %v4844_v12 = vpop.f32.mrf.mxu0  ;;  %v5761_v46 = vor.u32 %v5760_v61, %v5756_v5  ;;  %v5766_v14 = vrot.slane %v5764_v4, 5  ;;  %v6551_v15 = vunpack.c.l.b16 %v6458_v45  ;;  %v6552_v51 = vunpack.c.l.b16 %v6461_v43 }
 0x2f1   : > { %v5205_v9 = vsel %vm11220_vm8, %v5197_v54, %v5204_v33  ;;  %v5428_v32 = vsel %vm12503_vm7, %v5206_v26, %v5427_v38  ;;  %v5025_v19 = vpack.c.bf16 %v4993_v58, %v4993_v58  ;;  %10369 = vmatmul.msk.bf16.gmra.mxu1 %vm5993_vm9, %v5961_v35  ;;  %v4890_v13 = vadd.f32 %v4841_v41, %v4492_v10 }
 0x2f2   : > { %5426 = vst.msk [vmem:[#allocation3 + $0x7c] sm:$0xf] %vm402_vm1, %v5205_v9  ;;  %10460 = vmatmul.msk.bf16.gmra.mxu2 %vm5993_vm9, %v10984_v53  ;;  %v5762_v16 = vrot.slane %v5761_v46, 4  ;;  %v6454_v35 = vsel %vm11652_vm0, %v13255_v49, %v6453_v50  ;;  %v5752_v41 = vrot.slane %v5751_v22, 4  ;;  %v453_v43 = vsel %vm12503_vm7, 0, %v452_v6 }
 0x2f3   : > { %10620 = vmatmul.msk.bf16.gmra.mxu0 %vm5993_vm9, %v11012_v36  ;;  %5429 = vst [vmem:[#allocation3 + $0x80] sm:$0x1] %v5428_v32  ;;  %v5208_v54 = vshrl.u32 %v5025_v19, 16  ;;  %v4926_v63 = vmul.f32 %v12989_v34, %v4890_v13  ;;  %v5211_v37 = vshll.u32 %v5025_v19, 16  ;;  %v13308_v7 = vpack.c.b16 %v6552_v51, %v6551_v15 }
 0x2f4   : > { %v3792_v47 = vpop.f32.mrf.mxu2  ;;  %v13302_v39 = vpop.f32.mrf.mxu1  ;;  %v5767_v45 = vsel %vm11272_vm13, %v5762_v16, %v5766_v14  ;;  %v5757_v48 = vsel %vm11272_vm13, %v5752_v41, %v5756_v5  ;;  %454 = vst [vmem:[#allocation3 + $0x9c] sm:$0x1] %v453_v43  ;;  %v6550_v61 = vunpack.c.l.b16 %v6454_v35  ;;  %v10479_v26 = vrot.slane %v6378_v40, 9 }
 0x2f5   : > { %v13310_v4 = vrot.slane %v5208_v54, 7  ;;  %v4962_v49 = vadd.f32 %v13001_v25, %v4926_v63  ;;  %v3839_v38 = vadd.f32 %v3792_v47, %v15395_v27  ;;  %v5940_v33 = vunpack.c.l.b16 %v5767_v45 }
 0x2f6   : > { %v6464_v58 = vrot.slane %v13092_v57, 5  ;;  %v6549_v22 = vunpack.c.l.b16 %v13265_v28  ;;  %v5939_v46 = vunpack.c.l.b16 %v5757_v48  ;;  %v6467_v9 = vrot.slane %v13099_v52, 5  ;;  %v5434_v48 = vld [vmem:[#allocation3 + $0x8c] sm:$0x1] }
 0x2f7   : > { %v5213_v10 = vor.u32 %v5211_v37, %v13310_v4  ;;  %v4994_v36 = vmax.f32 %v4962_v49, 0.0  ;;  %v4493_v50 = vadd.f32 %v13217_v17, %v3839_v38  ;;  %v5214_v32 = vrot.slane %v13310_v4, 4  ;;  %v5492_v17 = vld [vmem:[#allocation3 + $0x78] sm:$0xf]  ;;  %v507_v38 = vld [vmem:[#allocation3 + $0xa4] sm:$0x1] }
 0x2f8   : > { %v4846_v53 = vpop.f32.mrf.mxu0  ;;  %v6465_v0 = vsel %vm11652_vm0, %v10479_v26, %v6464_v58  ;;  %v6466_v5 = vrot.slane %v6464_v58, 4  ;;  %v6577_v16 = vpack.c.b16 %v6550_v61, %v6549_v22  ;;  %v5962_v14 = vpack.c.b16 %v5940_v33, %v5939_v46  ;;  %v11013_v46 = vld [vmem:[#allocation3 + $0x3c] sm:$0xff] }
 0x2f9   : > { %v5431_v57 = vsel %vm12670_vm10, %v5213_v10, %v5430_v42  ;;  %v5026_v19 = vpack.c.bf16 %v4994_v36, %v4994_v36  ;;  %v4891_v13 = vadd.f32 %v4844_v12, %v4493_v50  ;;  %v13326_v15 = vld [vmem:[#allocation3 + $0x7c] sm:$0xf]  ;;  %v6553_v51 = vunpack.c.l.b16 %v6465_v0 }
 0x2fa   : > { %5432 = vst [vmem:[#allocation3 + $0x84] sm:$0xf] %v5431_v57  ;;  %v6468_v28 = vsel %vm11652_vm0, %v6466_v5, %v6467_v9  ;;  %v13331_v63 = vld [vmem:[#allocation3 + $0x80] sm:$0x1]  ;;  %v5769_v6 = vshrl.u32 %v5492_v17, 16  ;;  %v5772_v37 = vshll.u32 %v5492_v17, 16 }
 0x2fb   : > { %v5216_v40 = vshrl.u32 %v5026_v19, 16  ;;  %v5219_v54 = vshll.u32 %v5026_v19, 16  ;;  %v4927_v52 = vmul.f32 %v12989_v34, %v4891_v13  ;;  %v6554_v35 = vunpack.c.l.b16 %v6468_v28  ;;  %v13340_v34 = vpop.f32.mrf.mxu3  ;;  %v6379_v57 = vld [vmem:[#allocation3 + $0x54] sm:$0xe] }
 0x2fc   : > { %10517 = vmatmul.msk.bf16.gmra.mxu3 %vm5993_vm9, %v6577_v16  ;;  %v3794_v12 = vpop.f32.mrf.mxu2  ;;  %v13334_v41 = vpop.f32.mrf.mxu1  ;;  %v5778_v47 = vshll.u32 %v13326_v15, 16  ;;  %v5782_v45 = vshrl.u32 %v13326_v15, 16  ;;  %v5788_v27 = vshll.u32 %v13331_v63, 16  ;;  %v5771_v42 = vrot.slane %v5769_v6, 4 }
 0x2fd   : > { %v5218_v43 = vrot.slane %v5216_v40, 7  ;;  %v4963_v4 = vadd.f32 %v13001_v25, %v4927_v52  ;;  %v3840_v49 = vadd.f32 %v3794_v12, %v13198_v44  ;;  %v5774_v61 = vrot.slane %v5772_v37, 5  ;;  %v10985_v25 = vld [vmem:[#allocation3 + $0x30] sm:$0xff]  ;;  %v13360_v52 = vld [vmem:[%s15291_s2] ss:$0 sm:$0xff] }
 0x2fe   : > { %v5780_v33 = vrot.slane %v5778_v47, 5  ;;  %v5784_v26 = vrot.slane %v5782_v45, 4  ;;  %v5790_v5 = vrot.slane %v5788_v27, 5  ;;  %v508_v9 = vsel %vm12545_vm3, 0, %v507_v38 }
 0x2ff   : > { %v5221_v58 = vor.u32 %v5219_v54, %v5218_v43  ;;  %v5223_v10 = vrot.slane %v5218_v43, 4  ;;  %v4995_v36 = vmax.f32 %v4963_v4, 0.0  ;;  %v4494_v22 = vadd.f32 %v13260_v2, %v3840_v49  ;;  %509 = vst [vmem:[#allocation3 + $0xa4] sm:$0x1] %v508_v9  ;;  %v13376_v43 = vld [vmem:[%s15292_s3] ss:$0 sm:$0xff] }
 0x300   : > { %v4849_v50 = vpop.f32.mrf.mxu0  ;;  %v5775_v0 = vor.u32 %v5774_v61, %v5771_v42  ;;  %v5785_v44 = vor.u32 %v5784_v26, %v5780_v33  ;;  %v13354_v40 = vpack.c.b16 %v6554_v35, %v6553_v51  ;;  %v6471_v54 = vrot.slane %v13139_v11, 5  ;;  %v15396_v49 = vld [vmem:[#allocation28_spill] sm:$0xff] }
 0x301   : > { %v5222_v19 = vsel %vm11220_vm8, %v5214_v32, %v5221_v58  ;;  %v5435_v13 = vsel %vm12503_vm7, %v5223_v10, %v5434_v48  ;;  %v5027_v16 = vpack.c.bf16 %v4995_v36, %v4995_v36  ;;  %10370 = vmatmul.msk.bf16.gmra.mxu1 %vm5993_vm9, %v5962_v14  ;;  %v4892_v17 = vadd.f32 %v4846_v53, %v4494_v22  ;;  %v455_v14 = vld [vmem:[#allocation3 + $0xa8] sm:$0x1]  ;;  %v5437_v48 = vld [vmem:[#allocation3 + $0x90] sm:$0xf] }
 0x302   : > { %5433 = vst.msk [vmem:[#allocation3 + $0x88] sm:$0xf] %vm402_vm1, %v5222_v19  ;;  %10461 = vmatmul.msk.bf16.gmra.mxu2 %vm5993_vm9, %v10985_v25  ;;  %v5776_v2 = vrot.slane %v5775_v0, 4  ;;  %v5786_v28 = vrot.slane %v5785_v44, 4  ;;  %v10480_v12 = vrot.slane %v6379_v57, 9  ;;  %v456_v35 = vsel %vm12503_vm7, 0, %v455_v14 }
 0x303   : > { %10621 = vmatmul.msk.bf16.gmra.mxu0 %vm5993_vm9, %v11013_v46  ;;  %5436 = vst [vmem:[#allocation3 + $0x8c] sm:$0x1] %v5435_v13  ;;  %v5225_v32 = vshrl.u32 %v5027_v16, 16  ;;  %v4928_v53 = vmul.f32 %v13360_v52, %v4892_v17  ;;  %v5228_v6 = vshll.u32 %v5027_v16, 16  ;;  %v6473_v61 = vrot.slane %v6471_v54, 4  ;;  %v13385_v22 = vpop.f32.mrf.mxu3  ;;  %v15397_v19 = vld [vmem:[#allocation15_spill] sm:$0xff] }
 0x304   : > { %v3797_v37 = vpop.f32.mrf.mxu2  ;;  %v13363_v47 = vpop.f32.mrf.mxu1  ;;  %v5781_v51 = vsel %vm11272_vm13, %v5776_v2, %v5780_v33  ;;  %v5791_v11 = vsel %vm11272_vm13, %v5786_v28, %v5790_v5  ;;  %457 = vst [vmem:[#allocation3 + $0xa8] sm:$0x1] %v456_v35  ;;  %v6472_v38 = vsel %vm11652_vm0, %v10480_v12, %v6471_v54  ;;  %v6474_v33 = vrot.slane %v13143_v29, 5  ;;  %v15398_v13 = vld [vmem:[#allocation14_spill] sm:$0xff] }
 0x305   : > { %v13371_v45 = vrot.slane %v5225_v32, 7  ;;  %v4964_v4 = vadd.f32 %v13376_v43, %v4928_v53  ;;  %v3841_v27 = vadd.f32 %v3797_v37, %v15396_v49  ;;  %v5942_v42 = vunpack.c.l.b16 %v5791_v11  ;;  %v5494_v17 = vld [vmem:[#allocation3 + $0x84] sm:$0xf]  ;;  %v510_v49 = vld [vmem:[#allocation3 + $0xb0] sm:$0x1] }
 0x306   : > { %v5941_v25 = vunpack.c.l.b16 %v5781_v51  ;;  %v6475_v0 = vsel %vm11652_vm0, %v6473_v61, %v6474_v33  ;;  %v6555_v44 = vunpack.c.l.b16 %v6472_v38  ;;  %v3555_v16 = vadd.f32 %v15398_v13, %v15397_v19 }
 0x307   : > { %v5230_v26 = vor.u32 %v5228_v6, %v13371_v45  ;;  %v4996_v58 = vmax.f32 %v4964_v4, 0.0  ;;  %v4495_v36 = vadd.f32 %v13300_v62, %v3841_v27  ;;  %v5231_v46 = vrot.slane %v13371_v45, 4  ;;  %v5441_v27 = vld [vmem:[#allocation3 + $0x98] sm:$0x1] }
 0x308   : > { %v4851_v10 = vpop.f32.mrf.mxu0  ;;  %v6556_v57 = vunpack.c.l.b16 %v6475_v0  ;;  %v5963_v62 = vpack.c.b16 %v5942_v42, %v5941_v25  ;;  %v5793_v12 = vshrl.u32 %v5494_v17, 16  ;;  %v5796_v6 = vshll.u32 %v5494_v17, 16  ;;  %v11014_v0 = vld [vmem:[#allocation3 + $0x48] sm:$0xff] }
 0x309   : > { %v5438_v5 = vsel %vm12670_vm10, %v5230_v26, %v5437_v48  ;;  %v5028_v9 = vpack.c.bf16 %v4996_v58, %v4996_v58  ;;  %v4893_v29 = vadd.f32 %v4849_v50, %v4495_v36  ;;  %v13394_v2 = vld [vmem:[#allocation3 + $0x88] sm:$0xf] }
 0x30a   : > { %5439 = vst [vmem:[#allocation3 + $0x90] sm:$0xf] %v5438_v5  ;;  %v13397_v53 = vld [vmem:[#allocation3 + $0x8c] sm:$0x1]  ;;  %v13399_v14 = vpack.c.b16 %v6556_v57, %v6555_v44  ;;  %v5802_v37 = vshll.u32 %v13394_v2, 16  ;;  %v5806_v51 = vshrl.u32 %v13394_v2, 16 }
 0x30b   : > { %v5233_v28 = vshrl.u32 %v5028_v9, 16  ;;  %v5236_v54 = vshll.u32 %v5028_v9, 16  ;;  %v4929_v32 = vmul.f32 %v13360_v52, %v4893_v29  ;;  %v5812_v4 = vshll.u32 %v13397_v53, 16  ;;  %v10986_v44 = vld [vmem:[#allocation3 + $0x3c] sm:$0xff] }
 0x30c   : > { %10518 = vmatmul.msk.bf16.gmra.mxu3 %vm5993_vm9, %v13308_v7  ;;  %v3799_v50 = vpop.f32.mrf.mxu2  ;;  %v13407_v38 = vpop.f32.mrf.mxu1  ;;  %v5795_v48 = vrot.slane %v5793_v12, 4  ;;  %v5798_v42 = vrot.slane %v5796_v6, 5  ;;  %v5804_v7 = vrot.slane %v5802_v37, 5  ;;  %v5808_v61 = vrot.slane %v5806_v51, 4  ;;  %v6380_v57 = vld [vmem:[#allocation3 + $0x60] sm:$0xe] }
 0x30d   : > { %v5235_v11 = vrot.slane %v5233_v28, 7  ;;  %v4965_v35 = vadd.f32 %v13376_v43, %v4929_v32  ;;  %v3842_v45 = vadd.f32 %v3799_v50, %v3555_v16  ;;  %v511_v29 = vsel %vm12545_vm3, 0, %v510_v49  ;;  %v13417_v28 = vpop.f32.mrf.mxu3  ;;  %v458_v6 = vld [vmem:[#allocation3 + $0xb4] sm:$0x1] }
 0x30e   : > { %v5799_v5 = vor.u32 %v5798_v42, %v5795_v48  ;;  %v5809_v9 = vor.u32 %v5808_v61, %v5804_v7  ;;  %v5814_v32 = vrot.slane %v5812_v4, 5  ;;  %512 = vst [vmem:[#allocation3 + $0xb0] sm:$0x1] %v511_v29  ;;  %v15399_v4 = vld [vmem:[#allocation29_spill] sm:$0xff]  ;;  %v6481_v61 = vrot.slane %v13214_v21, 5 }
 0x30f   : > { %v5238_v33 = vor.u32 %v5236_v54, %v5235_v11  ;;  %v5240_v26 = vrot.slane %v5235_v11, 4  ;;  %v4997_v58 = vmax.f32 %v4965_v35, 0.0  ;;  %v4496_v25 = vadd.f32 %v13340_v34, %v3842_v45  ;;  %v5444_v48 = vld [vmem:[#allocation3 + $0x9c] sm:$0xf] }
 0x310   : > { %v4854_v36 = vpop.f32.mrf.mxu0  ;;  %v5800_v34 = vrot.slane %v5799_v5, 4  ;;  %v5810_v54 = vrot.slane %v5809_v9, 4  ;;  %v459_v35 = vsel %vm12503_vm7, 0, %v458_v6 }
 0x311   : > { %v5239_v19 = vsel %vm11220_vm8, %v5231_v46, %v5238_v33  ;;  %v5442_v13 = vsel %vm12503_vm7, %v5240_v26, %v5441_v27  ;;  %v5029_v16 = vpack.c.bf16 %v4997_v58, %v4997_v58  ;;  %10371 = vmatmul.msk.bf16.gmra.mxu1 %vm5993_vm9, %v5963_v62  ;;  %v4894_v17 = vadd.f32 %v4851_v10, %v4496_v25 }
 0x312   : > { %5440 = vst.msk [vmem:[#allocation3 + $0x94] sm:$0xf] %vm402_vm1, %v5239_v19  ;;  %10462 = vmatmul.msk.bf16.gmra.mxu2 %vm5993_vm9, %v10986_v44  ;;  %v6478_v46 = vrot.slane %v13202_v56, 5  ;;  %v10481_v62 = vrot.slane %v6380_v57, 9  ;;  %v5805_v51 = vsel %vm11272_vm13, %v5800_v34, %v5804_v7  ;;  %v5815_v11 = vsel %vm11272_vm13, %v5810_v54, %v5814_v32  ;;  %v5496_v54 = vld [vmem:[#allocation3 + $0x90] sm:$0xf] }
 0x313   : > { %10622 = vmatmul.msk.bf16.gmra.mxu0 %vm5993_vm9, %v11014_v0  ;;  %5443 = vst [vmem:[#allocation3 + $0x98] sm:$0x1] %v5442_v13  ;;  %v5242_v50 = vshrl.u32 %v5029_v16, 16  ;;  %v4930_v12 = vmul.f32 %v13360_v52, %v4894_v17  ;;  %v5245_v10 = vshll.u32 %v5029_v16, 16  ;;  %v5944_v42 = vunpack.c.l.b16 %v5815_v11  ;;  %v15400_v16 = vld [vmem:[#allocation17_spill] sm:$0xff]  ;;  %v15401_v17 = vld [vmem:[#allocation16_spill] sm:$0xff] }
 0x314   : > { %v3802_v37 = vpop.f32.mrf.mxu2  ;;  %460 = vst [vmem:[#allocation3 + $0xb4] sm:$0x1] %v459_v35  ;;  %v6479_v27 = vsel %vm11652_vm0, %v10481_v62, %v6478_v46  ;;  %v6480_v7 = vrot.slane %v6478_v46, 4  ;;  %v5943_v5 = vunpack.c.l.b16 %v5805_v51  ;;  %v3557_v34 = vadd.f32 %v15401_v17, %v15400_v16  ;;  %v6381_v17 = vld [vmem:[#allocation3 + $0x6c] sm:$0xe] }
 0x315   : > { %v13430_v45 = vrot.slane %v5242_v50, 7  ;;  %v4966_v56 = vadd.f32 %v13376_v43, %v4930_v12  ;;  %v3843_v49 = vadd.f32 %v3802_v37, %v15399_v4  ;;  %v6557_v29 = vunpack.c.l.b16 %v6479_v27  ;;  %v13451_v6 = vpop.f32.mrf.mxu3  ;;  %v11029_v27 = vld [vmem:[%s15293_s4 + $0x80] sm:$0xff] }
 0x316   : > { %v6482_v9 = vsel %vm11652_vm0, %v6480_v7, %v6481_v61  ;;  %v5817_v37 = vshrl.u32 %v5496_v54, 16  ;;  %v5820_v51 = vshll.u32 %v5496_v54, 16  ;;  %7664 = vmatpush.bf16.msrb.mxu1 %v11029_v27 }
 0x317   : > { %v5247_v33 = vor.u32 %v5245_v10, %v13430_v45  ;;  %v4998_v26 = vmax.f32 %v4966_v56, 0.0  ;;  %v4497_v25 = vadd.f32 %v13385_v22, %v3843_v49  ;;  %v5248_v0 = vrot.slane %v13430_v45, 4  ;;  %v13440_v44 = vpop.f32.mrf.mxu1 }
 0x318   : > { %v4856_v58 = vpop.f32.mrf.mxu0  ;;  %v6558_v13 = vunpack.c.l.b16 %v6482_v9  ;;  %v5964_v22 = vpack.c.b16 %v5944_v42, %v5943_v5  ;;  %v5448_v42 = vld [vmem:[#allocation3 + $0xa4] sm:$0x1]  ;;  %v5822_v7 = vrot.slane %v5820_v51, 5 }
 0x319   : > { %v5445_v57 = vsel %vm12670_vm10, %v5247_v33, %v5444_v48  ;;  %v5030_v19 = vpack.c.bf16 %v4998_v26, %v4998_v26  ;;  %v4895_v21 = vadd.f32 %v4854_v36, %v4497_v25  ;;  %v13448_v32 = vld [vmem:[#allocation3 + $0x94] sm:$0xf]  ;;  %v513_v48 = vld [vmem:[#allocation3 + $0xbc] sm:$0x1] }
 0x31a   : > { %5446 = vst [vmem:[#allocation3 + $0x9c] sm:$0xf] %v5445_v57  ;;  %v13453_v62 = vld [vmem:[#allocation3 + $0x98] sm:$0x1]  ;;  %v13455_v10 = vpack.c.b16 %v6558_v13, %v6557_v29  ;;  %v5826_v11 = vshll.u32 %v13448_v32, 16  ;;  %v5830_v35 = vshrl.u32 %v13448_v32, 16 }
 0x31b   : > { %v5250_v46 = vshrl.u32 %v5030_v19, 16  ;;  %v5253_v50 = vshll.u32 %v5030_v19, 16  ;;  %v4931_v12 = vmul.f32 %v13360_v52, %v4895_v21  ;;  %v5836_v49 = vshll.u32 %v13453_v62, 16  ;;  %v11015_v57 = vld [vmem:[#allocation3 + $0x54] sm:$0xff]  ;;  %v10987_v19 = vld [vmem:[#allocation3 + $0x48] sm:$0xff] }
 0x31c   : > { %10519 = vmatmul.msk.bf16.gmra.mxu3 %vm5993_vm9, %v13354_v40  ;;  %v3804_v36 = vpop.f32.mrf.mxu2  ;;  %v5819_v40 = vrot.slane %v5817_v37, 4  ;;  %v5828_v61 = vrot.slane %v5826_v11, 5  ;;  %v5832_v33 = vrot.slane %v5830_v35, 4  ;;  %v514_v16 = vsel %vm12545_vm3, 0, %v513_v48  ;;  %v461_v35 = vld [vmem:[#allocation3 + $0xc0] sm:$0x1] }
 0x31d   : > { %v5252_v45 = vrot.slane %v5250_v46, 7  ;;  %v4967_v56 = vadd.f32 %v13376_v43, %v4931_v12  ;;  %v3844_v4 = vadd.f32 %v3804_v36, %v3557_v34  ;;  %v5838_v37 = vrot.slane %v5836_v49, 5  ;;  %515 = vst [vmem:[#allocation3 + $0xbc] sm:$0x1] %v514_v16  ;;  %v4463_v48 = vpop.f32.mrf.mxu3 }
 0x31e   : > { %v5823_v21 = vor.u32 %v5822_v7, %v5819_v40  ;;  %v5833_v13 = vor.u32 %v5832_v33, %v5828_v61  ;;  %v462_v49 = vsel %vm12503_vm7, 0, %v461_v35  ;;  %v5451_v33 = vld [vmem:[#allocation3 + $0xa8] sm:$0xf] }
 0x31f   : > { %v5255_v26 = vor.u32 %v5253_v50, %v5252_v45  ;;  %v5257_v25 = vrot.slane %v5252_v45, 4  ;;  %v4999_v5 = vmax.f32 %v4967_v56, 0.0  ;;  %v4498_v29 = vadd.f32 %v13417_v28, %v3844_v4  ;;  %v13475_v28 = vpop.f32.mrf.mxu1  ;;  %463 = vst [vmem:[#allocation3 + $0xc0] sm:$0x1] %v462_v49 }
 0x320   : > { %v4859_v9 = vpop.f32.mrf.mxu0  ;;  %v5824_v12 = vrot.slane %v5823_v21, 4  ;;  %v5834_v36 = vrot.slane %v5833_v13, 4 }
 0x321   : > { %v5256_v34 = vsel %vm11220_vm8, %v5248_v0, %v5255_v26  ;;  %v5449_v54 = vsel %vm12503_vm7, %v5257_v25, %v5448_v42  ;;  %v5031_v46 = vpack.c.bf16 %v4999_v5, %v4999_v5  ;;  %10372 = vmatmul.msk.bf16.gmra.mxu1 %vm5993_vm9, %v5964_v22  ;;  %v4896_v50 = vadd.f32 %v4856_v58, %v4498_v29  ;;  %v15402_v42 = vld [vmem:[#allocation30_spill] sm:$0xff] }
 0x322   : > { %5447 = vst.msk [vmem:[#allocation3 + $0xa0] sm:$0xf] %vm402_vm1, %v5256_v34  ;;  %10463 = vmatmul.msk.bf16.gmra.mxu2 %vm5993_vm9, %v10987_v19  ;;  %v6485_v0 = vrot.slane %v13267_v1, 5  ;;  %v10482_v22 = vrot.slane %v6381_v17, 9  ;;  %v5829_v56 = vsel %vm11272_vm13, %v5824_v12, %v5828_v61  ;;  %v5839_v4 = vsel %vm11272_vm13, %v5834_v36, %v5838_v37  ;;  %v15403_v12 = vld [vmem:[#allocation31_spill] sm:$0xff] }
 0x323   : > { %10623 = vmatmul.msk.bf16.gmra.mxu0 %vm5993_vm9, %v11015_v57  ;;  %5450 = vst [vmem:[#allocation3 + $0xa4] sm:$0x1] %v5449_v54  ;;  %v5259_v51 = vshrl.u32 %v5031_v46, 16  ;;  %v4932_v11 = vmul.f32 %v13360_v52, %v4896_v50  ;;  %v5262_v58 = vshll.u32 %v5031_v46, 16  ;;  %v5946_v26 = vunpack.c.l.b16 %v5839_v4  ;;  %v15404_v36 = vld [vmem:[#allocation19_spill] sm:$0xff] }
 0x324   : > { %v3807_v45 = vpop.f32.mrf.mxu2  ;;  %v6486_v7 = vsel %vm11652_vm0, %v10482_v22, %v6485_v0  ;;  %v6487_v61 = vrot.slane %v6485_v0, 4  ;;  %v6488_v25 = vrot.slane %v13272_v3, 5  ;;  %v5945_v13 = vunpack.c.l.b16 %v5829_v56  ;;  %v5498_v0 = vld [vmem:[#allocation3 + $0x9c] sm:$0xf] }
 0x325   : > { %v5261_v27 = vrot.slane %v5259_v51, 7  ;;  %v4968_v1 = vadd.f32 %v13376_v43, %v4932_v11  ;;  %v3845_v40 = vadd.f32 %v3807_v45, %v15402_v42  ;;  %v6559_v17 = vunpack.c.l.b16 %v6486_v7 }
 0x326   : > { %v6489_v16 = vsel %vm11652_vm0, %v6487_v61, %v6488_v25  ;;  %v3559_v3 = vadd.f32 %v15404_v36, %v15403_v12  ;;  %v5965_v37 = vpack.c.b16 %v5946_v26, %v5945_v13  ;;  %v5841_v56 = vshrl.u32 %v5498_v0, 16  ;;  %v5455_v26 = vld [vmem:[#allocation3 + $0xb0] sm:$0x1] }
 0x327   : > { %v5264_v5 = vor.u32 %v5262_v58, %v5261_v27  ;;  %v5000_v29 = vmax.f32 %v4968_v1, 0.0  ;;  %v4499_v19 = vadd.f32 %v13451_v6, %v3845_v40  ;;  %v5265_v21 = vrot.slane %v5261_v27, 4 }
 0x328   : > { %v4861_v57 = vpop.f32.mrf.mxu0  ;;  %v6560_v50 = vunpack.c.l.b16 %v6489_v16  ;;  %v5844_v4 = vshll.u32 %v5498_v0, 16  ;;  %v5843_v61 = vrot.slane %v5841_v56, 4 }
 0x329   : > { %v5452_v34 = vsel %vm12670_vm10, %v5264_v5, %v5451_v33  ;;  %v5032_v54 = vpack.c.bf16 %v5000_v29, %v5000_v29  ;;  %v4897_v46 = vadd.f32 %v4859_v9, %v4499_v19  ;;  %v13499_v51 = vld [vmem:[#allocation3 + $0xa0] sm:$0xf]  ;;  %v516_v33 = vld [vmem:[#allocation3 + $0xc8] sm:$0x1] }
 0x32a   : > { %5453 = vst [vmem:[#allocation3 + $0xa8] sm:$0xf] %v5452_v34  ;;  %v13502_v22 = vld [vmem:[#allocation3 + $0xa4] sm:$0x1]  ;;  %v13504_v58 = vpack.c.b16 %v6560_v50, %v6559_v17  ;;  %v5850_v49 = vshll.u32 %v13499_v51, 16  ;;  %v5854_v27 = vshrl.u32 %v13499_v51, 16 }
 0x32b   : > { %v5267_v6 = vshrl.u32 %v5032_v54, 16  ;;  %v5270_v11 = vshll.u32 %v5032_v54, 16  ;;  %v4933_v35 = vmul.f32 %v13360_v52, %v4897_v46  ;;  %v5860_v7 = vshll.u32 %v13502_v22, 16  ;;  %v11016_v54 = vld [vmem:[#allocation3 + $0x60] sm:$0xff]  ;;  %v10988_v46 = vld [vmem:[#allocation3 + $0x54] sm:$0xff] }
 0x32c   : > { %v13506_v45 = vpop.f32.mrf.mxu1  ;;  %10520 = vmatmul.msk.bf16.gmra.mxu3 %vm5993_vm9, %v13399_v14  ;;  %v3809_v9 = vpop.f32.mrf.mxu2  ;;  %v5846_v25 = vrot.slane %v5844_v4, 5  ;;  %v5852_v5 = vrot.slane %v5850_v49, 5  ;;  %v5856_v29 = vrot.slane %v5854_v27, 4  ;;  %v517_v36 = vsel %vm12545_vm3, 0, %v516_v33  ;;  %v6382_v4 = vld [vmem:[#allocation3 + $0x78] sm:$0xe] }
 0x32d   : > { %v5269_v1 = vrot.slane %v5267_v6, 7  ;;  %v4969_v42 = vadd.f32 %v13376_v43, %v4933_v35  ;;  %v3846_v40 = vadd.f32 %v3809_v9, %v3559_v3  ;;  %v5862_v35 = vrot.slane %v5860_v7, 5  ;;  %518 = vst [vmem:[#allocation3 + $0xc8] sm:$0x1] %v517_v36  ;;  %v15405_v7 = vld [vmem:[#allocation20_spill] sm:$0xff] }
 0x32e   : > { %v5847_v50 = vor.u32 %v5846_v25, %v5843_v61  ;;  %v5857_v12 = vor.u32 %v5856_v29, %v5852_v5  ;;  %v5458_v61 = vld [vmem:[#allocation3 + $0xb4] sm:$0xf]  ;;  %v10483_v25 = vrot.slane %v6382_v4, 9  ;;  %v6495_v36 = vrot.slane %v13331_v63, 5 }
 0x32f   : > { %v5272_v14 = vor.u32 %v5270_v11, %v5269_v1  ;;  %v5274_v19 = vrot.slane %v5269_v1, 4  ;;  %v5001_v13 = vmax.f32 %v4969_v42, 0.0  ;;  %v4466_v16 = vpop.f32.mrf.mxu3  ;;  %v4500_v34 = vadd.f32 %v4463_v48, %v3846_v40 }
 0x330   : > { %v4864_v17 = vpop.f32.mrf.mxu0  ;;  %v5858_v48 = vrot.slane %v5857_v12, 4 }
 0x331   : > { %v5273_v3 = vsel %vm11220_vm8, %v5265_v21, %v5272_v14  ;;  %v5456_v0 = vsel %vm12503_vm7, %v5274_v19, %v5455_v26  ;;  %v5033_v6 = vpack.c.bf16 %v5001_v13, %v5001_v13  ;;  %10373 = vmatmul.msk.bf16.gmra.mxu1 %vm5993_vm9, %v5965_v37  ;;  %v4898_v11 = vadd.f32 %v4861_v57, %v4500_v34 }
 0x332   : > { %5454 = vst.msk [vmem:[#allocation3 + $0xac] sm:$0xf] %vm402_vm1, %v5273_v3  ;;  %10464 = vmatmul.msk.bf16.gmra.mxu2 %vm5993_vm9, %v10988_v46  ;;  %v5848_v21 = vrot.slane %v5847_v50, 4  ;;  %v5863_v57 = vsel %vm11272_vm13, %v5858_v48, %v5862_v35  ;;  %v6492_v37 = vrot.slane %v13326_v15, 5  ;;  %v5500_v46 = vld [vmem:[#allocation3 + $0xa8] sm:$0xf]  ;;  %v3561_v15 = vadd.f32 %v13200_v55, %v12585_v23 }
 0x333   : > { %10624 = vmatmul.msk.bf16.gmra.mxu0 %vm5993_vm9, %v11016_v54  ;;  %5457 = vst [vmem:[#allocation3 + $0xb0] sm:$0x1] %v5456_v0  ;;  %v5276_v9 = vshrl.u32 %v5033_v6, 16  ;;  %v4934_v56 = vmul.f32 %v13360_v52, %v4898_v11  ;;  %v5279_v49 = vshll.u32 %v5033_v6, 16  ;;  %v5948_v54 = vunpack.c.l.b16 %v5863_v57 }
 0x334   : > { %v13525_v27 = vpop.f32.mrf.mxu1  ;;  %v3812_v1 = vpop.f32.mrf.mxu2  ;;  %v5853_v26 = vsel %vm11272_vm13, %v5848_v21, %v5852_v5  ;;  %v6494_v12 = vrot.slane %v6492_v37, 4  ;;  %v6493_v11 = vsel %vm11652_vm0, %v10483_v25, %v6492_v37  ;;  %v5868_v48 = vshll.u32 %v5500_v46, 16 }
 0x335   : > { %v5278_v42 = vrot.slane %v5276_v9, 7  ;;  %v4970_v40 = vadd.f32 %v13376_v43, %v4934_v56  ;;  %v3847_v33 = vadd.f32 %v3812_v1, %v15405_v7  ;;  %v5947_v50 = vunpack.c.l.b16 %v5853_v26 }
 0x336   : > { %v6496_v23 = vsel %vm11652_vm0, %v6494_v12, %v6495_v36 }
 0x337   : > { %v5281_v29 = vor.u32 %v5279_v49, %v5278_v42  ;;  %v5002_v14 = vmax.f32 %v4970_v40, 0.0  ;;  %v4468_v19 = vpop.f32.mrf.mxu3  ;;  %v4501_v34 = vadd.f32 %v4466_v16, %v3847_v33  ;;  %v5865_v16 = vshrl.u32 %v5500_v46, 16 }
 0x338   : > { %v4866_v13 = vpop.f32.mrf.mxu0  ;;  %v5966_v9 = vpack.c.b16 %v5948_v54, %v5947_v50  ;;  %v6561_v49 = vunpack.c.l.b16 %v6493_v11  ;;  %v6562_v1 = vunpack.c.l.b16 %v6496_v23  ;;  %v5282_v26 = vrot.slane %v5278_v42, 4 }
 0x339   : > { %v5459_v3 = vsel %vm12670_vm10, %v5281_v29, %v5458_v61  ;;  %v5034_v5 = vpack.c.bf16 %v5002_v14, %v5002_v14  ;;  %v4899_v0 = vadd.f32 %v4864_v17, %v4501_v34  ;;  %v13539_v6 = vld [vmem:[#allocation3 + $0xac] sm:$0xf]  ;;  %v5462_v61 = vld [vmem:[#allocation3 + $0xbc] sm:$0x1]  ;;  %v5867_v29 = vrot.slane %v5865_v16, 4 }
 0x33a   : > { %5460 = vst [vmem:[#allocation3 + $0xb4] sm:$0xf] %v5459_v3  ;;  %v5874_v35 = vshll.u32 %v13539_v6, 16  ;;  %v5878_v56 = vshrl.u32 %v13539_v6, 16  ;;  %v13553_v7 = vld [vmem:[#allocation3 + $0xb0] sm:$0x1]  ;;  %v13557_v34 = vpack.c.b16 %v6562_v1, %v6561_v49 }
 0x33b   : > { %v5284_v55 = vshrl.u32 %v5034_v5, 16  ;;  %v4935_v63 = vmul.f32 %v13360_v52, %v4899_v0  ;;  %v5287_v17 = vshll.u32 %v5034_v5, 16  ;;  %v5870_v14 = vrot.slane %v5868_v48, 5  ;;  %v6383_v3 = vld [vmem:[#allocation3 + $0x84] sm:$0xe] }
 0x33c   : > { %10521 = vmatmul.msk.bf16.gmra.mxu3 %vm5993_vm9, %v13455_v10  ;;  %v3814_v21 = vpop.f32.mrf.mxu2  ;;  %v13550_v4 = vrot.slane %v5874_v35, 5  ;;  %v5880_v33 = vrot.slane %v5878_v56, 4  ;;  %v10989_v5 = vld [vmem:[#allocation3 + $0x60] sm:$0xff]  ;;  %v5884_v42 = vshll.u32 %v13553_v7, 16  ;;  %v6499_v11 = vrot.slane %v13394_v2, 5 }
 0x33d   : > { %v5286_v57 = vrot.slane %v5284_v55, 7  ;;  %v4971_v37 = vadd.f32 %v13376_v43, %v4935_v63  ;;  %v3848_v40 = vadd.f32 %v3814_v21, %v3561_v15  ;;  %v11017_v15 = vld [vmem:[#allocation3 + $0x6c] sm:$0xff]  ;;  %v5871_v2 = vor.u32 %v5870_v14, %v5867_v29 }
 0x33e   : > { %v13555_v25 = vpop.f32.mrf.mxu1  ;;  %v5881_v0 = vor.u32 %v5880_v33, %v13550_v4  ;;  %v10484_v63 = vrot.slane %v6383_v3, 9  ;;  %v5886_v21 = vrot.slane %v5884_v42, 5  ;;  %v6502_v1 = vrot.slane %v13397_v53, 5 }
 0x33f   : > { %v5289_v10 = vor.u32 %v5287_v17, %v5286_v57  ;;  %v5291_v54 = vrot.slane %v5286_v57, 4  ;;  %v5003_v46 = vmax.f32 %v4971_v37, 0.0  ;;  %v6670_v50 = vpop.f32.mrf.mxu3  ;;  %v4502_v36 = vadd.f32 %v4468_v19, %v3848_v40  ;;  %v11036_v19 = vld [vmem:[%s15293_s4 + $0xb8] sm:$0xff] }
 0x340   : > { %v13559_v12 = vpop.f32.mrf.mxu0  ;;  %v5882_v55 = vrot.slane %v5881_v0, 4  ;;  %8087 = vmatpush.bf16.msra.mxu2 %v11036_v19  ;;  %v6500_v49 = vsel %vm11652_vm0, %v10484_v63, %v6499_v11  ;;  %v5872_v29 = vrot.slane %v5871_v2, 4 }
 0x341   : > { %v5290_v16 = vsel %vm11220_vm8, %v5282_v26, %v5289_v10  ;;  %v5463_v48 = vsel %vm12503_vm7, %v5291_v54, %v5462_v61  ;;  %v5035_v35 = vpack.c.bf16 %v5003_v46, %v5003_v46  ;;  %10374 = vmatmul.msk.bf16.gmra.mxu1 %vm5993_vm9, %v5966_v9  ;;  %v4900_v23 = vadd.f32 %v4866_v13, %v4502_v36  ;;  %v5465_v26 = vld [vmem:[#allocation3 + $0xc0] sm:$0xf]  ;;  %v5502_v14 = vld [vmem:[#allocation3 + $0xb4] sm:$0xf] }
 0x342   : > { %5461 = vst.msk [vmem:[#allocation3 + $0xb8] sm:$0xf] %vm402_vm1, %v5290_v16  ;;  %10465 = vmatmul.msk.bf16.gmra.mxu2 %vm5993_vm9, %v10989_v5  ;;  %v6501_v9 = vrot.slane %v6499_v11, 4  ;;  %v11056_v10 = vld [vmem:[%s15293_s4 + $0xd8] sm:$0xff]  ;;  %v5877_v3 = vsel %vm11272_vm13, %v5872_v29, %v13550_v4 }
 0x343   : > { %10625 = vmatmul.msk.bf16.gmra.mxu0 %vm5993_vm9, %v11017_v15  ;;  %5464 = vst [vmem:[#allocation3 + $0xbc] sm:$0x1] %v5463_v48  ;;  %v5293_v56 = vshrl.u32 %v5035_v35, 16  ;;  %v4936_v17 = vmul.f32 %v13360_v52, %v4900_v23  ;;  %v5296_v37 = vshll.u32 %v5035_v35, 16  ;;  %v5887_v52 = vsel %vm11272_vm13, %v5882_v55, %v5886_v21  ;;  %8402 = vmatpush.bf16.msra.mxu3 %v11056_v10 }
 0x344   : > { %v6292_v13 = vpop.f32.mrf.mxu2  ;;  %v6503_v53 = vsel %vm11652_vm0, %v6501_v9, %v6502_v1  ;;  %v6563_v15 = vunpack.c.l.b16 %v6500_v49  ;;  %v5950_v11 = vunpack.c.l.b16 %v5887_v52  ;;  %v5889_v48 = vshrl.u32 %v5502_v14, 16  ;;  %v5469_v49 = vld [vmem:[#allocation3 + $0xc8] sm:$0x1] }
 0x345   : > { %v5295_v57 = vrot.slane %v5293_v56, 7  ;;  %v4972_v40 = vadd.f32 %v13376_v43, %v4936_v17  ;;  %v6293_v33 = vadd.f32 %v6292_v13, %v13228_v31  ;;  %v6564_v5 = vunpack.c.l.b16 %v6503_v53 }
 0x346   : > { %v13581_v61 = vpop.f32.mrf.mxu1  ;;  %v5892_v35 = vshll.u32 %v5502_v14, 16  ;;  %v5949_v2 = vunpack.c.l.b16 %v5877_v3 }
 0x347   : > { %v5298_v54 = vor.u32 %v5296_v37, %v5295_v57  ;;  %v5004_v46 = vmax.f32 %v4972_v40, 0.0  ;;  %v6672_v43 = vpop.f32.mrf.mxu3  ;;  %v13592_v31 = vadd.f32 %v6670_v50, %v6293_v33  ;;  %v13603_v19 = vpack.c.b16 %v6564_v5, %v6563_v15 }
 0x348   : > { %v13590_v36 = vpop.f32.mrf.mxu0  ;;  %v5967_v9 = vpack.c.b16 %v5950_v11, %v5949_v2  ;;  %v5891_v37 = vrot.slane %v5889_v48, 4  ;;  %v5894_v40 = vrot.slane %v5892_v35, 5  ;;  %v13632_v11 = vld [vmem:[#allocation3 + $0x10] sm:$0xf] }
 0x349   : > { %15406 = vst [vmem:[#allocation21_spill] sm:$0xff] %v13590_v36  ;;  %v5466_v0 = vsel %vm12670_vm10, %v5298_v54, %v5465_v26  ;;  %v5036_v42 = vpack.c.bf16 %v5004_v46, %v5004_v46  ;;  %v13599_v16 = vld [vmem:[#allocation3 + $0xb8] sm:$0xf]  ;;  %v5299_v26 = vrot.slane %v5295_v57, 4  ;;  %v10990_v54 = vld [vmem:[#allocation3 + $0x6c] sm:$0xff]  ;;  %v11064_v57 = vld [vmem:[%s15293_s4 + $0x118] sm:$0xff] }
 0x34a   : > { %5467 = vst [vmem:[#allocation3 + $0xc0] sm:$0xf] %v5466_v0  ;;  %v5898_v50 = vshll.u32 %v13599_v16, 16  ;;  %v5902_v23 = vshrl.u32 %v13599_v16, 16  ;;  %v13608_v21 = vld [vmem:[#allocation3 + $0xbc] sm:$0x1]  ;;  %9510 = vmatpush.bf16.msra.mxu1 %v11064_v57 }
 0x34b   : > { %v5301_v4 = vshrl.u32 %v5036_v42, 16  ;;  %v5304_v17 = vshll.u32 %v5036_v42, 16  ;;  %v5908_v46 = vshll.u32 %v13608_v21, 16 }
 0x34c   : > { %10522 = vmatmul.msk.bf16.gmra.mxu3 %vm5993_vm9, %v13504_v58  ;;  %v6294_v30 = vpop.f32.mrf.mxu2  ;;  %v5900_v55 = vrot.slane %v5898_v50, 5  ;;  %v5904_v63 = vrot.slane %v5902_v23, 4  ;;  %v11060_v58 = vld [vmem:[%s15293_s4 + $0xf8] sm:$0xff] }
 0x34d   : > { %v5303_v56 = vrot.slane %v5301_v4, 7  ;;  %v6295_v13 = vadd.f32 %v6294_v30, %v13276_v59  ;;  %v11018_v59 = vld [vmem:[#allocation3 + $0x78] sm:$0xff]  ;;  %9084 = vmatpush.bf16.msra.mxu0 %v11060_v58  ;;  %v5910_v0 = vrot.slane %v5908_v46, 5 }
 0x34e   : > { %v13610_v1 = vpop.f32.mrf.mxu1  ;;  %v5905_v33 = vor.u32 %v5904_v63, %v5900_v55  ;;  %v7096_v63 = vld [vmem:[#allocation3 + $0xc] sm:$0xf] }
 0x34f   : > { %v5306_v29 = vor.u32 %v5304_v17, %v5303_v56  ;;  %v5308_v52 = vrot.slane %v5303_v56, 4  ;;  %v6675_v14 = vpop.f32.mrf.mxu3  ;;  %v13617_v53 = vadd.f32 %v6672_v43, %v6295_v13  ;;  %v5895_v43 = vor.u32 %v5894_v40, %v5891_v37 }
 0x350   : > { %v13615_v10 = vpop.f32.mrf.mxu0  ;;  %v5906_v5 = vrot.slane %v5905_v33, 4  ;;  %v7154_v56 = vshll.u32 %v13632_v11, 16  ;;  %v7145_v13 = vshrl.u32 %v7096_v63, 16 }
 0x351   : > { %15407 = vst [vmem:[#allocation22_spill] sm:$0xff] %v13615_v10  ;;  %v5307_v3 = vsel %vm11220_vm8, %v5299_v26, %v5306_v29  ;;  %v5470_v15 = vsel %vm12503_vm7, %v5308_v52, %v5469_v49  ;;  %10375 = vmatmul.msk.bf16.gmra.mxu1 %vm5993_vm9, %v5967_v9  ;;  %v5896_v35 = vrot.slane %v5895_v43, 4  ;;  %v7148_v49 = vshll.u32 %v7096_v63, 16 }
 0x352   : > { %5468 = vst.msk [vmem:[#allocation3 + $0xc4] sm:$0xf] %vm402_vm1, %v5307_v3  ;;  %10466 = vmatmul.msk.bf16.gmra.mxu2 %vm5993_vm9, %v10990_v54  ;;  %v5911_v50 = vsel %vm11272_vm13, %v5906_v5, %v5910_v0  ;;  %v7156_v40 = vrot.slane %v7154_v56, 5  ;;  %v7147_v54 = vrot.slane %v7145_v13, 4  ;;  %v11019_v3 = vld [vmem:[#allocation3 + $0x84] sm:$0xff] }
 0x353   : > { %10626 = vmatmul.msk.bf16.gmra.mxu0 %vm5993_vm9, %v11018_v59  ;;  %5471 = vst [vmem:[#allocation3 + $0xc8] sm:$0x1] %v5470_v15  ;;  %v5901_v30 = vsel %vm11272_vm13, %v5896_v35, %v5900_v55  ;;  %v5952_v17 = vunpack.c.l.b16 %v5911_v50  ;;  %v13655_v59 = vld [vmem:[#allocation3 + $0x14] sm:$0x1]  ;;  %v7150_v46 = vrot.slane %v7148_v49, 5  ;;  %v10991_v15 = vld [vmem:[#allocation3 + $0x78] sm:$0xff] }
 0x354   : > { %v6297_v18 = vpop.f32.mrf.mxu2  ;;  %v5951_v9 = vunpack.c.l.b16 %v5901_v30  ;;  %v7099_v5 = vld [vmem:[#allocation3 + $0x18] sm:$0xf]  ;;  %v13661_v0 = vld [vmem:[#allocation3 + $0x1c] sm:$0xf] }
 0x355   : > { %v6298_v42 = vadd.f32 %v6297_v18, %v13302_v39  ;;  %v7158_v39 = vshrl.u32 %v13632_v11, 16  ;;  %v7151_v57 = vor.u32 %v7150_v46, %v7147_v54  ;;  %v7169_v56 = vshrl.u32 %v7099_v5, 16 }
 0x356   : > { %v13634_v48 = vpop.f32.mrf.mxu1  ;;  %v5968_v58 = vpack.c.b16 %v5952_v17, %v5951_v9  ;;  %v7178_v13 = vshll.u32 %v13661_v0, 16  ;;  %v7182_v49 = vshrl.u32 %v13661_v0, 16 }
 0x357   : > { %v6677_v23 = vpop.f32.mrf.mxu3  ;;  %v13640_v2 = vadd.f32 %v6675_v14, %v6298_v42  ;;  %v7160_v33 = vrot.slane %v7158_v39, 4  ;;  %v7152_v63 = vrot.slane %v7151_v57, 4  ;;  %v7172_v39 = vshll.u32 %v7099_v5, 16  ;;  %v7101_v5 = vld [vmem:[#allocation3 + $0x20] sm:$0x1] }
 0x358   : > { %v13638_v4 = vpop.f32.mrf.mxu0  ;;  %v7184_v54 = vrot.slane %v7182_v49, 4 }
 0x359   : > { %15408 = vst [vmem:[#allocation5_spill] sm:$0xff] %v13638_v4 }
 0x35a   : > { %15409 = vst [vmem:[#allocation23_spill] sm:$0xff] %v13640_v2  ;;  %v6387_v2 = vld [vmem:[#allocation3 + $0xb4] sm:$0xe] }
 0x35c   : > { %10523 = vmatmul.msk.bf16.gmra.mxu3 %vm5993_vm9, %v13557_v34  ;;  %v6299_v37 = vpop.f32.mrf.mxu2  ;;  %v7161_v34 = vor.u32 %v7160_v33, %v7156_v40  ;;  %v6506_v33 = vrot.slane %v13448_v32, 5 }
 0x35d   : > { %v6300_v26 = vadd.f32 %v6299_v37, %v13334_v41  ;;  %v7164_v41 = vshll.u32 %v13655_v59, 16  ;;  %v7157_v37 = vsel %vm11272_vm13, %v7152_v63, %v7156_v40 }
 0x35e   : > { %v13649_v29 = vpop.f32.mrf.mxu1  ;;  %v7162_v43 = vrot.slane %v7161_v34, 4  ;;  %v7537_v46 = vunpack.c.l.b16 %v7157_v37  ;;  %v6508_v40 = vrot.slane %v6506_v33, 4  ;;  %v7102_v37 = vld [vmem:[#allocation3 + $0x24] sm:$0xf] }
 0x35f   : > { %v6680_v55 = vpop.f32.mrf.mxu3  ;;  %v13653_v14 = vadd.f32 %v6677_v23, %v6300_v26  ;;  %v7166_v50 = vrot.slane %v7164_v41, 5  ;;  %v7174_v26 = vrot.slane %v7172_v39, 5  ;;  %v13690_v39 = vld [vmem:[#allocation3 + $0x28] sm:$0xf] }
 0x360   : > { %v13651_v52 = vpop.f32.mrf.mxu0 }
 0x361   : > { %15410 = vst [vmem:[#allocation25_spill] sm:$0xff] %v13651_v52  ;;  %10376 = vmatmul.msk.bf16.gmra.mxu1 %vm5993_vm9, %v5968_v58  ;;  %v7167_v9 = vsel %vm11272_vm13, %v7162_v43, %v7166_v50  ;;  %v7171_v58 = vrot.slane %v7169_v56, 4  ;;  %v6509_v56 = vrot.slane %v13453_v62, 5  ;;  %v7202_v62 = vshll.u32 %v13690_v39, 16 }
 0x362   : > { %15411 = vst [vmem:[#allocation27_spill] sm:$0xff] %v13653_v14  ;;  %10467 = vmatmul.msk.bf16.gmra.mxu2 %vm5993_vm9, %v10991_v15 }
 0x363   : > { %10627 = vmatmul.msk.bf16.gmra.mxu0 %vm5993_vm9, %v11019_v3  ;;  %v7175_v50 = vor.u32 %v7174_v26, %v7171_v58  ;;  %v7206_v26 = vshrl.u32 %v13690_v39, 16  ;;  %v13710_v8 = vrot.slane %v7202_v62, 5 }
 0x365   : > { %v6302_v18 = vpop.f32.mrf.mxu2 }
 0x366   : > { %v13663_v42 = vpop.f32.mrf.mxu1  ;;  %v6303_v35 = vadd.f32 %v6302_v18, %v13363_v47  ;;  %v7538_v47 = vunpack.c.l.b16 %v7167_v9  ;;  %v11020_v18 = vld [vmem:[#allocation3 + $0x90] sm:$0xff] }
 0x367   : > { %v6682_v23 = vpop.f32.mrf.mxu3 }
 0x368   : > { %v13666_v30 = vpop.f32.mrf.mxu0  ;;  %v13668_v17 = vadd.f32 %v6680_v55, %v6303_v35  ;;  %v7180_v55 = vrot.slane %v7178_v13, 5  ;;  %v7569_v41 = vpack.c.b16 %v7538_v47, %v7537_v46  ;;  %v6384_v35 = vld [vmem:[#allocation3 + $0x90] sm:$0xe]  ;;  %v7176_v13 = vrot.slane %v7175_v50, 4 }
 0x369   : > { %15412 = vst [vmem:[#allocation24_spill] sm:$0xff] %v13666_v30  ;;  %v10485_v9 = vrot.slane %v6384_v35, 9  ;;  %v7851_v46 = vrot.slane %v13661_v0, 5  ;;  %v6523_v30 = vrot.slane %v13553_v7, 5  ;;  %v11063_v7 = vld [vmem:[%s15293_s4 + $0x110] sm:$0xff] }
 0x36a   : > { %15413 = vst [vmem:[#allocation7_spill] sm:$0xff] %v13668_v17  ;;  %v7185_v63 = vor.u32 %v7184_v54, %v7180_v55  ;;  %v7779_v54 = vld [vmem:[#allocation3 + $0x18] sm:$0xe]  ;;  %v7181_v35 = vsel %vm11272_vm13, %v7176_v13, %v7180_v55  ;;  %v7854_v55 = vrot.slane %v7101_v5, 5  ;;  %9511 = vmatpush.bf16.msra.mxu1 %v11063_v7 }
 0x36b   : > { %v6507_v58 = vsel %vm11652_vm0, %v10485_v9, %v6506_v33  ;;  %v7193_v33 = vshrl.u32 %v7102_v37, 16  ;;  %v10674_v0 = vrot.slane %v7779_v54, 9  ;;  %v7196_v9 = vshll.u32 %v7102_v37, 16 }
 0x36c   : > { %10524 = vmatmul.msk.bf16.gmra.mxu3 %vm5993_vm9, %v13603_v19  ;;  %v10992_v19 = vld [vmem:[#allocation3 + $0x84] sm:$0xff]  ;;  %v7186_v49 = vrot.slane %v7185_v63, 4  ;;  %v6565_v63 = vunpack.c.l.b16 %v6507_v58  ;;  %v7539_v58 = vunpack.c.l.b16 %v7181_v35 }
 0x36d   : > { %v6304_v3 = vpop.f32.mrf.mxu2  ;;  %v7852_v20 = vsel %vm11652_vm0, %v10674_v0, %v7851_v46 }
 0x36e   : > { %v13679_v15 = vpop.f32.mrf.mxu1  ;;  %v6305_v34 = vadd.f32 %v6304_v3, %v13407_v38  ;;  %v7188_v38 = vshll.u32 %v7101_v5, 16 }
 0x36f   : > { %v6685_v57 = vpop.f32.mrf.mxu3 }
 0x370   : > { %v13682_v43 = vpop.f32.mrf.mxu0  ;;  %v13684_v32 = vadd.f32 %v6682_v23, %v6305_v34  ;;  %v6510_v23 = vsel %vm11652_vm0, %v6508_v40, %v6509_v56  ;;  %v7190_v40 = vrot.slane %v7188_v38, 5 }
 0x371   : > { %15414 = vst [vmem:[#allocation6_spill] sm:$0xff] %v13682_v43  ;;  %10657 = vmatmul.msk.bf16.vlgmr.msrb.gmra.mxu1 %vm5993_vm9, %v7569_v41  ;;  %v6566_v41 = vunpack.c.l.b16 %v6510_v23  ;;  %v7853_v23 = vrot.slane %v7851_v46, 4 }
 0x372   : > { %15415 = vst [vmem:[#allocation26_spill] sm:$0xff] %v13684_v32  ;;  %10468 = vmatmul.msk.bf16.gmra.mxu2 %vm5993_vm9, %v10992_v19  ;;  %v7191_v56 = vsel %vm11272_vm13, %v7186_v49, %v7190_v40  ;;  %v13716_v49 = vld [vmem:[#allocation3 + $0x34] sm:$0xf] }
 0x373   : > { %10628 = vmatmul.msk.bf16.gmra.mxu0 %vm5993_vm9, %v11020_v18  ;;  %v6585_v38 = vpack.c.b16 %v6566_v41, %v6565_v63  ;;  %v7540_v13 = vunpack.c.l.b16 %v7191_v56  ;;  %v7855_v37 = vsel %vm11652_vm0, %v7853_v23, %v7854_v55  ;;  %v7104_v63 = vld [vmem:[#allocation3 + $0x2c] sm:$0x1]  ;;  %v7226_v23 = vshll.u32 %v13716_v49, 16 }
 0x374   : > { %v7966_v41 = vunpack.c.l.b16 %v7855_v37  ;;  %v10993_v37 = vld [vmem:[#allocation3 + $0x90] sm:$0xff]  ;;  %v7865_v43 = vrot.slane %v13716_v49, 5 }
 0x375   : > { %v6307_v47 = vpop.f32.mrf.mxu2 }
 0x376   : > { %v13699_v3 = vpop.f32.mrf.mxu1  ;;  %v6308_v34 = vadd.f32 %v6307_v47, %v13440_v44  ;;  %v7208_v44 = vrot.slane %v7206_v26, 4  ;;  %v6513_v47 = vrot.slane %v13499_v51, 5  ;;  %v7198_v26 = vrot.slane %v7196_v9, 5 }
 0x377   : > { %v6687_v18 = vpop.f32.mrf.mxu3  ;;  %v7965_v51 = vunpack.c.l.b16 %v7852_v20  ;;  %v7230_v9 = vshrl.u32 %v13716_v49, 16 }
 0x378   : > { %v13702_v19 = vpop.f32.mrf.mxu0  ;;  %v13706_v50 = vadd.f32 %v6685_v57, %v6308_v34  ;;  %v7105_v57 = vld [vmem:[#allocation3 + $0x30] sm:$0xf]  ;;  %v7195_v34 = vrot.slane %v7193_v33, 4  ;;  %v7209_v54 = vor.u32 %v7208_v44, %v13710_v8  ;;  %v6515_v46 = vrot.slane %v6513_v47, 4  ;;  %v11021_v44 = vld [vmem:[#allocation3 + $0x9c] sm:$0xff] }
 0x379   : > { %15416 = vst [vmem:[#allocation11_spill] sm:$0xff] %v13702_v19  ;;  %v7217_v56 = vshrl.u32 %v7105_v57, 16  ;;  %v7220_v35 = vshll.u32 %v7105_v57, 16  ;;  %v7570_v33 = vpack.c.b16 %v7540_v13, %v7539_v58  ;;  %v13728_v55 = vpack.c.b16 %v7966_v41, %v7965_v51  ;;  %v6385_v19 = vld [vmem:[#allocation3 + $0x9c] sm:$0xe] }
 0x37a   : > { %15417 = vst [vmem:[#allocation9_spill] sm:$0xff] %v13706_v50  ;;  %v7199_v57 = vor.u32 %v7198_v26, %v7195_v34  ;;  %v7212_v13 = vshll.u32 %v7104_v63, 16  ;;  %v11035_v58 = vld [vmem:[%s15293_s4 + $0xb0] sm:$0xff]  ;;  %v7210_v51 = vrot.slane %v7209_v54, 4  ;;  %v7232_v34 = vrot.slane %v7230_v9, 4 }
 0x37b   : > { %v7219_v41 = vrot.slane %v7217_v56, 4  ;;  %8088 = vmatpush.bf16.msra.mxu2 %v11035_v58  ;;  %v7861_v9 = vrot.slane %v7104_v63, 5 }
 0x37c   : > { %10525 = vmatmul.msk.bf16.gmra.mxu3 %vm5993_vm9, %v6585_v38  ;;  %v7214_v54 = vrot.slane %v7212_v13, 5 }
 0x37d   : > { %v6309_v62 = vpop.f32.mrf.mxu2 }
 0x37e   : > { %v13721_v40 = vpop.f32.mrf.mxu1  ;;  %v6310_v5 = vadd.f32 %v6309_v62, %v13475_v28  ;;  %v6516_v28 = vrot.slane %v13502_v22, 5  ;;  %v7780_v62 = vld [vmem:[#allocation3 + $0x24] sm:$0xe]  ;;  %v7222_v22 = vrot.slane %v7220_v35, 5  ;;  %v7107_v35 = vld [vmem:[#allocation3 + $0x38] sm:$0x1] }
 0x37f   : > { %v6690_v0 = vpop.f32.mrf.mxu3  ;;  %v10675_v26 = vrot.slane %v7780_v62, 9 }
 0x380   : > { %v13724_v38 = vpop.f32.mrf.mxu0  ;;  %v13730_v20 = vadd.f32 %v6687_v18, %v6310_v5  ;;  %v6517_v18 = vsel %vm11652_vm0, %v6515_v46, %v6516_v28  ;;  %v10486_v5 = vrot.slane %v6385_v19, 9  ;;  %v7200_v46 = vrot.slane %v7199_v57, 4 }
 0x381   : > { %15418 = vst [vmem:[#allocation13_spill] sm:$0xff] %v13724_v38  ;;  %10658 = vmatmul.msk.bf16.gmra.mxu1 %vm5993_vm9, %v7570_v33  ;;  %v13741_v38 = vrot.slane %v7226_v23, 5  ;;  %v7858_v33 = vrot.slane %v13690_v39, 5  ;;  %v6568_v50 = vunpack.c.l.b16 %v6517_v18  ;;  %v11055_v23 = vld [vmem:[%s15293_s4 + $0xd0] sm:$0xff]  ;;  %v7223_v57 = vor.u32 %v7222_v22, %v7219_v41 }
 0x382   : > { %15419 = vst [vmem:[#allocation8_spill] sm:$0xff] %v13730_v20  ;;  %10469 = vmatmul.msk.bf16.gmra.mxu2 %vm5993_vm9, %v10993_v37  ;;  %v7781_v20 = vld [vmem:[#allocation3 + $0x30] sm:$0xe]  ;;  %v6514_v37 = vsel %vm11652_vm0, %v10486_v5, %v6513_v47  ;;  %v7215_v47 = vsel %vm11272_vm13, %v7210_v51, %v7214_v54  ;;  %8403 = vmatpush.bf16.msra.mxu3 %v11055_v23  ;;  %v7868_v41 = vrot.slane %v7107_v35, 5  ;;  %v7236_v54 = vshll.u32 %v7107_v35, 16 }
 0x383   : > { %10629 = vmatmul.msk.bf16.gmra.mxu0 %vm5993_vm9, %v11021_v44  ;;  %v7859_v39 = vsel %vm11652_vm0, %v10675_v26, %v7858_v33  ;;  %v7860_v49 = vrot.slane %v7858_v33, 4  ;;  %v7233_v13 = vor.u32 %v7232_v34, %v13741_v38  ;;  %v10676_v58 = vrot.slane %v7781_v20, 9  ;;  %v8519_v33 = vld [vmem:[#allocation3 + $0x18] sm:$0xf]  ;;  %v7108_v34 = vld [vmem:[#allocation3 + $0x3c] sm:$0xf] }
 0x384   : > { %v6567_v18 = vunpack.c.l.b16 %v6514_v37  ;;  %v7867_v26 = vrot.slane %v7865_v43, 4  ;;  %v7967_v63 = vunpack.c.l.b16 %v7859_v39  ;;  %v7205_v20 = vsel %vm11272_vm13, %v7200_v46, %v13710_v8  ;;  %v13775_v39 = vld [vmem:[#allocation3 + $0x1c] sm:$0xf] }
 0x385   : > { %v6312_v44 = vpop.f32.mrf.mxu2  ;;  %v7862_v5 = vsel %vm11652_vm0, %v7860_v49, %v7861_v9  ;;  %v7866_v51 = vsel %vm11652_vm0, %v10676_v58, %v7865_v43  ;;  %v7542_v37 = vunpack.c.l.b16 %v7215_v47  ;;  %v8568_v43 = vshrl.u32 %v8519_v33, 16 }
 0x386   : > { %v13747_v56 = vpop.f32.mrf.mxu1  ;;  %v6313_v19 = vadd.f32 %v6312_v44, %v13506_v45  ;;  %v7968_v44 = vunpack.c.l.b16 %v7862_v5  ;;  %v6586_v22 = vpack.c.b16 %v6568_v50, %v6567_v18  ;;  %v7869_v23 = vsel %vm11652_vm0, %v7867_v26, %v7868_v41  ;;  %v6386_v5 = vld [vmem:[#allocation3 + $0xa8] sm:$0xe] }
 0x387   : > { %v6692_v28 = vpop.f32.mrf.mxu3  ;;  %v7969_v50 = vunpack.c.l.b16 %v7866_v51  ;;  %v7970_v49 = vunpack.c.l.b16 %v7869_v23  ;;  %v7541_v9 = vunpack.c.l.b16 %v7205_v20  ;;  %v7224_v8 = vrot.slane %v7223_v57, 4  ;;  %v7782_v23 = vld [vmem:[#allocation3 + $0x3c] sm:$0xe] }
 0x388   : > { %v13758_v62 = vpop.f32.mrf.mxu0  ;;  %v13760_v45 = vadd.f32 %v6690_v0, %v6313_v19  ;;  %v6520_v0 = vrot.slane %v13539_v6, 5  ;;  %v13770_v19 = vpack.c.b16 %v7968_v44, %v7967_v63  ;;  %v13777_v46 = vrot.slane %v7233_v13, 4  ;;  %v13779_v6 = vld [vmem:[#allocation3 + $0x40] sm:$0xf]  ;;  %v11059_v63 = vld [vmem:[%s15293_s4 + $0xf0] sm:$0xff] }
 0x389   : > { %15420 = vst [vmem:[#allocation10_spill] sm:$0xff] %v13758_v62  ;;  %v7241_v35 = vshrl.u32 %v7108_v34, 16  ;;  %v7244_v44 = vshll.u32 %v7108_v34, 16  ;;  %v13787_v51 = vpack.c.b16 %v7970_v49, %v7969_v50  ;;  %v7571_v41 = vpack.c.b16 %v7542_v37, %v7541_v9  ;;  %v9201_v62 = vld [vmem:[#allocation3 + $0x18] sm:$0xe]  ;;  %9085 = vmatpush.bf16.msra.mxu0 %v11059_v63 }
 0x38a   : > { %15421 = vst [vmem:[#allocation12_spill] sm:$0xff] %v13760_v45  ;;  %v6522_v26 = vrot.slane %v6520_v0, 4  ;;  %v7229_v13 = vsel %vm11272_vm13, %v7224_v8, %v13741_v38  ;;  %v8571_v20 = vshll.u32 %v8519_v33, 16  ;;  %v10994_v45 = vld [vmem:[#allocation3 + $0x9c] sm:$0xff]  ;;  %v7872_v34 = vrot.slane %v13779_v6, 5 }
 0x38b   : > { %v9267_v37 = vrot.slane %v13775_v39, 5  ;;  %v10487_v50 = vrot.slane %v6386_v5, 9  ;;  %v13801_v33 = vld [vmem:[#allocation3 + $0x44] sm:$0x1]  ;;  %v13816_v8 = vrot.slane %v7244_v44, 5  ;;  %v8577_v63 = vshll.u32 %v13775_v39, 16 }
 0x38c   : > { %10526 = vmatmul.msk.bf16.gmra.mxu3 %vm5993_vm9, %v6586_v22  ;;  %v7238_v22 = vrot.slane %v7236_v54, 5  ;;  %v13808_v54 = vrot.slane %v8568_v43, 4  ;;  %v6524_v9 = vsel %vm11652_vm0, %v6522_v26, %v6523_v30  ;;  %v13822_v43 = vrot.slane %v8571_v20, 5  ;;  %v13833_v20 = vld [vmem:[#allocation3 + $0x28] sm:$0xf] }
 0x38d   : > { %v6314_v58 = vpop.f32.mrf.mxu2  ;;  %v6521_v5 = vsel %vm11652_vm0, %v10487_v50, %v6520_v0  ;;  %v7875_v30 = vrot.slane %v13801_v33, 5  ;;  %v9269_v44 = vrot.slane %v9267_v37, 4  ;;  %v7250_v0 = vshll.u32 %v13779_v6, 16  ;;  %v9202_v50 = vld [vmem:[#allocation3 + $0x24] sm:$0xe] }
 0x38e   : > { %v13781_v47 = vpop.f32.mrf.mxu1  ;;  %v6315_v18 = vadd.f32 %v6314_v58, %v13525_v27  ;;  %v11022_v58 = vld [vmem:[#allocation3 + $0xa8] sm:$0xff]  ;;  %v7239_v38 = vsel %vm11272_vm13, %v13777_v46, %v7238_v22  ;;  %v13818_v46 = vld [vmem:[#allocation3 + $0x20] sm:$0x1]  ;;  %v10874_v17 = vrot.slane %v9202_v50, 9  ;;  %v9274_v4 = vrot.slane %v13833_v20, 5 }
 0x38f   : > { %v6695_v57 = vpop.f32.mrf.mxu3  ;;  %v7544_v10 = vunpack.c.l.b16 %v7239_v38 }
 0x390   : > { %v13792_v27 = vadd.f32 %v6692_v28, %v6315_v18  ;;  %v13803_v28 = vrot.slane %v7241_v35, 4  ;;  %v13810_v49 = vpop.f32.mrf.mxu0  ;;  %v10677_v35 = vrot.slane %v7782_v23, 9  ;;  %v10873_v18 = vrot.slane %v9201_v62, 9 }
 0x391   : > { %10659 = vmatmul.msk.bf16.gmra.mxu1 %vm5993_vm9, %v7571_v41  ;;  %15423 = vst [vmem:[#allocation15_spill] sm:$0xff] %v13810_v49  ;;  %v7874_v41 = vrot.slane %v7872_v34, 4  ;;  %v6570_v62 = vunpack.c.l.b16 %v6524_v9  ;;  %v13830_v23 = vunpack.c.l.b16 %v7229_v13  ;;  %v7254_v49 = vshrl.u32 %v13779_v6, 16  ;;  %v13843_v13 = vld [vmem:[#allocation3 + $0x2c] sm:$0x1] }
 0x392   : > { %15422 = vst [vmem:[#allocation28_spill] sm:$0xff] %v13792_v27  ;;  %10470 = vmatmul.msk.bf16.gmra.mxu2 %vm5993_vm9, %v10994_v45  ;;  %v7873_v45 = vsel %vm11652_vm0, %v10677_v35, %v7872_v34  ;;  %v9268_v26 = vsel %vm11652_vm0, %v10873_v18, %v9267_v37  ;;  %v6569_v35 = vunpack.c.l.b16 %v6521_v5  ;;  %v11054_v37 = vld [vmem:[%s15293_s4 + $0xc8] sm:$0xff]  ;;  %v9275_v50 = vsel %vm11652_vm0, %v10874_v17, %v9274_v4 }
 0x393   : > { %10630 = vmatmul.msk.bf16.gmra.mxu0 %vm5993_vm9, %v11022_v58  ;;  %v9270_v58 = vrot.slane %v13818_v46, 5  ;;  %v7876_v9 = vsel %vm11652_vm0, %v7874_v41, %v7875_v30  ;;  %v13847_v27 = vld [vmem:[#allocation3 + $0x34] sm:$0xf]  ;;  %v7971_v32 = vunpack.c.l.b16 %v7873_v45  ;;  %v9386_v5 = vunpack.c.l.b16 %v9268_v26  ;;  %8404 = vmatpush.bf16.msra.mxu3 %v11054_v37  ;;  %v11053_v41 = vld [vmem:[%s15293_s4 + $0xc0] sm:$0xff]  ;;  %v13857_v30 = vld [vmem:[#allocation3 + $0x38] sm:$0x1] }
 0x394   : > { %v7972_v52 = vunpack.c.l.b16 %v7876_v9  ;;  %v6587_v14 = vpack.c.b16 %v6570_v62, %v6569_v35  ;;  %v9203_v26 = vld [vmem:[#allocation3 + $0x30] sm:$0xe]  ;;  %v9276_v62 = vrot.slane %v9274_v4, 4  ;;  %v9281_v38 = vrot.slane %v13847_v27, 5  ;;  %v7783_v9 = vld [vmem:[#allocation3 + $0x48] sm:$0xe] }
 0x395   : > { %v6317_v22 = vpop.f32.mrf.mxu2  ;;  %v13870_v35 = vrot.slane %v7250_v0, 5  ;;  %v7256_v37 = vrot.slane %v7254_v49, 4  ;;  %v9284_v4 = vrot.slane %v13857_v30, 5  ;;  %v13880_v0 = vld [vmem:[#allocation3 + $0x50] sm:$0x1]  ;;  %v13882_v49 = vrot.slane %v8577_v63, 5 }
 0x396   : > { %v13836_v7 = vpop.f32.mrf.mxu1  ;;  %v6318_v34 = vadd.f32 %v6317_v22, %v13555_v25  ;;  %v9271_v25 = vsel %vm11652_vm0, %v9269_v44, %v9270_v58  ;;  %v13859_v45 = vpack.c.b16 %v7972_v52, %v7971_v32  ;;  %v9277_v44 = vrot.slane %v13843_v13, 5 }
 0x397   : > { %v6697_v18 = vpop.f32.mrf.mxu3  ;;  %v9387_v6 = vunpack.c.l.b16 %v9271_v25  ;;  %v8581_v52 = vshrl.u32 %v13775_v39, 16  ;;  %v9283_v17 = vrot.slane %v9281_v38, 4  ;;  %8405 = vmatpush.bf16.msra.mxu3 %v11053_v41 }
 0x398   : > { %v13851_v22 = vadd.f32 %v6695_v57, %v6318_v34  ;;  %15425 = vst [vmem:[#allocation29_spill] sm:$0xff] %v13859_v45  ;;  %v13862_v57 = vld [vmem:[#allocation3 + $0x4c] sm:$0xf]  ;;  %v6527_v34 = vrot.slane %v13599_v16, 5  ;;  %v13873_v32 = vpop.f32.mrf.mxu0  ;;  %v9278_v25 = vsel %vm11652_vm0, %v9276_v62, %v9277_v44  ;;  %v11058_v44 = vld [vmem:[%s15293_s4 + $0xe8] sm:$0xff]  ;;  %v7257_v62 = vor.u32 %v7256_v37, %v13870_v35 }
 0x399   : > { %v13864_v58 = vpack.c.b16 %v9387_v6, %v9386_v5  ;;  %15427 = vst [vmem:[#allocation16_spill] sm:$0xff] %v13873_v32  ;;  %v10875_v5 = vrot.slane %v9203_v26, 9  ;;  %v7572_v6 = vpack.c.b16 %v7544_v10, %v13830_v23  ;;  %v7879_v39 = vrot.slane %v13862_v57, 5  ;;  %9086 = vmatpush.bf16.msra.mxu0 %v11058_v44  ;;  %v11034_v37 = vld [vmem:[%s15293_s4 + $0xa8] sm:$0xff] }
 0x39a   : > { %15424 = vst [vmem:[#allocation14_spill] sm:$0xff] %v13851_v22  ;;  %v9389_v26 = vunpack.c.l.b16 %v9278_v25  ;;  %v9285_v23 = vsel %vm11652_vm0, %v9283_v17, %v9284_v4  ;;  %v6529_v41 = vrot.slane %v6527_v34, 4  ;;  %v10678_v22 = vrot.slane %v7783_v9, 9  ;;  %8089 = vmatpush.bf16.msra.mxu2 %v11034_v37 }
 0x39b   : > { %15426 = vst [vmem:[#allocation17_spill] sm:$0xff] %v13864_v58  ;;  %v9388_v58 = vunpack.c.l.b16 %v9275_v50  ;;  %v9282_v10 = vsel %vm11652_vm0, %v10875_v5, %v9281_v38  ;;  %v8583_v50 = vrot.slane %v8581_v52, 4  ;;  %v7882_v25 = vrot.slane %v13880_v0, 5  ;;  %v13916_v5 = vld [vmem:[#allocation3 + $0x40] sm:$0xf] }
 0x39c   : > { %10527 = vmatmul.msk.bf16.gmra.mxu3 %vm5993_vm9, %v6587_v14  ;;  %v6530_v38 = vrot.slane %v13608_v21, 5  ;;  %v7880_v52 = vsel %vm11652_vm0, %v10678_v22, %v7879_v39  ;;  %v9391_v9 = vunpack.c.l.b16 %v9285_v23  ;;  %v7247_v21 = vor.u32 %v13816_v8, %v13803_v28 }
 0x39d   : > { %v6319_v16 = vpop.f32.mrf.mxu2  ;;  %v13899_v36 = vpack.c.b16 %v9389_v26, %v9388_v58  ;;  %v7260_v58 = vshll.u32 %v13801_v33, 16  ;;  %v10488_v4 = vrot.slane %v6387_v2, 9  ;;  %v7258_v44 = vrot.slane %v7257_v62, 4 }
 0x39e   : > { %v13885_v14 = vpop.f32.mrf.mxu1  ;;  %v6320_v32 = vadd.f32 %v6319_v16, %v13581_v61  ;;  %v11023_v61 = vld [vmem:[#allocation3 + $0xb4] sm:$0xff]  ;;  %v10995_v16 = vld [vmem:[#allocation3 + $0xa8] sm:$0xff]  ;;  %v6531_v22 = vsel %vm11652_vm0, %v6529_v41, %v6530_v38  ;;  %v8587_v26 = vshll.u32 %v13818_v46, 16  ;;  %v7973_v28 = vunpack.c.l.b16 %v7880_v52 }
 0x39f   : > { %15428 = vst [vmem:[#allocation30_spill] sm:$0xff] %v13885_v14  ;;  %v6700_v63 = vpop.f32.mrf.mxu3  ;;  %v7881_v14 = vrot.slane %v7879_v39, 4  ;;  %v6528_v33 = vsel %vm11652_vm0, %v10488_v4, %v6527_v34  ;;  %v8584_v2 = vor.u32 %v8583_v50, %v13882_v49  ;;  %v7262_v46 = vrot.slane %v7260_v58, 5  ;;  %v13939_v34 = vld [vmem:[#allocation3 + $0x44] sm:$0x1] }
 0x3a0   : > { %v13896_v45 = vadd.f32 %v6697_v18, %v6320_v32  ;;  %15429 = vst [vmem:[#allocation31_spill] sm:$0xff] %v13899_v36  ;;  %v11057_v18 = vld [vmem:[%s15293_s4 + $0xe0] sm:$0xff]  ;;  %v9390_v32 = vunpack.c.l.b16 %v9282_v10  ;;  %v9288_v10 = vrot.slane %v13916_v5, 5  ;;  %v13931_v23 = vpop.f32.mrf.mxu0  ;;  %v7274_v38 = vshll.u32 %v13862_v57, 16  ;;  %v9204_v4 = vld [vmem:[#allocation3 + $0x3c] sm:$0xe] }
 0x3a1   : > { %10660 = vmatmul.msk.bf16.gmra.mxu1 %vm5993_vm9, %v7572_v6  ;;  %v7883_v17 = vsel %vm11652_vm0, %v7881_v14, %v7882_v25  ;;  %9087 = vmatpush.bf16.msra.mxu0 %v11057_v18  ;;  %v8574_v14 = vor.u32 %v13822_v43, %v13808_v54  ;;  %15431 = vst [vmem:[#allocation20_spill] sm:$0xff] %v13931_v23  ;;  %v7248_v43 = vrot.slane %v7247_v21, 4  ;;  %v7111_v50 = vld [vmem:[#allocation3 + $0x48] sm:$0xf]  ;;  %v7278_v37 = vshrl.u32 %v13862_v57, 16  ;;  %v11024_v36 = vld [vmem:[#allocation3 + $0xc0] sm:$0xff] }
 0x3a2   : > { %10471 = vmatmul.msk.bf16.gmra.mxu2 %vm5993_vm9, %v10995_v16  ;;  %v7974_v6 = vunpack.c.l.b16 %v7883_v17  ;;  %v13922_v39 = vpack.c.b16 %v9391_v9, %v9390_v32  ;;  %v11033_v16 = vld [vmem:[%s15293_s4 + $0xa0] sm:$0xff]  ;;  %v7263_v52 = vsel %vm11272_vm13, %v7258_v44, %v7262_v46  ;;  %v8589_v32 = vrot.slane %v8587_v26, 5 }
 0x3a3   : > { %10631 = vmatmul.msk.bf16.gmra.mxu0 %vm5993_vm9, %v11023_v61  ;;  %v6572_v61 = vunpack.c.l.b16 %v6531_v22  ;;  %8090 = vmatpush.bf16.msra.mxu2 %v11033_v16  ;;  %v13949_v9 = vld [vmem:[#allocation3 + $0xc] sm:$0xe]  ;;  %v8575_v58 = vrot.slane %v8574_v14, 4  ;;  %v8585_v17 = vrot.slane %v8584_v2, 4  ;;  %v9290_v22 = vrot.slane %v9288_v10, 4 }
 0x3a4   : > { %15430 = vst [vmem:[#allocation19_spill] sm:$0xff] %v13922_v39  ;;  %v13941_v25 = vpack.c.b16 %v7974_v6, %v7973_v28  ;;  %v9291_v21 = vrot.slane %v13939_v34, 5  ;;  %v7253_v57 = vsel %vm11272_vm13, %v7248_v43, %v13870_v35  ;;  %v7268_v28 = vshll.u32 %v7111_v50, 16 }
 0x3a5   : > { %v6322_v8 = vpop.f32.mrf.mxu2  ;;  %v13955_v44 = vrot.slane %v7274_v38, 5  ;;  %v7280_v26 = vrot.slane %v7278_v37, 4  ;;  %v8580_v2 = vsel %vm11272_vm13, %v8575_v58, %v13882_v49  ;;  %v7844_v35 = vrot.slane %v13632_v11, 5  ;;  %v7784_v11 = vld [vmem:[#allocation3 + $0x54] sm:$0xe] }
 0x3a6   : > { %v13933_v41 = vpop.f32.mrf.mxu1  ;;  %v6323_v62 = vadd.f32 %v6322_v8, %v13610_v1  ;;  %v6571_v1 = vunpack.c.l.b16 %v6528_v33  ;;  %v8522_v8 = vld [vmem:[#allocation3 + $0x24] sm:$0xf]  ;;  %v7546_v33 = vunpack.c.l.b16 %v7263_v52  ;;  %v9292_v14 = vsel %vm11652_vm0, %v9290_v22, %v9291_v21 }
 0x3a7   : > { %v6702_v54 = vpop.f32.mrf.mxu3  ;;  %v10876_v46 = vrot.slane %v9204_v4, 9  ;;  %v7545_v16 = vunpack.c.l.b16 %v7253_v57  ;;  %v8592_v38 = vshrl.u32 %v8522_v8, 16  ;;  %v7270_v58 = vrot.slane %v7268_v28, 5 }
 0x3a8   : > { %v13945_v18 = vadd.f32 %v6700_v63, %v6323_v62  ;;  %v6588_v6 = vpack.c.b16 %v6572_v61, %v6571_v1  ;;  %v7265_v63 = vshrl.u32 %v7111_v50, 16  ;;  %v10673_v62 = vrot.slane %v13949_v9, 9  ;;  %v13965_v61 = vld [vmem:[#allocation3 + $0x58] sm:$0xf]  ;;  %v13973_v9 = vld [vmem:[#allocation3 + $0x5c] sm:$0x1]  ;;  %v13978_v57 = vpop.f32.mrf.mxu0 }
 0x3a9   : > { %v8590_v50 = vsel %vm11272_vm13, %v8585_v17, %v8589_v32  ;;  %v7886_v37 = vrot.slane %v13965_v61, 5  ;;  %v9289_v4 = vsel %vm11652_vm0, %v10876_v46, %v9288_v10  ;;  %v7573_v22 = vpack.c.b16 %v7546_v33, %v7545_v16  ;;  %15433 = vst [vmem:[#allocation34_spill] sm:$0xff] %v13978_v57 }
 0x3aa   : > { %15432 = vst [vmem:[#allocation33_spill] sm:$0xff] %v13945_v18  ;;  %v7267_v49 = vrot.slane %v7265_v63, 4  ;;  %v8595_v32 = vshll.u32 %v8522_v8, 16  ;;  %v9393_v17 = vunpack.c.l.b16 %v9292_v14  ;;  %v7284_v63 = vshll.u32 %v13880_v0, 16 }
 0x3ab   : > { %v8601_v28 = vshll.u32 %v13833_v20, 16  ;;  %v10679_v10 = vrot.slane %v7784_v11, 9  ;;  %v7888_v33 = vrot.slane %v7886_v37, 4  ;;  %v9392_v8 = vunpack.c.l.b16 %v9289_v4 }
 0x3ac   : > { %10528 = vmatmul.msk.bf16.gmra.mxu3 %vm5993_vm9, %v6588_v6  ;;  %v7281_v6 = vor.u32 %v7280_v26, %v13955_v44  ;;  %v7889_v26 = vrot.slane %v13973_v9, 5  ;;  %v13989_v14 = vunpack.c.l.b16 %v8590_v50  ;;  %v7846_v46 = vrot.slane %v7844_v35, 4 }
 0x3ad   : > { %v6324_v43 = vpop.f32.mrf.mxu2  ;;  %v7847_v0 = vrot.slane %v13655_v59, 5  ;;  %v13998_v4 = vpack.c.b16 %v9393_v17, %v9392_v8  ;;  %v7845_v50 = vsel %vm11652_vm0, %v10673_v62, %v7844_v35  ;;  %v7286_v59 = vrot.slane %v7284_v63, 5  ;;  %v8525_v63 = vld [vmem:[#allocation3 + $0x30] sm:$0xf] }
 0x3ae   : > { %v13970_v1 = vpop.f32.mrf.mxu1  ;;  %v6325_v52 = vadd.f32 %v6324_v43, %v13634_v48  ;;  %v10996_v48 = vld [vmem:[#allocation3 + $0xb4] sm:$0xff]  ;;  %v8605_v43 = vshrl.u32 %v13833_v20, 16  ;;  %v7282_v16 = vrot.slane %v7281_v6, 4  ;;  %v7887_v20 = vsel %vm11652_vm0, %v10679_v10, %v7886_v37 }
 0x3af   : > { %v6705_v21 = vpop.f32.mrf.mxu3  ;;  %v7890_v11 = vsel %vm11652_vm0, %v7888_v33, %v7889_v26  ;;  %15435 = vst [vmem:[#allocation36_spill] sm:$0xff] %v13998_v4  ;;  %v8597_v6 = vrot.slane %v8595_v32, 5  ;;  %v7848_v17 = vsel %vm11652_vm0, %v7846_v46, %v7847_v0  ;;  %v7963_v32 = vunpack.c.l.b16 %v7845_v50 }
 0x3b0   : > { %v13980_v39 = vadd.f32 %v6702_v54, %v6325_v52  ;;  %v7271_v54 = vor.u32 %v7270_v58, %v7267_v49  ;;  %v13992_v52 = vld [vmem:[#allocation3 + $0x4c] sm:$0xf]  ;;  %v8594_v49 = vrot.slane %v8592_v38, 4  ;;  %v7976_v58 = vunpack.c.l.b16 %v7890_v11  ;;  %v11037_v11 = vld [vmem:[#allocation3 + $0x18] sm:$0xff] }
 0x3b1   : > { %10661 = vmatmul.msk.bf16.gmra.mxu1 %vm5993_vm9, %v7573_v22  ;;  %v8607_v57 = vrot.slane %v8605_v43, 4  ;;  %v15302_v10 = vrot.slane %v13992_v52, 5  ;;  %v7287_v35 = vsel %vm11272_vm13, %v7282_v16, %v7286_v59  ;;  %v7298_v26 = vshll.u32 %v13965_v61, 16 }
 0x3b2   : > { %15434 = vst [vmem:[#allocation35_spill] sm:$0xff] %v13980_v39  ;;  %10472 = vmatmul.msk.bf16.gmra.mxu2 %vm5993_vm9, %v10996_v48  ;;  %v14004_v48 = vrot.slane %v8601_v28, 5  ;;  %v7272_v62 = vrot.slane %v7271_v54, 4  ;;  %v14016_v28 = vld [vmem:[#allocation3 + $0x50] sm:$0x1]  ;;  %v7302_v8 = vshrl.u32 %v13965_v61, 16  ;;  %v7964_v0 = vunpack.c.l.b16 %v7848_v17 }
 0x3b3   : > { %10632 = vmatmul.msk.bf16.gmra.mxu0 %vm5993_vm9, %v11024_v36  ;;  %v14000_v36 = vunpack.c.l.b16 %v8580_v2  ;;  %v7975_v2 = vunpack.c.l.b16 %v7887_v20  ;;  %v8598_v16 = vor.u32 %v8597_v6, %v8594_v49  ;;  %v14028_v20 = vpop.f32.mrf.mxu0  ;;  %v9297_v50 = vrot.slane %v15302_v10, 4 }
 0x3b4   : > { %v7277_v54 = vsel %vm11272_vm13, %v7272_v62, %v13955_v44  ;;  %15437 = vst [vmem:[#allocation38_spill] sm:$0xff] %v14028_v20  ;;  %v9298_v61 = vrot.slane %v14016_v28, 5  ;;  %v8625_v59 = vshll.u32 %v13847_v27, 16  ;;  %v8629_v44 = vshrl.u32 %v13847_v27, 16 }
 0x3b5   : > { %v6327_v22 = vpop.f32.mrf.mxu2  ;;  %v8992_v38 = vpack.c.b16 %v13989_v14, %v14000_v36  ;;  %v14022_v46 = vpack.c.b16 %v7976_v58, %v7975_v2  ;;  %v8608_v14 = vor.u32 %v8607_v57, %v14004_v48  ;;  %v8619_v36 = vshll.u32 %v8525_v63, 16 }
 0x3b6   : > { %v14006_v39 = vpop.f32.mrf.mxu1  ;;  %v6328_v37 = vadd.f32 %v6327_v22, %v13649_v29  ;;  %v7114_v29 = vld [vmem:[#allocation3 + $0x54] sm:$0xf]  ;;  %v7548_v58 = vunpack.c.l.b16 %v7287_v35  ;;  %v14036_v57 = vrot.slane %v7298_v26, 5  ;;  %v7304_v6 = vrot.slane %v7302_v8, 4  ;;  %v14051_v8 = vld [vmem:[#allocation3 + $0x68] sm:$0x1] }
 0x3b7   : > { %v6707_v33 = vpop.f32.mrf.mxu3  ;;  %v7289_v22 = vshrl.u32 %v7114_v29, 16  ;;  %v7292_v49 = vshll.u32 %v7114_v29, 16  ;;  %v14042_v17 = vsel %vm11652_vm0, %v9297_v50, %v9298_v61  ;;  %v7547_v2 = vunpack.c.l.b16 %v7277_v54 }
 0x3b8   : > { %v14018_v43 = vadd.f32 %v6705_v21, %v6328_v37  ;;  %v8616_v21 = vshrl.u32 %v8525_v63, 16  ;;  %v14038_v37 = vld [vmem:[#allocation3 + $0x64] sm:$0xf]  ;;  %v7995_v35 = vpack.c.b16 %v7964_v0, %v7963_v32  ;;  %v8611_v63 = vshll.u32 %v13843_v13, 16  ;;  %v7785_v13 = vld [vmem:[#allocation3 + $0x60] sm:$0xe] }
 0x3b9   : > { %v7893_v10 = vrot.slane %v14038_v37, 5  ;;  %v14049_v26 = vrot.slane %v8598_v16, 4  ;;  %v8621_v4 = vrot.slane %v8619_v36, 5  ;;  %v7574_v20 = vpack.c.b16 %v7548_v58, %v7547_v2  ;;  %v9205_v16 = vld [vmem:[#allocation3 + $0x48] sm:$0xe] }
 0x3ba   : > { %15436 = vst [vmem:[#allocation37_spill] sm:$0xff] %v14018_v43  ;;  %v14053_v61 = vrot.slane %v8608_v14, 4  ;;  %v14055_v54 = vrot.slane %v8625_v59, 5  ;;  %v8631_v32 = vrot.slane %v8629_v44, 4  ;;  %v7291_v43 = vrot.slane %v7289_v22, 4 }
 0x3bb   : > { %v7294_v23 = vrot.slane %v7292_v49, 5  ;;  %v7896_v36 = vrot.slane %v14051_v8, 5  ;;  %v7308_v14 = vshll.u32 %v13973_v9, 16  ;;  %v8528_v22 = vld [vmem:[#allocation3 + $0x3c] sm:$0xf]  ;;  %v10680_v59 = vrot.slane %v7785_v13, 9 }
 0x3bc   : > { %10817 = vmatmul.msk.bf16.vlgmr.msra.gmra.mxu3 %vm5993_vm9, %v11037_v11  ;;  %v8618_v11 = vrot.slane %v8616_v21, 4  ;;  %v7895_v21 = vrot.slane %v7893_v10, 4  ;;  %v8635_v44 = vshll.u32 %v13857_v30, 16  ;;  %v10877_v49 = vrot.slane %v9205_v16, 9  ;;  %v7117_v16 = vld [vmem:[#allocation3 + $0x60] sm:$0xf] }
 0x3bd   : > { %v6329_v62 = vpop.f32.mrf.mxu2  ;;  %v7295_v9 = vor.u32 %v7294_v23, %v7291_v43  ;;  %v7310_v23 = vrot.slane %v7308_v14, 5 }
 0x3be   : > { %v14046_v27 = vpop.f32.mrf.mxu1  ;;  %v6330_v29 = vadd.f32 %v6329_v62, %v13663_v42  ;;  %v7305_v42 = vor.u32 %v7304_v6, %v14036_v57  ;;  %v8613_v62 = vrot.slane %v8611_v63, 5  ;;  %v8622_v58 = vor.u32 %v8621_v4, %v8618_v11  ;;  %v14075_v6 = vpop.f32.mrf.mxu0 }
 0x3bf   : > { %v6710_v50 = vpop.f32.mrf.mxu3  ;;  %15439 = vst [vmem:[#allocation40_spill] sm:$0xff] %v14075_v6  ;;  %v7894_v4 = vsel %vm11652_vm0, %v10680_v59, %v7893_v10  ;;  %v8640_v63 = vshrl.u32 %v8528_v22, 16  ;;  %v15440_v11 = vrot.slane %v13992_v52, 5  ;;  %v7322_v10 = vshll.u32 %v14038_v37, 16 }
 0x3c0   : > { %v14057_v0 = vadd.f32 %v6707_v33, %v6330_v29  ;;  %v8604_v33 = vsel %vm11272_vm13, %v14049_v26, %v14004_v48  ;;  %v7306_v2 = vrot.slane %v7305_v42, 4  ;;  %v8643_v29 = vshll.u32 %v8528_v22, 16 }
 0x3c1   : > { %10662 = vmatmul.msk.bf16.gmra.mxu1 %vm5993_vm9, %v7574_v20  ;;  %v8614_v20 = vsel %vm11272_vm13, %v14053_v61, %v8613_v62  ;;  %v9296_v30 = vsel %vm11652_vm0, %v10877_v49, %v15440_v11  ;;  %v8623_v43 = vrot.slane %v8622_v58, 4  ;;  %v7326_v62 = vshrl.u32 %v14038_v37, 16  ;;  %v14094_v49 = vld [vmem:[#allocation3 + $0x58] sm:$0xf]  ;;  %v11038_v11 = vld [vmem:[#allocation3 + $0x24] sm:$0xff] }
 0x3c2   : > { %15438 = vst [vmem:[#allocation39_spill] sm:$0xff] %v14057_v0  ;;  %10713 = vmatmul.msk.bf16.vlgmr.msra.gmra.mxu2 %vm5993_vm9, %v7995_v35  ;;  %v8632_v35 = vor.u32 %v8631_v32, %v14055_v54  ;;  %v9395_v32 = vunpack.c.l.b16 %v14042_v17  ;;  %v7296_v59 = vrot.slane %v7295_v9, 4  ;;  %v8642_v58 = vrot.slane %v8640_v63, 4 }
 0x3c3   : > { %10857 = vmatmul.msk.bf16.vlgmr.msra.gmra.mxu0 %vm5993_vm9, %v8992_v38  ;;  %v7897_v38 = vsel %vm11652_vm0, %v7895_v21, %v7896_v36  ;;  %v8637_v21 = vrot.slane %v8635_v44, 5  ;;  %v7977_v36 = vunpack.c.l.b16 %v7894_v4  ;;  %v8645_v17 = vrot.slane %v8643_v29, 5  ;;  %v14107_v29 = vld [vmem:[#allocation3 + $0x70] sm:$0xf] }
 0x3c4   : > { %v7978_v26 = vunpack.c.l.b16 %v7897_v38  ;;  %v7311_v38 = vsel %vm11272_vm13, %v7306_v2, %v7310_v23  ;;  %v8633_v14 = vrot.slane %v8632_v35, 4  ;;  %v7301_v37 = vsel %vm11272_vm13, %v7296_v59, %v14036_v57 }
 0x3c5   : > { %v6332_v48 = vpop.f32.mrf.mxu2  ;;  %v7313_v44 = vshrl.u32 %v7117_v16, 16  ;;  %v7550_v9 = vunpack.c.l.b16 %v7311_v38  ;;  %v7328_v2 = vrot.slane %v7326_v62, 4  ;;  %v8962_v35 = vunpack.c.l.b16 %v8604_v33  ;;  %v14121_v38 = vld [vmem:[#allocation3 + $0x5c] sm:$0x1] }
 0x3c6   : > { %v14084_v61 = vpop.f32.mrf.mxu1  ;;  %v6333_v13 = vadd.f32 %v6332_v48, %v13679_v15  ;;  %v9394_v15 = vunpack.c.l.b16 %v9296_v30  ;;  %v14096_v48 = vpack.c.b16 %v7978_v26, %v7977_v36  ;;  %v9302_v30 = vrot.slane %v14094_v49, 5  ;;  %v14116_v62 = vpop.f32.mrf.mxu0 }
 0x3c7   : > { %v6712_v42 = vpop.f32.mrf.mxu3  ;;  %v8963_v63 = vunpack.c.l.b16 %v8614_v20  ;;  %v8649_v26 = vshll.u32 %v13916_v5, 16  ;;  %v7549_v23 = vunpack.c.l.b16 %v7301_v37  ;;  %15443 = vst [vmem:[#allocation43_spill] sm:$0xff] %v14116_v62  ;;  %v7315_v20 = vrot.slane %v7313_v44, 4 }
 0x3c8   : > { %v14090_v22 = vadd.f32 %v6710_v50, %v6333_v13  ;;  %v7316_v50 = vshll.u32 %v7117_v16, 16  ;;  %v14101_v4 = vpack.c.b16 %v9395_v32, %v9394_v15  ;;  %v14103_v13 = vrot.slane %v7322_v10, 5 }
 0x3c9   : > { %v8628_v32 = vsel %vm11272_vm13, %v8623_v43, %v14055_v54  ;;  %v8638_v16 = vsel %vm11272_vm13, %v8633_v14, %v8637_v21  ;;  %v8653_v10 = vshrl.u32 %v13916_v5, 16  ;;  %v8646_v59 = vor.u32 %v8645_v17, %v8642_v58  ;;  %v14125_v21 = vld [vmem:[#allocation3 + $0x74] sm:$0x1]  ;;  %v9206_v58 = vld [vmem:[#allocation3 + $0x54] sm:$0xe] }
 0x3ca   : > { %15441 = vst [vmem:[#allocation41_spill] sm:$0xff] %v14090_v22  ;;  %v7900_v15 = vrot.slane %v14107_v29, 5  ;;  %v7318_v54 = vrot.slane %v7316_v50, 5  ;;  %v7329_v43 = vor.u32 %v7328_v2, %v14103_v13  ;;  %v9304_v5 = vrot.slane %v9302_v30, 4  ;;  %v11062_v50 = vld [vmem:[%s15293_s4 + $0x108] sm:$0xff] }
 0x3cb   : > { %15442 = vst [vmem:[#allocation42_spill] sm:$0xff] %v14101_v4  ;;  %v8993_v4 = vpack.c.b16 %v8963_v63, %v8962_v35  ;;  %v14129_v62 = vrot.slane %v8649_v26, 5  ;;  %v7332_v17 = vshll.u32 %v14051_v8, 16  ;;  %v14134_v44 = vunpack.c.l.b16 %v8628_v32  ;;  %v7786_v2 = vld [vmem:[#allocation3 + $0x6c] sm:$0xe]  ;;  %9512 = vmatpush.bf16.msra.mxu1 %v11062_v50 }
 0x3cc   : > { %10818 = vmatmul.msk.bf16.gmra.mxu3 %vm5993_vm9, %v11038_v11  ;;  %v7575_v11 = vpack.c.b16 %v7550_v9, %v7549_v23  ;;  %v8655_v9 = vrot.slane %v8653_v10, 4  ;;  %v8647_v35 = vrot.slane %v8646_v59, 4  ;;  %v8531_v63 = vld [vmem:[#allocation3 + $0x48] sm:$0xf]  ;;  %v7902_v8 = vrot.slane %v7900_v15, 4 }
 0x3cd   : > { %v6334_v57 = vpop.f32.mrf.mxu2  ;;  %v7903_v26 = vrot.slane %v14125_v21, 5  ;;  %v7319_v23 = vor.u32 %v7318_v54, %v7315_v20  ;;  %v10878_v32 = vrot.slane %v9206_v58, 9  ;;  %v8664_v54 = vshrl.u32 %v8531_v63, 16 }
 0x3ce   : > { %v14118_v36 = vpop.f32.mrf.mxu1  ;;  %v6335_v33 = vadd.f32 %v6334_v57, %v13699_v3  ;;  %v8659_v3 = vshll.u32 %v13939_v34, 16  ;;  %v14143_v34 = vunpack.c.l.b16 %v8638_v16  ;;  %v7330_v57 = vrot.slane %v7329_v43, 4 }
 0x3cf   : > { %v6715_v37 = vpop.f32.mrf.mxu3  ;;  %v7904_v16 = vsel %vm11652_vm0, %v7902_v8, %v7903_v26  ;;  %v8656_v20 = vor.u32 %v8655_v9, %v14129_v62  ;;  %v9303_v43 = vsel %vm11652_vm0, %v10878_v32, %v9302_v30  ;;  %v8667_v50 = vshll.u32 %v8531_v63, 16  ;;  %v7120_v8 = vld [vmem:[#allocation3 + $0x6c] sm:$0xf]  ;;  %v14167_v30 = vpop.f32.mrf.mxu0 }
 0x3d0   : > { %v14127_v14 = vadd.f32 %v6712_v42, %v6335_v33  ;;  %v9305_v42 = vrot.slane %v14121_v38, 5  ;;  %v14151_v33 = vrot.slane %v8659_v3, 5  ;;  %v7350_v9 = vshrl.u32 %v14107_v29, 16  ;;  %15445 = vst [vmem:[#allocation45_spill] sm:$0xff] %v14167_v30 }
 0x3d1   : > { %10663 = vmatmul.msk.bf16.gmra.mxu1 %vm5993_vm9, %v7575_v11  ;;  %v7334_v11 = vrot.slane %v7332_v17, 5  ;;  %v8677_v63 = vshrl.u32 %v13992_v52, 16  ;;  %v9396_v32 = vunpack.c.l.b16 %v9303_v43 }
 0x3d2   : > { %15444 = vst [vmem:[#allocation44_spill] sm:$0xff] %v14127_v14  ;;  %10714 = vmatmul.msk.bf16.gmra.mxu2 %vm5993_vm9, %v13728_v55  ;;  %v9306_v10 = vsel %vm11652_vm0, %v9304_v5, %v9305_v42  ;;  %v10681_v55 = vrot.slane %v7786_v2, 9  ;;  %v7356_v14 = vshll.u32 %v14125_v21, 16 }
 0x3d3   : > { %10858 = vmatmul.msk.bf16.gmra.mxu0 %vm5993_vm9, %v8993_v4  ;;  %v8652_v4 = vsel %vm11272_vm13, %v8647_v35, %v14129_v62  ;;  %v9397_v2 = vunpack.c.l.b16 %v9306_v10  ;;  %v7320_v35 = vrot.slane %v7319_v23, 4  ;;  %v7335_v17 = vsel %vm11272_vm13, %v7330_v57, %v7334_v11 }
 0x3d4   : > { %v7901_v3 = vsel %vm11652_vm0, %v10681_v55, %v7900_v15  ;;  %v7346_v62 = vshll.u32 %v14107_v29, 16  ;;  %v14173_v15 = vld [vmem:[#allocation3 + $0x64] sm:$0xf]  ;;  %v14178_v57 = vrot.slane %v8656_v20, 4  ;;  %v7980_v55 = vunpack.c.l.b16 %v7904_v16  ;;  %v11039_v29 = vld [vmem:[#allocation3 + $0x30] sm:$0xff] }
 0x3d5   : > { %v6337_v59 = vpop.f32.mrf.mxu2  ;;  %v7325_v23 = vsel %vm11272_vm13, %v7320_v35, %v14103_v13  ;;  %v7979_v10 = vunpack.c.l.b16 %v7901_v3  ;;  %v7337_v11 = vshrl.u32 %v7120_v8, 16  ;;  %v9309_v43 = vrot.slane %v14173_v15, 5  ;;  %v14188_v13 = vld [vmem:[#allocation3 + $0x7c] sm:$0xf] }
 0x3d6   : > { %v14158_v58 = vpop.f32.mrf.mxu1  ;;  %v6338_v5 = vadd.f32 %v6337_v59, %v13721_v40  ;;  %v8673_v40 = vshll.u32 %v13992_v52, 16  ;;  %v7552_v59 = vunpack.c.l.b16 %v7335_v17  ;;  %v7352_v52 = vrot.slane %v7350_v9, 4 }
 0x3d7   : > { %v6717_v42 = vpop.f32.mrf.mxu3  ;;  %v14184_v30 = vpack.c.b16 %v7980_v55, %v7979_v10  ;;  %v8666_v20 = vrot.slane %v8664_v54, 4  ;;  %v8669_v3 = vrot.slane %v8667_v50, 5  ;;  %v8679_v35 = vrot.slane %v8677_v63, 4  ;;  %v8534_v50 = vld [vmem:[#allocation3 + $0x54] sm:$0xf]  ;;  %v14217_v22 = vpop.f32.mrf.mxu0 }
 0x3d8   : > { %v14169_v26 = vadd.f32 %v6715_v37, %v6338_v5  ;;  %v7340_v37 = vshll.u32 %v7120_v8, 16  ;;  %v14180_v5 = vpack.c.b16 %v9397_v2, %v9396_v32  ;;  %v14190_v16 = vrot.slane %v8673_v40, 5  ;;  %v14203_v40 = vld [vmem:[#allocation3 + $0x68] sm:$0x1]  ;;  %15449 = vst [vmem:[#allocation49_spill] sm:$0xff] %v14217_v22 }
 0x3d9   : > { %v7551_v17 = vunpack.c.l.b16 %v7325_v23  ;;  %v8994_v2 = vpack.c.b16 %v14143_v34, %v14134_v44  ;;  %v7339_v10 = vrot.slane %v7337_v11, 4  ;;  %v7907_v63 = vrot.slane %v14188_v13, 5 }
 0x3da   : > { %15446 = vst [vmem:[#allocation46_spill] sm:$0xff] %v14169_v26  ;;  %v14182_v26 = vrot.slane %v7346_v62, 5  ;;  %v14194_v62 = vunpack.c.l.b16 %v8652_v4  ;;  %v7342_v44 = vrot.slane %v7340_v37, 5  ;;  %v14207_v4 = vld [vmem:[#allocation3 + $0x80] sm:$0x1]  ;;  %v8670_v11 = vor.u32 %v8669_v3, %v8666_v20 }
 0x3db   : > { %15447 = vst [vmem:[#allocation47_spill] sm:$0xff] %v14180_v5  ;;  %v7576_v23 = vpack.c.b16 %v7552_v59, %v7551_v17  ;;  %v8683_v54 = vshll.u32 %v14016_v28, 16  ;;  %v9207_v5 = vld [vmem:[#allocation3 + $0x60] sm:$0xe]  ;;  %v8688_v59 = vshrl.u32 %v8534_v50, 16  ;;  %v8697_v37 = vshll.u32 %v14094_v49, 16 }
 0x3dc   : > { %10819 = vmatmul.msk.bf16.gmra.mxu3 %vm5993_vm9, %v11039_v29  ;;  %v7353_v34 = vor.u32 %v7352_v52, %v14182_v26  ;;  %v9311_v29 = vrot.slane %v9309_v43, 4  ;;  %v7787_v17 = vld [vmem:[#allocation3 + $0x78] sm:$0xe]  ;;  %v9312_v52 = vrot.slane %v14203_v40, 5  ;;  %v8701_v28 = vshrl.u32 %v14094_v49, 16 }
 0x3dd   : > { %v6339_v8 = vpop.f32.mrf.mxu2  ;;  %v7909_v20 = vrot.slane %v7907_v63, 4  ;;  %v7910_v3 = vrot.slane %v14207_v4, 5  ;;  %v7343_v21 = vor.u32 %v7342_v44, %v7339_v10  ;;  %v8685_v22 = vrot.slane %v8683_v54, 5 }
 0x3de   : > { %v14196_v9 = vpop.f32.mrf.mxu1  ;;  %v6340_v32 = vadd.f32 %v6339_v8, %v13747_v56  ;;  %v8680_v8 = vor.u32 %v8679_v35, %v14190_v16  ;;  %v7354_v35 = vrot.slane %v7353_v34, 4  ;;  %v10682_v6 = vrot.slane %v7787_v17, 9  ;;  %v7123_v34 = vld [vmem:[#allocation3 + $0x78] sm:$0xf] }
 0x3df   : > { %v6720_v55 = vpop.f32.mrf.mxu3  ;;  %v14230_v49 = vrot.slane %v8697_v37, 5 }
 0x3e0   : > { %v14209_v56 = vadd.f32 %v6717_v42, %v6340_v32  ;;  %v8691_v42 = vshll.u32 %v8534_v50, 16  ;;  %v10879_v32 = vrot.slane %v9207_v5, 9  ;;  %v7358_v50 = vrot.slane %v7356_v14, 5 }
 0x3e1   : > { %10664 = vmatmul.msk.bf16.gmra.mxu1 %vm5993_vm9, %v7576_v23  ;;  %v9313_v23 = vsel %vm11652_vm0, %v9311_v29, %v9312_v52  ;;  %v8681_v0 = vrot.slane %v8680_v8, 4  ;;  %v8703_v29 = vrot.slane %v8701_v28, 4  ;;  %v7908_v54 = vsel %vm11652_vm0, %v10682_v6, %v7907_v63  ;;  %v11040_v6 = vld [vmem:[#allocation3 + $0x3c] sm:$0xff] }
 0x3e2   : > { %15448 = vst [vmem:[#allocation48_spill] sm:$0xff] %v14209_v56  ;;  %10715 = vmatmul.msk.bf16.gmra.mxu2 %vm5993_vm9, %v13770_v19  ;;  %v14226_v56 = vrot.slane %v8670_v11, 4  ;;  %v9310_v10 = vsel %vm11652_vm0, %v10879_v32, %v9309_v43  ;;  %v9399_v11 = vunpack.c.l.b16 %v9313_v23  ;;  %v7344_v52 = vrot.slane %v7343_v21, 4 }
 0x3e3   : > { %10859 = vmatmul.msk.bf16.gmra.mxu0 %vm5993_vm9, %v8994_v2  ;;  %v7911_v2 = vsel %vm11652_vm0, %v7909_v20, %v7910_v3  ;;  %v7359_v14 = vsel %vm11272_vm13, %v7354_v35, %v7358_v50  ;;  %v8690_v8 = vrot.slane %v8688_v59, 4  ;;  %v8693_v37 = vrot.slane %v8691_v42, 5 }
 0x3e4   : > { %v7370_v43 = vshll.u32 %v14188_v13, 16  ;;  %v7374_v3 = vshrl.u32 %v14188_v13, 16  ;;  %v7361_v32 = vshrl.u32 %v7123_v34, 16  ;;  %v7364_v28 = vshll.u32 %v7123_v34, 16 }
 0x3e5   : > { %v6342_v19 = vpop.f32.mrf.mxu2  ;;  %v7982_v18 = vunpack.c.l.b16 %v7911_v2  ;;  %v7349_v63 = vsel %vm11272_vm13, %v7344_v52, %v14182_v26  ;;  %v8704_v42 = vor.u32 %v8703_v29, %v14230_v49  ;;  %v7554_v13 = vunpack.c.l.b16 %v7359_v14  ;;  %v14264_v2 = vpop.f32.mrf.mxu0  ;;  %v14276_v52 = vld [vmem:[#allocation3 + $0x88] sm:$0xf] }
 0x3e6   : > { %v14234_v44 = vpop.f32.mrf.mxu1  ;;  %v6343_v5 = vadd.f32 %v6342_v19, %v13781_v47  ;;  %v9398_v47 = vunpack.c.l.b16 %v9310_v10  ;;  %v7981_v19 = vunpack.c.l.b16 %v7908_v54  ;;  %v8676_v35 = vsel %vm11272_vm13, %v14226_v56, %v14190_v16  ;;  %15453 = vst [vmem:[#allocation52_spill] sm:$0xff] %v14264_v2 }
 0x3e7   : > { %v6722_v17 = vpop.f32.mrf.mxu3  ;;  %v8686_v23 = vsel %vm11272_vm13, %v8681_v0, %v8685_v22  ;;  %v8694_v50 = vor.u32 %v8693_v37, %v8690_v8  ;;  %v8707_v10 = vshll.u32 %v14121_v38, 16  ;;  %v7064_v34 = vadd.f32 %v13559_v12, %v13592_v31 }
 0x3e8   : > { %v14241_v20 = vadd.f32 %v6720_v55, %v6343_v5  ;;  %v15451_v55 = vsel %vm11272_vm13, %v14178_v57, %v14151_v33  ;;  %v14254_v21 = vpack.c.b16 %v9399_v11, %v9398_v47  ;;  %v14262_v26 = vpack.c.b16 %v7982_v18, %v7981_v19  ;;  %v8537_v5 = vld [vmem:[#allocation3 + $0x60] sm:$0xf] }
 0x3e9   : > { %v8967_v59 = vunpack.c.l.b16 %v15451_v55  ;;  %v14267_v33 = vrot.slane %v7370_v43, 5  ;;  %v7376_v57 = vrot.slane %v7374_v3, 4  ;;  %v7553_v16 = vunpack.c.l.b16 %v7349_v63  ;;  %v14282_v43 = vld [vmem:[#allocation3 + $0x70] sm:$0xf]  ;;  %v7788_v63 = vld [vmem:[#allocation3 + $0x84] sm:$0xe] }
 0x3ea   : > { %15450 = vst [vmem:[#allocation50_spill] sm:$0xff] %v14241_v20  ;;  %v7363_v29 = vrot.slane %v7361_v32, 4  ;;  %v7366_v0 = vrot.slane %v7364_v28, 5  ;;  %v14274_v11 = vunpack.c.l.b16 %v8686_v23  ;;  %v14278_v14 = vrot.slane %v8704_v42, 4 }
 0x3eb   : > { %15452 = vst [vmem:[#allocation51_spill] sm:$0xff] %v14254_v21  ;;  %v8995_v54 = vpack.c.b16 %v8967_v59, %v14194_v62  ;;  %v7577_v8 = vpack.c.b16 %v7554_v13, %v7553_v16  ;;  %v8712_v12 = vshrl.u32 %v8537_v5, 16  ;;  %v8715_v31 = vshll.u32 %v8537_v5, 16 }
 0x3ec   : > { %10820 = vmatmul.msk.bf16.gmra.mxu3 %vm5993_vm9, %v11040_v6  ;;  %v14287_v47 = vunpack.c.l.b16 %v8676_v35  ;;  %v14289_v62 = vrot.slane %v8694_v50, 4  ;;  %v7367_v32 = vor.u32 %v7366_v0, %v7363_v29  ;;  %v7380_v28 = vshll.u32 %v14207_v4, 16  ;;  %v15455_v35 = vld [vmem:[#allocation21_spill] sm:$0xff]  ;;  %v14316_v50 = vld [vmem:[#allocation3 + $0x8c] sm:$0x1] }
 0x3ed   : > { %v6344_v56 = vpop.f32.mrf.mxu2  ;;  %v14293_v19 = vrot.slane %v8707_v10, 5  ;;  %v7914_v6 = vrot.slane %v14276_v52, 5  ;;  %v9316_v55 = vrot.slane %v14282_v43, 5  ;;  %v14310_v42 = vrot.slane %v8712_v12, 4  ;;  %v14320_v29 = vld [vmem:[#allocation3 + $0x74] sm:$0x1] }
 0x3ee   : > { %v7666_v18 = vpop.f32.mrf.mxu1  ;;  %v6345_v22 = vadd.f32 %v6344_v56, %v13836_v7  ;;  %v7377_v7 = vor.u32 %v7376_v57, %v14267_v33  ;;  %v14312_v13 = vrot.slane %v8715_v31, 5  ;;  %v7065_v23 = vadd.f32 %v15455_v35, %v13617_v53  ;;  %v7126_v53 = vld [vmem:[#allocation3 + $0x84] sm:$0xf] }
 0x3ef   : > { %v14280_v38 = vadd.f32 %v7666_v18, %v7064_v34  ;;  %v6725_v37 = vpop.f32.mrf.mxu3  ;;  %v8721_v10 = vshll.u32 %v14173_v15, 16  ;;  %v8725_v5 = vshrl.u32 %v14173_v15, 16  ;;  %v7368_v16 = vrot.slane %v7367_v32, 4 }
 0x3f0   : > { %v14284_v3 = vadd.f32 %v6722_v17, %v6345_v22  ;;  %v7378_v57 = vrot.slane %v7377_v7, 4  ;;  %v7382_v56 = vrot.slane %v7380_v28, 5  ;;  %v10683_v0 = vrot.slane %v7788_v63, 9  ;;  %v14322_v22 = vpop.f32.mrf.mxu0  ;;  %v14329_v28 = vld [vmem:[#allocation3 + $0x7c] sm:$0xf] }
 0x3f1   : > { %10665 = vmatmul.msk.bf16.gmra.mxu1 %vm5993_vm9, %v7577_v8  ;;  %v7916_v18 = vrot.slane %v7914_v6, 4  ;;  %15456 = vst [vmem:[#allocation21_spill] sm:$0xff] %v14322_v22  ;;  %v15457_v8 = vld [vmem:[#allocation30_spill] sm:$0xff]  ;;  %v7394_v31 = vshll.u32 %v14276_v52, 16  ;;  %v9318_v35 = vrot.slane %v9316_v55, 4  ;;  %v7398_v32 = vshrl.u32 %v14276_v52, 16 }
 0x3f2   : > { %15454 = vst [vmem:[#allocation53_spill] sm:$0xff] %v14284_v3  ;;  %10716 = vmatmul.msk.bf16.gmra.mxu2 %vm5993_vm9, %v13787_v51  ;;  %v9208_v51 = vld [vmem:[#allocation3 + $0x6c] sm:$0xe]  ;;  %v7915_v63 = vsel %vm11652_vm0, %v10683_v0, %v7914_v6  ;;  %v7917_v4 = vrot.slane %v14316_v50, 5  ;;  %v7388_v52 = vshll.u32 %v7126_v53, 16 }
 0x3f3   : > { %10860 = vmatmul.msk.bf16.gmra.mxu0 %vm5993_vm9, %v8995_v54  ;;  %v10880_v7 = vrot.slane %v9208_v51, 9  ;;  %v7383_v51 = vsel %vm11272_vm13, %v7378_v57, %v7382_v56  ;;  %v11041_v0 = vld [vmem:[#allocation3 + $0x48] sm:$0xff]  ;;  %v14349_v57 = vrot.slane %v7394_v31, 5  ;;  %v7400_v56 = vrot.slane %v7398_v32, 4 }
 0x3f4   : > { %v7390_v20 = vrot.slane %v7388_v52, 5  ;;  %v8540_v52 = vld [vmem:[#allocation3 + $0x6c] sm:$0xf] }
 0x3f5   : > { %v6347_v34 = vpop.f32.mrf.mxu2  ;;  %v9317_v6 = vsel %vm11652_vm0, %v10880_v7, %v9316_v55  ;;  %v14354_v55 = vld [vmem:[#allocation3 + $0x80] sm:$0x1] }
 0x3f6   : > { %v7668_v54 = vpop.f32.mrf.mxu1  ;;  %v6348_v12 = vadd.f32 %v6347_v34, %v15457_v8  ;;  %v7373_v34 = vsel %vm11272_vm13, %v7368_v16, %v14267_v33  ;;  %v7918_v8 = vsel %vm11652_vm0, %v7916_v18, %v7917_v4  ;;  %v9323_v33 = vrot.slane %v14329_v28, 5 }
 0x3f7   : > { %v14326_v59 = vadd.f32 %v7668_v54, %v7065_v23  ;;  %v6727_v15 = vpop.f32.mrf.mxu3  ;;  %v9319_v23 = vrot.slane %v14320_v29, 5  ;;  %v7385_v54 = vshrl.u32 %v7126_v53, 16  ;;  %v7556_v16 = vunpack.c.l.b16 %v7383_v51  ;;  %v9209_v53 = vld [vmem:[#allocation3 + $0x78] sm:$0xe] }
 0x3f8   : > { %v14334_v17 = vadd.f32 %v6725_v37, %v6348_v12  ;;  %v7983_v37 = vunpack.c.l.b16 %v7915_v63  ;;  %v7984_v12 = vunpack.c.l.b16 %v7918_v8  ;;  %v14352_v4 = vrot.slane %v8721_v10, 5  ;;  %v15459_v8 = vld [vmem:[#allocation23_spill] sm:$0xff] }
 0x3f9   : > { %v9320_v21 = vsel %vm11652_vm0, %v9318_v35, %v9319_v23  ;;  %v8727_v18 = vrot.slane %v8725_v5, 4  ;;  %v9400_v63 = vunpack.c.l.b16 %v9317_v6  ;;  %v15460_v35 = vld [vmem:[#allocation22_spill] sm:$0xff]  ;;  %v7555_v3 = vunpack.c.l.b16 %v7373_v34 }
 0x3fa   : > { %15458 = vst [vmem:[#allocation30_spill] sm:$0xff] %v14334_v17  ;;  %v9401_v17 = vunpack.c.l.b16 %v9320_v21  ;;  %v14356_v7 = vpack.c.b16 %v7984_v12, %v7983_v37  ;;  %v7066_v23 = vadd.f32 %v15460_v35, %v15459_v8  ;;  %v7387_v31 = vrot.slane %v7385_v54, 4  ;;  %v14367_v8 = vpop.f32.mrf.mxu0 }
 0x3fb   : > { %v9325_v22 = vrot.slane %v9323_v33, 4  ;;  %v10881_v10 = vrot.slane %v9209_v53, 9  ;;  %v7578_v2 = vpack.c.b16 %v7556_v16, %v7555_v3  ;;  %v7401_v6 = vor.u32 %v7400_v56, %v14349_v57  ;;  %15462 = vst [vmem:[#allocation22_spill] sm:$0xff] %v14367_v8  ;;  %v14378_v16 = vld [vmem:[#allocation3 + $0x88] sm:$0xf] }
 0x3fc   : > { %10821 = vmatmul.msk.bf16.gmra.mxu3 %vm5993_vm9, %v11041_v0  ;;  %v14361_v0 = vpack.c.b16 %v9401_v17, %v9400_v63  ;;  %v9326_v12 = vrot.slane %v14354_v55, 5  ;;  %v8718_v54 = vor.u32 %v14312_v13, %v14310_v42  ;;  %v7404_v3 = vshll.u32 %v14316_v50, 16  ;;  %v15465_v42 = vld [vmem:[#allocation29_spill] sm:$0xff]  ;;  %v14403_v63 = vld [vmem:[#allocation3 + $0x94] sm:$0xf] }
 0x3fd   : > { %v6349_v51 = vpop.f32.mrf.mxu2  ;;  %v9324_v17 = vsel %vm11652_vm0, %v10881_v10, %v9323_v33  ;;  %v7391_v13 = vor.u32 %v7390_v20, %v7387_v31  ;;  %v8731_v33 = vshll.u32 %v14203_v40, 16  ;;  %v7402_v53 = vrot.slane %v7401_v6, 4  ;;  %v9210_v20 = vld [vmem:[#allocation3 + $0x84] sm:$0xe]  ;;  %v15469_v40 = vld [vmem:[#allocation5_spill] sm:$0xff] }
 0x3fe   : > { %v7671_v32 = vpop.f32.mrf.mxu1  ;;  %v6350_v21 = vadd.f32 %v6349_v51, %v13933_v41  ;;  %15461 = vst [vmem:[#allocation23_spill] sm:$0xff] %v14361_v0  ;;  %v8728_v41 = vor.u32 %v8727_v18, %v14352_v4  ;;  %v9327_v56 = vsel %vm11652_vm0, %v9325_v22, %v9326_v12  ;;  %v9402_v22 = vunpack.c.l.b16 %v9324_v17  ;;  %v15468_v51 = vld [vmem:[#allocation27_spill] sm:$0xff] }
 0x3ff   : > { %v14363_v5 = vadd.f32 %v7671_v32, %v7066_v23  ;;  %v6730_v37 = vpop.f32.mrf.mxu3  ;;  %v9403_v18 = vunpack.c.l.b16 %v9327_v56  ;;  %v8719_v35 = vrot.slane %v8718_v54, 4  ;;  %v7067_v31 = vadd.f32 %v15469_v40, %v15468_v51  ;;  %v14408_v6 = vld [vmem:[#allocation3 + $0x8c] sm:$0x1]  ;;  %v11042_v40 = vld [vmem:[#allocation3 + $0x54] sm:$0xff] }
 0x400   : > { %v14369_v34 = vadd.f32 %v6727_v15, %v6350_v21  ;;  %v15464_v15 = vpack.c.b16 %v14274_v11, %v14287_v47  ;;  %v15467_v11 = vsel %vm11272_vm13, %v14278_v14, %v14293_v19  ;;  %v8729_v23 = vrot.slane %v8728_v41, 4 }
 0x401   : > { %10666 = vmatmul.msk.bf16.gmra.mxu1 %vm5993_vm9, %v7578_v2  ;;  %v15466_v2 = vsel %vm11272_vm13, %v14289_v62, %v14230_v49  ;;  %v14401_v47 = vunpack.c.l.b16 %v15467_v11  ;;  %v8736_v49 = vshrl.u32 %v8540_v52, 16  ;;  %v9330_v62 = vrot.slane %v14378_v16, 5 }
 0x402   : > { %15463 = vst [vmem:[#allocation54_spill] sm:$0xff] %v14369_v34  ;;  %10717 = vmatmul.msk.bf16.gmra.mxu2 %vm5993_vm9, %v15465_v42  ;;  %v14393_v50 = vunpack.c.l.b16 %v15466_v2  ;;  %v7406_v21 = vrot.slane %v7404_v3, 5  ;;  %v8739_v10 = vshll.u32 %v8540_v52, 16  ;;  %v14410_v14 = vpack.c.b16 %v9403_v18, %v9402_v22  ;;  %v7129_v2 = vld [vmem:[#allocation3 + $0x90] sm:$0xf]  ;;  %v14429_v51 = vpop.f32.mrf.mxu0 }
 0x403   : > { %10861 = vmatmul.msk.bf16.gmra.mxu0 %vm5993_vm9, %v15464_v15  ;;  %v7392_v17 = vrot.slane %v7391_v13, 4  ;;  %v8733_v56 = vrot.slane %v8731_v33, 5  ;;  %v10882_v54 = vrot.slane %v9210_v20, 9  ;;  %v7418_v3 = vshll.u32 %v14403_v63, 16  ;;  %15472 = vst [vmem:[#allocation5_spill] sm:$0xff] %v14429_v51 }
 0x404   : > { %15470 = vst [vmem:[#allocation29_spill] sm:$0xff] %v14410_v14  ;;  %v7407_v42 = vsel %vm11272_vm13, %v7402_v53, %v7406_v21  ;;  %v7422_v52 = vshrl.u32 %v14403_v63, 16  ;;  %v9333_v13 = vrot.slane %v14408_v6, 5  ;;  %v8738_v18 = vrot.slane %v8736_v49, 4 }
 0x405   : > { %v6352_v32 = vpop.f32.mrf.mxu2  ;;  %v9331_v22 = vsel %vm11652_vm0, %v10882_v54, %v9330_v62  ;;  %v7397_v33 = vsel %vm11272_vm13, %v7392_v17, %v14349_v57  ;;  %v8734_v53 = vsel %vm11272_vm13, %v8729_v23, %v8733_v56  ;;  %v8741_v20 = vrot.slane %v8739_v10, 5  ;;  %v15473_v17 = vld [vmem:[#allocation7_spill] sm:$0xff]  ;;  %v15474_v56 = vld [vmem:[#allocation25_spill] sm:$0xff] }
 0x406   : > { %v7673_v19 = vpop.f32.mrf.mxu1  ;;  %v6353_v12 = vadd.f32 %v6352_v32, %v13970_v1  ;;  %v9332_v1 = vrot.slane %v9330_v62, 4  ;;  %v7412_v32 = vshll.u32 %v7129_v2, 16  ;;  %v14433_v21 = vrot.slane %v7418_v3, 5 }
 0x407   : > { %v14413_v41 = vadd.f32 %v7673_v19, %v7067_v31  ;;  %v6732_v15 = vpop.f32.mrf.mxu3  ;;  %v7409_v31 = vshrl.u32 %v7129_v2, 16  ;;  %v7424_v19 = vrot.slane %v7422_v52, 4  ;;  %v8997_v57 = vpack.c.b16 %v14401_v47, %v14393_v50  ;;  %v7131_v47 = vld [vmem:[#allocation3 + $0x98] sm:$0x1] }
 0x408   : > { %v14419_v11 = vadd.f32 %v6730_v37, %v6353_v12  ;;  %v7558_v37 = vunpack.c.l.b16 %v7407_v42  ;;  %v9334_v62 = vsel %vm11652_vm0, %v9332_v1, %v9333_v13  ;;  %v9404_v12 = vunpack.c.l.b16 %v9331_v22 }
 0x409   : > { %v9405_v54 = vunpack.c.l.b16 %v9334_v62  ;;  %v8724_v23 = vsel %vm11272_vm13, %v8719_v35, %v14352_v4  ;;  %v8745_v49 = vshll.u32 %v14282_v43, 16  ;;  %v8749_v10 = vshrl.u32 %v14282_v43, 16  ;;  %v8543_v35 = vld [vmem:[#allocation3 + $0x78] sm:$0xf] }
 0x40a   : > { %15471 = vst [vmem:[#allocation27_spill] sm:$0xff] %v14419_v11  ;;  %v7068_v42 = vadd.f32 %v15474_v56, %v15473_v17  ;;  %v7557_v2 = vunpack.c.l.b16 %v7397_v33  ;;  %v14445_v52 = vunpack.c.l.b16 %v8734_v53  ;;  %v7411_v13 = vrot.slane %v7409_v31, 4  ;;  %v14478_v56 = vpop.f32.mrf.mxu0 }
 0x40b   : > { %v14447_v22 = vpack.c.b16 %v9405_v54, %v9404_v12  ;;  %v8755_v4 = vshll.u32 %v14320_v29, 16  ;;  %v7414_v17 = vrot.slane %v7412_v32, 5  ;;  %v7425_v33 = vor.u32 %v7424_v19, %v14433_v21  ;;  %v11061_v29 = vld [vmem:[%s15293_s4 + $0x100] sm:$0xff]  ;;  %v14473_v32 = vld [vmem:[#allocation3 + $0x94] sm:$0xf]  ;;  %15477 = vst [vmem:[#allocation55_spill] sm:$0xff] %v14478_v56 }
 0x40c   : > { %10822 = vmatmul.msk.bf16.gmra.mxu3 %vm5993_vm9, %v11042_v40  ;;  %v8742_v40 = vor.u32 %v8741_v20, %v8738_v18  ;;  %v7579_v43 = vpack.c.b16 %v7558_v37, %v7557_v2  ;;  %v14456_v12 = vunpack.c.l.b16 %v8724_v23  ;;  %v14458_v54 = vrot.slane %v8745_v49, 5  ;;  %v7789_v37 = vld [vmem:[#allocation3 + $0x90] sm:$0xe]  ;;  %9513 = vmatpush.bf16.msra.mxu1 %v11061_v29 }
 0x40d   : > { %v6354_v3 = vpop.f32.mrf.mxu2  ;;  %15475 = vst [vmem:[#allocation7_spill] sm:$0xff] %v14447_v22  ;;  %v7428_v18 = vshll.u32 %v7131_v47, 16  ;;  %v8760_v20 = vshrl.u32 %v8543_v35, 16  ;;  %v7415_v19 = vor.u32 %v7414_v17, %v7411_v13  ;;  %v7426_v23 = vrot.slane %v7425_v33, 4  ;;  %v14500_v22 = vld [vmem:[#allocation3 + $0x98] sm:$0x1] }
 0x40e   : > { %v7676_v1 = vpop.f32.mrf.mxu1  ;;  %v6355_v50 = vadd.f32 %v6354_v3, %v14006_v39  ;;  %v14460_v39 = vrot.slane %v8749_v10, 4  ;;  %v14471_v31 = vrot.slane %v8742_v40, 4  ;;  %v14475_v49 = vrot.slane %v8755_v4, 5 }
 0x40f   : > { %v14451_v62 = vadd.f32 %v7676_v1, %v7068_v42  ;;  %v6735_v14 = vpop.f32.mrf.mxu3  ;;  %v7921_v10 = vrot.slane %v14403_v63, 5  ;;  %v8763_v2 = vshll.u32 %v8543_v35, 16  ;;  %v10684_v3 = vrot.slane %v7789_v37, 9  ;;  %v15478_v1 = vld [vmem:[#allocation26_spill] sm:$0xff]  ;;  %v9211_v37 = vld [vmem:[#allocation3 + $0x90] sm:$0xe] }
 0x410   : > { %v14454_v53 = vadd.f32 %v6732_v15, %v6355_v50  ;;  %v8752_v42 = vor.u32 %v14460_v39, %v14458_v54  ;;  %v15479_v50 = vld [vmem:[#allocation24_spill] sm:$0xff]  ;;  %v7430_v4 = vrot.slane %v7428_v18, 5  ;;  %v14490_v63 = vrot.slane %v8760_v20, 4 }
 0x411   : > { %10667 = vmatmul.msk.bf16.gmra.mxu1 %vm5993_vm9, %v7579_v43  ;;  %v7069_v13 = vadd.f32 %v15479_v50, %v15478_v1  ;;  %v14488_v43 = vld [vmem:[#allocation3 + $0xa0] sm:$0xf]  ;;  %v9337_v17 = vrot.slane %v14473_v32, 5  ;;  %v7923_v39 = vrot.slane %v7921_v10, 4  ;;  %v7924_v35 = vrot.slane %v7131_v47, 5 }
 0x412   : > { %15476 = vst [vmem:[#allocation25_spill] sm:$0xff] %v14454_v53  ;;  %10718 = vmatmul.msk.bf16.gmra.mxu2 %vm5993_vm9, %v13941_v25  ;;  %v7922_v25 = vsel %vm11652_vm0, %v10684_v3, %v7921_v10  ;;  %v7416_v50 = vrot.slane %v7415_v19, 4  ;;  %v7431_v18 = vsel %vm11272_vm13, %v7426_v23, %v7430_v4  ;;  %v11043_v19 = vld [vmem:[#allocation3 + $0x60] sm:$0xff]  ;;  %v8765_v53 = vrot.slane %v8763_v2, 5  ;;  %v14525_v56 = vpop.f32.mrf.mxu0 }
 0x413   : > { %10862 = vmatmul.msk.bf16.gmra.mxu0 %vm5993_vm9, %v8997_v57  ;;  %v7132_v57 = vld [vmem:[#allocation3 + $0x9c] sm:$0xf]  ;;  %v7925_v47 = vsel %vm11652_vm0, %v7923_v39, %v7924_v35  ;;  %v7985_v10 = vunpack.c.l.b16 %v7922_v25  ;;  %v15482_v2 = vld [vmem:[#allocation6_spill] sm:$0xff]  ;;  %15483 = vst [vmem:[#allocation24_spill] sm:$0xff] %v14525_v56 }
 0x414   : > { %v7433_v20 = vshrl.u32 %v7132_v57, 16  ;;  %v7986_v3 = vunpack.c.l.b16 %v7925_v47  ;;  %v7421_v23 = vsel %vm11272_vm13, %v7416_v50, %v14433_v21  ;;  %v7436_v4 = vshll.u32 %v7132_v57, 16  ;;  %v15481_v57 = vld [vmem:[#allocation9_spill] sm:$0xff] }
 0x415   : > { %v6357_v40 = vpop.f32.mrf.mxu2  ;;  %v7070_v50 = vadd.f32 %v15482_v2, %v15481_v57  ;;  %v8766_v57 = vor.u32 %v8765_v53, %v14490_v63 }
 0x416   : > { %v7678_v33 = vpop.f32.mrf.mxu1  ;;  %v6358_v29 = vadd.f32 %v6357_v40, %v14046_v27  ;;  %v7442_v27 = vshll.u32 %v14488_v43, 16  ;;  %v7446_v40 = vshrl.u32 %v14488_v43, 16  ;;  %v14513_v11 = vpack.c.b16 %v7986_v3, %v7985_v10 }
 0x417   : > { %v14496_v15 = vadd.f32 %v7678_v33, %v7069_v13  ;;  %v6737_v1 = vpop.f32.mrf.mxu3  ;;  %v10883_v13 = vrot.slane %v9211_v37, 9  ;;  %v9339_v33 = vrot.slane %v9337_v17, 4  ;;  %v8773_v37 = vshrl.u32 %v14329_v28, 16 }
 0x418   : > { %v14502_v0 = vadd.f32 %v6735_v14, %v6358_v29  ;;  %v9340_v14 = vrot.slane %v14500_v22, 5  ;;  %v7560_v29 = vunpack.c.l.b16 %v7431_v18  ;;  %v14518_v39 = vrot.slane %v7442_v27, 5 }
 0x419   : > { %v9338_v25 = vsel %vm11652_vm0, %v10883_v13, %v9337_v17  ;;  %v7448_v35 = vrot.slane %v7446_v40, 4  ;;  %v7559_v18 = vunpack.c.l.b16 %v7421_v23  ;;  %v7435_v10 = vrot.slane %v7433_v20, 4 }
 0x41a   : > { %15480 = vst [vmem:[#allocation26_spill] sm:$0xff] %v14502_v0  ;;  %v8769_v0 = vshll.u32 %v14329_v28, 16  ;;  %v9341_v21 = vsel %vm11652_vm0, %v9339_v33, %v9340_v14  ;;  %v8753_v3 = vrot.slane %v8752_v42, 4  ;;  %v7438_v27 = vrot.slane %v7436_v4, 5  ;;  %v7134_v14 = vld [vmem:[#allocation3 + $0xa4] sm:$0x1] }
 0x41b   : > { %v9406_v40 = vunpack.c.l.b16 %v9338_v25  ;;  %v9407_v34 = vunpack.c.l.b16 %v9341_v21  ;;  %v7580_v51 = vpack.c.b16 %v7560_v29, %v7559_v18  ;;  %v7449_v42 = vor.u32 %v7448_v35, %v14518_v39  ;;  %v7790_v21 = vld [vmem:[#allocation3 + $0x9c] sm:$0xe]  ;;  %v15489_v18 = vld [vmem:[#allocation11_spill] sm:$0xff] }
 0x41c   : > { %10823 = vmatmul.msk.bf16.gmra.mxu3 %vm5993_vm9, %v11043_v19  ;;  %v8546_v19 = vld [vmem:[#allocation3 + $0x84] sm:$0xf]  ;;  %v14531_v23 = vrot.slane %v8769_v0, 5  ;;  %v14536_v2 = vrot.slane %v8773_v37, 4  ;;  %v8758_v4 = vsel %vm11272_vm13, %v8753_v3, %v14475_v49  ;;  %v15486_v0 = vpack.c.b16 %v14445_v52, %v14456_v12  ;;  %v14563_v12 = vld [vmem:[#allocation3 + $0xac] sm:$0xf] }
 0x41d   : > { %v6359_v47 = vpop.f32.mrf.mxu2  ;;  %v8784_v29 = vshrl.u32 %v8546_v19, 16  ;;  %v8787_v25 = vshll.u32 %v8546_v19, 16  ;;  %v7439_v53 = vor.u32 %v7438_v27, %v7435_v10  ;;  %v7452_v63 = vshll.u32 %v7134_v14, 16 }
 0x41e   : > { %v7681_v17 = vpop.f32.mrf.mxu1  ;;  %v6360_v13 = vadd.f32 %v6359_v47, %v14084_v61  ;;  %v14538_v61 = vpack.c.b16 %v9407_v34, %v9406_v40  ;;  %v15487_v34 = vsel %vm11272_vm13, %v14471_v31, %v14458_v54  ;;  %v14557_v49 = vrot.slane %v8766_v57, 4  ;;  %v7135_v40 = vld [vmem:[#allocation3 + $0xa8] sm:$0xf] }
 0x41f   : > { %v14528_v28 = vadd.f32 %v7681_v17, %v7070_v50  ;;  %v6740_v33 = vpop.f32.mrf.mxu3  ;;  %v7450_v35 = vrot.slane %v7449_v42, 4  ;;  %v14561_v52 = vunpack.c.l.b16 %v8758_v4  ;;  %v15488_v50 = vld [vmem:[#allocation8_spill] sm:$0xff]  ;;  %v14570_v47 = vrot.slane %v8784_v29, 4 }
 0x420   : > { %v14533_v20 = vadd.f32 %v6737_v1, %v6360_v13  ;;  %15485 = vst [vmem:[#allocation6_spill] sm:$0xff] %v14538_v61  ;;  %v14559_v1 = vld [vmem:[#allocation3 + $0xa0] sm:$0xf]  ;;  %v7071_v54 = vadd.f32 %v15489_v18, %v15488_v50  ;;  %v14572_v10 = vrot.slane %v8787_v25, 5  ;;  %v7928_v3 = vrot.slane %v14488_v43, 5  ;;  %v11044_v50 = vld [vmem:[#allocation3 + $0x6c] sm:$0xff] }
 0x421   : > { %10668 = vmatmul.msk.bf16.gmra.mxu1 %vm5993_vm9, %v7580_v51  ;;  %v14555_v51 = vunpack.c.l.b16 %v15487_v34  ;;  %v7440_v27 = vrot.slane %v7439_v53, 4  ;;  %v7454_v19 = vrot.slane %v7452_v63, 5  ;;  %v9344_v57 = vrot.slane %v14559_v1, 5  ;;  %v14583_v34 = vpop.f32.mrf.mxu0  ;;  %v15542_v24 = vld [vmem:[#allocation26_spill] sm:$0xff] }
 0x422   : > { %15484 = vst [vmem:[#allocation9_spill] sm:$0xff] %v14533_v20  ;;  %10719 = vmatmul.msk.bf16.gmra.mxu2 %vm5993_vm9, %v14022_v46  ;;  %v8776_v46 = vor.u32 %v14536_v2, %v14531_v23  ;;  %v7466_v4 = vshll.u32 %v14563_v12, 16  ;;  %v7470_v29 = vshrl.u32 %v14563_v12, 16  ;;  %v10685_v25 = vrot.slane %v7790_v21, 9 }
 0x423   : > { %10863 = vmatmul.msk.bf16.gmra.mxu0 %vm5993_vm9, %v15486_v0  ;;  %v14581_v0 = vld [vmem:[#allocation3 + $0xa4] sm:$0x1]  ;;  %15490 = vst [vmem:[#allocation8_spill] sm:$0xff] %v14583_v34  ;;  %v8793_v53 = vshll.u32 %v14378_v16, 16  ;;  %v8797_v63 = vshrl.u32 %v14378_v16, 16  ;;  %v7445_v18 = vsel %vm11272_vm13, %v7440_v27, %v14518_v39  ;;  %v7930_v21 = vrot.slane %v7928_v3, 4 }
 0x424   : > { %v9346_v37 = vrot.slane %v9344_v57, 4  ;;  %v14597_v61 = vrot.slane %v7466_v4, 5  ;;  %v7472_v16 = vrot.slane %v7470_v29, 4  ;;  %v7561_v34 = vunpack.c.l.b16 %v7445_v18 }
 0x425   : > { %v6362_v31 = vpop.f32.mrf.mxu2  ;;  %v14602_v39 = vrot.slane %v8793_v53, 5  ;;  %v8799_v4 = vrot.slane %v8797_v63, 4 }
 0x426   : > { %v7683_v17 = vpop.f32.mrf.mxu1  ;;  %v6363_v13 = vadd.f32 %v6362_v31, %v14118_v36  ;;  %v7455_v36 = vsel %vm11272_vm13, %v7450_v35, %v7454_v19  ;;  %v7931_v31 = vrot.slane %v7134_v14, 5  ;;  %v9347_v35 = vrot.slane %v14581_v0, 5 }
 0x427   : > { %v14577_v42 = vadd.f32 %v7683_v17, %v7071_v54  ;;  %v6742_v2 = vpop.f32.mrf.mxu3  ;;  %v7929_v54 = vsel %vm11652_vm0, %v10685_v25, %v7928_v3  ;;  %v7457_v17 = vshrl.u32 %v7135_v40, 16  ;;  %v7562_v19 = vunpack.c.l.b16 %v7455_v36  ;;  %v15493_v25 = vld [vmem:[#allocation13_spill] sm:$0xff] }
 0x428   : > { %v14585_v43 = vadd.f32 %v6740_v33, %v6363_v13  ;;  %v7460_v33 = vshll.u32 %v7135_v40, 16  ;;  %v9212_v13 = vld [vmem:[#allocation3 + $0x9c] sm:$0xe]  ;;  %v7987_v27 = vunpack.c.l.b16 %v7929_v54  ;;  %v9348_v14 = vsel %vm11652_vm0, %v9346_v37, %v9347_v35  ;;  %v15492_v40 = vld [vmem:[#allocation12_spill] sm:$0xff] }
 0x429   : > { %v7072_v20 = vadd.f32 %v15493_v25, %v15492_v40  ;;  %v10884_v56 = vrot.slane %v9212_v13, 9  ;;  %v7581_v54 = vpack.c.b16 %v7562_v19, %v7561_v34  ;;  %v7473_v35 = vor.u32 %v7472_v16, %v14597_v61  ;;  %v14630_v19 = vld [vmem:[#allocation3 + $0xb8] sm:$0xf]  ;;  %v7138_v25 = vld [vmem:[#allocation3 + $0xb4] sm:$0xf] }
 0x42a   : > { %15491 = vst [vmem:[#allocation11_spill] sm:$0xff] %v14585_v43  ;;  %v7932_v43 = vsel %vm11652_vm0, %v7930_v21, %v7931_v31  ;;  %v14609_v21 = vld [vmem:[#allocation3 + $0xb0] sm:$0x1]  ;;  %v7462_v53 = vrot.slane %v7460_v33, 5  ;;  %v8777_v13 = vrot.slane %v8776_v46, 4  ;;  %v15494_v34 = vshll.u32 %v14354_v55, 16 }
 0x42b   : > { %v7988_v3 = vunpack.c.l.b16 %v7932_v43  ;;  %v9345_v18 = vsel %vm11652_vm0, %v10884_v56, %v9344_v57  ;;  %v14632_v56 = vpop.f32.mrf.mxu0  ;;  %v7474_v46 = vrot.slane %v7473_v35, 4  ;;  %v7490_v16 = vshll.u32 %v14630_v19, 16 }
 0x42c   : > { %10824 = vmatmul.msk.bf16.gmra.mxu3 %vm5993_vm9, %v11044_v50  ;;  %v7459_v50 = vrot.slane %v7457_v17, 4  ;;  %v7476_v17 = vshll.u32 %v14609_v21, 16  ;;  %v8781_v33 = vrot.slane %v15494_v34, 5 }
 0x42d   : > { %v6364_v36 = vpop.f32.mrf.mxu2  ;;  %v14611_v31 = vpack.c.b16 %v7988_v3, %v7987_v27  ;;  %v7791_v27 = vld [vmem:[#allocation3 + $0xa8] sm:$0xe] }
 0x42e   : > { %v7686_v29 = vpop.f32.mrf.mxu1  ;;  %v6365_v8 = vadd.f32 %v6364_v36, %v14158_v58  ;;  %v8999_v58 = vpack.c.b16 %v14561_v52, %v14555_v51  ;;  %v8790_v51 = vor.u32 %v14572_v10, %v14570_v47  ;;  %v8800_v52 = vor.u32 %v8799_v4, %v14602_v39 }
 0x42f   : > { %v14613_v43 = vadd.f32 %v7686_v29, %v7072_v20  ;;  %v6745_v37 = vpop.f32.mrf.mxu3  ;;  %v8772_v20 = vsel %vm11272_vm13, %v14557_v49, %v14531_v23  ;;  %v8803_v23 = vshll.u32 %v14408_v6, 16  ;;  %v9408_v49 = vunpack.c.l.b16 %v9345_v18 }
 0x430   : > { %v14618_v63 = vadd.f32 %v6742_v2, %v6365_v8  ;;  %v9409_v8 = vunpack.c.l.b16 %v9348_v14  ;;  %v7463_v55 = vor.u32 %v7462_v53, %v7459_v50  ;;  %v8782_v57 = vsel %vm11272_vm13, %v8777_v13, %v8781_v33  ;;  %v15496_v14 = vld [vmem:[#allocation10_spill] sm:$0xff] }
 0x431   : > { %10669 = vmatmul.msk.bf16.gmra.mxu1 %vm5993_vm9, %v7581_v54  ;;  %v14643_v2 = vunpack.c.l.b16 %v8772_v20  ;;  %v7478_v40 = vrot.slane %v7476_v17, 5  ;;  %v7494_v6 = vshrl.u32 %v14630_v19, 16  ;;  %v7935_v36 = vrot.slane %v14563_v12, 5  ;;  %v8549_v20 = vld [vmem:[#allocation3 + $0x90] sm:$0xf] }
 0x432   : > { %10720 = vmatmul.msk.bf16.gmra.mxu2 %vm5993_vm9, %v14096_v48  ;;  %v14646_v3 = vpack.c.b16 %v9409_v8, %v9408_v49  ;;  %v15495_v48 = vld [vmem:[#allocation28_spill] sm:$0xff]  ;;  %v8791_v50 = vrot.slane %v8790_v51, 4  ;;  %v8801_v53 = vrot.slane %v8800_v52, 4  ;;  %v8805_v54 = vrot.slane %v8803_v23, 5 }
 0x433   : > { %10864 = vmatmul.msk.bf16.gmra.mxu0 %vm5993_vm9, %v8999_v58  ;;  %v7073_v47 = vadd.f32 %v15496_v14, %v15495_v48  ;;  %v7464_v58 = vrot.slane %v7463_v55, 4  ;;  %v7479_v13 = vsel %vm11272_vm13, %v7474_v46, %v7478_v40  ;;  %v10686_v17 = vrot.slane %v7791_v27, 9  ;;  %v11045_v55 = vld [vmem:[#allocation3 + $0x78] sm:$0xff]  ;;  %v15498_v40 = vld [vmem:[#allocation14_spill] sm:$0xff] }
 0x434   : > { %v7481_v33 = vshrl.u32 %v7138_v25, 16  ;;  %v7484_v8 = vshll.u32 %v7138_v25, 16  ;;  %v14659_v12 = vrot.slane %v7490_v16, 5  ;;  %v7496_v49 = vrot.slane %v7494_v6, 4  ;;  %v15499_v25 = vld [vmem:[#allocation15_spill] sm:$0xff] }
 0x435   : > { %v6367_v10 = vpop.f32.mrf.mxu2  ;;  %v7936_v51 = vsel %vm11652_vm0, %v10686_v17, %v7935_v36  ;;  %v7937_v52 = vrot.slane %v7935_v36, 4  ;;  %v7938_v23 = vrot.slane %v14609_v21, 5  ;;  %v7469_v46 = vsel %vm11272_vm13, %v7464_v58, %v14597_v61  ;;  %v14676_v21 = vpop.f32.mrf.mxu0  ;;  %v14681_v61 = vld [vmem:[#allocation3 + $0xbc] sm:$0x1] }
 0x436   : > { %v7688_v4 = vpop.f32.mrf.mxu1  ;;  %v6368_v29 = vadd.f32 %v6367_v10, %v14196_v9  ;;  %v14661_v9 = vld [vmem:[#allocation3 + $0xac] sm:$0xf]  ;;  %v8796_v16 = vsel %vm11272_vm13, %v8791_v50, %v14602_v39  ;;  %v8808_v27 = vshrl.u32 %v8549_v20, 16  ;;  %v7564_v48 = vunpack.c.l.b16 %v7479_v13 }
 0x437   : > { %v14653_v35 = vadd.f32 %v7688_v4, %v7073_v47  ;;  %v6747_v18 = vpop.f32.mrf.mxu3  ;;  %v8806_v14 = vsel %vm11272_vm13, %v8801_v53, %v8805_v54  ;;  %v8811_v47 = vshll.u32 %v8549_v20, 16  ;;  %v7939_v10 = vsel %vm11652_vm0, %v7937_v52, %v7938_v23 }
 0x438   : > { %v14657_v34 = vadd.f32 %v6745_v37, %v6368_v29  ;;  %v8977_v37 = vunpack.c.l.b16 %v8782_v57  ;;  %v7074_v6 = vadd.f32 %v15499_v25, %v15498_v40  ;;  %v7989_v57 = vunpack.c.l.b16 %v7936_v51  ;;  %v7792_v25 = vld [vmem:[#allocation3 + $0xb4] sm:$0xe] }
 0x439   : > { %15497 = vst [vmem:[#allocation12_spill] sm:$0xff] %v14653_v35  ;;  %v7990_v39 = vunpack.c.l.b16 %v7939_v10  ;;  %v9351_v36 = vrot.slane %v14661_v9, 5  ;;  %v7563_v4 = vunpack.c.l.b16 %v7469_v46  ;;  %v7483_v50 = vrot.slane %v7481_v33, 4  ;;  %v14697_v33 = vld [vmem:[#allocation3 + $0xb0] sm:$0x1] }
 0x43a   : > { %v7486_v53 = vrot.slane %v7484_v8, 5  ;;  %v7497_v54 = vor.u32 %v7496_v49, %v14659_v12  ;;  %v14686_v20 = vunpack.c.l.b16 %v8806_v14  ;;  %v14688_v17 = vrot.slane %v8808_v27, 4 }
 0x43b   : > { %v14690_v52 = vpack.c.b16 %v7990_v39, %v7989_v57  ;;  %v7582_v51 = vpack.c.b16 %v7564_v48, %v7563_v4  ;;  %v7500_v46 = vshll.u32 %v14681_v61, 16  ;;  %v14695_v10 = vrot.slane %v8811_v47, 5  ;;  %v9213_v48 = vld [vmem:[#allocation3 + $0xa8] sm:$0xe]  ;;  %v15501_v4 = vld [vmem:[#allocation16_spill] sm:$0xff] }
 0x43c   : > { %10825 = vmatmul.msk.bf16.gmra.mxu3 %vm5993_vm9, %v11045_v55  ;;  %v9353_v49 = vrot.slane %v9351_v36, 4  ;;  %v7487_v27 = vor.u32 %v7486_v53, %v7483_v50  ;;  %v7498_v14 = vrot.slane %v7497_v54, 4  ;;  %v14703_v40 = vunpack.c.l.b16 %v8796_v16 }
 0x43d   : > { %v6369_v29 = vpop.f32.mrf.mxu2  ;;  %v9354_v47 = vrot.slane %v14697_v33, 5  ;;  %v8817_v16 = vshll.u32 %v14473_v32, 16  ;;  %v10687_v57 = vrot.slane %v7792_v25, 9  ;;  %v7942_v39 = vrot.slane %v14630_v19, 5 }
 0x43e   : > { %v7691_v58 = vpop.f32.mrf.mxu1  ;;  %v6370_v13 = vadd.f32 %v6369_v29, %v14234_v44  ;;  %v9000_v44 = vpack.c.b16 %v8977_v37, %v14643_v2  ;;  %v7075_v29 = vadd.f32 %v15501_v4, %v13896_v45  ;;  %v7488_v53 = vrot.slane %v7487_v27, 4  ;;  %v9214_v4 = vld [vmem:[#allocation3 + $0xb4] sm:$0xe]  ;;  %v11046_v2 = vld [vmem:[#allocation3 + $0x84] sm:$0xff] }
 0x43f   : > { %v14692_v23 = vadd.f32 %v7691_v58, %v7074_v6  ;;  %v8407_v55 = vpop.f32.mrf.mxu3  ;;  %v14713_v6 = vld [vmem:[#allocation3 + $0xc4] sm:$0xf]  ;;  %v10885_v58 = vrot.slane %v9213_v48, 9  ;;  %v7943_v19 = vsel %vm11652_vm0, %v10687_v57, %v7942_v39  ;;  %v7944_v25 = vrot.slane %v7942_v39, 4  ;;  %v14733_v48 = vld [vmem:[#allocation3 + $0xb8] sm:$0xf] }
 0x440   : > { %v14699_v8 = vadd.f32 %v6747_v18, %v6370_v13  ;;  %v7502_v18 = vrot.slane %v7500_v46, 5  ;;  %v14723_v13 = vpop.f32.mrf.mxu0  ;;  %v7514_v27 = vshll.u32 %v14713_v6, 16  ;;  %v7493_v57 = vsel %vm11272_vm13, %v7488_v53, %v14659_v12 }
 0x441   : > { %15500 = vst [vmem:[#allocation13_spill] sm:$0xff] %v14692_v23  ;;  %10670 = vmatmul.msk.bf16.gmra.mxu1 %vm5993_vm9, %v7582_v51  ;;  %v10886_v53 = vrot.slane %v9214_v4, 9 }
 0x442   : > { %10721 = vmatmul.msk.bf16.gmra.mxu2 %vm5993_vm9, %v14184_v30  ;;  %v9355_v30 = vsel %vm11652_vm0, %v9353_v49, %v9354_v47  ;;  %v7503_v54 = vsel %vm11272_vm13, %v7498_v14, %v7502_v18  ;;  %v7945_v49 = vrot.slane %v14681_v61, 5  ;;  %v7518_v14 = vshrl.u32 %v14713_v6, 16 }
 0x443   : > { %10865 = vmatmul.msk.bf16.gmra.mxu0 %vm5993_vm9, %v9000_v44  ;;  %v7141_v44 = vld [vmem:[#allocation3 + $0xc0] sm:$0xf]  ;;  %v9352_v18 = vsel %vm11652_vm0, %v10885_v58, %v9351_v36  ;;  %v8821_v61 = vshrl.u32 %v14473_v32, 16  ;;  %v9411_v37 = vunpack.c.l.b16 %v9355_v30  ;;  %v14745_v36 = vld [vmem:[#allocation3 + $0xbc] sm:$0x1]  ;;  %v9358_v58 = vrot.slane %v14733_v48, 5 }
 0x444   : > { %v7946_v39 = vsel %vm11652_vm0, %v7944_v25, %v7945_v49  ;;  %v7508_v23 = vshll.u32 %v7141_v44, 16  ;;  %v7520_v12 = vrot.slane %v7518_v14, 4  ;;  %v15503_v25 = vld [vmem:[#allocation33_spill] sm:$0xff]  ;;  %v15504_v49 = vld [vmem:[#allocation20_spill] sm:$0xff]  ;;  %v14755_v30 = vrot.slane %v8817_v16, 5 }
 0x445   : > { %v8092_v50 = vpop.f32.mrf.mxu2  ;;  %v7076_v35 = vadd.f32 %v15504_v49, %v15503_v25  ;;  %v9361_v14 = vrot.slane %v14745_v36, 5 }
 0x446   : > { %v7693_v51 = vpop.f32.mrf.mxu1  ;;  %v8172_v46 = vadd.f32 %v8092_v50, %v14280_v38  ;;  %v7991_v50 = vunpack.c.l.b16 %v7943_v19  ;;  %v7565_v19 = vunpack.c.l.b16 %v7493_v57  ;;  %v7510_v49 = vrot.slane %v7508_v23, 5 }
 0x447   : > { %v14729_v47 = vadd.f32 %v7693_v51, %v7075_v29  ;;  %v8409_v45 = vpop.f32.mrf.mxu3  ;;  %v7505_v29 = vshrl.u32 %v7141_v44, 16  ;;  %v7992_v51 = vunpack.c.l.b16 %v7946_v39  ;;  %v9360_v39 = vrot.slane %v9358_v58, 4 }
 0x448   : > { %v14737_v38 = vadd.f32 %v8407_v55, %v8172_v46  ;;  %v9410_v55 = vunpack.c.l.b16 %v9352_v18  ;;  %v14748_v46 = vrot.slane %v7514_v27, 5  ;;  %v9359_v27 = vsel %vm11652_vm0, %v10886_v53, %v9358_v58  ;;  %v14769_v58 = vpop.f32.mrf.mxu0 }
 0x449   : > { %15502 = vst [vmem:[#allocation28_spill] sm:$0xff] %v14729_v47  ;;  %v7566_v47 = vunpack.c.l.b16 %v7503_v54  ;;  %v14750_v32 = vpack.c.b16 %v7992_v51, %v7991_v50  ;;  %v8823_v54 = vrot.slane %v8821_v61, 4  ;;  %v7143_v51 = vld [vmem:[#allocation3 + $0xc8] sm:$0x1]  ;;  %v7507_v25 = vrot.slane %v7505_v29, 4 }
 0x44a   : > { %v14757_v44 = vpack.c.b16 %v9411_v37, %v9410_v55  ;;  %v7521_v57 = vor.u32 %v7520_v12, %v14748_v46  ;;  %v9362_v55 = vsel %vm11652_vm0, %v9360_v39, %v9361_v14  ;;  %v15506_v23 = vpack.c.b16 %v14686_v20, %v14703_v40  ;;  %v9215_v12 = vld [vmem:[#allocation3 + $0xc0] sm:$0xe]  ;;  %v14789_v40 = vld [vmem:[#allocation3 + $0xc8] sm:$0x1] }
 0x44b   : > { %v7583_v37 = vpack.c.b16 %v7566_v47, %v7565_v19  ;;  %v9413_v29 = vunpack.c.l.b16 %v9362_v55  ;;  %v14781_v47 = vld [vmem:[#allocation3 + $0xc4] sm:$0xf]  ;;  %v7949_v14 = vrot.slane %v14713_v6, 5 }
 0x44c   : > { %10826 = vmatmul.msk.bf16.gmra.mxu3 %vm5993_vm9, %v11046_v2  ;;  %v8827_v2 = vshll.u32 %v14500_v22, 16  ;;  %v7524_v22 = vshll.u32 %v7143_v51, 16  ;;  %v7522_v19 = vrot.slane %v7521_v57, 4  ;;  %v15509_v55 = vld [vmem:[#allocation34_spill] sm:$0xff] }
 0x44d   : > { %v8094_v18 = vpop.f32.mrf.mxu2  ;;  %v7951_v6 = vrot.slane %v7949_v14, 4 }
 0x44e   : > { %v7696_v50 = vpop.f32.mrf.mxu1  ;;  %v8173_v4 = vadd.f32 %v8094_v18, %v14326_v59  ;;  %v8824_v59 = vor.u32 %v8823_v54, %v14755_v30  ;;  %v9412_v18 = vunpack.c.l.b16 %v9359_v27  ;;  %v7511_v54 = vor.u32 %v7510_v49, %v7507_v25 }
 0x44f   : > { %v14764_v16 = vadd.f32 %v7696_v50, %v7076_v35  ;;  %v8412_v61 = vpop.f32.mrf.mxu3  ;;  %v7793_v35 = vld [vmem:[#allocation3 + $0xc0] sm:$0xe]  ;;  %v15507_v27 = vor.u32 %v14695_v10, %v14688_v17  ;;  %v8829_v20 = vrot.slane %v8827_v2, 5  ;;  %v8841_v25 = vshll.u32 %v14559_v1, 16 }
 0x450   : > { %v14771_v53 = vadd.f32 %v8409_v45, %v8173_v4  ;;  %v14783_v45 = vpack.c.b16 %v9413_v29, %v9412_v18  ;;  %v8825_v50 = vrot.slane %v8824_v59, 4  ;;  %v10688_v4 = vrot.slane %v7793_v35, 9 }
 0x451   : > { %15505 = vst [vmem:[#allocation10_spill] sm:$0xff] %v14764_v16  ;;  %10671 = vmatmul.msk.bf16.gmra.mxu1 %vm5993_vm9, %v7583_v37  ;;  %v8815_v39 = vrot.slane %v15507_v27, 4  ;;  %v15508_v37 = vld [vmem:[#allocation35_spill] sm:$0xff]  ;;  %v10887_v49 = vrot.slane %v9215_v12, 9  ;;  %v7952_v2 = vrot.slane %v7143_v51, 5  ;;  %v7512_v27 = vrot.slane %v7511_v54, 4 }
 0x452   : > { %10722 = vmatmul.msk.bf16.gmra.mxu2 %vm5993_vm9, %v14262_v26  ;;  %v9365_v26 = vrot.slane %v14781_v47, 5  ;;  %v7077_v18 = vadd.f32 %v15509_v55, %v15508_v37  ;;  %v7950_v10 = vsel %vm11652_vm0, %v10688_v4, %v7949_v14  ;;  %v8830_v51 = vsel %vm11272_vm13, %v8825_v50, %v8829_v20  ;;  %v8552_v14 = vld [vmem:[#allocation3 + $0x9c] sm:$0xf] }
 0x453   : > { %10866 = vmatmul.msk.bf16.gmra.mxu0 %vm5993_vm9, %v15506_v23  ;;  %v7526_v23 = vrot.slane %v7524_v22, 5  ;;  %v9368_v22 = vrot.slane %v14789_v40, 5  ;;  %v7953_v12 = vsel %vm11652_vm0, %v7951_v6, %v7952_v2  ;;  %v8845_v54 = vshrl.u32 %v14559_v1, 16 }
 0x454   : > { %v9367_v4 = vrot.slane %v9365_v26, 4  ;;  %v8835_v6 = vshll.u32 %v8552_v14, 16  ;;  %v8843_v2 = vrot.slane %v8841_v25, 5 }
 0x455   : > { %v8097_v29 = vpop.f32.mrf.mxu2  ;;  %v7527_v37 = vsel %vm11272_vm13, %v7522_v19, %v7526_v23  ;;  %v14812_v19 = vpop.f32.mrf.mxu0  ;;  %v11047_v23 = vld [vmem:[#allocation3 + $0x90] sm:$0xff] }
 0x456   : > { %v7698_v57 = vpop.f32.mrf.mxu1  ;;  %v8174_v17 = vadd.f32 %v8097_v29, %v14363_v5  ;;  %v9366_v5 = vsel %vm11652_vm0, %v10887_v49, %v9365_v26  ;;  %v7994_v29 = vunpack.c.l.b16 %v7953_v12  ;;  %v8820_v49 = vsel %vm11272_vm13, %v8815_v39, %v14755_v30  ;;  %v15511_v12 = vld [vmem:[#allocation37_spill] sm:$0xff] }
 0x457   : > { %v14798_v59 = vadd.f32 %v7698_v57, %v7077_v18  ;;  %v8414_v35 = vpop.f32.mrf.mxu3  ;;  %v7993_v18 = vunpack.c.l.b16 %v7950_v10  ;;  %v9369_v26 = vsel %vm11652_vm0, %v9367_v4, %v9368_v22  ;;  %v7568_v50 = vunpack.c.l.b16 %v7527_v37 }
 0x458   : > { %v14803_v55 = vadd.f32 %v8412_v61, %v8174_v17  ;;  %v7517_v61 = vsel %vm11272_vm13, %v7512_v27, %v14748_v46  ;;  %v9414_v1 = vunpack.c.l.b16 %v9366_v5  ;;  %v9415_v57 = vunpack.c.l.b16 %v9369_v26  ;;  %v15512_v46 = vld [vmem:[#allocation38_spill] sm:$0xff] }
 0x459   : > { %15510 = vst [vmem:[#allocation14_spill] sm:$0xff] %v14798_v59  ;;  %v14822_v20 = vpack.c.b16 %v7994_v29, %v7993_v18  ;;  %v8981_v17 = vunpack.c.l.b16 %v8830_v51  ;;  %v8832_v10 = vshrl.u32 %v8552_v14, 16  ;;  %v7078_v27 = vadd.f32 %v15512_v46, %v15511_v12 }
 0x45a   : > { %v7567_v59 = vunpack.c.l.b16 %v7517_v61  ;;  %v8847_v30 = vrot.slane %v8845_v54, 4  ;;  %v14827_v39 = vpack.c.b16 %v9415_v57, %v9414_v1  ;;  %v8980_v4 = vunpack.c.l.b16 %v8820_v49  ;;  %v15513_v54 = vld [vmem:[#allocation39_spill] sm:$0xff] }
 0x45b   : > { %v8834_v14 = vrot.slane %v8832_v10, 4  ;;  %v8865_v46 = vshll.u32 %v14661_v9, 16 }
 0x45c   : > { %10827 = vmatmul.msk.bf16.gmra.mxu3 %vm5993_vm9, %v11047_v23  ;;  %v7584_v18 = vpack.c.b16 %v7568_v50, %v7567_v59  ;;  %v9002_v51 = vpack.c.b16 %v8981_v17, %v8980_v4  ;;  %v8837_v23 = vrot.slane %v8835_v6, 5  ;;  %v8848_v61 = vor.u32 %v8847_v30, %v8843_v2  ;;  %v15514_v59 = vld [vmem:[#allocation40_spill] sm:$0xff]  ;;  %v11048_v30 = vld [vmem:[#allocation3 + $0x9c] sm:$0xff] }
 0x45d   : > { %v8099_v16 = vpop.f32.mrf.mxu2 }
 0x45e   : > { %v7701_v22 = vpop.f32.mrf.mxu1  ;;  %v8175_v37 = vadd.f32 %v8099_v16, %v14413_v41  ;;  %v8851_v41 = vshll.u32 %v14581_v0, 16  ;;  %v14839_v16 = vpop.f32.mrf.mxu0  ;;  %v8838_v26 = vor.u32 %v8837_v23, %v8834_v14  ;;  %v8849_v50 = vrot.slane %v8848_v61, 4  ;;  %v8555_v0 = vld [vmem:[#allocation3 + $0xa8] sm:$0xf] }
 0x45f   : > { %v14830_v5 = vadd.f32 %v7701_v22, %v7078_v27  ;;  %v8417_v25 = vpop.f32.mrf.mxu3  ;;  %v8869_v27 = vshrl.u32 %v14661_v9, 16  ;;  %v8856_v4 = vshrl.u32 %v8555_v0, 16  ;;  %v8859_v23 = vshll.u32 %v8555_v0, 16  ;;  %v15519_v0 = vld [vmem:[#allocation45_spill] sm:$0xff] }
 0x460   : > { %v14832_v29 = vadd.f32 %v8414_v35, %v8175_v37  ;;  %v7079_v35 = vadd.f32 %v15514_v59, %v15513_v54  ;;  %v8853_v10 = vrot.slane %v8851_v41, 5  ;;  %v8839_v12 = vrot.slane %v8838_v26, 4 }
 0x461   : > { %10672 = vmatmul.msk.bf16.gmra.mxu1 %vm5993_vm9, %v7584_v18  ;;  %v15515_v18 = vld [vmem:[#allocation41_spill] sm:$0xff]  ;;  %v8867_v61 = vrot.slane %v8865_v46, 5  ;;  %v8871_v41 = vrot.slane %v8869_v27, 4 }
 0x462   : > { %10723 = vmatmul.msk.bf16.gmra.mxu2 %vm5993_vm9, %v14356_v7  ;;  %v8854_v7 = vsel %vm11272_vm13, %v8849_v50, %v8853_v10  ;;  %v8844_v37 = vsel %vm11272_vm13, %v8839_v12, %v8843_v2  ;;  %v15517_v50 = vld [vmem:[#allocation17_spill] sm:$0xff]  ;;  %v8875_v12 = vshll.u32 %v14697_v33, 16 }
 0x463   : > { %10867 = vmatmul.msk.bf16.gmra.mxu0 %vm5993_vm9, %v9002_v51  ;;  %v15516_v51 = vld [vmem:[#allocation43_spill] sm:$0xff]  ;;  %v8872_v10 = vor.u32 %v8871_v41, %v8867_v61  ;;  %v8893_v41 = vshrl.u32 %v14733_v48, 16 }
 0x465   : > { %v8102_v49 = vpop.f32.mrf.mxu2 }
 0x466   : > { %v7703_v1 = vpop.f32.mrf.mxu1  ;;  %v8176_v57 = vadd.f32 %v8102_v49, %v14451_v62  ;;  %v8983_v62 = vunpack.c.l.b16 %v8854_v7  ;;  %v14857_v54 = vpop.f32.mrf.mxu0  ;;  %v15518_v7 = vld [vmem:[#allocation44_spill] sm:$0xff] }
 0x467   : > { %v14844_v17 = vadd.f32 %v7703_v1, %v7079_v35  ;;  %v8419_v22 = vpop.f32.mrf.mxu3  ;;  %v8982_v35 = vunpack.c.l.b16 %v8844_v37  ;;  %v8858_v1 = vrot.slane %v8856_v4, 4  ;;  %v7081_v46 = vadd.f32 %v15519_v0, %v15518_v7 }
 0x468   : > { %v14846_v6 = vadd.f32 %v8417_v25, %v8176_v57  ;;  %v7080_v25 = vadd.f32 %v15516_v51, %v15515_v18  ;;  %v8861_v57 = vrot.slane %v8859_v23, 5  ;;  %v8877_v18 = vrot.slane %v8875_v12, 5 }
 0x469   : > { %v9003_v26 = vpack.c.b16 %v8983_v62, %v8982_v35  ;;  %v8889_v23 = vshll.u32 %v14733_v48, 16 }
 0x46b   : > { %v8891_v12 = vrot.slane %v8889_v23, 5 }
 0x46c   : > { %10828 = vmatmul.msk.bf16.gmra.mxu3 %vm5993_vm9, %v11048_v30  ;;  %v8862_v30 = vor.u32 %v8861_v57, %v8858_v1 }
 0x46d   : > { %v8104_v14 = vpop.f32.mrf.mxu2 }
 0x46e   : > { %v7706_v59 = vpop.f32.mrf.mxu1  ;;  %v8177_v9 = vadd.f32 %v8104_v14, %v14496_v15  ;;  %v14875_v51 = vpop.f32.mrf.mxu0  ;;  %v8558_v14 = vld [vmem:[#allocation3 + $0xb4] sm:$0xf] }
 0x46f   : > { %v14860_v49 = vadd.f32 %v7706_v59, %v7080_v25  ;;  %v8422_v15 = vpop.f32.mrf.mxu3  ;;  %v11049_v59 = vld [vmem:[#allocation3 + $0xa8] sm:$0xff]  ;;  %v8880_v35 = vshrl.u32 %v8558_v14, 16 }
 0x470   : > { %v14862_v2 = vadd.f32 %v8419_v22, %v8177_v9  ;;  %v8873_v22 = vrot.slane %v8872_v10, 4  ;;  %v8883_v10 = vshll.u32 %v8558_v14, 16  ;;  %v15524_v14 = vld [vmem:[#allocation52_spill] sm:$0xff] }
 0x471   : > { %10913 = vmatmul.msk.bf16.vlgmr.msra.gmra.mxu1 %vm5993_vm9, %v15517_v50  ;;  %v15521_v50 = vld [vmem:[#allocation49_spill] sm:$0xff] }
 0x472   : > { %10724 = vmatmul.msk.bf16.gmra.mxu2 %vm5993_vm9, %v14513_v11  ;;  %v8863_v11 = vrot.slane %v8862_v30, 4  ;;  %v8878_v33 = vsel %vm11272_vm13, %v8873_v22, %v8877_v18  ;;  %v15522_v22 = vld [vmem:[#allocation31_spill] sm:$0xff] }
 0x473   : > { %10868 = vmatmul.msk.bf16.gmra.mxu0 %vm5993_vm9, %v9003_v26  ;;  %v8985_v9 = vunpack.c.l.b16 %v8878_v33  ;;  %v15520_v26 = vld [vmem:[#allocation46_spill] sm:$0xff]  ;;  %v15523_v33 = vld [vmem:[#allocation48_spill] sm:$0xff] }
 0x474   : > { %v7082_v1 = vadd.f32 %v15521_v50, %v15520_v26  ;;  %v7083_v23 = vadd.f32 %v15524_v14, %v15523_v33  ;;  %v15527_v14 = vld [vmem:[#allocation19_spill] sm:$0xff] }
 0x475   : > { %v8107_v27 = vpop.f32.mrf.mxu2 }
 0x476   : > { %v7708_v37 = vpop.f32.mrf.mxu1  ;;  %v8178_v62 = vadd.f32 %v8107_v27, %v14528_v28  ;;  %v8868_v28 = vsel %vm11272_vm13, %v8863_v11, %v8867_v61  ;;  %v14895_v11 = vpop.f32.mrf.mxu0 }
 0x477   : > { %v14873_v4 = vadd.f32 %v7708_v37, %v7081_v46  ;;  %v8984_v46 = vunpack.c.l.b16 %v8868_v28  ;;  %v8424_v48 = vpop.f32.mrf.mxu3  ;;  %v8882_v37 = vrot.slane %v8880_v35, 4 }
 0x478   : > { %v14877_v25 = vadd.f32 %v8422_v15, %v8178_v62  ;;  %v8895_v15 = vrot.slane %v8893_v41, 4  ;;  %v8885_v62 = vrot.slane %v8883_v10, 5  ;;  %v11050_v10 = vld [vmem:[#allocation3 + $0xb4] sm:$0xff] }
 0x479   : > { %v9004_v61 = vpack.c.b16 %v8985_v9, %v8984_v46  ;;  %v15525_v46 = vld [vmem:[#allocation50_spill] sm:$0xff] }
 0x47a   : > { %v8896_v18 = vor.u32 %v8895_v15, %v8891_v12  ;;  %v8886_v41 = vor.u32 %v8885_v62, %v8882_v37 }
 0x47c   : > { %10829 = vmatmul.msk.bf16.gmra.mxu3 %vm5993_vm9, %v11049_v59  ;;  %v8897_v59 = vrot.slane %v8896_v18, 4  ;;  %v8887_v26 = vrot.slane %v8886_v41, 4 }
 0x47d   : > { %v8109_v57 = vpop.f32.mrf.mxu2 }
 0x47e   : > { %v7711_v7 = vpop.f32.mrf.mxu1  ;;  %v8179_v0 = vadd.f32 %v8109_v57, %v14577_v42  ;;  %v8899_v42 = vshll.u32 %v14745_v36, 16  ;;  %v8913_v57 = vshll.u32 %v14781_v47, 16  ;;  %v8892_v36 = vsel %vm11272_vm13, %v8887_v26, %v8891_v12  ;;  %v14911_v15 = vpop.f32.mrf.mxu0 }
 0x47f   : > { %v14889_v27 = vadd.f32 %v7711_v7, %v7082_v1  ;;  %v8561_v1 = vld [vmem:[#allocation3 + $0xc0] sm:$0xf] }
 0x480   : > { %v14891_v30 = vadd.f32 %v8424_v48, %v8179_v0  ;;  %v8901_v35 = vrot.slane %v8899_v42, 5  ;;  %v8904_v0 = vshrl.u32 %v8561_v1, 16  ;;  %v15526_v48 = vld [vmem:[#allocation21_spill] sm:$0xff]  ;;  %v8915_v37 = vrot.slane %v8913_v57, 5 }
 0x481   : > { %10914 = vmatmul.msk.bf16.gmra.mxu1 %vm5993_vm9, %v15522_v22  ;;  %v8907_v22 = vshll.u32 %v8561_v1, 16  ;;  %v8986_v42 = vunpack.c.l.b16 %v8892_v36 }
 0x482   : > { %10725 = vmatmul.msk.bf16.gmra.mxu2 %vm5993_vm9, %v14611_v31  ;;  %v8902_v50 = vsel %vm11272_vm13, %v8897_v59, %v8901_v35  ;;  %v8917_v31 = vshrl.u32 %v14781_v47, 16  ;;  %v8906_v12 = vrot.slane %v8904_v0, 4  ;;  %v8923_v59 = vshll.u32 %v14789_v40, 16  ;;  %v15529_v35 = vld [vmem:[#allocation22_spill] sm:$0xff] }
 0x483   : > { %10869 = vmatmul.msk.bf16.gmra.mxu0 %vm5993_vm9, %v9004_v61  ;;  %v8987_v7 = vunpack.c.l.b16 %v8902_v50  ;;  %v7084_v61 = vadd.f32 %v15526_v48, %v15525_v46  ;;  %v11051_v40 = vld [vmem:[#allocation3 + $0xc0] sm:$0xff] }
 0x484   : > { %v8919_v62 = vrot.slane %v8917_v31, 4  ;;  %v8925_v36 = vrot.slane %v8923_v59, 5  ;;  %v15533_v59 = vld [vmem:[#allocation36_spill] sm:$0xff] }
 0x485   : > { %v9005_v47 = vpack.c.b16 %v8987_v7, %v8986_v42  ;;  %v464_v7 = vld [vmem:[#allocation3 + $0xcc] sm:$0x1] }
 0x486   : > { %v7713_v28 = vpop.f32.mrf.mxu1  ;;  %v8920_v41 = vor.u32 %v8919_v62, %v8915_v37  ;;  %v14926_v57 = vpop.f32.mrf.mxu0  ;;  %v465_v46 = vsel %vm12503_vm7, 0, %v464_v7  ;;  %v15531_v62 = vld [vmem:[#allocation30_spill] sm:$0xff] }
 0x487   : > { %v14903_v9 = vadd.f32 %v7713_v28, %v7083_v23  ;;  %v8909_v23 = vrot.slane %v8907_v22, 5  ;;  %v15528_v28 = vld [vmem:[#allocation53_spill] sm:$0xff]  ;;  %466 = vst [vmem:[#allocation3 + $0xcc] sm:$0x1] %v465_v46 }
 0x488   : > { %v7085_v26 = vadd.f32 %v15529_v35, %v15528_v28  ;;  %v8921_v1 = vrot.slane %v8920_v41, 4  ;;  %v519_v28 = vld [vmem:[#allocation3 + $0xd4] sm:$0x1] }
 0x489   : > { %v8910_v50 = vor.u32 %v8909_v23, %v8906_v12 }
 0x48b   : > { %v8911_v48 = vrot.slane %v8910_v50, 4  ;;  %v520_v50 = vsel %vm12545_vm3, 0, %v519_v28 }
 0x48c   : > { %10830 = vmatmul.msk.bf16.gmra.mxu3 %vm5993_vm9, %v11050_v10  ;;  %521 = vst [vmem:[#allocation3 + $0xd4] sm:$0x1] %v520_v50  ;;  %v15537_v50 = vld [vmem:[#allocation27_spill] sm:$0xff] }
 0x48e   : > { %v7716_v18 = vpop.f32.mrf.mxu1  ;;  %v14941_v23 = vpop.f32.mrf.mxu0  ;;  %v8564_v35 = vld [vmem:[#allocation3 + $0xcc] sm:$0xf] }
 0x48f   : > { %v14916_v33 = vadd.f32 %v7716_v18, %v7084_v61  ;;  %v8916_v61 = vsel %vm11272_vm13, %v8911_v48, %v8915_v37  ;;  %v15532_v18 = vld [vmem:[#allocation5_spill] sm:$0xff] }
 0x490   : > { %v7086_v42 = vadd.f32 %v15532_v18, %v15531_v62 }
 0x491   : > { %10915 = vmatmul.msk.bf16.gmra.mxu1 %vm5993_vm9, %v15527_v14  ;;  %v8988_v14 = vunpack.c.l.b16 %v8916_v61 }
 0x492   : > { %10726 = vmatmul.msk.bf16.gmra.mxu2 %vm5993_vm9, %v14690_v52  ;;  %v8926_v52 = vsel %vm11272_vm13, %v8921_v1, %v8925_v36  ;;  %v8928_v1 = vshrl.u32 %v8564_v35, 16 }
 0x493   : > { %10870 = vmatmul.msk.bf16.gmra.mxu0 %vm5993_vm9, %v9005_v47  ;;  %v8989_v22 = vunpack.c.l.b16 %v8926_v52  ;;  %v15535_v52 = vld [vmem:[#allocation54_spill] sm:$0xff] }
 0x494   : > { %v8930_v0 = vrot.slane %v8928_v1, 4  ;;  %v15538_v1 = vld [vmem:[#allocation24_spill] sm:$0xff] }
 0x495   : > { %v9006_v41 = vpack.c.b16 %v8989_v22, %v8988_v14 }
 0x496   : > { %v7718_v31 = vpop.f32.mrf.mxu1 }
 0x497   : > { %v14928_v10 = vadd.f32 %v7718_v31, %v7085_v26  ;;  %v14945_v26 = vld [vmem:[#allocation3 + $0xd0] sm:$0xf]  ;;  %v8931_v31 = vshll.u32 %v8564_v35, 16 }
 0x498   : > { %v8937_v36 = vshll.u32 %v14945_v26, 16  ;;  %v8941_v7 = vshrl.u32 %v14945_v26, 16 }
 0x499   : > { %v8933_v46 = vrot.slane %v8931_v31, 5  ;;  %v7088_v31 = vadd.f32 %v15538_v1, %v15537_v50  ;;  %v15543_v50 = vld [vmem:[#allocation47_spill] sm:$0xff] }
 0x49a   : > { %v8939_v48 = vrot.slane %v8937_v36, 5  ;;  %v8943_v22 = vrot.slane %v8941_v7, 4 }
 0x49b   : > { %v8934_v18 = vor.u32 %v8933_v46, %v8930_v0 }
 0x49c   : > { %10831 = vmatmul.msk.bf16.gmra.mxu3 %vm5993_vm9, %v11051_v40  ;;  %v15536_v40 = vld [vmem:[#allocation55_spill] sm:$0xff] }
 0x49d   : > { %v7087_v61 = vadd.f32 %v15536_v40, %v15535_v52  ;;  %v8935_v14 = vrot.slane %v8934_v18, 4  ;;  %v15541_v18 = vld [vmem:[#allocation8_spill] sm:$0xff] }
 0x49e   : > { %v7721_v47 = vpop.f32.mrf.mxu1 }
 0x49f   : > { %v14939_v12 = vadd.f32 %v7721_v47, %v7086_v42  ;;  %v8944_v42 = vor.u32 %v8943_v22, %v8939_v48  ;;  %v11052_v47 = vld [vmem:[#allocation3 + $0xcc] sm:$0xff]  ;;  %v8940_v28 = vsel %vm11272_vm13, %v8935_v14, %v8939_v48 }
 0x4a0   : > { %v8990_v0 = vunpack.c.l.b16 %v8940_v28  ;;  %v7090_v28 = vadd.f32 %v14632_v56, %v15542_v24  ;;  %v7093_v56 = vadd.f32 %v14769_v58, %v14618_v63  ;;  %v9169_v63 = vadd.f32 %v14857_v54, %v14737_v38  ;;  %v15018_v58 = vld [vmem:[%s15294_s5] ss:$0 sm:$0xff]  ;;  %v15029_v38 = vpop.f32.mrf.mxu2 }
 0x4a1   : > { %10916 = vmatmul.msk.bf16.gmra.mxu1 %vm5993_vm9, %v15533_v59  ;;  %v14960_v59 = vld [vmem:[#allocation3 + $0xd4] sm:$0x1]  ;;  %v8945_v35 = vrot.slane %v8944_v42, 4 }
 0x4a2   : > { %10727 = vmatmul.msk.bf16.gmra.mxu2 %vm5993_vm9, %v14750_v32  ;;  %v8947_v37 = vshll.u32 %v14960_v59, 16 }
 0x4a3   : > { %10871 = vmatmul.msk.bf16.gmra.mxu0 %vm5993_vm9, %v9006_v41  ;;  %v14958_v41 = vpop.f32.mrf.mxu0 }
 0x4a4   : > { %v8949_v36 = vrot.slane %v8947_v37, 5 }
 0x4a6   : > { %v7723_v62 = vpop.f32.mrf.mxu1  ;;  %v8950_v52 = vsel %vm11272_vm13, %v8945_v35, %v8949_v36 }
 0x4a7   : > { %v14956_v32 = vadd.f32 %v7723_v62, %v7087_v61  ;;  %v8991_v40 = vunpack.c.l.b16 %v8950_v52  ;;  %v15539_v61 = vld [vmem:[#allocation42_spill] sm:$0xff]  ;;  %v15540_v62 = vld [vmem:[#allocation25_spill] sm:$0xff] }
 0x4a8   : > { %v7089_v42 = vadd.f32 %v15541_v18, %v15540_v62 }
 0x4a9   : > { %v9007_v48 = vpack.c.b16 %v8991_v40, %v8990_v0 }
 0x4ab   : > { %v14976_v22 = vpop.f32.mrf.mxu0 }
 0x4ac   : > { %10832 = vmatmul.msk.bf16.gmra.mxu3 %vm5993_vm9, %v11052_v47 }
 0x4ae   : > { %v7726_v7 = vpop.f32.mrf.mxu1 }
 0x4af   : > { %v14968_v46 = vadd.f32 %v7726_v7, %v7088_v31  ;;  %v15545_v7 = vld [vmem:[#allocation11_spill] sm:$0xff] }
 0x4b0   : > { %v7092_v0 = vadd.f32 %v14723_v13, %v15545_v7  ;;  %v7095_v13 = vadd.f32 %v14839_v16, %v14699_v8  ;;  %v15548_v16 = vld [vmem:[#allocation29_spill] sm:$0xff] }
 0x4b1   : > { %10917 = vmatmul.msk.bf16.gmra.mxu1 %vm5993_vm9, %v15539_v61  ;;  %v15546_v61 = vld [vmem:[#allocation51_spill] sm:$0xff] }
 0x4b2   : > { %10728 = vmatmul.msk.bf16.gmra.mxu2 %vm5993_vm9, %v14822_v20  ;;  %v15544_v20 = vld [vmem:[#allocation9_spill] sm:$0xff] }
 0x4b3   : > { %10872 = vmatmul.msk.bf16.gmra.mxu0 %vm5993_vm9, %v9007_v48  ;;  %v7091_v1 = vadd.f32 %v14676_v21, %v15544_v20  ;;  %v7094_v21 = vadd.f32 %v14812_v19, %v14657_v34  ;;  %v9170_v20 = vadd.f32 %v14875_v51, %v14771_v53 }
 0x4b6   : > { %v7728_v47 = vpop.f32.mrf.mxu1 }
 0x4b7   : > { %v14981_v14 = vadd.f32 %v7728_v47, %v7089_v42  ;;  %v15547_v47 = vld [vmem:[#allocation23_spill] sm:$0xff] }
 0x4be   : > { %v7731_v35 = vpop.f32.mrf.mxu1 }
 0x4bf   : > { %v14985_v37 = vadd.f32 %v7731_v35, %v7090_v28  ;;  %v15023_v35 = vld [vmem:[%s15295_s6] ss:$0 sm:$0xff] }
 0x4c1   : > { %10918 = vmatmul.msk.bf16.gmra.mxu1 %vm5993_vm9, %v15543_v50 }
 0x4c6   : > { %v7733_v31 = vpop.f32.mrf.mxu1 }
 0x4c7   : > { %v14991_v36 = vadd.f32 %v7733_v31, %v7091_v1 }
 0x4ce   : > { %v7736_v52 = vpop.f32.mrf.mxu1 }
 0x4cf   : > { %v14995_v40 = vadd.f32 %v7736_v52, %v7092_v0  ;;  %v15035_v0 = vpop.f32.mrf.mxu3 }
 0x4d1   : > { %10919 = vmatmul.msk.bf16.gmra.mxu1 %vm5993_vm9, %v15546_v61  ;;  %v15038_v61 = vpop.f32.mrf.mxu0 }
 0x4d6   : > { %v7738_v48 = vpop.f32.mrf.mxu1 }
 0x4d7   : > { %v15001_v62 = vadd.f32 %v7738_v48, %v7093_v56  ;;  %v9171_v48 = vadd.f32 %v14895_v11, %v14803_v55 }
 0x4d9   : > { %v15053_v11 = vpop.f32.mrf.mxu0 }
 0x4de   : > { %v7741_v18 = vpop.f32.mrf.mxu1 }
 0x4df   : > { %v15005_v42 = vadd.f32 %v7741_v18, %v7094_v21  ;;  %v15042_v21 = vpop.f32.mrf.mxu2 }
 0x4e1   : > { %10920 = vmatmul.msk.bf16.gmra.mxu1 %vm5993_vm9, %v15547_v47  ;;  %v15549_v47 = vld [vmem:[#allocation7_spill] sm:$0xff] }
 0x4e6   : > { %v7743_v24 = vpop.f32.mrf.mxu1 }
 0x4e7   : > { %v15011_v28 = vadd.f32 %v7743_v24, %v7095_v13  ;;  %v15049_v24 = vpop.f32.mrf.mxu3 }
 0x4ee   : > { %v9515_v34 = vpop.f32.mrf.mxu1 }
 0x4ef   : > { %v9595_v19 = vadd.f32 %v9515_v34, %v9169_v63  ;;  %v9172_v34 = vadd.f32 %v14911_v15, %v14832_v29  ;;  %v15065_v15 = vpop.f32.mrf.mxu0 }
 0x4f1   : > { %v9631_v8 = vmul.f32 %v15018_v58, %v9595_v19  ;;  %10921 = vmatmul.msk.bf16.gmra.mxu1 %vm5993_vm9, %v15548_v16 }
 0x4f3   : > { %v9667_v50 = vadd.f32 %v15023_v35, %v9631_v8  ;;  %v15056_v8 = vpop.f32.mrf.mxu2 }
 0x4f5   : > { %v9699_v54 = vmax.f32 %v9667_v50, 0.0 }
 0x4f6   : > { %v9517_v1 = vpop.f32.mrf.mxu1 }
 0x4f7   : > { %9731 = vst.msk [vmem:[#allocation4] sm:$0xff] %vm5993_vm9, %v9699_v54  ;;  %v9596_v31 = vadd.f32 %v9517_v1, %v9170_v20  ;;  %v9173_v20 = vadd.f32 %v14926_v57, %v14846_v6  ;;  %v15062_v1 = vpop.f32.mrf.mxu3 }
 0x4f9   : > { %v9632_v7 = vmul.f32 %v15018_v58, %v9596_v31 }
 0x4fb   : > { %v9668_v52 = vadd.f32 %v15023_v35, %v9632_v7 }
 0x4fd   : > { %v9700_v56 = vmax.f32 %v9668_v52, 0.0  ;;  %v15550_v52 = vld [vmem:[#allocation6_spill] sm:$0xff] }
 0x4fe   : > { %v9520_v18 = vpop.f32.mrf.mxu1 }
 0x4ff   : > { %9732 = vst.msk [vmem:[#allocation4 + $0x8] sm:$0xff] %vm5993_vm9, %v9700_v56  ;;  %v9597_v53 = vadd.f32 %v9520_v18, %v9171_v48  ;;  %v15070_v56 = vpop.f32.mrf.mxu2 }
 0x501   : > { %v9633_v51 = vmul.f32 %v15018_v58, %v9597_v53  ;;  %10922 = vmatmul.msk.bf16.gmra.mxu1 %vm5993_vm9, %v15549_v47  ;;  %v9174_v53 = vadd.f32 %v14941_v23, %v14862_v2  ;;  %v15085_v2 = vpop.f32.mrf.mxu0 }
 0x503   : > { %v9669_v13 = vadd.f32 %v15023_v35, %v9633_v51 }
 0x505   : > { %v9701_v63 = vmax.f32 %v9669_v13, 0.0 }
 0x506   : > { %v9522_v55 = vpop.f32.mrf.mxu1  ;;  %v9763_v18 = vld [vmem:[#allocation4] ss:$2 sm:$0xff]  ;;  %v9779_v6 = vld [vmem:[#allocation4 + $0x1] ss:$2 sm:$0xff] }
 0x507   : > { %9733 = vst.msk [vmem:[#allocation4 + $0x10] sm:$0xff] %vm5993_vm9, %v9701_v63  ;;  %v9598_v19 = vadd.f32 %v9522_v55, %v9172_v34  ;;  %v9826_v63 = vmax.f32 %v9763_v18, %v9779_v6 }
 0x509   : > { %v9634_v16 = vmul.f32 %v15018_v58, %v9598_v19  ;;  %v15077_v19 = vpop.f32.mrf.mxu3 }
 0x50b   : > { %v9670_v50 = vadd.f32 %v15023_v35, %v9634_v16 }
 0x50d   : > { %v9702_v54 = vmax.f32 %v9670_v50, 0.0 }
 0x50e   : > { %v9525_v31 = vpop.f32.mrf.mxu1 }
 0x50f   : > { %9734 = vst.msk [vmem:[#allocation4 + $0x18] sm:$0xff] %vm5993_vm9, %v9702_v54  ;;  %v9599_v29 = vadd.f32 %v9525_v31, %v9173_v20  ;;  %v15088_v20 = vpop.f32.mrf.mxu2 }
 0x511   : > { %v9635_v7 = vmul.f32 %v15018_v58, %v9599_v29  ;;  %10923 = vmatmul.msk.bf16.gmra.mxu1 %vm5993_vm9, %v15550_v52  ;;  %v9175_v29 = vadd.f32 %v14958_v41, %v14877_v25  ;;  %v15098_v18 = vpop.f32.mrf.mxu3  ;;  %v9176_v25 = vadd.f32 %v14976_v22, %v14891_v30 }
 0x513   : > { %v9671_v48 = vadd.f32 %v15023_v35, %v9635_v7 }
 0x515   : > { %v9703_v57 = vmax.f32 %v9671_v48, 0.0 }
 0x516   : > { %v9795_v51 = vld [vmem:[#allocation4 + $0x10] ss:$2 sm:$0xff]  ;;  %v9811_v47 = vld [vmem:[#allocation4 + $0x11] ss:$2 sm:$0xff]  ;;  %v9527_v13 = vpop.f32.mrf.mxu1 }
 0x517   : > { %v9834_v34 = vmax.f32 %v9795_v51, %v9811_v47  ;;  %9735 = vst.msk [vmem:[#allocation4 + $0x20] sm:$0xff] %vm5993_vm9, %v9703_v57  ;;  %v9600_v55 = vadd.f32 %v9527_v13, %v9174_v53  ;;  %v8180_v57 = vadd.f32 %v15029_v38, %v14613_v43  ;;  %v15103_v53 = vpop.f32.mrf.mxu0  ;;  %v15107_v41 = vpop.f32.mrf.mxu2  ;;  %v15551_v43 = vld [vmem:[#allocation12_spill] sm:$0xff] }
 0x518   : > { %v8181_v38 = vadd.f32 %v15042_v21, %v15551_v43 }
 0x519   : > { %v9842_v16 = vmax.f32 %v9826_v63, %v9834_v34  ;;  %v9636_v50 = vmul.f32 %v15018_v58, %v9600_v55  ;;  %v15113_v55 = vpop.f32.mrf.mxu3 }
 0x51b   : > { %v9850_v23 = vpack.c.bf16 %v9842_v16, %v9842_v16  ;;  %v9672_v54 = vadd.f32 %v15023_v35, %v9636_v50 }
 0x51d   : > { %9858 = vst.msk [vmem:[%s15083_s11] sm:$0xf] %vm402_vm1, %v9850_v23  ;;  %v9704_v31 = vmax.f32 %v9672_v54, 0.0 }
 0x51e   : > { %v9530_v7 = vpop.f32.mrf.mxu1 }
 0x51f   : > { %9736 = vst.msk [vmem:[#allocation4 + $0x28] sm:$0xff] %vm5993_vm9, %v9704_v31  ;;  %v9601_v52 = vadd.f32 %v9530_v7, %v9175_v29  ;;  %v15118_v50 = vpop.f32.mrf.mxu0  ;;  %v15121_v54 = vpop.f32.mrf.mxu2 }
 0x521   : > { %v9637_v48 = vmul.f32 %v15018_v58, %v9601_v52  ;;  %10924 = vmatmul.msk.bf16.gmra.mxu1 %vm5993_vm9, %v14646_v3  ;;  %v8495_v3 = vadd.f32 %v15035_v0, %v8180_v57  ;;  %v8496_v0 = vadd.f32 %v15049_v24, %v8181_v38  ;;  %v15131_v57 = vpop.f32.mrf.mxu3 }
 0x523   : > { %v9673_v6 = vadd.f32 %v15023_v35, %v9637_v48  ;;  %v9177_v30 = vadd.f32 %v15038_v61, %v8495_v3  ;;  %v15552_v61 = vld [vmem:[#allocation13_spill] sm:$0xff] }
 0x524   : > { %v8182_v52 = vadd.f32 %v15056_v8, %v15552_v61 }
 0x525   : > { %v9705_v51 = vmax.f32 %v9673_v6, 0.0  ;;  %v9178_v6 = vadd.f32 %v15053_v11, %v8496_v0 }
 0x526   : > { %v9532_v47 = vpop.f32.mrf.mxu1  ;;  %v9765_v29 = vld [vmem:[#allocation4 + $0x20] ss:$2 sm:$0xff]  ;;  %v9781_v7 = vld [vmem:[#allocation4 + $0x21] ss:$2 sm:$0xff]  ;;  %v8497_v3 = vadd.f32 %v15062_v1, %v8182_v52 }
 0x527   : > { %9737 = vst.msk [vmem:[#allocation4 + $0x30] sm:$0xff] %vm5993_vm9, %v9705_v51  ;;  %v9602_v13 = vadd.f32 %v9532_v47, %v9176_v25  ;;  %v9827_v47 = vmax.f32 %v9765_v29, %v9781_v7  ;;  %v15138_v43 = vpop.f32.mrf.mxu2 }
 0x528   : > { %v8187_v60 = vadd.f32 %v15138_v43, %v14844_v17 }
 0x529   : > { %v9638_v63 = vmul.f32 %v15018_v58, %v9602_v13 }
 0x52b   : > { %v9674_v34 = vadd.f32 %v15023_v35, %v9638_v63  ;;  %v15135_v63 = vpop.f32.mrf.mxu0 }
 0x52d   : > { %v9706_v16 = vmax.f32 %v9674_v34, 0.0 }
 0x52e   : > { %v9535_v22 = vpop.f32.mrf.mxu1 }
 0x52f   : > { %9738 = vst.msk [vmem:[#allocation4 + $0x38] sm:$0xff] %vm5993_vm9, %v9706_v16  ;;  %v9603_v23 = vadd.f32 %v9535_v22, %v9177_v30  ;;  %v15553_v16 = vld [vmem:[#allocation28_spill] sm:$0xff]  ;;  %v15156_v61 = vpop.f32.mrf.mxu2 }
 0x530   : > { %v8183_v30 = vadd.f32 %v15070_v56, %v15553_v16  ;;  %v8188_v43 = vadd.f32 %v15156_v61, %v14860_v49 }
 0x531   : > { %v9639_v31 = vmul.f32 %v15018_v58, %v9603_v23  ;;  %10925 = vmatmul.msk.bf16.gmra.mxu1 %vm5993_vm9, %v14757_v44  ;;  %v9179_v23 = vadd.f32 %v15065_v15, %v8497_v3  ;;  %v15554_v15 = vld [vmem:[#allocation10_spill] sm:$0xff] }
 0x532   : > { %v8184_v52 = vadd.f32 %v15088_v20, %v15554_v15 }
 0x533   : > { %v9675_v21 = vadd.f32 %v15023_v35, %v9639_v31  ;;  %v15147_v31 = vpop.f32.mrf.mxu3  ;;  %v15153_v7 = vpop.f32.mrf.mxu0 }
 0x535   : > { %v9707_v48 = vmax.f32 %v9675_v21, 0.0  ;;  %v8498_v21 = vadd.f32 %v15077_v19, %v8183_v30 }
 0x536   : > { %v9797_v51 = vld [vmem:[#allocation4 + $0x30] ss:$2 sm:$0xff]  ;;  %v9813_v24 = vld [vmem:[#allocation4 + $0x31] ss:$2 sm:$0xff]  ;;  %v9537_v25 = vpop.f32.mrf.mxu1 }
 0x537   : > { %v9835_v13 = vmax.f32 %v9797_v51, %v9813_v24  ;;  %9739 = vst.msk [vmem:[#allocation4 + $0x40] sm:$0xff] %vm5993_vm9, %v9707_v48  ;;  %v9604_v44 = vadd.f32 %v9537_v25, %v9178_v6  ;;  %v9180_v6 = vadd.f32 %v15085_v2, %v8498_v21  ;;  %v8499_v24 = vadd.f32 %v15098_v18, %v8184_v52 }
 0x539   : > { %v9843_v34 = vmax.f32 %v9827_v47, %v9835_v13  ;;  %v9640_v8 = vmul.f32 %v15018_v58, %v9604_v44  ;;  %v15555_v13 = vld [vmem:[#allocation14_spill] sm:$0xff]  ;;  %v9181_v2 = vadd.f32 %v15103_v53, %v8499_v24  ;;  %v9375_v53 = vrot.slane %v14960_v59, 5 }
 0x53a   : > { %v8185_v44 = vadd.f32 %v15107_v41, %v15555_v13 }
 0x53b   : > { %v9851_v11 = vpack.c.bf16 %v9843_v34, %v9843_v34  ;;  %v9676_v38 = vadd.f32 %v15023_v35, %v9640_v8  ;;  %v15164_v25 = vpop.f32.mrf.mxu3  ;;  %v15169_v3 = vpop.f32.mrf.mxu0 }
 0x53c   : > { %v15172_v34 = vpop.f32.mrf.mxu2  ;;  %v8500_v16 = vadd.f32 %v15113_v55, %v8185_v44 }
 0x53d   : > { %9859 = vst.msk [vmem:[%s15083_s11 + $0x4] sm:$0xf] %vm402_vm1, %v9851_v11  ;;  %v9708_v22 = vmax.f32 %v9676_v38, 0.0  ;;  %v9372_v11 = vrot.slane %v14945_v26, 5  ;;  %v9216_v38 = vld [vmem:[#allocation3 + $0xcc] sm:$0xe]  ;;  %v8186_v26 = vadd.f32 %v15121_v54, %v14830_v5 }
 0x53e   : > { %v9540_v0 = vpop.f32.mrf.mxu1  ;;  %v10888_v41 = vrot.slane %v9216_v38, 9  ;;  %v9182_v55 = vadd.f32 %v15118_v50, %v8500_v16  ;;  %v8502_v38 = vadd.f32 %v15147_v31, %v8187_v60  ;;  %v8503_v31 = vadd.f32 %v15164_v25, %v8188_v43 }
 0x53f   : > { %9740 = vst.msk [vmem:[#allocation4 + $0x48] sm:$0xff] %vm5993_vm9, %v9708_v22  ;;  %v9605_v1 = vadd.f32 %v9540_v0, %v9179_v23  ;;  %v9374_v22 = vrot.slane %v9372_v11, 4  ;;  %v8501_v54 = vadd.f32 %v15131_v57, %v8186_v26 }
 0x540   : > { %v9185_v61 = vadd.f32 %v15169_v3, %v8503_v31 }
 0x541   : > { %v9641_v29 = vmul.f32 %v15018_v58, %v9605_v1  ;;  %10926 = vmatmul.msk.bf16.gmra.mxu1 %vm5993_vm9, %v14783_v45  ;;  %v9376_v59 = vsel %vm11652_vm0, %v9374_v22, %v9375_v53  ;;  %v9184_v22 = vadd.f32 %v15153_v7, %v8502_v38 }
 0x543   : > { %v9677_v56 = vadd.f32 %v15023_v35, %v9641_v29  ;;  %v8449_v0 = vpop.f32.mrf.mxu3 }
 0x545   : > { %v9709_v48 = vmax.f32 %v9677_v56, 0.0 }
 0x546   : > { %v9542_v51 = vpop.f32.mrf.mxu1  ;;  %v9767_v1 = vld [vmem:[#allocation4 + $0x40] ss:$2 sm:$0xff]  ;;  %v9783_v21 = vld [vmem:[#allocation4 + $0x41] ss:$2 sm:$0xff] }
 0x547   : > { %9741 = vst.msk [vmem:[#allocation4 + $0x50] sm:$0xff] %vm5993_vm9, %v9709_v48  ;;  %v9606_v19 = vadd.f32 %v9542_v51, %v9180_v6  ;;  %v9131_v48 = vpop.f32.mrf.mxu0  ;;  %v9828_v6 = vmax.f32 %v9767_v1, %v9783_v21 }
 0x549   : > { %v9642_v45 = vmul.f32 %v15018_v58, %v9606_v19  ;;  %v8137_v19 = vpop.f32.mrf.mxu2 }
 0x54b   : > { %v9678_v47 = vadd.f32 %v15023_v35, %v9642_v45 }
 0x54d   : > { %v9710_v20 = vmax.f32 %v9678_v47, 0.0  ;;  %v9417_v47 = vunpack.c.l.b16 %v9376_v59 }
 0x54e   : > { %v9545_v8 = vpop.f32.mrf.mxu1 }
 0x54f   : > { %9742 = vst.msk [vmem:[#allocation4 + $0x58] sm:$0xff] %vm5993_vm9, %v9710_v20  ;;  %v9607_v18 = vadd.f32 %v9545_v8, %v9181_v2  ;;  %v9183_v2 = vadd.f32 %v15135_v63, %v8501_v54  ;;  %v9134_v16 = vpop.f32.mrf.mxu0 }
 0x551   : > { %v9643_v30 = vmul.f32 %v15018_v58, %v9607_v18  ;;  %10927 = vmatmul.msk.bf16.gmra.mxu1 %vm5993_vm9, %v14827_v39  ;;  %v9373_v39 = vsel %vm11652_vm0, %v10888_v41, %v9372_v11  ;;  %v8452_v11 = vpop.f32.mrf.mxu3  ;;  %v8139_v41 = vpop.f32.mrf.mxu2 }
 0x552   : > { %v9416_v45 = vunpack.c.l.b16 %v9373_v39 }
 0x553   : > { %v9679_v23 = vadd.f32 %v15023_v35, %v9643_v30 }
 0x554   : > { %v9433_v8 = vpack.c.b16 %v9417_v47, %v9416_v45 }
 0x555   : > { %v9711_v29 = vmax.f32 %v9679_v23, 0.0 }
 0x556   : > { %v9799_v56 = vld [vmem:[#allocation4 + $0x50] ss:$2 sm:$0xff]  ;;  %v9815_v15 = vld [vmem:[#allocation4 + $0x51] ss:$2 sm:$0xff]  ;;  %v9547_v52 = vpop.f32.mrf.mxu1 }
 0x557   : > { %v9836_v51 = vmax.f32 %v9799_v56, %v9815_v15  ;;  %9743 = vst.msk [vmem:[#allocation4 + $0x60] sm:$0xff] %vm5993_vm9, %v9711_v29  ;;  %v9608_v5 = vadd.f32 %v9547_v52, %v9182_v55  ;;  %v9136_v21 = vpop.f32.mrf.mxu0  ;;  %v8189_v56 = vadd.f32 %v15172_v34, %v14873_v4 }
 0x559   : > { %v9844_v50 = vmax.f32 %v9828_v6, %v9836_v51  ;;  %v9644_v24 = vmul.f32 %v15018_v58, %v9608_v5  ;;  %v8454_v26 = vpop.f32.mrf.mxu3  ;;  %v8142_v55 = vpop.f32.mrf.mxu2  ;;  %v8504_v52 = vadd.f32 %v8449_v0, %v8189_v56  ;;  %v8190_v5 = vadd.f32 %v8137_v19, %v14889_v27 }
 0x55b   : > { %v9852_v13 = vpack.c.bf16 %v9844_v50, %v9844_v50  ;;  %v9680_v44 = vadd.f32 %v15023_v35, %v9644_v24  ;;  %v9186_v4 = vadd.f32 %v9131_v48, %v8504_v52  ;;  %v8191_v48 = vadd.f32 %v8139_v41, %v14903_v9 }
 0x55d   : > { %9860 = vst.msk [vmem:[%s15083_s11 + $0x8] sm:$0xf] %vm402_vm1, %v9852_v13  ;;  %v9712_v20 = vmax.f32 %v9680_v44, 0.0  ;;  %v8505_v44 = vadd.f32 %v8452_v11, %v8190_v5  ;;  %v8506_v11 = vadd.f32 %v8454_v26, %v8191_v48 }
 0x55e   : > { %v9550_v57 = vpop.f32.mrf.mxu1 }
 0x55f   : > { %9744 = vst.msk [vmem:[#allocation4 + $0x68] sm:$0xff] %vm5993_vm9, %v9712_v20  ;;  %v9609_v18 = vadd.f32 %v9550_v57, %v9183_v2  ;;  %v9139_v54 = vpop.f32.mrf.mxu0  ;;  %v9187_v57 = vadd.f32 %v9134_v16, %v8505_v44 }
 0x561   : > { %v9645_v30 = vmul.f32 %v15018_v58, %v9609_v18  ;;  %10928 = vmatmul.msk.bf16.gmra.mxu1 %vm5993_vm9, %v9433_v8  ;;  %v8457_v25 = vpop.f32.mrf.mxu3  ;;  %v8144_v34 = vpop.f32.mrf.mxu2 }
 0x563   : > { %v9681_v17 = vadd.f32 %v15023_v35, %v9645_v30 }
 0x565   : > { %v9713_v63 = vmax.f32 %v9681_v17, 0.0 }
 0x566   : > { %v9552_v53 = vpop.f32.mrf.mxu1  ;;  %v9769_v6 = vld [vmem:[#allocation4 + $0x60] ss:$2 sm:$0xff]  ;;  %v9785_v51 = vld [vmem:[#allocation4 + $0x61] ss:$2 sm:$0xff] }
 0x567   : > { %9745 = vst.msk [vmem:[#allocation4 + $0x70] sm:$0xff] %vm5993_vm9, %v9713_v63  ;;  %v9610_v23 = vadd.f32 %v9552_v53, %v9184_v22  ;;  %v9829_v47 = vmax.f32 %v9769_v6, %v9785_v51  ;;  %v9141_v38 = vpop.f32.mrf.mxu0  ;;  %v8192_v22 = vadd.f32 %v8142_v55, %v14916_v33 }
 0x569   : > { %v9646_v1 = vmul.f32 %v15018_v58, %v9610_v23  ;;  %v8459_v19 = vpop.f32.mrf.mxu3  ;;  %v8147_v17 = vpop.f32.mrf.mxu2  ;;  %v9188_v23 = vadd.f32 %v9136_v21, %v8506_v11  ;;  %v8507_v31 = vadd.f32 %v8457_v25, %v8192_v22 }
 0x56a   : > { %v8194_v5 = vadd.f32 %v8147_v17, %v14939_v12 }
 0x56b   : > { %v9682_v29 = vadd.f32 %v15023_v35, %v9646_v1 }
 0x56d   : > { %v9714_v49 = vmax.f32 %v9682_v29, 0.0 }
 0x56e   : > { %v9555_v7 = vpop.f32.mrf.mxu1 }
 0x56f   : > { %9746 = vst.msk [vmem:[#allocation4 + $0x78] sm:$0xff] %vm5993_vm9, %v9714_v49  ;;  %v9611_v15 = vadd.f32 %v9555_v7, %v9185_v61  ;;  %v9144_v1 = vpop.f32.mrf.mxu0  ;;  %v8193_v49 = vadd.f32 %v8144_v34, %v14928_v10  ;;  %v9189_v7 = vadd.f32 %v9139_v54, %v8507_v31 }
 0x571   : > { %v9647_v39 = vmul.f32 %v15018_v58, %v9611_v15  ;;  %v8462_v9 = vpop.f32.mrf.mxu3  ;;  %v8149_v56 = vpop.f32.mrf.mxu2  ;;  %v8508_v55 = vadd.f32 %v8459_v19, %v8193_v49 }
 0x573   : > { %v9683_v59 = vadd.f32 %v15023_v35, %v9647_v39  ;;  %v9190_v10 = vadd.f32 %v9141_v38, %v8508_v55 }
 0x575   : > { %v9715_v50 = vmax.f32 %v9683_v59, 0.0 }
 0x576   : > { %v9801_v3 = vld [vmem:[#allocation4 + $0x70] ss:$2 sm:$0xff]  ;;  %v9817_v24 = vld [vmem:[#allocation4 + $0x71] ss:$2 sm:$0xff]  ;;  %v9557_v45 = vpop.f32.mrf.mxu1 }
 0x577   : > { %v9837_v13 = vmax.f32 %v9801_v3, %v9817_v24  ;;  %9747 = vst.msk [vmem:[#allocation4 + $0x80] sm:$0xff] %vm5993_vm9, %v9715_v50  ;;  %v9612_v0 = vadd.f32 %v9557_v45, %v9186_v4  ;;  %v9146_v39 = vpop.f32.mrf.mxu0 }
 0x579   : > { %v9845_v60 = vmax.f32 %v9829_v47, %v9837_v13  ;;  %v9648_v20 = vmul.f32 %v15018_v58, %v9612_v0  ;;  %v8464_v21 = vpop.f32.mrf.mxu3  ;;  %v8152_v59 = vpop.f32.mrf.mxu2  ;;  %v8509_v47 = vadd.f32 %v8462_v9, %v8194_v5 }
 0x57a   : > { %v8196_v11 = vadd.f32 %v8152_v59, %v14968_v46 }
 0x57b   : > { %v9853_v2 = vpack.c.bf16 %v9845_v60, %v9845_v60  ;;  %v9684_v27 = vadd.f32 %v15023_v35, %v9648_v20  ;;  %v9191_v19 = vadd.f32 %v9144_v1, %v8509_v47 }
 0x57d   : > { %9861 = vst.msk [vmem:[%s15083_s11 + $0xc] sm:$0xf] %vm402_vm1, %v9853_v2  ;;  %v9716_v8 = vmax.f32 %v9684_v27, 0.0  ;;  %v8195_v2 = vadd.f32 %v8149_v56, %v14956_v32 }
 0x57e   : > { %v9560_v18 = vpop.f32.mrf.mxu1 }
 0x57f   : > { %9748 = vst.msk [vmem:[#allocation4 + $0x88] sm:$0xff] %vm5993_vm9, %v9716_v8  ;;  %v9613_v30 = vadd.f32 %v9560_v18, %v9187_v57  ;;  %v9149_v12 = vpop.f32.mrf.mxu0  ;;  %v8510_v18 = vadd.f32 %v8464_v21, %v8195_v2 }
 0x581   : > { %v9649_v43 = vmul.f32 %v15018_v58, %v9613_v30  ;;  %v8467_v44 = vpop.f32.mrf.mxu3  ;;  %v8154_v48 = vpop.f32.mrf.mxu2 }
 0x582   : > { %v8511_v9 = vadd.f32 %v8467_v44, %v8196_v11  ;;  %v8197_v31 = vadd.f32 %v8154_v48, %v14981_v14 }
 0x583   : > { %v9685_v63 = vadd.f32 %v15023_v35, %v9649_v43 }
 0x585   : > { %v9717_v53 = vmax.f32 %v9685_v63, 0.0  ;;  %v9192_v63 = vadd.f32 %v9146_v39, %v8510_v18 }
 0x586   : > { %v9562_v41 = vpop.f32.mrf.mxu1  ;;  %v9771_v6 = vld [vmem:[#allocation4 + $0x80] ss:$2 sm:$0xff]  ;;  %v9787_v51 = vld [vmem:[#allocation4 + $0x81] ss:$2 sm:$0xff] }
 0x587   : > { %9749 = vst.msk [vmem:[#allocation4 + $0x90] sm:$0xff] %vm5993_vm9, %v9717_v53  ;;  %v9614_v16 = vadd.f32 %v9562_v41, %v9188_v23  ;;  %v9830_v3 = vmax.f32 %v9771_v6, %v9787_v51  ;;  %v9151_v22 = vpop.f32.mrf.mxu0 }
 0x589   : > { %v9650_v29 = vmul.f32 %v15018_v58, %v9614_v16  ;;  %v8469_v17 = vpop.f32.mrf.mxu3  ;;  %v8157_v23 = vpop.f32.mrf.mxu2 }
 0x58b   : > { %v9686_v26 = vadd.f32 %v15023_v35, %v9650_v29  ;;  %v9193_v29 = vadd.f32 %v9149_v12, %v8511_v9 }
 0x58d   : > { %v9718_v61 = vmax.f32 %v9686_v26, 0.0 }
 0x58e   : > { %v9565_v15 = vpop.f32.mrf.mxu1 }
 0x58f   : > { %9750 = vst.msk [vmem:[#allocation4 + $0x98] sm:$0xff] %vm5993_vm9, %v9718_v61  ;;  %v9615_v33 = vadd.f32 %v9565_v15, %v9189_v7  ;;  %v9154_v49 = vpop.f32.mrf.mxu0  ;;  %v8512_v61 = vadd.f32 %v8469_v17, %v8197_v31 }
 0x591   : > { %v9651_v52 = vmul.f32 %v15018_v58, %v9615_v33  ;;  %v8472_v56 = vpop.f32.mrf.mxu3  ;;  %v8159_v15 = vpop.f32.mrf.mxu2  ;;  %v9194_v14 = vadd.f32 %v9151_v22, %v8512_v61 }
 0x592   : > { %v8199_v47 = vadd.f32 %v8159_v15, %v14991_v36 }
 0x593   : > { %v9687_v25 = vadd.f32 %v15023_v35, %v9651_v52  ;;  %v8198_v52 = vadd.f32 %v8157_v23, %v14985_v37 }
 0x595   : > { %v9719_v50 = vmax.f32 %v9687_v25, 0.0 }
 0x596   : > { %v9803_v54 = vld [vmem:[#allocation4 + $0x90] ss:$2 sm:$0xff]  ;;  %v9819_v4 = vld [vmem:[#allocation4 + $0x91] ss:$2 sm:$0xff]  ;;  %v9567_v34 = vpop.f32.mrf.mxu1 }
 0x597   : > { %v9838_v24 = vmax.f32 %v9803_v54, %v9819_v4  ;;  %9751 = vst.msk [vmem:[#allocation4 + $0xa0] sm:$0xff] %vm5993_vm9, %v9719_v50  ;;  %v9616_v45 = vadd.f32 %v9567_v34, %v9190_v10  ;;  %v8513_v54 = vadd.f32 %v8472_v56, %v8198_v52 }
 0x599   : > { %v9846_v13 = vmax.f32 %v9830_v3, %v9838_v24  ;;  %v9652_v0 = vmul.f32 %v15018_v58, %v9616_v45  ;;  %v8474_v10 = vpop.f32.mrf.mxu3  ;;  %v9156_v3 = vpop.f32.mrf.mxu0 }
 0x59a   : > { %v8162_v45 = vpop.f32.mrf.mxu2 }
 0x59b   : > { %v9854_v60 = vpack.c.bf16 %v9846_v13, %v9846_v13  ;;  %v9688_v20 = vadd.f32 %v15023_v35, %v9652_v0  ;;  %v9195_v0 = vadd.f32 %v9154_v49, %v8513_v54  ;;  %v8200_v48 = vadd.f32 %v8162_v45, %v14995_v40 }
 0x59d   : > { %9862 = vst.msk [vmem:[%s15083_s11 + $0x10] sm:$0xf] %vm402_vm1, %v9854_v60  ;;  %v9720_v27 = vmax.f32 %v9688_v20, 0.0  ;;  %v8514_v20 = vadd.f32 %v8474_v10, %v8199_v47 }
 0x59e   : > { %v9570_v8 = vpop.f32.mrf.mxu1 }
 0x59f   : > { %9752 = vst.msk [vmem:[#allocation4 + $0xa8] sm:$0xff] %vm5993_vm9, %v9720_v27  ;;  %v9617_v57 = vadd.f32 %v9570_v8, %v9191_v19 }
 0x5a1   : > { %v9653_v38 = vmul.f32 %v15018_v58, %v9617_v57  ;;  %v8477_v2 = vpop.f32.mrf.mxu3  ;;  %v9159_v19 = vpop.f32.mrf.mxu0  ;;  %v9196_v57 = vadd.f32 %v9156_v3, %v8514_v20 }
 0x5a2   : > { %v8164_v36 = vpop.f32.mrf.mxu2 }
 0x5a3   : > { %v9689_v30 = vadd.f32 %v15023_v35, %v9653_v38 }
 0x5a5   : > { %v9721_v43 = vmax.f32 %v9689_v30, 0.0  ;;  %v8515_v30 = vadd.f32 %v8477_v2, %v8200_v48 }
 0x5a6   : > { %v9572_v32 = vpop.f32.mrf.mxu1  ;;  %v9773_v21 = vld [vmem:[#allocation4 + $0xa0] ss:$2 sm:$0xff]  ;;  %v9789_v55 = vld [vmem:[#allocation4 + $0xa1] ss:$2 sm:$0xff] }
 0x5a7   : > { %9753 = vst.msk [vmem:[#allocation4 + $0xb0] sm:$0xff] %vm5993_vm9, %v9721_v43  ;;  %v9618_v53 = vadd.f32 %v9572_v32, %v9192_v63  ;;  %v9831_v51 = vmax.f32 %v9773_v21, %v9789_v55  ;;  %v8201_v63 = vadd.f32 %v8164_v36, %v15001_v62  ;;  %v9197_v22 = vadd.f32 %v9159_v19, %v8515_v30 }
 0x5a9   : > { %v9654_v41 = vmul.f32 %v15018_v58, %v9618_v53  ;;  %v8479_v43 = vpop.f32.mrf.mxu3  ;;  %v9161_v23 = vpop.f32.mrf.mxu0 }
 0x5aa   : > { %v8167_v9 = vpop.f32.mrf.mxu2 }
 0x5ab   : > { %v9690_v16 = vadd.f32 %v15023_v35, %v9654_v41  ;;  %v8516_v41 = vadd.f32 %v8479_v43, %v8201_v63 }
 0x5ad   : > { %v9722_v1 = vmax.f32 %v9690_v16, 0.0  ;;  %v9198_v62 = vadd.f32 %v9161_v23, %v8516_v41 }
 0x5ae   : > { %v9575_v26 = vpop.f32.mrf.mxu1 }
 0x5af   : > { %9754 = vst.msk [vmem:[#allocation4 + $0xb8] sm:$0xff] %vm5993_vm9, %v9722_v1  ;;  %v9619_v46 = vadd.f32 %v9575_v26, %v9193_v29  ;;  %v8202_v26 = vadd.f32 %v8167_v9, %v15005_v42 }
 0x5b1   : > { %v9655_v7 = vmul.f32 %v15018_v58, %v9619_v46  ;;  %v8482_v1 = vpop.f32.mrf.mxu3  ;;  %v9164_v55 = vpop.f32.mrf.mxu0 }
 0x5b2   : > { %v8517_v52 = vadd.f32 %v8482_v1, %v8202_v26 }
 0x5b3   : > { %v9691_v33 = vadd.f32 %v15023_v35, %v9655_v7 }
 0x5b5   : > { %v9723_v39 = vmax.f32 %v9691_v33, 0.0 }
 0x5b6   : > { %v9805_v25 = vld [vmem:[#allocation4 + $0xb0] ss:$2 sm:$0xff]  ;;  %v9821_v59 = vld [vmem:[#allocation4 + $0xb1] ss:$2 sm:$0xff]  ;;  %v9577_v6 = vpop.f32.mrf.mxu1 }
 0x5b7   : > { %v9839_v5 = vmax.f32 %v9805_v25, %v9821_v59  ;;  %9755 = vst.msk [vmem:[#allocation4 + $0xc0] sm:$0xff] %vm5993_vm9, %v9723_v39  ;;  %v9620_v50 = vadd.f32 %v9577_v6, %v9194_v14  ;;  %v8169_v25 = vpop.f32.mrf.mxu2  ;;  %v9199_v6 = vadd.f32 %v9164_v55, %v8517_v52 }
 0x5b9   : > { %v9847_v4 = vmax.f32 %v9831_v51, %v9839_v5  ;;  %v9656_v34 = vmul.f32 %v15018_v58, %v9620_v50  ;;  %v8203_v51 = vadd.f32 %v8169_v25, %v15011_v28  ;;  %v8484_v50 = vpop.f32.mrf.mxu3  ;;  %v9166_v3 = vpop.f32.mrf.mxu0 }
 0x5bb   : > { %v9855_v24 = vpack.c.bf16 %v9847_v4, %v9847_v4  ;;  %v9692_v37 = vadd.f32 %v15023_v35, %v9656_v34  ;;  %v8518_v4 = vadd.f32 %v8484_v50, %v8203_v51 }
 0x5bd   : > { %9863 = vst.msk [vmem:[%s15083_s11 + $0x14] sm:$0xf] %vm402_vm1, %v9855_v24  ;;  %v9724_v13 = vmax.f32 %v9692_v37, 0.0  ;;  %v9200_v37 = vadd.f32 %v9166_v3, %v8518_v4 }
 0x5be   : > { %v9580_v44 = vpop.f32.mrf.mxu1 }
 0x5bf   : > { %9756 = vst.msk [vmem:[#allocation4 + $0xc8] sm:$0xff] %vm5993_vm9, %v9724_v13  ;;  %v9621_v60 = vadd.f32 %v9580_v44, %v9195_v0 }
 0x5c1   : > { %v9657_v12 = vmul.f32 %v15018_v58, %v9621_v60 }
 0x5c3   : > { %v9693_v27 = vadd.f32 %v15023_v35, %v9657_v12 }
 0x5c5   : > { %v9725_v8 = vmax.f32 %v9693_v27, 0.0 }
 0x5c6   : > { %v9582_v18 = vpop.f32.mrf.mxu1  ;;  %v9775_v29 = vld [vmem:[#allocation4 + $0xc0] ss:$2 sm:$0xff]  ;;  %v9791_v56 = vld [vmem:[#allocation4 + $0xc1] ss:$2 sm:$0xff] }
 0x5c7   : > { %9757 = vst.msk [vmem:[#allocation4 + $0xd0] sm:$0xff] %vm5993_vm9, %v9725_v8  ;;  %v9622_v38 = vadd.f32 %v9582_v18, %v9196_v57  ;;  %v9832_v15 = vmax.f32 %v9775_v29, %v9791_v56 }
 0x5c9   : > { %v9658_v17 = vmul.f32 %v15018_v58, %v9622_v38 }
 0x5cb   : > { %v9694_v11 = vadd.f32 %v15023_v35, %v9658_v17 }
 0x5cd   : > { %v9726_v32 = vmax.f32 %v9694_v11, 0.0 }
 0x5ce   : > { %v9585_v53 = vpop.f32.mrf.mxu1 }
 0x5cf   : > { %9758 = vst.msk [vmem:[#allocation4 + $0xd8] sm:$0xff] %vm5993_vm9, %v9726_v32  ;;  %v9623_v40 = vadd.f32 %v9585_v53, %v9197_v22 }
 0x5d1   : > { %v9659_v16 = vmul.f32 %v15018_v58, %v9623_v40 }
 0x5d3   : > { %v9695_v31 = vadd.f32 %v15023_v35, %v9659_v16 }
 0x5d5   : > { %v9727_v46 = vmax.f32 %v9695_v31, 0.0 }
 0x5d6   : > { %v9807_v49 = vld [vmem:[#allocation4 + $0xd0] ss:$2 sm:$0xff]  ;;  %v9823_v61 = vld [vmem:[#allocation4 + $0xd1] ss:$2 sm:$0xff]  ;;  %v9587_v7 = vpop.f32.mrf.mxu1 }
 0x5d7   : > { %v9840_v33 = vmax.f32 %v9807_v49, %v9823_v61  ;;  %9759 = vst.msk [vmem:[#allocation4 + $0xe0] sm:$0xff] %vm5993_vm9, %v9727_v46  ;;  %v9624_v21 = vadd.f32 %v9587_v7, %v9198_v62 }
 0x5d9   : > { %v9848_v39 = vmax.f32 %v9832_v15, %v9840_v33  ;;  %v9660_v14 = vmul.f32 %v15018_v58, %v9624_v21 }
 0x5db   : > { %v9856_v59 = vpack.c.bf16 %v9848_v39, %v9848_v39  ;;  %v9696_v42 = vadd.f32 %v15023_v35, %v9660_v14 }
 0x5dd   : > { %9864 = vst.msk [vmem:[%s15083_s11 + $0x18] sm:$0xf] %vm402_vm1, %v9856_v59  ;;  %v9728_v5 = vmax.f32 %v9696_v42, 0.0 }
 0x5de   : > { %v9590_v10 = vpop.f32.mrf.mxu1 }
 0x5df   : > { %9760 = vst.msk [vmem:[#allocation4 + $0xe8] sm:$0xff] %vm5993_vm9, %v9728_v5  ;;  %v9625_v54 = vadd.f32 %v9590_v10, %v9199_v6 }
 0x5e1   : > { %v9661_v34 = vmul.f32 %v15018_v58, %v9625_v54 }
 0x5e3   : > { %v9697_v24 = vadd.f32 %v15023_v35, %v9661_v34 }
 0x5e5   : > { %v9729_v45 = vmax.f32 %v9697_v24, 0.0 }
 0x5e6   : > { %v9592_v47 = vpop.f32.mrf.mxu1  ;;  %v9777_v60 = vld [vmem:[#allocation4 + $0xe0] ss:$2 sm:$0xff]  ;;  %v9793_v20 = vld [vmem:[#allocation4 + $0xe1] ss:$2 sm:$0xff] }
 0x5e7   : > { %9761 = vst.msk [vmem:[#allocation4 + $0xf0] sm:$0xff] %vm5993_vm9, %v9729_v45  ;;  %v9626_v28 = vadd.f32 %v9592_v47, %v9200_v37  ;;  %v9833_v27 = vmax.f32 %v9777_v60, %v9793_v20 }
 0x5e9   : > { %v9662_v13 = vmul.f32 %v15018_v58, %v9626_v28 }
 0x5eb   : > { %v9698_v0 = vadd.f32 %v15023_v35, %v9662_v13 }
 0x5ed   : > { %v9730_v44 = vmax.f32 %v9698_v0, 0.0 }
 0x5ef   : > { %9762 = vst.msk [vmem:[#allocation4 + $0xf8] sm:$0xff] %vm5993_vm9, %v9730_v44 }
 0x5f6   : > { %v9809_v12 = vld [vmem:[#allocation4 + $0xf0] ss:$2 sm:$0xff]  ;;  %v9825_v2 = vld [vmem:[#allocation4 + $0xf1] ss:$2 sm:$0xff] }
 0x5f7   : > { %v9841_v19 = vmax.f32 %v9809_v12, %v9825_v2 }
 0x5f9   : > { %v9849_v48 = vmax.f32 %v9833_v27, %v9841_v19 }
 0x5fb   : > { %v9857_v8 = vpack.c.bf16 %v9849_v48, %v9849_v48 }
 0x5fd   : > { %9865 = vst.msk [vmem:[%s15083_s11 + $0x1c] sm:$0xf] %vm402_vm1, %v9857_v8 }
 0x5fe PF: > { %s17_s24 = sadd.s32 1, %s11120_s24  }
 0x5ff   : > { %p14_p4 = scmp.ge.s32.totalorder %s17_s24, 6  }
 0x601   :  { %16 = sbr.rel (!%p14_p4) target bundleno = 1 (0x1), region = 131 }

</bundles_post_ra>
